<compile_context>
chip_gen: v6e
topology: v6e:2x2x1
jax: 0.10.0
libtpu: 0.0.40
codegen_flags: <defaults>
</compile_context>

<pallas_src>
import functools

import jax
import jax.numpy as jnp
from jax import lax
from jax.experimental import pallas as pl
from jax.experimental.pallas import tpu as pltpu


# ------------------------------- Pallas kernel ------------------------------ #

def _enhance_kernel(xpad_ref, w1_ref, w2_ref, w3_ref,
                    gamma_ref, beta_ref, alpha_ref, out_ref, *, eps):
    n, c_dim, hp, wp = xpad_ref.shape          # hp = H + 12, wp = W + 12 (pad 6)
    _, _, h, w = out_ref.shape
    he, we = h + 4, w + 4                      # conv1 evaluated on an extended domain

    # conv2 zero-pads conv1's HxW output by 2 -> mask the extended-domain values
    # that fall outside conv1's true output.
    rows = lax.broadcasted_iota(jnp.int32, (he, we), 0)
    cols = lax.broadcasted_iota(jnp.int32, (he, we), 1)
    interior = ((rows >= 2) & (rows < h + 2) &
                (cols >= 2) & (cols < w + 2))[None, :, :]

    # ---- depthwise 5x5(dil2) -> depthwise 3x3(dil2) -> 1x1 conv, fused ------
    y3 = [None] * c_dim                        # pre-BN activations per out-channel
    for c in range(c_dim):
        xc = xpad_ref[:, c, :, :]              # (N, H+12, W+12)

        # depthwise conv1: k=5, dilation=2, padding=4 (on the extended domain)
        y1 = jnp.zeros((n, he, we), jnp.float32)
        for di in range(5):
            for dj in range(5):
                tap = xc[:, 2 * di:2 * di + he, 2 * dj:2 * dj + we]
                y1 = y1 + tap * w1_ref[c, di * 5 + dj]
        y1 = jnp.where(interior, y1, 0.0)      # == zero-pad conv1's output by 2

        # depthwise conv2: k=3, dilation=2, padding=2
        y2 = jnp.zeros((n, h, w), jnp.float32)
        for di in range(3):
            for dj in range(3):
                tap = y1[:, 2 * di:2 * di + h, 2 * dj:2 * dj + w]
                y2 = y2 + tap * w2_ref[c, di * 3 + dj]

        # pointwise 1x1 conv: accumulate this input channel into every out-channel
        for d in range(c_dim):
            contrib = y2 * w3_ref[d, c]
            y3[d] = contrib if c == 0 else y3[d] + contrib

    # ---- BatchNorm (training-mode batch stats) + PReLU + residual -----------
    inv_m = 1.0 / float(n * h * w)
    alpha = alpha_ref[0]
    for d in range(c_dim):
        yd = y3[d]
        s = jnp.sum(yd)
        sq = jnp.sum(yd * yd)
        mean = s * inv_m
        var = jnp.maximum(sq * inv_m - mean * mean, 0.0)   # clamp f32 cancellation
        inv_std = lax.rsqrt(var + eps)                     # EUP
        scale = gamma_ref[d] * inv_std
        shift = beta_ref[d] - mean * scale
        ybn = yd * scale + shift
        yact = jnp.where(ybn >= 0.0, ybn, alpha * ybn)     # PReLU (shared slope)
        res = xpad_ref[:, d, :, :][:, 6:6 + h, 6:6 + w]    # original (un-padded) x
        out_ref[:, d, :, :] = res + yact


# -------------------------------- JAX wrapper ------------------------------- #

@functools.partial(jax.jit, static_argnames=("eps",))
def enhance_residual(x, w_dw5, w_dw3, w_pw, gamma, beta, alpha, *, eps=1e-5):
    """Forward of EnhanceResidualModule. x: (N, C, H, W); weights in PyTorch layout."""
    n, c, h, w = x.shape
    x = x.astype(jnp.float32)
    # pad=6 = 4 (conv1 padding) + 2 (conv2's margin on the extended domain)
    xpad = jnp.pad(x, ((0, 0), (0, 0), (6, 6), (6, 6)))

    w1 = w_dw5.reshape(c, 25).astype(jnp.float32)      # (C,1,5,5) -> (C,25)
    w2 = w_dw3.reshape(c, 9).astype(jnp.float32)       # (C,1,3,3) -> (C,9)
    w3 = w_pw.reshape(c, c).astype(jnp.float32)        # (C,C,1,1) -> (C,C)
    alpha_arr = jnp.asarray(alpha, dtype=jnp.float32).reshape((1,))

    smem = pl.BlockSpec(memory_space=pltpu.MemorySpace.SMEM)
    vmem = pl.BlockSpec(memory_space=pltpu.MemorySpace.VMEM)

    out = pl.pallas_call(
        functools.partial(_enhance_kernel, eps=eps),
        out_shape=jax.ShapeDtypeStruct((n, c, h, w), jnp.float32),
        in_specs=[vmem, smem, smem, smem, smem, smem, smem],
        out_specs=vmem,
    )(xpad, w1, w2, w3,
      gamma.astype(jnp.float32), beta.astype(jnp.float32), alpha_arr)
    return out


# --------------------------------- reference -------------------------------- #

def _reference(x, w_dw5, w_dw3, w_pw, gamma, beta, alpha, eps=1e-5):
    c = x.shape[1]
    dn = ("NCHW", "OIHW", "NCHW")
    y = lax.conv_general_dilated(x, w_dw5, (1, 1), [(4, 4), (4, 4)],
                                 rhs_dilation=(2, 2), dimension_numbers=dn,
                                 feature_group_count=c)
    y = lax.conv_general_dilated(y, w_dw3, (1, 1), [(2, 2), (2, 2)],
                                 rhs_dilation=(2, 2), dimension_numbers=dn,
                                 feature_group_count=c)
    y = lax.conv_general_dilated(y, w_pw, (1, 1), [(0, 0), (0, 0)],
                                 dimension_numbers=dn)
    mean = y.mean(axis=(0, 2, 3), keepdims=True)
    var = y.var(axis=(0, 2, 3), keepdims=True)          # biased, BN training mode
    yhat = (y - mean) * lax.rsqrt(var + eps)
    yhat = yhat * gamma.reshape(1, -1, 1, 1) + beta.reshape(1, -1, 1, 1)
    act = jnp.where(yhat >= 0, yhat, alpha * yhat)      # PReLU
    return x + act


# ------------------------------------ main ----------------------------------- #

if __name__ == "__main__":
    N, C, H, W = 2, 4, 16, 16
    key = jax.random.PRNGKey(0)
    k1, k2, k3, k4, k5, k6 = jax.random.split(key, 6)
    x = jax.random.normal(k1, (N, C, H, W), dtype=jnp.float32)
    w_dw5 = jax.random.normal(k2, (C, 1, 5, 5), dtype=jnp.float32) * 0.2   # groups=C
    w_dw3 = jax.random.normal(k3, (C, 1, 3, 3), dtype=jnp.float32) * 0.2   # groups=C
    w_pw = jax.random.normal(k4, (C, C, 1, 1), dtype=jnp.float32) * 0.3    # 1x1 conv
    gamma = 1.0 + 0.1 * jax.random.normal(k5, (C,), dtype=jnp.float32)     # BN weight
    beta = 0.1 * jax.random.normal(k6, (C,), dtype=jnp.float32)            # BN bias
    alpha = 0.25                                                           # nn.PReLU() default

    out = enhance_residual(x, w_dw5, w_dw3, w_pw, gamma, beta, alpha)
    out = jax.block_until_ready(out)

    ref = _reference(x, w_dw5, w_dw3, w_pw, gamma, beta, alpha)
    assert out.shape == ref.shape, (out.shape, ref.shape)
    max_err = float(jnp.max(jnp.abs(out - ref)))
    assert jnp.allclose(out, ref, rtol=1e-3, atol=1e-3), max_err
    print("KERNEL_OK")
</pallas_src>

<mosaic_0001>
module attributes {stable_mosaic.version = 11 : i64} {
  func.func @_enhance_kernel(%arg0: memref<2x4x28x28xf32, #tpu.memory_space<vmem>>, %arg1: memref<4x25xf32, #tpu.memory_space<smem>>, %arg2: memref<4x9xf32, #tpu.memory_space<smem>>, %arg3: memref<4x4xf32, #tpu.memory_space<smem>>, %arg4: memref<4xf32, #tpu.memory_space<smem>>, %arg5: memref<4xf32, #tpu.memory_space<smem>>, %arg6: memref<1xf32, #tpu.memory_space<smem>>, %arg7: memref<2x4x16x16xf32, #tpu.memory_space<vmem>>) attributes {dimension_semantics = [], scalar_prefetch = 0 : i64, scratch_operands = 0 : i64, tpu.core_type = #tpu.core_type<tc>} {
    %0 = tpu.iota {dimensions = array<i32: 0>} : vector<20x20xi32>
    %1 = tpu.iota {dimensions = array<i32: 1>} : vector<20x20xi32>
    %c2_i32 = arith.constant 2 : i32
    %2 = vector.broadcast %c2_i32 : i32 to vector<20x20xi32>
    %3 = arith.cmpi sge, %0, %2 : vector<20x20xi32>
    %c18_i32 = arith.constant 18 : i32
    %4 = vector.broadcast %c18_i32 : i32 to vector<20x20xi32>
    %5 = arith.cmpi slt, %0, %4 : vector<20x20xi32>
    %6 = arith.andi %3, %5 : vector<20x20xi1>
    %c2_i32_0 = arith.constant 2 : i32
    %7 = vector.broadcast %c2_i32_0 : i32 to vector<20x20xi32>
    %8 = arith.cmpi sge, %1, %7 : vector<20x20xi32>
    %9 = arith.andi %6, %8 : vector<20x20xi1>
    %c18_i32_1 = arith.constant 18 : i32
    %10 = vector.broadcast %c18_i32_1 : i32 to vector<20x20xi32>
    %11 = arith.cmpi slt, %1, %10 : vector<20x20xi32>
    %12 = arith.andi %9, %11 : vector<20x20xi1>
    %13 = vector.shape_cast %12 : vector<20x20xi1> to vector<1x20x20xi1>
    %c0 = arith.constant 0 : index
    %c0_2 = arith.constant 0 : index
    %c0_3 = arith.constant 0 : index
    %c0_4 = arith.constant 0 : index
    %14 = vector.load %arg0[%c0, %c0_2, %c0_3, %c0_4] : memref<2x4x28x28xf32, #tpu.memory_space<vmem>>, vector<2x1x28x28xf32>
    %15 = vector.shape_cast %14 : vector<2x1x28x28xf32> to vector<2x28x28xf32>
    %cst = arith.constant 0.000000e+00 : f32
    %16 = vector.broadcast %cst : f32 to vector<2x20x20xf32>
    %17 = vector.extract_strided_slice %15 {offsets = [0, 0, 0], sizes = [2, 20, 20], strides = [1, 1, 1]} : vector<2x28x28xf32> to vector<2x20x20xf32>
    %c0_5 = arith.constant 0 : index
    %c0_6 = arith.constant 0 : index
    %18 = memref.load %arg1[%c0_5, %c0_6] : memref<4x25xf32, #tpu.memory_space<smem>>
    %19 = vector.broadcast %18 : f32 to vector<2x20x20xf32>
    %20 = arith.mulf %17, %19 : vector<2x20x20xf32>
    %21 = arith.addf %16, %20 : vector<2x20x20xf32>
    %22 = vector.extract_strided_slice %15 {offsets = [0, 0, 2], sizes = [2, 20, 20], strides = [1, 1, 1]} : vector<2x28x28xf32> to vector<2x20x20xf32>
    %c0_7 = arith.constant 0 : index
    %c1 = arith.constant 1 : index
    %23 = memref.load %arg1[%c0_7, %c1] : memref<4x25xf32, #tpu.memory_space<smem>>
    %24 = vector.broadcast %23 : f32 to vector<2x20x20xf32>
    %25 = arith.mulf %22, %24 : vector<2x20x20xf32>
    %26 = arith.addf %21, %25 : vector<2x20x20xf32>
    %27 = vector.extract_strided_slice %15 {offsets = [0, 0, 4], sizes = [2, 20, 20], strides = [1, 1, 1]} : vector<2x28x28xf32> to vector<2x20x20xf32>
    %c0_8 = arith.constant 0 : index
    %c2 = arith.constant 2 : index
    %28 = memref.load %arg1[%c0_8, %c2] : memref<4x25xf32, #tpu.memory_space<smem>>
    %29 = vector.broadcast %28 : f32 to vector<2x20x20xf32>
    %30 = arith.mulf %27, %29 : vector<2x20x20xf32>
    %31 = arith.addf %26, %30 : vector<2x20x20xf32>
    %32 = vector.extract_strided_slice %15 {offsets = [0, 0, 6], sizes = [2, 20, 20], strides = [1, 1, 1]} : vector<2x28x28xf32> to vector<2x20x20xf32>
    %c0_9 = arith.constant 0 : index
    %c3 = arith.constant 3 : index
    %33 = memref.load %arg1[%c0_9, %c3] : memref<4x25xf32, #tpu.memory_space<smem>>
    %34 = vector.broadcast %33 : f32 to vector<2x20x20xf32>
    %35 = arith.mulf %32, %34 : vector<2x20x20xf32>
    %36 = arith.addf %31, %35 : vector<2x20x20xf32>
    %37 = vector.extract_strided_slice %15 {offsets = [0, 0, 8], sizes = [2, 20, 20], strides = [1, 1, 1]} : vector<2x28x28xf32> to vector<2x20x20xf32>
    %c0_10 = arith.constant 0 : index
    %c4 = arith.constant 4 : index
    %38 = memref.load %arg1[%c0_10, %c4] : memref<4x25xf32, #tpu.memory_space<smem>>
    %39 = vector.broadcast %38 : f32 to vector<2x20x20xf32>
    %40 = arith.mulf %37, %39 : vector<2x20x20xf32>
    %41 = arith.addf %36, %40 : vector<2x20x20xf32>
    %42 = vector.extract_strided_slice %15 {offsets = [0, 2, 0], sizes = [2, 20, 20], strides = [1, 1, 1]} : vector<2x28x28xf32> to vector<2x20x20xf32>
    %c0_11 = arith.constant 0 : index
    %c5 = arith.constant 5 : index
    %43 = memref.load %arg1[%c0_11, %c5] : memref<4x25xf32, #tpu.memory_space<smem>>
    %44 = vector.broadcast %43 : f32 to vector<2x20x20xf32>
    %45 = arith.mulf %42, %44 : vector<2x20x20xf32>
    %46 = arith.addf %41, %45 : vector<2x20x20xf32>
    %47 = vector.extract_strided_slice %15 {offsets = [0, 2, 2], sizes = [2, 20, 20], strides = [1, 1, 1]} : vector<2x28x28xf32> to vector<2x20x20xf32>
    %c0_12 = arith.constant 0 : index
    %c6 = arith.constant 6 : index
    %48 = memref.load %arg1[%c0_12, %c6] : memref<4x25xf32, #tpu.memory_space<smem>>
    %49 = vector.broadcast %48 : f32 to vector<2x20x20xf32>
    %50 = arith.mulf %47, %49 : vector<2x20x20xf32>
    %51 = arith.addf %46, %50 : vector<2x20x20xf32>
    %52 = vector.extract_strided_slice %15 {offsets = [0, 2, 4], sizes = [2, 20, 20], strides = [1, 1, 1]} : vector<2x28x28xf32> to vector<2x20x20xf32>
    %c0_13 = arith.constant 0 : index
    %c7 = arith.constant 7 : index
    %53 = memref.load %arg1[%c0_13, %c7] : memref<4x25xf32, #tpu.memory_space<smem>>
    %54 = vector.broadcast %53 : f32 to vector<2x20x20xf32>
    %55 = arith.mulf %52, %54 : vector<2x20x20xf32>
    %56 = arith.addf %51, %55 : vector<2x20x20xf32>
    %57 = vector.extract_strided_slice %15 {offsets = [0, 2, 6], sizes = [2, 20, 20], strides = [1, 1, 1]} : vector<2x28x28xf32> to vector<2x20x20xf32>
    %c0_14 = arith.constant 0 : index
    %c8 = arith.constant 8 : index
    %58 = memref.load %arg1[%c0_14, %c8] : memref<4x25xf32, #tpu.memory_space<smem>>
    %59 = vector.broadcast %58 : f32 to vector<2x20x20xf32>
    %60 = arith.mulf %57, %59 : vector<2x20x20xf32>
    %61 = arith.addf %56, %60 : vector<2x20x20xf32>
    %62 = vector.extract_strided_slice %15 {offsets = [0, 2, 8], sizes = [2, 20, 20], strides = [1, 1, 1]} : vector<2x28x28xf32> to vector<2x20x20xf32>
    %c0_15 = arith.constant 0 : index
    %c9 = arith.constant 9 : index
    %63 = memref.load %arg1[%c0_15, %c9] : memref<4x25xf32, #tpu.memory_space<smem>>
    %64 = vector.broadcast %63 : f32 to vector<2x20x20xf32>
    %65 = arith.mulf %62, %64 : vector<2x20x20xf32>
    %66 = arith.addf %61, %65 : vector<2x20x20xf32>
    %67 = vector.extract_strided_slice %15 {offsets = [0, 4, 0], sizes = [2, 20, 20], strides = [1, 1, 1]} : vector<2x28x28xf32> to vector<2x20x20xf32>
    %c0_16 = arith.constant 0 : index
    %c10 = arith.constant 10 : index
    %68 = memref.load %arg1[%c0_16, %c10] : memref<4x25xf32, #tpu.memory_space<smem>>
    %69 = vector.broadcast %68 : f32 to vector<2x20x20xf32>
    %70 = arith.mulf %67, %69 : vector<2x20x20xf32>
    %71 = arith.addf %66, %70 : vector<2x20x20xf32>
    %72 = vector.extract_strided_slice %15 {offsets = [0, 4, 2], sizes = [2, 20, 20], strides = [1, 1, 1]} : vector<2x28x28xf32> to vector<2x20x20xf32>
    %c0_17 = arith.constant 0 : index
    %c11 = arith.constant 11 : index
    %73 = memref.load %arg1[%c0_17, %c11] : memref<4x25xf32, #tpu.memory_space<smem>>
    %74 = vector.broadcast %73 : f32 to vector<2x20x20xf32>
    %75 = arith.mulf %72, %74 : vector<2x20x20xf32>
    %76 = arith.addf %71, %75 : vector<2x20x20xf32>
    %77 = vector.extract_strided_slice %15 {offsets = [0, 4, 4], sizes = [2, 20, 20], strides = [1, 1, 1]} : vector<2x28x28xf32> to vector<2x20x20xf32>
    %c0_18 = arith.constant 0 : index
    %c12 = arith.constant 12 : index
    %78 = memref.load %arg1[%c0_18, %c12] : memref<4x25xf32, #tpu.memory_space<smem>>
    %79 = vector.broadcast %78 : f32 to vector<2x20x20xf32>
    %80 = arith.mulf %77, %79 : vector<2x20x20xf32>
    %81 = arith.addf %76, %80 : vector<2x20x20xf32>
    %82 = vector.extract_strided_slice %15 {offsets = [0, 4, 6], sizes = [2, 20, 20], strides = [1, 1, 1]} : vector<2x28x28xf32> to vector<2x20x20xf32>
    %c0_19 = arith.constant 0 : index
    %c13 = arith.constant 13 : index
    %83 = memref.load %arg1[%c0_19, %c13] : memref<4x25xf32, #tpu.memory_space<smem>>
    %84 = vector.broadcast %83 : f32 to vector<2x20x20xf32>
    %85 = arith.mulf %82, %84 : vector<2x20x20xf32>
    %86 = arith.addf %81, %85 : vector<2x20x20xf32>
    %87 = vector.extract_strided_slice %15 {offsets = [0, 4, 8], sizes = [2, 20, 20], strides = [1, 1, 1]} : vector<2x28x28xf32> to vector<2x20x20xf32>
    %c0_20 = arith.constant 0 : index
    %c14 = arith.constant 14 : index
    %88 = memref.load %arg1[%c0_20, %c14] : memref<4x25xf32, #tpu.memory_space<smem>>
    %89 = vector.broadcast %88 : f32 to vector<2x20x20xf32>
    %90 = arith.mulf %87, %89 : vector<2x20x20xf32>
    %91 = arith.addf %86, %90 : vector<2x20x20xf32>
    %92 = vector.extract_strided_slice %15 {offsets = [0, 6, 0], sizes = [2, 20, 20], strides = [1, 1, 1]} : vector<2x28x28xf32> to vector<2x20x20xf32>
    %c0_21 = arith.constant 0 : index
    %c15 = arith.constant 15 : index
    %93 = memref.load %arg1[%c0_21, %c15] : memref<4x25xf32, #tpu.memory_space<smem>>
    %94 = vector.broadcast %93 : f32 to vector<2x20x20xf32>
    %95 = arith.mulf %92, %94 : vector<2x20x20xf32>
    %96 = arith.addf %91, %95 : vector<2x20x20xf32>
    %97 = vector.extract_strided_slice %15 {offsets = [0, 6, 2], sizes = [2, 20, 20], strides = [1, 1, 1]} : vector<2x28x28xf32> to vector<2x20x20xf32>
    %c0_22 = arith.constant 0 : index
    %c16 = arith.constant 16 : index
    %98 = memref.load %arg1[%c0_22, %c16] : memref<4x25xf32, #tpu.memory_space<smem>>
    %99 = vector.broadcast %98 : f32 to vector<2x20x20xf32>
    %100 = arith.mulf %97, %99 : vector<2x20x20xf32>
    %101 = arith.addf %96, %100 : vector<2x20x20xf32>
    %102 = vector.extract_strided_slice %15 {offsets = [0, 6, 4], sizes = [2, 20, 20], strides = [1, 1, 1]} : vector<2x28x28xf32> to vector<2x20x20xf32>
    %c0_23 = arith.constant 0 : index
    %c17 = arith.constant 17 : index
    %103 = memref.load %arg1[%c0_23, %c17] : memref<4x25xf32, #tpu.memory_space<smem>>
    %104 = vector.broadcast %103 : f32 to vector<2x20x20xf32>
    %105 = arith.mulf %102, %104 : vector<2x20x20xf32>
    %106 = arith.addf %101, %105 : vector<2x20x20xf32>
    %107 = vector.extract_strided_slice %15 {offsets = [0, 6, 6], sizes = [2, 20, 20], strides = [1, 1, 1]} : vector<2x28x28xf32> to vector<2x20x20xf32>
    %c0_24 = arith.constant 0 : index
    %c18 = arith.constant 18 : index
    %108 = memref.load %arg1[%c0_24, %c18] : memref<4x25xf32, #tpu.memory_space<smem>>
    %109 = vector.broadcast %108 : f32 to vector<2x20x20xf32>
    %110 = arith.mulf %107, %109 : vector<2x20x20xf32>
    %111 = arith.addf %106, %110 : vector<2x20x20xf32>
    %112 = vector.extract_strided_slice %15 {offsets = [0, 6, 8], sizes = [2, 20, 20], strides = [1, 1, 1]} : vector<2x28x28xf32> to vector<2x20x20xf32>
    %c0_25 = arith.constant 0 : index
    %c19 = arith.constant 19 : index
    %113 = memref.load %arg1[%c0_25, %c19] : memref<4x25xf32, #tpu.memory_space<smem>>
    %114 = vector.broadcast %113 : f32 to vector<2x20x20xf32>
    %115 = arith.mulf %112, %114 : vector<2x20x20xf32>
    %116 = arith.addf %111, %115 : vector<2x20x20xf32>
    %117 = vector.extract_strided_slice %15 {offsets = [0, 8, 0], sizes = [2, 20, 20], strides = [1, 1, 1]} : vector<2x28x28xf32> to vector<2x20x20xf32>
    %c0_26 = arith.constant 0 : index
    %c20 = arith.constant 20 : index
    %118 = memref.load %arg1[%c0_26, %c20] : memref<4x25xf32, #tpu.memory_space<smem>>
    %119 = vector.broadcast %118 : f32 to vector<2x20x20xf32>
    %120 = arith.mulf %117, %119 : vector<2x20x20xf32>
    %121 = arith.addf %116, %120 : vector<2x20x20xf32>
    %122 = vector.extract_strided_slice %15 {offsets = [0, 8, 2], sizes = [2, 20, 20], strides = [1, 1, 1]} : vector<2x28x28xf32> to vector<2x20x20xf32>
    %c0_27 = arith.constant 0 : index
    %c21 = arith.constant 21 : index
    %123 = memref.load %arg1[%c0_27, %c21] : memref<4x25xf32, #tpu.memory_space<smem>>
    %124 = vector.broadcast %123 : f32 to vector<2x20x20xf32>
    %125 = arith.mulf %122, %124 : vector<2x20x20xf32>
    %126 = arith.addf %121, %125 : vector<2x20x20xf32>
    %127 = vector.extract_strided_slice %15 {offsets = [0, 8, 4], sizes = [2, 20, 20], strides = [1, 1, 1]} : vector<2x28x28xf32> to vector<2x20x20xf32>
    %c0_28 = arith.constant 0 : index
    %c22 = arith.constant 22 : index
    %128 = memref.load %arg1[%c0_28, %c22] : memref<4x25xf32, #tpu.memory_space<smem>>
    %129 = vector.broadcast %128 : f32 to vector<2x20x20xf32>
    %130 = arith.mulf %127, %129 : vector<2x20x20xf32>
    %131 = arith.addf %126, %130 : vector<2x20x20xf32>
    %132 = vector.extract_strided_slice %15 {offsets = [0, 8, 6], sizes = [2, 20, 20], strides = [1, 1, 1]} : vector<2x28x28xf32> to vector<2x20x20xf32>
    %c0_29 = arith.constant 0 : index
    %c23 = arith.constant 23 : index
    %133 = memref.load %arg1[%c0_29, %c23] : memref<4x25xf32, #tpu.memory_space<smem>>
    %134 = vector.broadcast %133 : f32 to vector<2x20x20xf32>
    %135 = arith.mulf %132, %134 : vector<2x20x20xf32>
    %136 = arith.addf %131, %135 : vector<2x20x20xf32>
    %137 = vector.extract_strided_slice %15 {offsets = [0, 8, 8], sizes = [2, 20, 20], strides = [1, 1, 1]} : vector<2x28x28xf32> to vector<2x20x20xf32>
    %c0_30 = arith.constant 0 : index
    %c24 = arith.constant 24 : index
    %138 = memref.load %arg1[%c0_30, %c24] : memref<4x25xf32, #tpu.memory_space<smem>>
    %139 = vector.broadcast %138 : f32 to vector<2x20x20xf32>
    %140 = arith.mulf %137, %139 : vector<2x20x20xf32>
    %141 = arith.addf %136, %140 : vector<2x20x20xf32>
    %cst_31 = arith.constant 0.000000e+00 : f32
    %142 = vector.shape_cast %13 : vector<1x20x20xi1> to vector<1x20x20xi1>
    %143 = vector.broadcast %142 : vector<1x20x20xi1> to vector<2x20x20xi1>
    %144 = vector.broadcast %cst_31 : f32 to vector<2x20x20xf32>
    %145 = arith.select %143, %141, %144 : vector<2x20x20xi1>, vector<2x20x20xf32>
    %cst_32 = arith.constant 0.000000e+00 : f32
    %146 = vector.broadcast %cst_32 : f32 to vector<2x16x16xf32>
    %147 = vector.extract_strided_slice %145 {offsets = [0, 0, 0], sizes = [2, 16, 16], strides = [1, 1, 1]} : vector<2x20x20xf32> to vector<2x16x16xf32>
    %c0_33 = arith.constant 0 : index
    %c0_34 = arith.constant 0 : index
    %148 = memref.load %arg2[%c0_33, %c0_34] : memref<4x9xf32, #tpu.memory_space<smem>>
    %149 = vector.broadcast %148 : f32 to vector<2x16x16xf32>
    %150 = arith.mulf %147, %149 : vector<2x16x16xf32>
    %151 = arith.addf %146, %150 : vector<2x16x16xf32>
    %152 = vector.extract_strided_slice %145 {offsets = [0, 0, 2], sizes = [2, 16, 16], strides = [1, 1, 1]} : vector<2x20x20xf32> to vector<2x16x16xf32>
    %c0_35 = arith.constant 0 : index
    %c1_36 = arith.constant 1 : index
    %153 = memref.load %arg2[%c0_35, %c1_36] : memref<4x9xf32, #tpu.memory_space<smem>>
    %154 = vector.broadcast %153 : f32 to vector<2x16x16xf32>
    %155 = arith.mulf %152, %154 : vector<2x16x16xf32>
    %156 = arith.addf %151, %155 : vector<2x16x16xf32>
    %157 = vector.extract_strided_slice %145 {offsets = [0, 0, 4], sizes = [2, 16, 16], strides = [1, 1, 1]} : vector<2x20x20xf32> to vector<2x16x16xf32>
    %c0_37 = arith.constant 0 : index
    %c2_38 = arith.constant 2 : index
    %158 = memref.load %arg2[%c0_37, %c2_38] : memref<4x9xf32, #tpu.memory_space<smem>>
    %159 = vector.broadcast %158 : f32 to vector<2x16x16xf32>
    %160 = arith.mulf %157, %159 : vector<2x16x16xf32>
    %161 = arith.addf %156, %160 : vector<2x16x16xf32>
    %162 = vector.extract_strided_slice %145 {offsets = [0, 2, 0], sizes = [2, 16, 16], strides = [1, 1, 1]} : vector<2x20x20xf32> to vector<2x16x16xf32>
    %c0_39 = arith.constant 0 : index
    %c3_40 = arith.constant 3 : index
    %163 = memref.load %arg2[%c0_39, %c3_40] : memref<4x9xf32, #tpu.memory_space<smem>>
    %164 = vector.broadcast %163 : f32 to vector<2x16x16xf32>
    %165 = arith.mulf %162, %164 : vector<2x16x16xf32>
    %166 = arith.addf %161, %165 : vector<2x16x16xf32>
    %167 = vector.extract_strided_slice %145 {offsets = [0, 2, 2], sizes = [2, 16, 16], strides = [1, 1, 1]} : vector<2x20x20xf32> to vector<2x16x16xf32>
    %c0_41 = arith.constant 0 : index
    %c4_42 = arith.constant 4 : index
    %168 = memref.load %arg2[%c0_41, %c4_42] : memref<4x9xf32, #tpu.memory_space<smem>>
    %169 = vector.broadcast %168 : f32 to vector<2x16x16xf32>
    %170 = arith.mulf %167, %169 : vector<2x16x16xf32>
    %171 = arith.addf %166, %170 : vector<2x16x16xf32>
    %172 = vector.extract_strided_slice %145 {offsets = [0, 2, 4], sizes = [2, 16, 16], strides = [1, 1, 1]} : vector<2x20x20xf32> to vector<2x16x16xf32>
    %c0_43 = arith.constant 0 : index
    %c5_44 = arith.constant 5 : index
    %173 = memref.load %arg2[%c0_43, %c5_44] : memref<4x9xf32, #tpu.memory_space<smem>>
    %174 = vector.broadcast %173 : f32 to vector<2x16x16xf32>
    %175 = arith.mulf %172, %174 : vector<2x16x16xf32>
    %176 = arith.addf %171, %175 : vector<2x16x16xf32>
    %177 = vector.extract_strided_slice %145 {offsets = [0, 4, 0], sizes = [2, 16, 16], strides = [1, 1, 1]} : vector<2x20x20xf32> to vector<2x16x16xf32>
    %c0_45 = arith.constant 0 : index
    %c6_46 = arith.constant 6 : index
    %178 = memref.load %arg2[%c0_45, %c6_46] : memref<4x9xf32, #tpu.memory_space<smem>>
    %179 = vector.broadcast %178 : f32 to vector<2x16x16xf32>
    %180 = arith.mulf %177, %179 : vector<2x16x16xf32>
    %181 = arith.addf %176, %180 : vector<2x16x16xf32>
    %182 = vector.extract_strided_slice %145 {offsets = [0, 4, 2], sizes = [2, 16, 16], strides = [1, 1, 1]} : vector<2x20x20xf32> to vector<2x16x16xf32>
    %c0_47 = arith.constant 0 : index
    %c7_48 = arith.constant 7 : index
    %183 = memref.load %arg2[%c0_47, %c7_48] : memref<4x9xf32, #tpu.memory_space<smem>>
    %184 = vector.broadcast %183 : f32 to vector<2x16x16xf32>
    %185 = arith.mulf %182, %184 : vector<2x16x16xf32>
    %186 = arith.addf %181, %185 : vector<2x16x16xf32>
    %187 = vector.extract_strided_slice %145 {offsets = [0, 4, 4], sizes = [2, 16, 16], strides = [1, 1, 1]} : vector<2x20x20xf32> to vector<2x16x16xf32>
    %c0_49 = arith.constant 0 : index
    %c8_50 = arith.constant 8 : index
    %188 = memref.load %arg2[%c0_49, %c8_50] : memref<4x9xf32, #tpu.memory_space<smem>>
    %189 = vector.broadcast %188 : f32 to vector<2x16x16xf32>
    %190 = arith.mulf %187, %189 : vector<2x16x16xf32>
    %191 = arith.addf %186, %190 : vector<2x16x16xf32>
    %c0_51 = arith.constant 0 : index
    %c0_52 = arith.constant 0 : index
    %192 = memref.load %arg3[%c0_51, %c0_52] : memref<4x4xf32, #tpu.memory_space<smem>>
    %193 = vector.broadcast %192 : f32 to vector<2x16x16xf32>
    %194 = arith.mulf %191, %193 : vector<2x16x16xf32>
    %c1_53 = arith.constant 1 : index
    %c0_54 = arith.constant 0 : index
    %195 = memref.load %arg3[%c1_53, %c0_54] : memref<4x4xf32, #tpu.memory_space<smem>>
    %196 = vector.broadcast %195 : f32 to vector<2x16x16xf32>
    %197 = arith.mulf %191, %196 : vector<2x16x16xf32>
    %c2_55 = arith.constant 2 : index
    %c0_56 = arith.constant 0 : index
    %198 = memref.load %arg3[%c2_55, %c0_56] : memref<4x4xf32, #tpu.memory_space<smem>>
    %199 = vector.broadcast %198 : f32 to vector<2x16x16xf32>
    %200 = arith.mulf %191, %199 : vector<2x16x16xf32>
    %c3_57 = arith.constant 3 : index
    %c0_58 = arith.constant 0 : index
    %201 = memref.load %arg3[%c3_57, %c0_58] : memref<4x4xf32, #tpu.memory_space<smem>>
    %202 = vector.broadcast %201 : f32 to vector<2x16x16xf32>
    %203 = arith.mulf %191, %202 : vector<2x16x16xf32>
    %c0_59 = arith.constant 0 : index
    %c1_60 = arith.constant 1 : index
    %c0_61 = arith.constant 0 : index
    %c0_62 = arith.constant 0 : index
    %204 = vector.load %arg0[%c0_59, %c1_60, %c0_61, %c0_62] : memref<2x4x28x28xf32, #tpu.memory_space<vmem>>, vector<2x1x28x28xf32>
    %205 = vector.shape_cast %204 : vector<2x1x28x28xf32> to vector<2x28x28xf32>
    %cst_63 = arith.constant 0.000000e+00 : f32
    %206 = vector.broadcast %cst_63 : f32 to vector<2x20x20xf32>
    %207 = vector.extract_strided_slice %205 {offsets = [0, 0, 0], sizes = [2, 20, 20], strides = [1, 1, 1]} : vector<2x28x28xf32> to vector<2x20x20xf32>
    %c1_64 = arith.constant 1 : index
    %c0_65 = arith.constant 0 : index
    %208 = memref.load %arg1[%c1_64, %c0_65] : memref<4x25xf32, #tpu.memory_space<smem>>
    %209 = vector.broadcast %208 : f32 to vector<2x20x20xf32>
    %210 = arith.mulf %207, %209 : vector<2x20x20xf32>
    %211 = arith.addf %206, %210 : vector<2x20x20xf32>
    %212 = vector.extract_strided_slice %205 {offsets = [0, 0, 2], sizes = [2, 20, 20], strides = [1, 1, 1]} : vector<2x28x28xf32> to vector<2x20x20xf32>
    %c1_66 = arith.constant 1 : index
    %c1_67 = arith.constant 1 : index
    %213 = memref.load %arg1[%c1_66, %c1_67] : memref<4x25xf32, #tpu.memory_space<smem>>
    %214 = vector.broadcast %213 : f32 to vector<2x20x20xf32>
    %215 = arith.mulf %212, %214 : vector<2x20x20xf32>
    %216 = arith.addf %211, %215 : vector<2x20x20xf32>
    %217 = vector.extract_strided_slice %205 {offsets = [0, 0, 4], sizes = [2, 20, 20], strides = [1, 1, 1]} : vector<2x28x28xf32> to vector<2x20x20xf32>
    %c1_68 = arith.constant 1 : index
    %c2_69 = arith.constant 2 : index
    %218 = memref.load %arg1[%c1_68, %c2_69] : memref<4x25xf32, #tpu.memory_space<smem>>
    %219 = vector.broadcast %218 : f32 to vector<2x20x20xf32>
    %220 = arith.mulf %217, %219 : vector<2x20x20xf32>
    %221 = arith.addf %216, %220 : vector<2x20x20xf32>
    %222 = vector.extract_strided_slice %205 {offsets = [0, 0, 6], sizes = [2, 20, 20], strides = [1, 1, 1]} : vector<2x28x28xf32> to vector<2x20x20xf32>
    %c1_70 = arith.constant 1 : index
    %c3_71 = arith.constant 3 : index
    %223 = memref.load %arg1[%c1_70, %c3_71] : memref<4x25xf32, #tpu.memory_space<smem>>
    %224 = vector.broadcast %223 : f32 to vector<2x20x20xf32>
    %225 = arith.mulf %222, %224 : vector<2x20x20xf32>
    %226 = arith.addf %221, %225 : vector<2x20x20xf32>
    %227 = vector.extract_strided_slice %205 {offsets = [0, 0, 8], sizes = [2, 20, 20], strides = [1, 1, 1]} : vector<2x28x28xf32> to vector<2x20x20xf32>
    %c1_72 = arith.constant 1 : index
    %c4_73 = arith.constant 4 : index
    %228 = memref.load %arg1[%c1_72, %c4_73] : memref<4x25xf32, #tpu.memory_space<smem>>
    %229 = vector.broadcast %228 : f32 to vector<2x20x20xf32>
    %230 = arith.mulf %227, %229 : vector<2x20x20xf32>
    %231 = arith.addf %226, %230 : vector<2x20x20xf32>
    %232 = vector.extract_strided_slice %205 {offsets = [0, 2, 0], sizes = [2, 20, 20], strides = [1, 1, 1]} : vector<2x28x28xf32> to vector<2x20x20xf32>
    %c1_74 = arith.constant 1 : index
    %c5_75 = arith.constant 5 : index
    %233 = memref.load %arg1[%c1_74, %c5_75] : memref<4x25xf32, #tpu.memory_space<smem>>
    %234 = vector.broadcast %233 : f32 to vector<2x20x20xf32>
    %235 = arith.mulf %232, %234 : vector<2x20x20xf32>
    %236 = arith.addf %231, %235 : vector<2x20x20xf32>
    %237 = vector.extract_strided_slice %205 {offsets = [0, 2, 2], sizes = [2, 20, 20], strides = [1, 1, 1]} : vector<2x28x28xf32> to vector<2x20x20xf32>
    %c1_76 = arith.constant 1 : index
    %c6_77 = arith.constant 6 : index
    %238 = memref.load %arg1[%c1_76, %c6_77] : memref<4x25xf32, #tpu.memory_space<smem>>
    %239 = vector.broadcast %238 : f32 to vector<2x20x20xf32>
    %240 = arith.mulf %237, %239 : vector<2x20x20xf32>
    %241 = arith.addf %236, %240 : vector<2x20x20xf32>
    %242 = vector.extract_strided_slice %205 {offsets = [0, 2, 4], sizes = [2, 20, 20], strides = [1, 1, 1]} : vector<2x28x28xf32> to vector<2x20x20xf32>
    %c1_78 = arith.constant 1 : index
    %c7_79 = arith.constant 7 : index
    %243 = memref.load %arg1[%c1_78, %c7_79] : memref<4x25xf32, #tpu.memory_space<smem>>
    %244 = vector.broadcast %243 : f32 to vector<2x20x20xf32>
    %245 = arith.mulf %242, %244 : vector<2x20x20xf32>
    %246 = arith.addf %241, %245 : vector<2x20x20xf32>
    %247 = vector.extract_strided_slice %205 {offsets = [0, 2, 6], sizes = [2, 20, 20], strides = [1, 1, 1]} : vector<2x28x28xf32> to vector<2x20x20xf32>
    %c1_80 = arith.constant 1 : index
    %c8_81 = arith.constant 8 : index
    %248 = memref.load %arg1[%c1_80, %c8_81] : memref<4x25xf32, #tpu.memory_space<smem>>
    %249 = vector.broadcast %248 : f32 to vector<2x20x20xf32>
    %250 = arith.mulf %247, %249 : vector<2x20x20xf32>
    %251 = arith.addf %246, %250 : vector<2x20x20xf32>
    %252 = vector.extract_strided_slice %205 {offsets = [0, 2, 8], sizes = [2, 20, 20], strides = [1, 1, 1]} : vector<2x28x28xf32> to vector<2x20x20xf32>
    %c1_82 = arith.constant 1 : index
    %c9_83 = arith.constant 9 : index
    %253 = memref.load %arg1[%c1_82, %c9_83] : memref<4x25xf32, #tpu.memory_space<smem>>
    %254 = vector.broadcast %253 : f32 to vector<2x20x20xf32>
    %255 = arith.mulf %252, %254 : vector<2x20x20xf32>
    %256 = arith.addf %251, %255 : vector<2x20x20xf32>
    %257 = vector.extract_strided_slice %205 {offsets = [0, 4, 0], sizes = [2, 20, 20], strides = [1, 1, 1]} : vector<2x28x28xf32> to vector<2x20x20xf32>
    %c1_84 = arith.constant 1 : index
    %c10_85 = arith.constant 10 : index
    %258 = memref.load %arg1[%c1_84, %c10_85] : memref<4x25xf32, #tpu.memory_space<smem>>
    %259 = vector.broadcast %258 : f32 to vector<2x20x20xf32>
    %260 = arith.mulf %257, %259 : vector<2x20x20xf32>
    %261 = arith.addf %256, %260 : vector<2x20x20xf32>
    %262 = vector.extract_strided_slice %205 {offsets = [0, 4, 2], sizes = [2, 20, 20], strides = [1, 1, 1]} : vector<2x28x28xf32> to vector<2x20x20xf32>
    %c1_86 = arith.constant 1 : index
    %c11_87 = arith.constant 11 : index
    %263 = memref.load %arg1[%c1_86, %c11_87] : memref<4x25xf32, #tpu.memory_space<smem>>
    %264 = vector.broadcast %263 : f32 to vector<2x20x20xf32>
    %265 = arith.mulf %262, %264 : vector<2x20x20xf32>
    %266 = arith.addf %261, %265 : vector<2x20x20xf32>
    %267 = vector.extract_strided_slice %205 {offsets = [0, 4, 4], sizes = [2, 20, 20], strides = [1, 1, 1]} : vector<2x28x28xf32> to vector<2x20x20xf32>
    %c1_88 = arith.constant 1 : index
    %c12_89 = arith.constant 12 : index
    %268 = memref.load %arg1[%c1_88, %c12_89] : memref<4x25xf32, #tpu.memory_space<smem>>
    %269 = vector.broadcast %268 : f32 to vector<2x20x20xf32>
    %270 = arith.mulf %267, %269 : vector<2x20x20xf32>
    %271 = arith.addf %266, %270 : vector<2x20x20xf32>
    %272 = vector.extract_strided_slice %205 {offsets = [0, 4, 6], sizes = [2, 20, 20], strides = [1, 1, 1]} : vector<2x28x28xf32> to vector<2x20x20xf32>
    %c1_90 = arith.constant 1 : index
    %c13_91 = arith.constant 13 : index
    %273 = memref.load %arg1[%c1_90, %c13_91] : memref<4x25xf32, #tpu.memory_space<smem>>
    %274 = vector.broadcast %273 : f32 to vector<2x20x20xf32>
    %275 = arith.mulf %272, %274 : vector<2x20x20xf32>
    %276 = arith.addf %271, %275 : vector<2x20x20xf32>
    %277 = vector.extract_strided_slice %205 {offsets = [0, 4, 8], sizes = [2, 20, 20], strides = [1, 1, 1]} : vector<2x28x28xf32> to vector<2x20x20xf32>
    %c1_92 = arith.constant 1 : index
    %c14_93 = arith.constant 14 : index
    %278 = memref.load %arg1[%c1_92, %c14_93] : memref<4x25xf32, #tpu.memory_space<smem>>
    %279 = vector.broadcast %278 : f32 to vector<2x20x20xf32>
    %280 = arith.mulf %277, %279 : vector<2x20x20xf32>
    %281 = arith.addf %276, %280 : vector<2x20x20xf32>
    %282 = vector.extract_strided_slice %205 {offsets = [0, 6, 0], sizes = [2, 20, 20], strides = [1, 1, 1]} : vector<2x28x28xf32> to vector<2x20x20xf32>
    %c1_94 = arith.constant 1 : index
    %c15_95 = arith.constant 15 : index
    %283 = memref.load %arg1[%c1_94, %c15_95] : memref<4x25xf32, #tpu.memory_space<smem>>
    %284 = vector.broadcast %283 : f32 to vector<2x20x20xf32>
    %285 = arith.mulf %282, %284 : vector<2x20x20xf32>
    %286 = arith.addf %281, %285 : vector<2x20x20xf32>
    %287 = vector.extract_strided_slice %205 {offsets = [0, 6, 2], sizes = [2, 20, 20], strides = [1, 1, 1]} : vector<2x28x28xf32> to vector<2x20x20xf32>
    %c1_96 = arith.constant 1 : index
    %c16_97 = arith.constant 16 : index
    %288 = memref.load %arg1[%c1_96, %c16_97] : memref<4x25xf32, #tpu.memory_space<smem>>
    %289 = vector.broadcast %288 : f32 to vector<2x20x20xf32>
    %290 = arith.mulf %287, %289 : vector<2x20x20xf32>
    %291 = arith.addf %286, %290 : vector<2x20x20xf32>
    %292 = vector.extract_strided_slice %205 {offsets = [0, 6, 4], sizes = [2, 20, 20], strides = [1, 1, 1]} : vector<2x28x28xf32> to vector<2x20x20xf32>
    %c1_98 = arith.constant 1 : index
    %c17_99 = arith.constant 17 : index
    %293 = memref.load %arg1[%c1_98, %c17_99] : memref<4x25xf32, #tpu.memory_space<smem>>
    %294 = vector.broadcast %293 : f32 to vector<2x20x20xf32>
    %295 = arith.mulf %292, %294 : vector<2x20x20xf32>
    %296 = arith.addf %291, %295 : vector<2x20x20xf32>
    %297 = vector.extract_strided_slice %205 {offsets = [0, 6, 6], sizes = [2, 20, 20], strides = [1, 1, 1]} : vector<2x28x28xf32> to vector<2x20x20xf32>
    %c1_100 = arith.constant 1 : index
    %c18_101 = arith.constant 18 : index
    %298 = memref.load %arg1[%c1_100, %c18_101] : memref<4x25xf32, #tpu.memory_space<smem>>
    %299 = vector.broadcast %298 : f32 to vector<2x20x20xf32>
    %300 = arith.mulf %297, %299 : vector<2x20x20xf32>
    %301 = arith.addf %296, %300 : vector<2x20x20xf32>
    %302 = vector.extract_strided_slice %205 {offsets = [0, 6, 8], sizes = [2, 20, 20], strides = [1, 1, 1]} : vector<2x28x28xf32> to vector<2x20x20xf32>
    %c1_102 = arith.constant 1 : index
    %c19_103 = arith.constant 19 : index
    %303 = memref.load %arg1[%c1_102, %c19_103] : memref<4x25xf32, #tpu.memory_space<smem>>
    %304 = vector.broadcast %303 : f32 to vector<2x20x20xf32>
    %305 = arith.mulf %302, %304 : vector<2x20x20xf32>
    %306 = arith.addf %301, %305 : vector<2x20x20xf32>
    %307 = vector.extract_strided_slice %205 {offsets = [0, 8, 0], sizes = [2, 20, 20], strides = [1, 1, 1]} : vector<2x28x28xf32> to vector<2x20x20xf32>
    %c1_104 = arith.constant 1 : index
    %c20_105 = arith.constant 20 : index
    %308 = memref.load %arg1[%c1_104, %c20_105] : memref<4x25xf32, #tpu.memory_space<smem>>
    %309 = vector.broadcast %308 : f32 to vector<2x20x20xf32>
    %310 = arith.mulf %307, %309 : vector<2x20x20xf32>
    %311 = arith.addf %306, %310 : vector<2x20x20xf32>
    %312 = vector.extract_strided_slice %205 {offsets = [0, 8, 2], sizes = [2, 20, 20], strides = [1, 1, 1]} : vector<2x28x28xf32> to vector<2x20x20xf32>
    %c1_106 = arith.constant 1 : index
    %c21_107 = arith.constant 21 : index
    %313 = memref.load %arg1[%c1_106, %c21_107] : memref<4x25xf32, #tpu.memory_space<smem>>
    %314 = vector.broadcast %313 : f32 to vector<2x20x20xf32>
    %315 = arith.mulf %312, %314 : vector<2x20x20xf32>
    %316 = arith.addf %311, %315 : vector<2x20x20xf32>
    %317 = vector.extract_strided_slice %205 {offsets = [0, 8, 4], sizes = [2, 20, 20], strides = [1, 1, 1]} : vector<2x28x28xf32> to vector<2x20x20xf32>
    %c1_108 = arith.constant 1 : index
    %c22_109 = arith.constant 22 : index
    %318 = memref.load %arg1[%c1_108, %c22_109] : memref<4x25xf32, #tpu.memory_space<smem>>
    %319 = vector.broadcast %318 : f32 to vector<2x20x20xf32>
    %320 = arith.mulf %317, %319 : vector<2x20x20xf32>
    %321 = arith.addf %316, %320 : vector<2x20x20xf32>
    %322 = vector.extract_strided_slice %205 {offsets = [0, 8, 6], sizes = [2, 20, 20], strides = [1, 1, 1]} : vector<2x28x28xf32> to vector<2x20x20xf32>
    %c1_110 = arith.constant 1 : index
    %c23_111 = arith.constant 23 : index
    %323 = memref.load %arg1[%c1_110, %c23_111] : memref<4x25xf32, #tpu.memory_space<smem>>
    %324 = vector.broadcast %323 : f32 to vector<2x20x20xf32>
    %325 = arith.mulf %322, %324 : vector<2x20x20xf32>
    %326 = arith.addf %321, %325 : vector<2x20x20xf32>
    %327 = vector.extract_strided_slice %205 {offsets = [0, 8, 8], sizes = [2, 20, 20], strides = [1, 1, 1]} : vector<2x28x28xf32> to vector<2x20x20xf32>
    %c1_112 = arith.constant 1 : index
    %c24_113 = arith.constant 24 : index
    %328 = memref.load %arg1[%c1_112, %c24_113] : memref<4x25xf32, #tpu.memory_space<smem>>
    %329 = vector.broadcast %328 : f32 to vector<2x20x20xf32>
    %330 = arith.mulf %327, %329 : vector<2x20x20xf32>
    %331 = arith.addf %326, %330 : vector<2x20x20xf32>
    %cst_114 = arith.constant 0.000000e+00 : f32
    %332 = vector.shape_cast %13 : vector<1x20x20xi1> to vector<1x20x20xi1>
    %333 = vector.broadcast %332 : vector<1x20x20xi1> to vector<2x20x20xi1>
    %334 = vector.broadcast %cst_114 : f32 to vector<2x20x20xf32>
    %335 = arith.select %333, %331, %334 : vector<2x20x20xi1>, vector<2x20x20xf32>
    %cst_115 = arith.constant 0.000000e+00 : f32
    %336 = vector.broadcast %cst_115 : f32 to vector<2x16x16xf32>
    %337 = vector.extract_strided_slice %335 {offsets = [0, 0, 0], sizes = [2, 16, 16], strides = [1, 1, 1]} : vector<2x20x20xf32> to vector<2x16x16xf32>
    %c1_116 = arith.constant 1 : index
    %c0_117 = arith.constant 0 : index
    %338 = memref.load %arg2[%c1_116, %c0_117] : memref<4x9xf32, #tpu.memory_space<smem>>
    %339 = vector.broadcast %338 : f32 to vector<2x16x16xf32>
    %340 = arith.mulf %337, %339 : vector<2x16x16xf32>
    %341 = arith.addf %336, %340 : vector<2x16x16xf32>
    %342 = vector.extract_strided_slice %335 {offsets = [0, 0, 2], sizes = [2, 16, 16], strides = [1, 1, 1]} : vector<2x20x20xf32> to vector<2x16x16xf32>
    %c1_118 = arith.constant 1 : index
    %c1_119 = arith.constant 1 : index
    %343 = memref.load %arg2[%c1_118, %c1_119] : memref<4x9xf32, #tpu.memory_space<smem>>
    %344 = vector.broadcast %343 : f32 to vector<2x16x16xf32>
    %345 = arith.mulf %342, %344 : vector<2x16x16xf32>
    %346 = arith.addf %341, %345 : vector<2x16x16xf32>
    %347 = vector.extract_strided_slice %335 {offsets = [0, 0, 4], sizes = [2, 16, 16], strides = [1, 1, 1]} : vector<2x20x20xf32> to vector<2x16x16xf32>
    %c1_120 = arith.constant 1 : index
    %c2_121 = arith.constant 2 : index
    %348 = memref.load %arg2[%c1_120, %c2_121] : memref<4x9xf32, #tpu.memory_space<smem>>
    %349 = vector.broadcast %348 : f32 to vector<2x16x16xf32>
    %350 = arith.mulf %347, %349 : vector<2x16x16xf32>
    %351 = arith.addf %346, %350 : vector<2x16x16xf32>
    %352 = vector.extract_strided_slice %335 {offsets = [0, 2, 0], sizes = [2, 16, 16], strides = [1, 1, 1]} : vector<2x20x20xf32> to vector<2x16x16xf32>
    %c1_122 = arith.constant 1 : index
    %c3_123 = arith.constant 3 : index
    %353 = memref.load %arg2[%c1_122, %c3_123] : memref<4x9xf32, #tpu.memory_space<smem>>
    %354 = vector.broadcast %353 : f32 to vector<2x16x16xf32>
    %355 = arith.mulf %352, %354 : vector<2x16x16xf32>
    %356 = arith.addf %351, %355 : vector<2x16x16xf32>
    %357 = vector.extract_strided_slice %335 {offsets = [0, 2, 2], sizes = [2, 16, 16], strides = [1, 1, 1]} : vector<2x20x20xf32> to vector<2x16x16xf32>
    %c1_124 = arith.constant 1 : index
    %c4_125 = arith.constant 4 : index
    %358 = memref.load %arg2[%c1_124, %c4_125] : memref<4x9xf32, #tpu.memory_space<smem>>
    %359 = vector.broadcast %358 : f32 to vector<2x16x16xf32>
    %360 = arith.mulf %357, %359 : vector<2x16x16xf32>
    %361 = arith.addf %356, %360 : vector<2x16x16xf32>
    %362 = vector.extract_strided_slice %335 {offsets = [0, 2, 4], sizes = [2, 16, 16], strides = [1, 1, 1]} : vector<2x20x20xf32> to vector<2x16x16xf32>
    %c1_126 = arith.constant 1 : index
    %c5_127 = arith.constant 5 : index
    %363 = memref.load %arg2[%c1_126, %c5_127] : memref<4x9xf32, #tpu.memory_space<smem>>
    %364 = vector.broadcast %363 : f32 to vector<2x16x16xf32>
    %365 = arith.mulf %362, %364 : vector<2x16x16xf32>
    %366 = arith.addf %361, %365 : vector<2x16x16xf32>
    %367 = vector.extract_strided_slice %335 {offsets = [0, 4, 0], sizes = [2, 16, 16], strides = [1, 1, 1]} : vector<2x20x20xf32> to vector<2x16x16xf32>
    %c1_128 = arith.constant 1 : index
    %c6_129 = arith.constant 6 : index
    %368 = memref.load %arg2[%c1_128, %c6_129] : memref<4x9xf32, #tpu.memory_space<smem>>
    %369 = vector.broadcast %368 : f32 to vector<2x16x16xf32>
    %370 = arith.mulf %367, %369 : vector<2x16x16xf32>
    %371 = arith.addf %366, %370 : vector<2x16x16xf32>
    %372 = vector.extract_strided_slice %335 {offsets = [0, 4, 2], sizes = [2, 16, 16], strides = [1, 1, 1]} : vector<2x20x20xf32> to vector<2x16x16xf32>
    %c1_130 = arith.constant 1 : index
    %c7_131 = arith.constant 7 : index
    %373 = memref.load %arg2[%c1_130, %c7_131] : memref<4x9xf32, #tpu.memory_space<smem>>
    %374 = vector.broadcast %373 : f32 to vector<2x16x16xf32>
    %375 = arith.mulf %372, %374 : vector<2x16x16xf32>
    %376 = arith.addf %371, %375 : vector<2x16x16xf32>
    %377 = vector.extract_strided_slice %335 {offsets = [0, 4, 4], sizes = [2, 16, 16], strides = [1, 1, 1]} : vector<2x20x20xf32> to vector<2x16x16xf32>
    %c1_132 = arith.constant 1 : index
    %c8_133 = arith.constant 8 : index
    %378 = memref.load %arg2[%c1_132, %c8_133] : memref<4x9xf32, #tpu.memory_space<smem>>
    %379 = vector.broadcast %378 : f32 to vector<2x16x16xf32>
    %380 = arith.mulf %377, %379 : vector<2x16x16xf32>
    %381 = arith.addf %376, %380 : vector<2x16x16xf32>
    %c0_134 = arith.constant 0 : index
    %c1_135 = arith.constant 1 : index
    %382 = memref.load %arg3[%c0_134, %c1_135] : memref<4x4xf32, #tpu.memory_space<smem>>
    %383 = vector.broadcast %382 : f32 to vector<2x16x16xf32>
    %384 = arith.mulf %381, %383 : vector<2x16x16xf32>
    %385 = arith.addf %194, %384 : vector<2x16x16xf32>
    %c1_136 = arith.constant 1 : index
    %c1_137 = arith.constant 1 : index
    %386 = memref.load %arg3[%c1_136, %c1_137] : memref<4x4xf32, #tpu.memory_space<smem>>
    %387 = vector.broadcast %386 : f32 to vector<2x16x16xf32>
    %388 = arith.mulf %381, %387 : vector<2x16x16xf32>
    %389 = arith.addf %197, %388 : vector<2x16x16xf32>
    %c2_138 = arith.constant 2 : index
    %c1_139 = arith.constant 1 : index
    %390 = memref.load %arg3[%c2_138, %c1_139] : memref<4x4xf32, #tpu.memory_space<smem>>
    %391 = vector.broadcast %390 : f32 to vector<2x16x16xf32>
    %392 = arith.mulf %381, %391 : vector<2x16x16xf32>
    %393 = arith.addf %200, %392 : vector<2x16x16xf32>
    %c3_140 = arith.constant 3 : index
    %c1_141 = arith.constant 1 : index
    %394 = memref.load %arg3[%c3_140, %c1_141] : memref<4x4xf32, #tpu.memory_space<smem>>
    %395 = vector.broadcast %394 : f32 to vector<2x16x16xf32>
    %396 = arith.mulf %381, %395 : vector<2x16x16xf32>
    %397 = arith.addf %203, %396 : vector<2x16x16xf32>
    %c0_142 = arith.constant 0 : index
    %c2_143 = arith.constant 2 : index
    %c0_144 = arith.constant 0 : index
    %c0_145 = arith.constant 0 : index
    %398 = vector.load %arg0[%c0_142, %c2_143, %c0_144, %c0_145] : memref<2x4x28x28xf32, #tpu.memory_space<vmem>>, vector<2x1x28x28xf32>
    %399 = vector.shape_cast %398 : vector<2x1x28x28xf32> to vector<2x28x28xf32>
    %cst_146 = arith.constant 0.000000e+00 : f32
    %400 = vector.broadcast %cst_146 : f32 to vector<2x20x20xf32>
    %401 = vector.extract_strided_slice %399 {offsets = [0, 0, 0], sizes = [2, 20, 20], strides = [1, 1, 1]} : vector<2x28x28xf32> to vector<2x20x20xf32>
    %c2_147 = arith.constant 2 : index
    %c0_148 = arith.constant 0 : index
    %402 = memref.load %arg1[%c2_147, %c0_148] : memref<4x25xf32, #tpu.memory_space<smem>>
    %403 = vector.broadcast %402 : f32 to vector<2x20x20xf32>
    %404 = arith.mulf %401, %403 : vector<2x20x20xf32>
    %405 = arith.addf %400, %404 : vector<2x20x20xf32>
    %406 = vector.extract_strided_slice %399 {offsets = [0, 0, 2], sizes = [2, 20, 20], strides = [1, 1, 1]} : vector<2x28x28xf32> to vector<2x20x20xf32>
    %c2_149 = arith.constant 2 : index
    %c1_150 = arith.constant 1 : index
    %407 = memref.load %arg1[%c2_149, %c1_150] : memref<4x25xf32, #tpu.memory_space<smem>>
    %408 = vector.broadcast %407 : f32 to vector<2x20x20xf32>
    %409 = arith.mulf %406, %408 : vector<2x20x20xf32>
    %410 = arith.addf %405, %409 : vector<2x20x20xf32>
    %411 = vector.extract_strided_slice %399 {offsets = [0, 0, 4], sizes = [2, 20, 20], strides = [1, 1, 1]} : vector<2x28x28xf32> to vector<2x20x20xf32>
    %c2_151 = arith.constant 2 : index
    %c2_152 = arith.constant 2 : index
    %412 = memref.load %arg1[%c2_151, %c2_152] : memref<4x25xf32, #tpu.memory_space<smem>>
    %413 = vector.broadcast %412 : f32 to vector<2x20x20xf32>
    %414 = arith.mulf %411, %413 : vector<2x20x20xf32>
    %415 = arith.addf %410, %414 : vector<2x20x20xf32>
    %416 = vector.extract_strided_slice %399 {offsets = [0, 0, 6], sizes = [2, 20, 20], strides = [1, 1, 1]} : vector<2x28x28xf32> to vector<2x20x20xf32>
    %c2_153 = arith.constant 2 : index
    %c3_154 = arith.constant 3 : index
    %417 = memref.load %arg1[%c2_153, %c3_154] : memref<4x25xf32, #tpu.memory_space<smem>>
    %418 = vector.broadcast %417 : f32 to vector<2x20x20xf32>
    %419 = arith.mulf %416, %418 : vector<2x20x20xf32>
    %420 = arith.addf %415, %419 : vector<2x20x20xf32>
    %421 = vector.extract_strided_slice %399 {offsets = [0, 0, 8], sizes = [2, 20, 20], strides = [1, 1, 1]} : vector<2x28x28xf32> to vector<2x20x20xf32>
    %c2_155 = arith.constant 2 : index
    %c4_156 = arith.constant 4 : index
    %422 = memref.load %arg1[%c2_155, %c4_156] : memref<4x25xf32, #tpu.memory_space<smem>>
    %423 = vector.broadcast %422 : f32 to vector<2x20x20xf32>
    %424 = arith.mulf %421, %423 : vector<2x20x20xf32>
    %425 = arith.addf %420, %424 : vector<2x20x20xf32>
    %426 = vector.extract_strided_slice %399 {offsets = [0, 2, 0], sizes = [2, 20, 20], strides = [1, 1, 1]} : vector<2x28x28xf32> to vector<2x20x20xf32>
    %c2_157 = arith.constant 2 : index
    %c5_158 = arith.constant 5 : index
    %427 = memref.load %arg1[%c2_157, %c5_158] : memref<4x25xf32, #tpu.memory_space<smem>>
    %428 = vector.broadcast %427 : f32 to vector<2x20x20xf32>
    %429 = arith.mulf %426, %428 : vector<2x20x20xf32>
    %430 = arith.addf %425, %429 : vector<2x20x20xf32>
    %431 = vector.extract_strided_slice %399 {offsets = [0, 2, 2], sizes = [2, 20, 20], strides = [1, 1, 1]} : vector<2x28x28xf32> to vector<2x20x20xf32>
    %c2_159 = arith.constant 2 : index
    %c6_160 = arith.constant 6 : index
    %432 = memref.load %arg1[%c2_159, %c6_160] : memref<4x25xf32, #tpu.memory_space<smem>>
    %433 = vector.broadcast %432 : f32 to vector<2x20x20xf32>
    %434 = arith.mulf %431, %433 : vector<2x20x20xf32>
    %435 = arith.addf %430, %434 : vector<2x20x20xf32>
    %436 = vector.extract_strided_slice %399 {offsets = [0, 2, 4], sizes = [2, 20, 20], strides = [1, 1, 1]} : vector<2x28x28xf32> to vector<2x20x20xf32>
    %c2_161 = arith.constant 2 : index
    %c7_162 = arith.constant 7 : index
    %437 = memref.load %arg1[%c2_161, %c7_162] : memref<4x25xf32, #tpu.memory_space<smem>>
    %438 = vector.broadcast %437 : f32 to vector<2x20x20xf32>
    %439 = arith.mulf %436, %438 : vector<2x20x20xf32>
    %440 = arith.addf %435, %439 : vector<2x20x20xf32>
    %441 = vector.extract_strided_slice %399 {offsets = [0, 2, 6], sizes = [2, 20, 20], strides = [1, 1, 1]} : vector<2x28x28xf32> to vector<2x20x20xf32>
    %c2_163 = arith.constant 2 : index
    %c8_164 = arith.constant 8 : index
    %442 = memref.load %arg1[%c2_163, %c8_164] : memref<4x25xf32, #tpu.memory_space<smem>>
    %443 = vector.broadcast %442 : f32 to vector<2x20x20xf32>
    %444 = arith.mulf %441, %443 : vector<2x20x20xf32>
    %445 = arith.addf %440, %444 : vector<2x20x20xf32>
    %446 = vector.extract_strided_slice %399 {offsets = [0, 2, 8], sizes = [2, 20, 20], strides = [1, 1, 1]} : vector<2x28x28xf32> to vector<2x20x20xf32>
    %c2_165 = arith.constant 2 : index
    %c9_166 = arith.constant 9 : index
    %447 = memref.load %arg1[%c2_165, %c9_166] : memref<4x25xf32, #tpu.memory_space<smem>>
    %448 = vector.broadcast %447 : f32 to vector<2x20x20xf32>
    %449 = arith.mulf %446, %448 : vector<2x20x20xf32>
    %450 = arith.addf %445, %449 : vector<2x20x20xf32>
    %451 = vector.extract_strided_slice %399 {offsets = [0, 4, 0], sizes = [2, 20, 20], strides = [1, 1, 1]} : vector<2x28x28xf32> to vector<2x20x20xf32>
    %c2_167 = arith.constant 2 : index
    %c10_168 = arith.constant 10 : index
    %452 = memref.load %arg1[%c2_167, %c10_168] : memref<4x25xf32, #tpu.memory_space<smem>>
    %453 = vector.broadcast %452 : f32 to vector<2x20x20xf32>
    %454 = arith.mulf %451, %453 : vector<2x20x20xf32>
    %455 = arith.addf %450, %454 : vector<2x20x20xf32>
    %456 = vector.extract_strided_slice %399 {offsets = [0, 4, 2], sizes = [2, 20, 20], strides = [1, 1, 1]} : vector<2x28x28xf32> to vector<2x20x20xf32>
    %c2_169 = arith.constant 2 : index
    %c11_170 = arith.constant 11 : index
    %457 = memref.load %arg1[%c2_169, %c11_170] : memref<4x25xf32, #tpu.memory_space<smem>>
    %458 = vector.broadcast %457 : f32 to vector<2x20x20xf32>
    %459 = arith.mulf %456, %458 : vector<2x20x20xf32>
    %460 = arith.addf %455, %459 : vector<2x20x20xf32>
    %461 = vector.extract_strided_slice %399 {offsets = [0, 4, 4], sizes = [2, 20, 20], strides = [1, 1, 1]} : vector<2x28x28xf32> to vector<2x20x20xf32>
    %c2_171 = arith.constant 2 : index
    %c12_172 = arith.constant 12 : index
    %462 = memref.load %arg1[%c2_171, %c12_172] : memref<4x25xf32, #tpu.memory_space<smem>>
    %463 = vector.broadcast %462 : f32 to vector<2x20x20xf32>
    %464 = arith.mulf %461, %463 : vector<2x20x20xf32>
    %465 = arith.addf %460, %464 : vector<2x20x20xf32>
    %466 = vector.extract_strided_slice %399 {offsets = [0, 4, 6], sizes = [2, 20, 20], strides = [1, 1, 1]} : vector<2x28x28xf32> to vector<2x20x20xf32>
    %c2_173 = arith.constant 2 : index
    %c13_174 = arith.constant 13 : index
    %467 = memref.load %arg1[%c2_173, %c13_174] : memref<4x25xf32, #tpu.memory_space<smem>>
    %468 = vector.broadcast %467 : f32 to vector<2x20x20xf32>
    %469 = arith.mulf %466, %468 : vector<2x20x20xf32>
    %470 = arith.addf %465, %469 : vector<2x20x20xf32>
    %471 = vector.extract_strided_slice %399 {offsets = [0, 4, 8], sizes = [2, 20, 20], strides = [1, 1, 1]} : vector<2x28x28xf32> to vector<2x20x20xf32>
    %c2_175 = arith.constant 2 : index
    %c14_176 = arith.constant 14 : index
    %472 = memref.load %arg1[%c2_175, %c14_176] : memref<4x25xf32, #tpu.memory_space<smem>>
    %473 = vector.broadcast %472 : f32 to vector<2x20x20xf32>
    %474 = arith.mulf %471, %473 : vector<2x20x20xf32>
    %475 = arith.addf %470, %474 : vector<2x20x20xf32>
    %476 = vector.extract_strided_slice %399 {offsets = [0, 6, 0], sizes = [2, 20, 20], strides = [1, 1, 1]} : vector<2x28x28xf32> to vector<2x20x20xf32>
    %c2_177 = arith.constant 2 : index
    %c15_178 = arith.constant 15 : index
    %477 = memref.load %arg1[%c2_177, %c15_178] : memref<4x25xf32, #tpu.memory_space<smem>>
    %478 = vector.broadcast %477 : f32 to vector<2x20x20xf32>
    %479 = arith.mulf %476, %478 : vector<2x20x20xf32>
    %480 = arith.addf %475, %479 : vector<2x20x20xf32>
    %481 = vector.extract_strided_slice %399 {offsets = [0, 6, 2], sizes = [2, 20, 20], strides = [1, 1, 1]} : vector<2x28x28xf32> to vector<2x20x20xf32>
    %c2_179 = arith.constant 2 : index
    %c16_180 = arith.constant 16 : index
    %482 = memref.load %arg1[%c2_179, %c16_180] : memref<4x25xf32, #tpu.memory_space<smem>>
    %483 = vector.broadcast %482 : f32 to vector<2x20x20xf32>
    %484 = arith.mulf %481, %483 : vector<2x20x20xf32>
    %485 = arith.addf %480, %484 : vector<2x20x20xf32>
    %486 = vector.extract_strided_slice %399 {offsets = [0, 6, 4], sizes = [2, 20, 20], strides = [1, 1, 1]} : vector<2x28x28xf32> to vector<2x20x20xf32>
    %c2_181 = arith.constant 2 : index
    %c17_182 = arith.constant 17 : index
    %487 = memref.load %arg1[%c2_181, %c17_182] : memref<4x25xf32, #tpu.memory_space<smem>>
    %488 = vector.broadcast %487 : f32 to vector<2x20x20xf32>
    %489 = arith.mulf %486, %488 : vector<2x20x20xf32>
    %490 = arith.addf %485, %489 : vector<2x20x20xf32>
    %491 = vector.extract_strided_slice %399 {offsets = [0, 6, 6], sizes = [2, 20, 20], strides = [1, 1, 1]} : vector<2x28x28xf32> to vector<2x20x20xf32>
    %c2_183 = arith.constant 2 : index
    %c18_184 = arith.constant 18 : index
    %492 = memref.load %arg1[%c2_183, %c18_184] : memref<4x25xf32, #tpu.memory_space<smem>>
    %493 = vector.broadcast %492 : f32 to vector<2x20x20xf32>
    %494 = arith.mulf %491, %493 : vector<2x20x20xf32>
    %495 = arith.addf %490, %494 : vector<2x20x20xf32>
    %496 = vector.extract_strided_slice %399 {offsets = [0, 6, 8], sizes = [2, 20, 20], strides = [1, 1, 1]} : vector<2x28x28xf32> to vector<2x20x20xf32>
    %c2_185 = arith.constant 2 : index
    %c19_186 = arith.constant 19 : index
    %497 = memref.load %arg1[%c2_185, %c19_186] : memref<4x25xf32, #tpu.memory_space<smem>>
    %498 = vector.broadcast %497 : f32 to vector<2x20x20xf32>
    %499 = arith.mulf %496, %498 : vector<2x20x20xf32>
    %500 = arith.addf %495, %499 : vector<2x20x20xf32>
    %501 = vector.extract_strided_slice %399 {offsets = [0, 8, 0], sizes = [2, 20, 20], strides = [1, 1, 1]} : vector<2x28x28xf32> to vector<2x20x20xf32>
    %c2_187 = arith.constant 2 : index
    %c20_188 = arith.constant 20 : index
    %502 = memref.load %arg1[%c2_187, %c20_188] : memref<4x25xf32, #tpu.memory_space<smem>>
    %503 = vector.broadcast %502 : f32 to vector<2x20x20xf32>
    %504 = arith.mulf %501, %503 : vector<2x20x20xf32>
    %505 = arith.addf %500, %504 : vector<2x20x20xf32>
    %506 = vector.extract_strided_slice %399 {offsets = [0, 8, 2], sizes = [2, 20, 20], strides = [1, 1, 1]} : vector<2x28x28xf32> to vector<2x20x20xf32>
    %c2_189 = arith.constant 2 : index
    %c21_190 = arith.constant 21 : index
    %507 = memref.load %arg1[%c2_189, %c21_190] : memref<4x25xf32, #tpu.memory_space<smem>>
    %508 = vector.broadcast %507 : f32 to vector<2x20x20xf32>
    %509 = arith.mulf %506, %508 : vector<2x20x20xf32>
    %510 = arith.addf %505, %509 : vector<2x20x20xf32>
    %511 = vector.extract_strided_slice %399 {offsets = [0, 8, 4], sizes = [2, 20, 20], strides = [1, 1, 1]} : vector<2x28x28xf32> to vector<2x20x20xf32>
    %c2_191 = arith.constant 2 : index
    %c22_192 = arith.constant 22 : index
    %512 = memref.load %arg1[%c2_191, %c22_192] : memref<4x25xf32, #tpu.memory_space<smem>>
    %513 = vector.broadcast %512 : f32 to vector<2x20x20xf32>
    %514 = arith.mulf %511, %513 : vector<2x20x20xf32>
    %515 = arith.addf %510, %514 : vector<2x20x20xf32>
    %516 = vector.extract_strided_slice %399 {offsets = [0, 8, 6], sizes = [2, 20, 20], strides = [1, 1, 1]} : vector<2x28x28xf32> to vector<2x20x20xf32>
    %c2_193 = arith.constant 2 : index
    %c23_194 = arith.constant 23 : index
    %517 = memref.load %arg1[%c2_193, %c23_194] : memref<4x25xf32, #tpu.memory_space<smem>>
    %518 = vector.broadcast %517 : f32 to vector<2x20x20xf32>
    %519 = arith.mulf %516, %518 : vector<2x20x20xf32>
    %520 = arith.addf %515, %519 : vector<2x20x20xf32>
    %521 = vector.extract_strided_slice %399 {offsets = [0, 8, 8], sizes = [2, 20, 20], strides = [1, 1, 1]} : vector<2x28x28xf32> to vector<2x20x20xf32>
    %c2_195 = arith.constant 2 : index
    %c24_196 = arith.constant 24 : index
    %522 = memref.load %arg1[%c2_195, %c24_196] : memref<4x25xf32, #tpu.memory_space<smem>>
    %523 = vector.broadcast %522 : f32 to vector<2x20x20xf32>
    %524 = arith.mulf %521, %523 : vector<2x20x20xf32>
    %525 = arith.addf %520, %524 : vector<2x20x20xf32>
    %cst_197 = arith.constant 0.000000e+00 : f32
    %526 = vector.shape_cast %13 : vector<1x20x20xi1> to vector<1x20x20xi1>
    %527 = vector.broadcast %526 : vector<1x20x20xi1> to vector<2x20x20xi1>
    %528 = vector.broadcast %cst_197 : f32 to vector<2x20x20xf32>
    %529 = arith.select %527, %525, %528 : vector<2x20x20xi1>, vector<2x20x20xf32>
    %cst_198 = arith.constant 0.000000e+00 : f32
    %530 = vector.broadcast %cst_198 : f32 to vector<2x16x16xf32>
    %531 = vector.extract_strided_slice %529 {offsets = [0, 0, 0], sizes = [2, 16, 16], strides = [1, 1, 1]} : vector<2x20x20xf32> to vector<2x16x16xf32>
    %c2_199 = arith.constant 2 : index
    %c0_200 = arith.constant 0 : index
    %532 = memref.load %arg2[%c2_199, %c0_200] : memref<4x9xf32, #tpu.memory_space<smem>>
    %533 = vector.broadcast %532 : f32 to vector<2x16x16xf32>
    %534 = arith.mulf %531, %533 : vector<2x16x16xf32>
    %535 = arith.addf %530, %534 : vector<2x16x16xf32>
    %536 = vector.extract_strided_slice %529 {offsets = [0, 0, 2], sizes = [2, 16, 16], strides = [1, 1, 1]} : vector<2x20x20xf32> to vector<2x16x16xf32>
    %c2_201 = arith.constant 2 : index
    %c1_202 = arith.constant 1 : index
    %537 = memref.load %arg2[%c2_201, %c1_202] : memref<4x9xf32, #tpu.memory_space<smem>>
    %538 = vector.broadcast %537 : f32 to vector<2x16x16xf32>
    %539 = arith.mulf %536, %538 : vector<2x16x16xf32>
    %540 = arith.addf %535, %539 : vector<2x16x16xf32>
    %541 = vector.extract_strided_slice %529 {offsets = [0, 0, 4], sizes = [2, 16, 16], strides = [1, 1, 1]} : vector<2x20x20xf32> to vector<2x16x16xf32>
    %c2_203 = arith.constant 2 : index
    %c2_204 = arith.constant 2 : index
    %542 = memref.load %arg2[%c2_203, %c2_204] : memref<4x9xf32, #tpu.memory_space<smem>>
    %543 = vector.broadcast %542 : f32 to vector<2x16x16xf32>
    %544 = arith.mulf %541, %543 : vector<2x16x16xf32>
    %545 = arith.addf %540, %544 : vector<2x16x16xf32>
    %546 = vector.extract_strided_slice %529 {offsets = [0, 2, 0], sizes = [2, 16, 16], strides = [1, 1, 1]} : vector<2x20x20xf32> to vector<2x16x16xf32>
    %c2_205 = arith.constant 2 : index
    %c3_206 = arith.constant 3 : index
    %547 = memref.load %arg2[%c2_205, %c3_206] : memref<4x9xf32, #tpu.memory_space<smem>>
    %548 = vector.broadcast %547 : f32 to vector<2x16x16xf32>
    %549 = arith.mulf %546, %548 : vector<2x16x16xf32>
    %550 = arith.addf %545, %549 : vector<2x16x16xf32>
    %551 = vector.extract_strided_slice %529 {offsets = [0, 2, 2], sizes = [2, 16, 16], strides = [1, 1, 1]} : vector<2x20x20xf32> to vector<2x16x16xf32>
    %c2_207 = arith.constant 2 : index
    %c4_208 = arith.constant 4 : index
    %552 = memref.load %arg2[%c2_207, %c4_208] : memref<4x9xf32, #tpu.memory_space<smem>>
    %553 = vector.broadcast %552 : f32 to vector<2x16x16xf32>
    %554 = arith.mulf %551, %553 : vector<2x16x16xf32>
    %555 = arith.addf %550, %554 : vector<2x16x16xf32>
    %556 = vector.extract_strided_slice %529 {offsets = [0, 2, 4], sizes = [2, 16, 16], strides = [1, 1, 1]} : vector<2x20x20xf32> to vector<2x16x16xf32>
    %c2_209 = arith.constant 2 : index
    %c5_210 = arith.constant 5 : index
    %557 = memref.load %arg2[%c2_209, %c5_210] : memref<4x9xf32, #tpu.memory_space<smem>>
    %558 = vector.broadcast %557 : f32 to vector<2x16x16xf32>
    %559 = arith.mulf %556, %558 : vector<2x16x16xf32>
    %560 = arith.addf %555, %559 : vector<2x16x16xf32>
    %561 = vector.extract_strided_slice %529 {offsets = [0, 4, 0], sizes = [2, 16, 16], strides = [1, 1, 1]} : vector<2x20x20xf32> to vector<2x16x16xf32>
    %c2_211 = arith.constant 2 : index
    %c6_212 = arith.constant 6 : index
    %562 = memref.load %arg2[%c2_211, %c6_212] : memref<4x9xf32, #tpu.memory_space<smem>>
    %563 = vector.broadcast %562 : f32 to vector<2x16x16xf32>
    %564 = arith.mulf %561, %563 : vector<2x16x16xf32>
    %565 = arith.addf %560, %564 : vector<2x16x16xf32>
    %566 = vector.extract_strided_slice %529 {offsets = [0, 4, 2], sizes = [2, 16, 16], strides = [1, 1, 1]} : vector<2x20x20xf32> to vector<2x16x16xf32>
    %c2_213 = arith.constant 2 : index
    %c7_214 = arith.constant 7 : index
    %567 = memref.load %arg2[%c2_213, %c7_214] : memref<4x9xf32, #tpu.memory_space<smem>>
    %568 = vector.broadcast %567 : f32 to vector<2x16x16xf32>
    %569 = arith.mulf %566, %568 : vector<2x16x16xf32>
    %570 = arith.addf %565, %569 : vector<2x16x16xf32>
    %571 = vector.extract_strided_slice %529 {offsets = [0, 4, 4], sizes = [2, 16, 16], strides = [1, 1, 1]} : vector<2x20x20xf32> to vector<2x16x16xf32>
    %c2_215 = arith.constant 2 : index
    %c8_216 = arith.constant 8 : index
    %572 = memref.load %arg2[%c2_215, %c8_216] : memref<4x9xf32, #tpu.memory_space<smem>>
    %573 = vector.broadcast %572 : f32 to vector<2x16x16xf32>
    %574 = arith.mulf %571, %573 : vector<2x16x16xf32>
    %575 = arith.addf %570, %574 : vector<2x16x16xf32>
    %c0_217 = arith.constant 0 : index
    %c2_218 = arith.constant 2 : index
    %576 = memref.load %arg3[%c0_217, %c2_218] : memref<4x4xf32, #tpu.memory_space<smem>>
    %577 = vector.broadcast %576 : f32 to vector<2x16x16xf32>
    %578 = arith.mulf %575, %577 : vector<2x16x16xf32>
    %579 = arith.addf %385, %578 : vector<2x16x16xf32>
    %c1_219 = arith.constant 1 : index
    %c2_220 = arith.constant 2 : index
    %580 = memref.load %arg3[%c1_219, %c2_220] : memref<4x4xf32, #tpu.memory_space<smem>>
    %581 = vector.broadcast %580 : f32 to vector<2x16x16xf32>
    %582 = arith.mulf %575, %581 : vector<2x16x16xf32>
    %583 = arith.addf %389, %582 : vector<2x16x16xf32>
    %c2_221 = arith.constant 2 : index
    %c2_222 = arith.constant 2 : index
    %584 = memref.load %arg3[%c2_221, %c2_222] : memref<4x4xf32, #tpu.memory_space<smem>>
    %585 = vector.broadcast %584 : f32 to vector<2x16x16xf32>
    %586 = arith.mulf %575, %585 : vector<2x16x16xf32>
    %587 = arith.addf %393, %586 : vector<2x16x16xf32>
    %c3_223 = arith.constant 3 : index
    %c2_224 = arith.constant 2 : index
    %588 = memref.load %arg3[%c3_223, %c2_224] : memref<4x4xf32, #tpu.memory_space<smem>>
    %589 = vector.broadcast %588 : f32 to vector<2x16x16xf32>
    %590 = arith.mulf %575, %589 : vector<2x16x16xf32>
    %591 = arith.addf %397, %590 : vector<2x16x16xf32>
    %c0_225 = arith.constant 0 : index
    %c3_226 = arith.constant 3 : index
    %c0_227 = arith.constant 0 : index
    %c0_228 = arith.constant 0 : index
    %592 = vector.load %arg0[%c0_225, %c3_226, %c0_227, %c0_228] : memref<2x4x28x28xf32, #tpu.memory_space<vmem>>, vector<2x1x28x28xf32>
    %593 = vector.shape_cast %592 : vector<2x1x28x28xf32> to vector<2x28x28xf32>
    %cst_229 = arith.constant 0.000000e+00 : f32
    %594 = vector.broadcast %cst_229 : f32 to vector<2x20x20xf32>
    %595 = vector.extract_strided_slice %593 {offsets = [0, 0, 0], sizes = [2, 20, 20], strides = [1, 1, 1]} : vector<2x28x28xf32> to vector<2x20x20xf32>
    %c3_230 = arith.constant 3 : index
    %c0_231 = arith.constant 0 : index
    %596 = memref.load %arg1[%c3_230, %c0_231] : memref<4x25xf32, #tpu.memory_space<smem>>
    %597 = vector.broadcast %596 : f32 to vector<2x20x20xf32>
    %598 = arith.mulf %595, %597 : vector<2x20x20xf32>
    %599 = arith.addf %594, %598 : vector<2x20x20xf32>
    %600 = vector.extract_strided_slice %593 {offsets = [0, 0, 2], sizes = [2, 20, 20], strides = [1, 1, 1]} : vector<2x28x28xf32> to vector<2x20x20xf32>
    %c3_232 = arith.constant 3 : index
    %c1_233 = arith.constant 1 : index
    %601 = memref.load %arg1[%c3_232, %c1_233] : memref<4x25xf32, #tpu.memory_space<smem>>
    %602 = vector.broadcast %601 : f32 to vector<2x20x20xf32>
    %603 = arith.mulf %600, %602 : vector<2x20x20xf32>
    %604 = arith.addf %599, %603 : vector<2x20x20xf32>
    %605 = vector.extract_strided_slice %593 {offsets = [0, 0, 4], sizes = [2, 20, 20], strides = [1, 1, 1]} : vector<2x28x28xf32> to vector<2x20x20xf32>
    %c3_234 = arith.constant 3 : index
    %c2_235 = arith.constant 2 : index
    %606 = memref.load %arg1[%c3_234, %c2_235] : memref<4x25xf32, #tpu.memory_space<smem>>
    %607 = vector.broadcast %606 : f32 to vector<2x20x20xf32>
    %608 = arith.mulf %605, %607 : vector<2x20x20xf32>
    %609 = arith.addf %604, %608 : vector<2x20x20xf32>
    %610 = vector.extract_strided_slice %593 {offsets = [0, 0, 6], sizes = [2, 20, 20], strides = [1, 1, 1]} : vector<2x28x28xf32> to vector<2x20x20xf32>
    %c3_236 = arith.constant 3 : index
    %c3_237 = arith.constant 3 : index
    %611 = memref.load %arg1[%c3_236, %c3_237] : memref<4x25xf32, #tpu.memory_space<smem>>
    %612 = vector.broadcast %611 : f32 to vector<2x20x20xf32>
    %613 = arith.mulf %610, %612 : vector<2x20x20xf32>
    %614 = arith.addf %609, %613 : vector<2x20x20xf32>
    %615 = vector.extract_strided_slice %593 {offsets = [0, 0, 8], sizes = [2, 20, 20], strides = [1, 1, 1]} : vector<2x28x28xf32> to vector<2x20x20xf32>
    %c3_238 = arith.constant 3 : index
    %c4_239 = arith.constant 4 : index
    %616 = memref.load %arg1[%c3_238, %c4_239] : memref<4x25xf32, #tpu.memory_space<smem>>
    %617 = vector.broadcast %616 : f32 to vector<2x20x20xf32>
    %618 = arith.mulf %615, %617 : vector<2x20x20xf32>
    %619 = arith.addf %614, %618 : vector<2x20x20xf32>
    %620 = vector.extract_strided_slice %593 {offsets = [0, 2, 0], sizes = [2, 20, 20], strides = [1, 1, 1]} : vector<2x28x28xf32> to vector<2x20x20xf32>
    %c3_240 = arith.constant 3 : index
    %c5_241 = arith.constant 5 : index
    %621 = memref.load %arg1[%c3_240, %c5_241] : memref<4x25xf32, #tpu.memory_space<smem>>
    %622 = vector.broadcast %621 : f32 to vector<2x20x20xf32>
    %623 = arith.mulf %620, %622 : vector<2x20x20xf32>
    %624 = arith.addf %619, %623 : vector<2x20x20xf32>
    %625 = vector.extract_strided_slice %593 {offsets = [0, 2, 2], sizes = [2, 20, 20], strides = [1, 1, 1]} : vector<2x28x28xf32> to vector<2x20x20xf32>
    %c3_242 = arith.constant 3 : index
    %c6_243 = arith.constant 6 : index
    %626 = memref.load %arg1[%c3_242, %c6_243] : memref<4x25xf32, #tpu.memory_space<smem>>
    %627 = vector.broadcast %626 : f32 to vector<2x20x20xf32>
    %628 = arith.mulf %625, %627 : vector<2x20x20xf32>
    %629 = arith.addf %624, %628 : vector<2x20x20xf32>
    %630 = vector.extract_strided_slice %593 {offsets = [0, 2, 4], sizes = [2, 20, 20], strides = [1, 1, 1]} : vector<2x28x28xf32> to vector<2x20x20xf32>
    %c3_244 = arith.constant 3 : index
    %c7_245 = arith.constant 7 : index
    %631 = memref.load %arg1[%c3_244, %c7_245] : memref<4x25xf32, #tpu.memory_space<smem>>
    %632 = vector.broadcast %631 : f32 to vector<2x20x20xf32>
    %633 = arith.mulf %630, %632 : vector<2x20x20xf32>
    %634 = arith.addf %629, %633 : vector<2x20x20xf32>
    %635 = vector.extract_strided_slice %593 {offsets = [0, 2, 6], sizes = [2, 20, 20], strides = [1, 1, 1]} : vector<2x28x28xf32> to vector<2x20x20xf32>
    %c3_246 = arith.constant 3 : index
    %c8_247 = arith.constant 8 : index
    %636 = memref.load %arg1[%c3_246, %c8_247] : memref<4x25xf32, #tpu.memory_space<smem>>
    %637 = vector.broadcast %636 : f32 to vector<2x20x20xf32>
    %638 = arith.mulf %635, %637 : vector<2x20x20xf32>
    %639 = arith.addf %634, %638 : vector<2x20x20xf32>
    %640 = vector.extract_strided_slice %593 {offsets = [0, 2, 8], sizes = [2, 20, 20], strides = [1, 1, 1]} : vector<2x28x28xf32> to vector<2x20x20xf32>
    %c3_248 = arith.constant 3 : index
    %c9_249 = arith.constant 9 : index
    %641 = memref.load %arg1[%c3_248, %c9_249] : memref<4x25xf32, #tpu.memory_space<smem>>
    %642 = vector.broadcast %641 : f32 to vector<2x20x20xf32>
    %643 = arith.mulf %640, %642 : vector<2x20x20xf32>
    %644 = arith.addf %639, %643 : vector<2x20x20xf32>
    %645 = vector.extract_strided_slice %593 {offsets = [0, 4, 0], sizes = [2, 20, 20], strides = [1, 1, 1]} : vector<2x28x28xf32> to vector<2x20x20xf32>
    %c3_250 = arith.constant 3 : index
    %c10_251 = arith.constant 10 : index
    %646 = memref.load %arg1[%c3_250, %c10_251] : memref<4x25xf32, #tpu.memory_space<smem>>
    %647 = vector.broadcast %646 : f32 to vector<2x20x20xf32>
    %648 = arith.mulf %645, %647 : vector<2x20x20xf32>
    %649 = arith.addf %644, %648 : vector<2x20x20xf32>
    %650 = vector.extract_strided_slice %593 {offsets = [0, 4, 2], sizes = [2, 20, 20], strides = [1, 1, 1]} : vector<2x28x28xf32> to vector<2x20x20xf32>
    %c3_252 = arith.constant 3 : index
    %c11_253 = arith.constant 11 : index
    %651 = memref.load %arg1[%c3_252, %c11_253] : memref<4x25xf32, #tpu.memory_space<smem>>
    %652 = vector.broadcast %651 : f32 to vector<2x20x20xf32>
    %653 = arith.mulf %650, %652 : vector<2x20x20xf32>
    %654 = arith.addf %649, %653 : vector<2x20x20xf32>
    %655 = vector.extract_strided_slice %593 {offsets = [0, 4, 4], sizes = [2, 20, 20], strides = [1, 1, 1]} : vector<2x28x28xf32> to vector<2x20x20xf32>
    %c3_254 = arith.constant 3 : index
    %c12_255 = arith.constant 12 : index
    %656 = memref.load %arg1[%c3_254, %c12_255] : memref<4x25xf32, #tpu.memory_space<smem>>
    %657 = vector.broadcast %656 : f32 to vector<2x20x20xf32>
    %658 = arith.mulf %655, %657 : vector<2x20x20xf32>
    %659 = arith.addf %654, %658 : vector<2x20x20xf32>
    %660 = vector.extract_strided_slice %593 {offsets = [0, 4, 6], sizes = [2, 20, 20], strides = [1, 1, 1]} : vector<2x28x28xf32> to vector<2x20x20xf32>
    %c3_256 = arith.constant 3 : index
    %c13_257 = arith.constant 13 : index
    %661 = memref.load %arg1[%c3_256, %c13_257] : memref<4x25xf32, #tpu.memory_space<smem>>
    %662 = vector.broadcast %661 : f32 to vector<2x20x20xf32>
    %663 = arith.mulf %660, %662 : vector<2x20x20xf32>
    %664 = arith.addf %659, %663 : vector<2x20x20xf32>
    %665 = vector.extract_strided_slice %593 {offsets = [0, 4, 8], sizes = [2, 20, 20], strides = [1, 1, 1]} : vector<2x28x28xf32> to vector<2x20x20xf32>
    %c3_258 = arith.constant 3 : index
    %c14_259 = arith.constant 14 : index
    %666 = memref.load %arg1[%c3_258, %c14_259] : memref<4x25xf32, #tpu.memory_space<smem>>
    %667 = vector.broadcast %666 : f32 to vector<2x20x20xf32>
    %668 = arith.mulf %665, %667 : vector<2x20x20xf32>
    %669 = arith.addf %664, %668 : vector<2x20x20xf32>
    %670 = vector.extract_strided_slice %593 {offsets = [0, 6, 0], sizes = [2, 20, 20], strides = [1, 1, 1]} : vector<2x28x28xf32> to vector<2x20x20xf32>
    %c3_260 = arith.constant 3 : index
    %c15_261 = arith.constant 15 : index
    %671 = memref.load %arg1[%c3_260, %c15_261] : memref<4x25xf32, #tpu.memory_space<smem>>
    %672 = vector.broadcast %671 : f32 to vector<2x20x20xf32>
    %673 = arith.mulf %670, %672 : vector<2x20x20xf32>
    %674 = arith.addf %669, %673 : vector<2x20x20xf32>
    %675 = vector.extract_strided_slice %593 {offsets = [0, 6, 2], sizes = [2, 20, 20], strides = [1, 1, 1]} : vector<2x28x28xf32> to vector<2x20x20xf32>
    %c3_262 = arith.constant 3 : index
    %c16_263 = arith.constant 16 : index
    %676 = memref.load %arg1[%c3_262, %c16_263] : memref<4x25xf32, #tpu.memory_space<smem>>
    %677 = vector.broadcast %676 : f32 to vector<2x20x20xf32>
    %678 = arith.mulf %675, %677 : vector<2x20x20xf32>
    %679 = arith.addf %674, %678 : vector<2x20x20xf32>
    %680 = vector.extract_strided_slice %593 {offsets = [0, 6, 4], sizes = [2, 20, 20], strides = [1, 1, 1]} : vector<2x28x28xf32> to vector<2x20x20xf32>
    %c3_264 = arith.constant 3 : index
    %c17_265 = arith.constant 17 : index
    %681 = memref.load %arg1[%c3_264, %c17_265] : memref<4x25xf32, #tpu.memory_space<smem>>
    %682 = vector.broadcast %681 : f32 to vector<2x20x20xf32>
    %683 = arith.mulf %680, %682 : vector<2x20x20xf32>
    %684 = arith.addf %679, %683 : vector<2x20x20xf32>
    %685 = vector.extract_strided_slice %593 {offsets = [0, 6, 6], sizes = [2, 20, 20], strides = [1, 1, 1]} : vector<2x28x28xf32> to vector<2x20x20xf32>
    %c3_266 = arith.constant 3 : index
    %c18_267 = arith.constant 18 : index
    %686 = memref.load %arg1[%c3_266, %c18_267] : memref<4x25xf32, #tpu.memory_space<smem>>
    %687 = vector.broadcast %686 : f32 to vector<2x20x20xf32>
    %688 = arith.mulf %685, %687 : vector<2x20x20xf32>
    %689 = arith.addf %684, %688 : vector<2x20x20xf32>
    %690 = vector.extract_strided_slice %593 {offsets = [0, 6, 8], sizes = [2, 20, 20], strides = [1, 1, 1]} : vector<2x28x28xf32> to vector<2x20x20xf32>
    %c3_268 = arith.constant 3 : index
    %c19_269 = arith.constant 19 : index
    %691 = memref.load %arg1[%c3_268, %c19_269] : memref<4x25xf32, #tpu.memory_space<smem>>
    %692 = vector.broadcast %691 : f32 to vector<2x20x20xf32>
    %693 = arith.mulf %690, %692 : vector<2x20x20xf32>
    %694 = arith.addf %689, %693 : vector<2x20x20xf32>
    %695 = vector.extract_strided_slice %593 {offsets = [0, 8, 0], sizes = [2, 20, 20], strides = [1, 1, 1]} : vector<2x28x28xf32> to vector<2x20x20xf32>
    %c3_270 = arith.constant 3 : index
    %c20_271 = arith.constant 20 : index
    %696 = memref.load %arg1[%c3_270, %c20_271] : memref<4x25xf32, #tpu.memory_space<smem>>
    %697 = vector.broadcast %696 : f32 to vector<2x20x20xf32>
    %698 = arith.mulf %695, %697 : vector<2x20x20xf32>
    %699 = arith.addf %694, %698 : vector<2x20x20xf32>
    %700 = vector.extract_strided_slice %593 {offsets = [0, 8, 2], sizes = [2, 20, 20], strides = [1, 1, 1]} : vector<2x28x28xf32> to vector<2x20x20xf32>
    %c3_272 = arith.constant 3 : index
    %c21_273 = arith.constant 21 : index
    %701 = memref.load %arg1[%c3_272, %c21_273] : memref<4x25xf32, #tpu.memory_space<smem>>
    %702 = vector.broadcast %701 : f32 to vector<2x20x20xf32>
    %703 = arith.mulf %700, %702 : vector<2x20x20xf32>
    %704 = arith.addf %699, %703 : vector<2x20x20xf32>
    %705 = vector.extract_strided_slice %593 {offsets = [0, 8, 4], sizes = [2, 20, 20], strides = [1, 1, 1]} : vector<2x28x28xf32> to vector<2x20x20xf32>
    %c3_274 = arith.constant 3 : index
    %c22_275 = arith.constant 22 : index
    %706 = memref.load %arg1[%c3_274, %c22_275] : memref<4x25xf32, #tpu.memory_space<smem>>
    %707 = vector.broadcast %706 : f32 to vector<2x20x20xf32>
    %708 = arith.mulf %705, %707 : vector<2x20x20xf32>
    %709 = arith.addf %704, %708 : vector<2x20x20xf32>
    %710 = vector.extract_strided_slice %593 {offsets = [0, 8, 6], sizes = [2, 20, 20], strides = [1, 1, 1]} : vector<2x28x28xf32> to vector<2x20x20xf32>
    %c3_276 = arith.constant 3 : index
    %c23_277 = arith.constant 23 : index
    %711 = memref.load %arg1[%c3_276, %c23_277] : memref<4x25xf32, #tpu.memory_space<smem>>
    %712 = vector.broadcast %711 : f32 to vector<2x20x20xf32>
    %713 = arith.mulf %710, %712 : vector<2x20x20xf32>
    %714 = arith.addf %709, %713 : vector<2x20x20xf32>
    %715 = vector.extract_strided_slice %593 {offsets = [0, 8, 8], sizes = [2, 20, 20], strides = [1, 1, 1]} : vector<2x28x28xf32> to vector<2x20x20xf32>
    %c3_278 = arith.constant 3 : index
    %c24_279 = arith.constant 24 : index
    %716 = memref.load %arg1[%c3_278, %c24_279] : memref<4x25xf32, #tpu.memory_space<smem>>
    %717 = vector.broadcast %716 : f32 to vector<2x20x20xf32>
    %718 = arith.mulf %715, %717 : vector<2x20x20xf32>
    %719 = arith.addf %714, %718 : vector<2x20x20xf32>
    %cst_280 = arith.constant 0.000000e+00 : f32
    %720 = vector.shape_cast %13 : vector<1x20x20xi1> to vector<1x20x20xi1>
    %721 = vector.broadcast %720 : vector<1x20x20xi1> to vector<2x20x20xi1>
    %722 = vector.broadcast %cst_280 : f32 to vector<2x20x20xf32>
    %723 = arith.select %721, %719, %722 : vector<2x20x20xi1>, vector<2x20x20xf32>
    %cst_281 = arith.constant 0.000000e+00 : f32
    %724 = vector.broadcast %cst_281 : f32 to vector<2x16x16xf32>
    %725 = vector.extract_strided_slice %723 {offsets = [0, 0, 0], sizes = [2, 16, 16], strides = [1, 1, 1]} : vector<2x20x20xf32> to vector<2x16x16xf32>
    %c3_282 = arith.constant 3 : index
    %c0_283 = arith.constant 0 : index
    %726 = memref.load %arg2[%c3_282, %c0_283] : memref<4x9xf32, #tpu.memory_space<smem>>
    %727 = vector.broadcast %726 : f32 to vector<2x16x16xf32>
    %728 = arith.mulf %725, %727 : vector<2x16x16xf32>
    %729 = arith.addf %724, %728 : vector<2x16x16xf32>
    %730 = vector.extract_strided_slice %723 {offsets = [0, 0, 2], sizes = [2, 16, 16], strides = [1, 1, 1]} : vector<2x20x20xf32> to vector<2x16x16xf32>
    %c3_284 = arith.constant 3 : index
    %c1_285 = arith.constant 1 : index
    %731 = memref.load %arg2[%c3_284, %c1_285] : memref<4x9xf32, #tpu.memory_space<smem>>
    %732 = vector.broadcast %731 : f32 to vector<2x16x16xf32>
    %733 = arith.mulf %730, %732 : vector<2x16x16xf32>
    %734 = arith.addf %729, %733 : vector<2x16x16xf32>
    %735 = vector.extract_strided_slice %723 {offsets = [0, 0, 4], sizes = [2, 16, 16], strides = [1, 1, 1]} : vector<2x20x20xf32> to vector<2x16x16xf32>
    %c3_286 = arith.constant 3 : index
    %c2_287 = arith.constant 2 : index
    %736 = memref.load %arg2[%c3_286, %c2_287] : memref<4x9xf32, #tpu.memory_space<smem>>
    %737 = vector.broadcast %736 : f32 to vector<2x16x16xf32>
    %738 = arith.mulf %735, %737 : vector<2x16x16xf32>
    %739 = arith.addf %734, %738 : vector<2x16x16xf32>
    %740 = vector.extract_strided_slice %723 {offsets = [0, 2, 0], sizes = [2, 16, 16], strides = [1, 1, 1]} : vector<2x20x20xf32> to vector<2x16x16xf32>
    %c3_288 = arith.constant 3 : index
    %c3_289 = arith.constant 3 : index
    %741 = memref.load %arg2[%c3_288, %c3_289] : memref<4x9xf32, #tpu.memory_space<smem>>
    %742 = vector.broadcast %741 : f32 to vector<2x16x16xf32>
    %743 = arith.mulf %740, %742 : vector<2x16x16xf32>
    %744 = arith.addf %739, %743 : vector<2x16x16xf32>
    %745 = vector.extract_strided_slice %723 {offsets = [0, 2, 2], sizes = [2, 16, 16], strides = [1, 1, 1]} : vector<2x20x20xf32> to vector<2x16x16xf32>
    %c3_290 = arith.constant 3 : index
    %c4_291 = arith.constant 4 : index
    %746 = memref.load %arg2[%c3_290, %c4_291] : memref<4x9xf32, #tpu.memory_space<smem>>
    %747 = vector.broadcast %746 : f32 to vector<2x16x16xf32>
    %748 = arith.mulf %745, %747 : vector<2x16x16xf32>
    %749 = arith.addf %744, %748 : vector<2x16x16xf32>
    %750 = vector.extract_strided_slice %723 {offsets = [0, 2, 4], sizes = [2, 16, 16], strides = [1, 1, 1]} : vector<2x20x20xf32> to vector<2x16x16xf32>
    %c3_292 = arith.constant 3 : index
    %c5_293 = arith.constant 5 : index
    %751 = memref.load %arg2[%c3_292, %c5_293] : memref<4x9xf32, #tpu.memory_space<smem>>
    %752 = vector.broadcast %751 : f32 to vector<2x16x16xf32>
    %753 = arith.mulf %750, %752 : vector<2x16x16xf32>
    %754 = arith.addf %749, %753 : vector<2x16x16xf32>
    %755 = vector.extract_strided_slice %723 {offsets = [0, 4, 0], sizes = [2, 16, 16], strides = [1, 1, 1]} : vector<2x20x20xf32> to vector<2x16x16xf32>
    %c3_294 = arith.constant 3 : index
    %c6_295 = arith.constant 6 : index
    %756 = memref.load %arg2[%c3_294, %c6_295] : memref<4x9xf32, #tpu.memory_space<smem>>
    %757 = vector.broadcast %756 : f32 to vector<2x16x16xf32>
    %758 = arith.mulf %755, %757 : vector<2x16x16xf32>
    %759 = arith.addf %754, %758 : vector<2x16x16xf32>
    %760 = vector.extract_strided_slice %723 {offsets = [0, 4, 2], sizes = [2, 16, 16], strides = [1, 1, 1]} : vector<2x20x20xf32> to vector<2x16x16xf32>
    %c3_296 = arith.constant 3 : index
    %c7_297 = arith.constant 7 : index
    %761 = memref.load %arg2[%c3_296, %c7_297] : memref<4x9xf32, #tpu.memory_space<smem>>
    %762 = vector.broadcast %761 : f32 to vector<2x16x16xf32>
    %763 = arith.mulf %760, %762 : vector<2x16x16xf32>
    %764 = arith.addf %759, %763 : vector<2x16x16xf32>
    %765 = vector.extract_strided_slice %723 {offsets = [0, 4, 4], sizes = [2, 16, 16], strides = [1, 1, 1]} : vector<2x20x20xf32> to vector<2x16x16xf32>
    %c3_298 = arith.constant 3 : index
    %c8_299 = arith.constant 8 : index
    %766 = memref.load %arg2[%c3_298, %c8_299] : memref<4x9xf32, #tpu.memory_space<smem>>
    %767 = vector.broadcast %766 : f32 to vector<2x16x16xf32>
    %768 = arith.mulf %765, %767 : vector<2x16x16xf32>
    %769 = arith.addf %764, %768 : vector<2x16x16xf32>
    %c0_300 = arith.constant 0 : index
    %c3_301 = arith.constant 3 : index
    %770 = memref.load %arg3[%c0_300, %c3_301] : memref<4x4xf32, #tpu.memory_space<smem>>
    %771 = vector.broadcast %770 : f32 to vector<2x16x16xf32>
    %772 = arith.mulf %769, %771 : vector<2x16x16xf32>
    %773 = arith.addf %579, %772 : vector<2x16x16xf32>
    %c1_302 = arith.constant 1 : index
    %c3_303 = arith.constant 3 : index
    %774 = memref.load %arg3[%c1_302, %c3_303] : memref<4x4xf32, #tpu.memory_space<smem>>
    %775 = vector.broadcast %774 : f32 to vector<2x16x16xf32>
    %776 = arith.mulf %769, %775 : vector<2x16x16xf32>
    %777 = arith.addf %583, %776 : vector<2x16x16xf32>
    %c2_304 = arith.constant 2 : index
    %c3_305 = arith.constant 3 : index
    %778 = memref.load %arg3[%c2_304, %c3_305] : memref<4x4xf32, #tpu.memory_space<smem>>
    %779 = vector.broadcast %778 : f32 to vector<2x16x16xf32>
    %780 = arith.mulf %769, %779 : vector<2x16x16xf32>
    %781 = arith.addf %587, %780 : vector<2x16x16xf32>
    %c3_306 = arith.constant 3 : index
    %c3_307 = arith.constant 3 : index
    %782 = memref.load %arg3[%c3_306, %c3_307] : memref<4x4xf32, #tpu.memory_space<smem>>
    %783 = vector.broadcast %782 : f32 to vector<2x16x16xf32>
    %784 = arith.mulf %769, %783 : vector<2x16x16xf32>
    %785 = arith.addf %591, %784 : vector<2x16x16xf32>
    %c0_308 = arith.constant 0 : index
    %786 = memref.load %arg6[%c0_308] : memref<1xf32, #tpu.memory_space<smem>>
    %787 = vector.shape_cast %773 : vector<2x16x16xf32> to vector<1x2x16x16xf32>
    %cst_309 = arith.constant dense<0.000000e+00> : vector<1xf32>
    %788 = vector.multi_reduction <add>, %787, %cst_309 [1, 2, 3] : vector<1x2x16x16xf32> to vector<1xf32>
    %789 = vector.shape_cast %788 : vector<1xf32> to vector<1x1x1x1xf32>
    %790 = vector.extract %789[0, 0, 0, 0] : f32 from vector<1x1x1x1xf32>
    %791 = arith.mulf %773, %773 : vector<2x16x16xf32>
    %792 = vector.shape_cast %791 : vector<2x16x16xf32> to vector<1x2x16x16xf32>
    %cst_310 = arith.constant dense<0.000000e+00> : vector<1xf32>
    %793 = vector.multi_reduction <add>, %792, %cst_310 [1, 2, 3] : vector<1x2x16x16xf32> to vector<1xf32>
    %794 = vector.shape_cast %793 : vector<1xf32> to vector<1x1x1x1xf32>
    %795 = vector.extract %794[0, 0, 0, 0] : f32 from vector<1x1x1x1xf32>
    %cst_311 = arith.constant 0.001953125 : f32
    %796 = arith.mulf %790, %cst_311 : f32
    %cst_312 = arith.constant 0.001953125 : f32
    %797 = arith.mulf %795, %cst_312 : f32
    %798 = arith.mulf %796, %796 : f32
    %799 = arith.subf %797, %798 : f32
    %cst_313 = arith.constant 0.000000e+00 : f32
    %800 = arith.maximumf %799, %cst_313 : f32
    %cst_314 = arith.constant 9.99999974E-6 : f32
    %801 = arith.addf %800, %cst_314 : f32
    %802 = math.rsqrt %801 : f32
    %c0_315 = arith.constant 0 : index
    %803 = memref.load %arg4[%c0_315] : memref<4xf32, #tpu.memory_space<smem>>
    %804 = arith.mulf %803, %802 : f32
    %c0_316 = arith.constant 0 : index
    %805 = memref.load %arg5[%c0_316] : memref<4xf32, #tpu.memory_space<smem>>
    %806 = arith.mulf %796, %804 : f32
    %807 = arith.subf %805, %806 : f32
    %808 = vector.broadcast %804 : f32 to vector<2x16x16xf32>
    %809 = arith.mulf %773, %808 : vector<2x16x16xf32>
    %810 = vector.broadcast %807 : f32 to vector<2x16x16xf32>
    %811 = arith.addf %809, %810 : vector<2x16x16xf32>
    %cst_317 = arith.constant 0.000000e+00 : f32
    %812 = vector.broadcast %cst_317 : f32 to vector<2x16x16xf32>
    %813 = arith.cmpf oge, %811, %812 : vector<2x16x16xf32>
    %814 = vector.broadcast %786 : f32 to vector<2x16x16xf32>
    %815 = arith.mulf %814, %811 : vector<2x16x16xf32>
    %816 = arith.select %813, %811, %815 : vector<2x16x16xi1>, vector<2x16x16xf32>
    %c0_318 = arith.constant 0 : index
    %c0_319 = arith.constant 0 : index
    %c0_320 = arith.constant 0 : index
    %c0_321 = arith.constant 0 : index
    %817 = vector.load %arg0[%c0_318, %c0_319, %c0_320, %c0_321] : memref<2x4x28x28xf32, #tpu.memory_space<vmem>>, vector<2x1x28x28xf32>
    %818 = vector.shape_cast %817 : vector<2x1x28x28xf32> to vector<2x28x28xf32>
    %819 = vector.extract_strided_slice %818 {offsets = [0, 6, 6], sizes = [2, 16, 16], strides = [1, 1, 1]} : vector<2x28x28xf32> to vector<2x16x16xf32>
    %820 = arith.addf %819, %816 : vector<2x16x16xf32>
    %c0_322 = arith.constant 0 : index
    %c0_323 = arith.constant 0 : index
    %c0_324 = arith.constant 0 : index
    %c0_325 = arith.constant 0 : index
    %821 = vector.load %arg7[%c0_322, %c0_323, %c0_324, %c0_325] : memref<2x4x16x16xf32, #tpu.memory_space<vmem>>, vector<2x1x16x16xf32>
    %822 = vector.shape_cast %821 : vector<2x1x16x16xf32> to vector<2x16x16xf32>
    %823 = vector.shape_cast %820 : vector<2x16x16xf32> to vector<2x1x16x16xf32>
    tpu.vector_store %arg7[%c0_322, %c0_323, %c0_324, %c0_325], %823 {strides = array<i32>} : memref<2x4x16x16xf32, #tpu.memory_space<vmem>>, vector<2x1x16x16xf32>,
    %824 = vector.shape_cast %777 : vector<2x16x16xf32> to vector<1x2x16x16xf32>
    %cst_326 = arith.constant dense<0.000000e+00> : vector<1xf32>
    %825 = vector.multi_reduction <add>, %824, %cst_326 [1, 2, 3] : vector<1x2x16x16xf32> to vector<1xf32>
    %826 = vector.shape_cast %825 : vector<1xf32> to vector<1x1x1x1xf32>
    %827 = vector.extract %826[0, 0, 0, 0] : f32 from vector<1x1x1x1xf32>
    %828 = arith.mulf %777, %777 : vector<2x16x16xf32>
    %829 = vector.shape_cast %828 : vector<2x16x16xf32> to vector<1x2x16x16xf32>
    %cst_327 = arith.constant dense<0.000000e+00> : vector<1xf32>
    %830 = vector.multi_reduction <add>, %829, %cst_327 [1, 2, 3] : vector<1x2x16x16xf32> to vector<1xf32>
    %831 = vector.shape_cast %830 : vector<1xf32> to vector<1x1x1x1xf32>
    %832 = vector.extract %831[0, 0, 0, 0] : f32 from vector<1x1x1x1xf32>
    %cst_328 = arith.constant 0.001953125 : f32
    %833 = arith.mulf %827, %cst_328 : f32
    %cst_329 = arith.constant 0.001953125 : f32
    %834 = arith.mulf %832, %cst_329 : f32
    %835 = arith.mulf %833, %833 : f32
    %836 = arith.subf %834, %835 : f32
    %cst_330 = arith.constant 0.000000e+00 : f32
    %837 = arith.maximumf %836, %cst_330 : f32
    %cst_331 = arith.constant 9.99999974E-6 : f32
    %838 = arith.addf %837, %cst_331 : f32
    %839 = math.rsqrt %838 : f32
    %c1_332 = arith.constant 1 : index
    %840 = memref.load %arg4[%c1_332] : memref<4xf32, #tpu.memory_space<smem>>
    %841 = arith.mulf %840, %839 : f32
    %c1_333 = arith.constant 1 : index
    %842 = memref.load %arg5[%c1_333] : memref<4xf32, #tpu.memory_space<smem>>
    %843 = arith.mulf %833, %841 : f32
    %844 = arith.subf %842, %843 : f32
    %845 = vector.broadcast %841 : f32 to vector<2x16x16xf32>
    %846 = arith.mulf %777, %845 : vector<2x16x16xf32>
    %847 = vector.broadcast %844 : f32 to vector<2x16x16xf32>
    %848 = arith.addf %846, %847 : vector<2x16x16xf32>
    %cst_334 = arith.constant 0.000000e+00 : f32
    %849 = vector.broadcast %cst_334 : f32 to vector<2x16x16xf32>
    %850 = arith.cmpf oge, %848, %849 : vector<2x16x16xf32>
    %851 = vector.broadcast %786 : f32 to vector<2x16x16xf32>
    %852 = arith.mulf %851, %848 : vector<2x16x16xf32>
    %853 = arith.select %850, %848, %852 : vector<2x16x16xi1>, vector<2x16x16xf32>
    %c0_335 = arith.constant 0 : index
    %c1_336 = arith.constant 1 : index
    %c0_337 = arith.constant 0 : index
    %c0_338 = arith.constant 0 : index
    %854 = vector.load %arg0[%c0_335, %c1_336, %c0_337, %c0_338] : memref<2x4x28x28xf32, #tpu.memory_space<vmem>>, vector<2x1x28x28xf32>
    %855 = vector.shape_cast %854 : vector<2x1x28x28xf32> to vector<2x28x28xf32>
    %856 = vector.extract_strided_slice %855 {offsets = [0, 6, 6], sizes = [2, 16, 16], strides = [1, 1, 1]} : vector<2x28x28xf32> to vector<2x16x16xf32>
    %857 = arith.addf %856, %853 : vector<2x16x16xf32>
    %c0_339 = arith.constant 0 : index
    %c1_340 = arith.constant 1 : index
    %c0_341 = arith.constant 0 : index
    %c0_342 = arith.constant 0 : index
    %858 = vector.load %arg7[%c0_339, %c1_340, %c0_341, %c0_342] : memref<2x4x16x16xf32, #tpu.memory_space<vmem>>, vector<2x1x16x16xf32>
    %859 = vector.shape_cast %858 : vector<2x1x16x16xf32> to vector<2x16x16xf32>
    %860 = vector.shape_cast %857 : vector<2x16x16xf32> to vector<2x1x16x16xf32>
    tpu.vector_store %arg7[%c0_339, %c1_340, %c0_341, %c0_342], %860 {strides = array<i32>} : memref<2x4x16x16xf32, #tpu.memory_space<vmem>>, vector<2x1x16x16xf32>,
    %861 = vector.shape_cast %781 : vector<2x16x16xf32> to vector<1x2x16x16xf32>
    %cst_343 = arith.constant dense<0.000000e+00> : vector<1xf32>
    %862 = vector.multi_reduction <add>, %861, %cst_343 [1, 2, 3] : vector<1x2x16x16xf32> to vector<1xf32>
    %863 = vector.shape_cast %862 : vector<1xf32> to vector<1x1x1x1xf32>
    %864 = vector.extract %863[0, 0, 0, 0] : f32 from vector<1x1x1x1xf32>
    %865 = arith.mulf %781, %781 : vector<2x16x16xf32>
    %866 = vector.shape_cast %865 : vector<2x16x16xf32> to vector<1x2x16x16xf32>
    %cst_344 = arith.constant dense<0.000000e+00> : vector<1xf32>
    %867 = vector.multi_reduction <add>, %866, %cst_344 [1, 2, 3] : vector<1x2x16x16xf32> to vector<1xf32>
    %868 = vector.shape_cast %867 : vector<1xf32> to vector<1x1x1x1xf32>
    %869 = vector.extract %868[0, 0, 0, 0] : f32 from vector<1x1x1x1xf32>
    %cst_345 = arith.constant 0.001953125 : f32
    %870 = arith.mulf %864, %cst_345 : f32
    %cst_346 = arith.constant 0.001953125 : f32
    %871 = arith.mulf %869, %cst_346 : f32
    %872 = arith.mulf %870, %870 : f32
    %873 = arith.subf %871, %872 : f32
    %cst_347 = arith.constant 0.000000e+00 : f32
    %874 = arith.maximumf %873, %cst_347 : f32
    %cst_348 = arith.constant 9.99999974E-6 : f32
    %875 = arith.addf %874, %cst_348 : f32
    %876 = math.rsqrt %875 : f32
    %c2_349 = arith.constant 2 : index
    %877 = memref.load %arg4[%c2_349] : memref<4xf32, #tpu.memory_space<smem>>
    %878 = arith.mulf %877, %876 : f32
    %c2_350 = arith.constant 2 : index
    %879 = memref.load %arg5[%c2_350] : memref<4xf32, #tpu.memory_space<smem>>
    %880 = arith.mulf %870, %878 : f32
    %881 = arith.subf %879, %880 : f32
    %882 = vector.broadcast %878 : f32 to vector<2x16x16xf32>
    %883 = arith.mulf %781, %882 : vector<2x16x16xf32>
    %884 = vector.broadcast %881 : f32 to vector<2x16x16xf32>
    %885 = arith.addf %883, %884 : vector<2x16x16xf32>
    %cst_351 = arith.constant 0.000000e+00 : f32
    %886 = vector.broadcast %cst_351 : f32 to vector<2x16x16xf32>
    %887 = arith.cmpf oge, %885, %886 : vector<2x16x16xf32>
    %888 = vector.broadcast %786 : f32 to vector<2x16x16xf32>
    %889 = arith.mulf %888, %885 : vector<2x16x16xf32>
    %890 = arith.select %887, %885, %889 : vector<2x16x16xi1>, vector<2x16x16xf32>
    %c0_352 = arith.constant 0 : index
    %c2_353 = arith.constant 2 : index
    %c0_354 = arith.constant 0 : index
    %c0_355 = arith.constant 0 : index
    %891 = vector.load %arg0[%c0_352, %c2_353, %c0_354, %c0_355] : memref<2x4x28x28xf32, #tpu.memory_space<vmem>>, vector<2x1x28x28xf32>
    %892 = vector.shape_cast %891 : vector<2x1x28x28xf32> to vector<2x28x28xf32>
    %893 = vector.extract_strided_slice %892 {offsets = [0, 6, 6], sizes = [2, 16, 16], strides = [1, 1, 1]} : vector<2x28x28xf32> to vector<2x16x16xf32>
    %894 = arith.addf %893, %890 : vector<2x16x16xf32>
    %c0_356 = arith.constant 0 : index
    %c2_357 = arith.constant 2 : index
    %c0_358 = arith.constant 0 : index
    %c0_359 = arith.constant 0 : index
    %895 = vector.load %arg7[%c0_356, %c2_357, %c0_358, %c0_359] : memref<2x4x16x16xf32, #tpu.memory_space<vmem>>, vector<2x1x16x16xf32>
    %896 = vector.shape_cast %895 : vector<2x1x16x16xf32> to vector<2x16x16xf32>
    %897 = vector.shape_cast %894 : vector<2x16x16xf32> to vector<2x1x16x16xf32>
    tpu.vector_store %arg7[%c0_356, %c2_357, %c0_358, %c0_359], %897 {strides = array<i32>} : memref<2x4x16x16xf32, #tpu.memory_space<vmem>>, vector<2x1x16x16xf32>,
    %898 = vector.shape_cast %785 : vector<2x16x16xf32> to vector<1x2x16x16xf32>
    %cst_360 = arith.constant dense<0.000000e+00> : vector<1xf32>
    %899 = vector.multi_reduction <add>, %898, %cst_360 [1, 2, 3] : vector<1x2x16x16xf32> to vector<1xf32>
    %900 = vector.shape_cast %899 : vector<1xf32> to vector<1x1x1x1xf32>
    %901 = vector.extract %900[0, 0, 0, 0] : f32 from vector<1x1x1x1xf32>
    %902 = arith.mulf %785, %785 : vector<2x16x16xf32>
    %903 = vector.shape_cast %902 : vector<2x16x16xf32> to vector<1x2x16x16xf32>
    %cst_361 = arith.constant dense<0.000000e+00> : vector<1xf32>
    %904 = vector.multi_reduction <add>, %903, %cst_361 [1, 2, 3] : vector<1x2x16x16xf32> to vector<1xf32>
    %905 = vector.shape_cast %904 : vector<1xf32> to vector<1x1x1x1xf32>
    %906 = vector.extract %905[0, 0, 0, 0] : f32 from vector<1x1x1x1xf32>
    %cst_362 = arith.constant 0.001953125 : f32
    %907 = arith.mulf %901, %cst_362 : f32
    %cst_363 = arith.constant 0.001953125 : f32
    %908 = arith.mulf %906, %cst_363 : f32
    %909 = arith.mulf %907, %907 : f32
    %910 = arith.subf %908, %909 : f32
    %cst_364 = arith.constant 0.000000e+00 : f32
    %911 = arith.maximumf %910, %cst_364 : f32
    %cst_365 = arith.constant 9.99999974E-6 : f32
    %912 = arith.addf %911, %cst_365 : f32
    %913 = math.rsqrt %912 : f32
    %c3_366 = arith.constant 3 : index
    %914 = memref.load %arg4[%c3_366] : memref<4xf32, #tpu.memory_space<smem>>
    %915 = arith.mulf %914, %913 : f32
    %c3_367 = arith.constant 3 : index
    %916 = memref.load %arg5[%c3_367] : memref<4xf32, #tpu.memory_space<smem>>
    %917 = arith.mulf %907, %915 : f32
    %918 = arith.subf %916, %917 : f32
    %919 = vector.broadcast %915 : f32 to vector<2x16x16xf32>
    %920 = arith.mulf %785, %919 : vector<2x16x16xf32>
    %921 = vector.broadcast %918 : f32 to vector<2x16x16xf32>
    %922 = arith.addf %920, %921 : vector<2x16x16xf32>
    %cst_368 = arith.constant 0.000000e+00 : f32
    %923 = vector.broadcast %cst_368 : f32 to vector<2x16x16xf32>
    %924 = arith.cmpf oge, %922, %923 : vector<2x16x16xf32>
    %925 = vector.broadcast %786 : f32 to vector<2x16x16xf32>
    %926 = arith.mulf %925, %922 : vector<2x16x16xf32>
    %927 = arith.select %924, %922, %926 : vector<2x16x16xi1>, vector<2x16x16xf32>
    %c0_369 = arith.constant 0 : index
    %c3_370 = arith.constant 3 : index
    %c0_371 = arith.constant 0 : index
    %c0_372 = arith.constant 0 : index
    %928 = vector.load %arg0[%c0_369, %c3_370, %c0_371, %c0_372] : memref<2x4x28x28xf32, #tpu.memory_space<vmem>>, vector<2x1x28x28xf32>
    %929 = vector.shape_cast %928 : vector<2x1x28x28xf32> to vector<2x28x28xf32>
    %930 = vector.extract_strided_slice %929 {offsets = [0, 6, 6], sizes = [2, 16, 16], strides = [1, 1, 1]} : vector<2x28x28xf32> to vector<2x16x16xf32>
    %931 = arith.addf %930, %927 : vector<2x16x16xf32>
    %c0_373 = arith.constant 0 : index
    %c3_374 = arith.constant 3 : index
    %c0_375 = arith.constant 0 : index
    %c0_376 = arith.constant 0 : index
    %932 = vector.load %arg7[%c0_373, %c3_374, %c0_375, %c0_376] : memref<2x4x16x16xf32, #tpu.memory_space<vmem>>, vector<2x1x16x16xf32>
    %933 = vector.shape_cast %932 : vector<2x1x16x16xf32> to vector<2x16x16xf32>
    %934 = vector.shape_cast %931 : vector<2x16x16xf32> to vector<2x1x16x16xf32>
    tpu.vector_store %arg7[%c0_373, %c3_374, %c0_375, %c0_376], %934 {strides = array<i32>} : memref<2x4x16x16xf32, #tpu.memory_space<vmem>>, vector<2x1x16x16xf32>,
    return
  }
}

</mosaic_0001>

<bundles_post_ra>
// kernel: enhance_residual.1
= control target key start
LH: loop header
LB: loop body
LE: loop exit
PB: predicated region body
PF: predicated region fallthrough
CT: control target
= control target key end

     0   :  { %13 = vsyncpa [#allocation5], 0  ;;  %s12457_s0 = inlined_call_operand.vmem [shape: f32[2,4,28,28], index: 0, kind: input, shape index: {}]   ;;  %s12458_s1 = inlined_call_operand.vmem [shape: f32[4,25], index: 1, kind: input, shape index: {}]   ;;  %s12459_s2 = inlined_call_operand.vmem [shape: f32[4,9], index: 2, kind: input, shape index: {}]   ;;  %s12460_s3 = inlined_call_operand.vmem [shape: f32[4,4], index: 3, kind: input, shape index: {}]   ;;  %s12461_s4 = inlined_call_operand.vmem [shape: f32[4], index: 4, kind: input, shape index: {}]   ;;  %s12462_s5 = inlined_call_operand.vmem [shape: f32[4], index: 5, kind: input, shape index: {}]   ;;  %s12463_s6 = inlined_call_operand.<no memory space> [shape: f32[1], index: 6, kind: input, shape index: {}]   ;;  %s12464_s7 = inlined_call_operand.hbm [shape: f32[2,4,16,16], index: 7, kind: output, shape index: {}]  }
   0x1   :  { %14 = vsyncpa [#allocation7], 0 }
   0x2   :  { %15 = vsyncpa [#allocation10], 0  ;;  %s35_s26 = sshll.u32 %s12459_s2, 4  ;;  %s36_s26 = int_to_ptr.vmem [resolvable:$true] %s35_s26 }
   0x3   :  { %16 = vsyncpa [#allocation4], 0  ;;  %s55_s29 = sshll.u32 %s12461_s4, 4  ;;  %s6568_s30 = scalar_lea.vmem %s36_s26, 64  ;;  %s56_s29 = int_to_ptr.vmem [resolvable:$true] %s55_s29 }
   0x4   :  { %p6569_p0 = scmp.ne.s32.totalorder %s36_s26, %s6568_s30  ;;  %p6573_p1 = scmp.lt.s32.totalorder %s36_s26, %s36_s26 }
   0x5   :  { %p6574_p2 = scmp.lt.s32.totalorder %s6568_s30, %s6568_s30 }
   0x7   :  { %p6575_p3 = por %p6574_p2, %p6573_p1 }
   0x9   :  { %p6576_p4 = pnand %p6575_p3, %p6569_p0 }
   0xb   :  { %6579 = shalt.err (!%p6576_p4)
}
   0xc   :  { %s6656_s8 = smov [#allocation6]   ;;  %s6580_s9 = scalar_lea.vmem %s56_s29, 16 }
   0xd   :  { %38 = dma.vmem_to_smem %s36_s26, 64, %s6656_s8, [#allocation7]  }
   0xe   :  { %p6581_p5 = scmp.ne.s32.totalorder %s56_s29, %s6580_s9  ;;  %p6585_p6 = scmp.lt.s32.totalorder %s56_s29, %s56_s29 }
   0xf   :  { %p6586_p7 = scmp.lt.s32.totalorder %s6580_s9, %s6580_s9 }
  0x11   :  { %p6587_p8 = por %p6586_p7, %p6585_p6 }
  0x13   :  { %p6588_p9 = pnand %p6587_p8, %p6581_p5 }
  0x15   :  { %6591 = shalt.err (!%p6588_p9)
}
  0x16   :  { %s6657_s2 = smov [#allocation9]   ;;  %s25_s11 = sshll.u32 %s12458_s1, 4  ;;  %s26_s11 = int_to_ptr.vmem [resolvable:$true] %s25_s11 }
  0x17   :  { %58 = dma.vmem_to_smem %s56_s29, 16, %s6657_s2, [#allocation10]  }
  0x18   :  { %s45_s14 = sshll.u32 %s12460_s3, 4  ;;  %s6592_s15 = scalar_lea.vmem %s26_s11, 64  ;;  %s46_s14 = int_to_ptr.vmem [resolvable:$true] %s45_s14 }
  0x19   :  { %p6593_p10 = scmp.ne.s32.totalorder %s26_s11, %s6592_s15  ;;  %p6597_p11 = scmp.lt.s32.totalorder %s26_s11, %s26_s11 }
  0x1a   :  { %p6598_p12 = scmp.lt.s32.totalorder %s6592_s15, %s6592_s15 }
  0x1c   :  { %p6599_p13 = por %p6598_p12, %p6597_p11 }
  0x1e   :  { %p6600_p0 = pnand %p6599_p13, %p6593_p10 }
  0x20   :  { %6603 = shalt.err (!%p6600_p0)
}
  0x21   :  { %s6658_s16 = smov [#allocation3]   ;;  %s6604_s17 = scalar_lea.vmem %s46_s14, 64 }
  0x22   :  { %28 = dma.vmem_to_smem %s26_s11, 64, %s6658_s16, [#allocation5]  }
  0x23   :  { %p6605_p1 = scmp.ne.s32.totalorder %s46_s14, %s6604_s17  ;;  %p6609_p2 = scmp.lt.s32.totalorder %s46_s14, %s46_s14 }
  0x24   :  { %p6610_p3 = scmp.lt.s32.totalorder %s6604_s17, %s6604_s17 }
  0x26   :  { %p6611_p4 = por %p6610_p3, %p6609_p2 }
  0x28   :  { %p6612_p5 = pnand %p6611_p4, %p6605_p1 }
  0x2a   :  { %6615 = shalt.err (!%p6612_p5)
}
  0x2b   :  { %s6659_s1 = smov [#allocation8]   ;;  %s65_s19 = sshll.u32 %s12462_s5, 4  ;;  %s66_s19 = int_to_ptr.vmem [resolvable:$true] %s65_s19 }
  0x2c   :  { %48 = dma.vmem_to_smem %s46_s14, 64, %s6659_s1, [#allocation7]  }
  0x2d   :  { %s6616_s20 = scalar_lea.vmem %s66_s19, 16  ;;  %p6621_p7 = scmp.lt.s32.totalorder %s66_s19, %s66_s19 }
  0x2e   :  { %p6617_p6 = scmp.ne.s32.totalorder %s66_s19, %s6616_s20  ;;  %p6622_p8 = scmp.lt.s32.totalorder %s6616_s20, %s6616_s20 }
  0x30   :  { %p6623_p9 = por %p6622_p8, %p6621_p7 }
  0x32   :  { %p6624_p10 = pnand %p6623_p9, %p6617_p6 }
  0x34   :  { %6627 = shalt.err (!%p6624_p10)
}
  0x35   :  { %s6660_s21 = smov [#allocation11]  }
  0x36   :  { %68 = dma.vmem_to_smem %s66_s19, 16, %s6660_s21, [#allocation10]  }
  0x37   :  { %6648 = dma.done.wait [#allocation5], 64  }
  0x38   :  { %6649 = vsyncadd [#allocation5], 4294967232 }
  0x39   :  { %6650 = dma.done.wait [#allocation7], 128  }
  0x3a   :  { %6651 = vsyncadd [#allocation7], 4294967168 }
  0x3b   :  { %6652 = dma.done.wait [#allocation10], 32  }
  0x3c   :  { %6653 = vsyncadd [#allocation10], 4294967264 }
  0x3d   :  { %86 = sfence }
  0x3e   :  { %s6279_s22 = sld [smem:[#allocation3 + $0x1]]  ;;  %v6728_v0 = vld [vmem:[%s12457_s0 + $0x10] sm:$0xff]  ;;  %v6733_v1 = vld [vmem:[%s12457_s0] sm:$0xff]  ;;  %v6743_v4 = vld [vmem:[%s12457_s0 + $0x8] sm:$0xff]  ;;  %s6661_s8 = smov 126   ;;  %vm298_vm0 = vcmask 1045504  }
  0x3f   :  { %v6738_v3 = vld [vmem:[%s12457_s0 + $0x80] sm:$0xff]  ;;  %s6280_s30 = sld [smem:[#allocation3 + $0x2]]  ;;  %v6754_v9 = vld [vmem:[%s12457_s0 + $0x90] sm:$0xff]  ;;  %v6759_v10 = vld [vmem:[%s12457_s0 + $0x88] sm:$0xff]  ;;  %s6662_s12 = smov 124   ;;  %vm527_vm1 = vcmask 1043456  }
  0x40   :  { %s6281_s11 = sld [smem:[#allocation3 + $0x3]]  ;;  %s6663_s14 = smov 122   ;;  %vm760_vm2 = vcmask 1041408   ;;  %vm5691_vm12 = vcmask 130048  }
  0x41   :  { %s6282_s13 = sld [smem:[#allocation3 + $0x4]]  ;;  %s6664_s16 = smov 120  }
  0x42   :  { %s6284_s15 = sld [smem:[#allocation3 + $0x6]] }
  0x43   :  { %s6285_s17 = sld [smem:[#allocation3 + $0x7]] }
  0x44   :  { %v133_v2 = vstv %s6279_s22  ;;  %s6286_s1 = sld [smem:[#allocation3 + $0x8]] }
  0x45   :  { %v136_v5 = vmul.f32 %v133_v2, %v6728_v0  ;;  %v134_v6 = vmul.f32 %v133_v2, %v6733_v1  ;;  %v137_v7 = vmul.f32 %v133_v2, %v6738_v3  ;;  %v135_v8 = vmul.f32 %v133_v2, %v6743_v4  ;;  %s6287_s3 = sld [smem:[#allocation3 + $0x9]] }
  0x46   :  { %v139_v11 = vmul.f32 %v133_v2, %v6754_v9  ;;  %v138_v12 = vmul.f32 %v133_v2, %v6759_v10  ;;  %v171_v13 = vstv %s6280_s30  ;;  %v209_v20 = vstv %s6281_s11  ;;  %s6289_s18 = sld [smem:[#allocation3 + $0xb]] }
  0x47   :  { %150 = vrot.lane.b32.xlu1 %v136_v5, %s6661_s8  ;;  %146 = vrot.lane.b32.xlu0 %v134_v6, %s6661_s8  ;;  %v173_v14 = vmul.f32 %v171_v13, %v6743_v4  ;;  %v172_v15 = vmul.f32 %v171_v13, %v6733_v1  ;;  %v175_v16 = vmul.f32 %v171_v13, %v6738_v3  ;;  %v247_v27 = vstv %s6282_s13  ;;  %s6290_s19 = sld [smem:[#allocation3 + $0xc]] }
  0x48   :  { %v174_v17 = vmul.f32 %v171_v13, %v6728_v0  ;;  %v177_v18 = vmul.f32 %v171_v13, %v6754_v9  ;;  %v176_v19 = vmul.f32 %v171_v13, %v6759_v10  ;;  %v211_v21 = vmul.f32 %v209_v20, %v6743_v4  ;;  %s6291_s20 = sld [smem:[#allocation3 + $0xd]] }
  0x49   :  { %v210_v22 = vmul.f32 %v209_v20, %v6733_v1  ;;  %v213_v23 = vmul.f32 %v209_v20, %v6738_v3  ;;  %v212_v24 = vmul.f32 %v209_v20, %v6728_v0  ;;  %v215_v25 = vmul.f32 %v209_v20, %v6754_v9  ;;  %s6292_s21 = sld [smem:[#allocation3 + $0xe]] }
  0x4a   :  { %v214_v26 = vmul.f32 %v209_v20, %v6759_v10  ;;  %v249_v28 = vmul.f32 %v247_v27, %v6743_v4  ;;  %v248_v29 = vmul.f32 %v247_v27, %v6733_v1  ;;  %v322_v30 = vstv %s6284_s15  ;;  %s6294_s22 = sld [smem:[#allocation3 + $0x10]] }
  0x4b   :  { %152 = vrot.lane.b32.xlu1 %v137_v7, %s6661_s8  ;;  %148 = vrot.lane.b32.xlu0 %v135_v8, %s6661_s8  ;;  %v251_v31 = vmul.f32 %v247_v27, %v6738_v3  ;;  %v250_v32 = vmul.f32 %v247_v27, %v6728_v0  ;;  %v324_v33 = vmul.f32 %v322_v30, %v6743_v4  ;;  %v370_v48 = vstv %s6285_s17  ;;  %s6295_s23 = sld [smem:[#allocation3 + $0x11]] }
  0x4c   :  { %v325_v34 = vmul.f32 %v322_v30, %v6728_v0  ;;  %v323_v35 = vmul.f32 %v322_v30, %v6733_v1  ;;  %v253_v36 = vmul.f32 %v247_v27, %v6754_v9  ;;  %v252_v37 = vmul.f32 %v247_v27, %v6759_v10  ;;  %s6296_s27 = sld [smem:[#allocation3 + $0x12]] }
  0x4d   :  { %v326_v38 = vmul.f32 %v322_v30, %v6738_v3  ;;  %v336_v39 = vrot.slane %v324_v33, 2  ;;  %v327_v42 = vmul.f32 %v322_v30, %v6759_v10  ;;  %v328_v43 = vmul.f32 %v322_v30, %v6754_v9  ;;  %s6297_s28 = sld [smem:[#allocation3 + $0x13]] }
  0x4e   :  { %v338_v40 = vrot.slane %v325_v34, 2  ;;  %v335_v41 = vrot.slane %v323_v35, 2  ;;  %v372_v51 = vmul.f32 %v370_v48, %v6743_v4  ;;  %v373_v52 = vmul.f32 %v370_v48, %v6728_v0  ;;  %s6299_s29 = sld [smem:[#allocation3 + $0x15]] }
  0x4f   :  { %156 = vrot.lane.b32.xlu1 %v139_v11, %s6661_s8  ;;  %154 = vrot.lane.b32.xlu0 %v138_v12, %s6661_s8  ;;  %v340_v46 = vrot.slane %v326_v38, 2  ;;  %v341_v47 = vrot.slane %v327_v42, 2  ;;  %v343_v49 = vrot.slane %v328_v43, 2  ;;  %v371_v53 = vmul.f32 %v370_v48, %v6733_v1  ;;  %s6300_s30 = sld [smem:[#allocation3 + $0x16]] }
  0x50   :  { %v339_v44 = vsel %vm298_vm0, %v336_v39, %v338_v40  ;;  %v337_v45 = vsel %vm298_vm0, %v335_v41, %v336_v39  ;;  %v374_v55 = vmul.f32 %v370_v48, %v6738_v3  ;;  %v384_v56 = vrot.slane %v372_v51, 2  ;;  %s6301_s9 = sld [smem:[#allocation3 + $0x17]] }
  0x51   :  { %v342_v50 = vsel %vm298_vm0, %v340_v46, %v341_v47  ;;  %v344_v54 = vsel %vm298_vm0, %v341_v47, %v343_v49  ;;  %v386_v57 = vrot.slane %v373_v52, 2  ;;  %v383_v58 = vrot.slane %v371_v53, 2  ;;  %s6302_s2 = sld [smem:[#allocation3 + $0x18]] }
  0x52   :  { %v375_v59 = vmul.f32 %v370_v48, %v6759_v10  ;;  %v388_v60 = vrot.slane %v374_v55, 2  ;;  %v418_v61 = vstv %s6286_s1  ;;  %v376_v5 = vmul.f32 %v370_v48, %v6754_v9  ;;  %s118_s4 = sld [smem:[#allocation3]] }
  0x53   :  { %186 = vrot.lane.b32.xlu1 %v173_v14, %s6662_s12  ;;  %184 = vrot.lane.b32.xlu0 %v172_v15, %s6662_s12  ;;  %v387_v62 = vsel %vm298_vm0, %v384_v56, %v386_v57  ;;  %v385_v63 = vsel %vm298_vm0, %v383_v58, %v384_v56  ;;  %v420_v6 = vmul.f32 %v418_v61, %v6743_v4  ;;  %v466_v20 = vstv %s6287_s3  ;;  %s6283_s10 = sld [smem:[#allocation3 + $0x5]] }
  0x54   :  { %v389_v2 = vrot.slane %v375_v59, 2  ;;  %v421_v7 = vmul.f32 %v418_v61, %v6728_v0  ;;  %v391_v11 = vrot.slane %v376_v5, 2  ;;  %v419_v12 = vmul.f32 %v418_v61, %v6733_v1  ;;  %s6288_s1 = sld [smem:[#allocation3 + $0xa]] }
  0x55   :  { %v432_v13 = vrot.slane %v420_v6, 2  ;;  %v471_v35 = vmul.f32 %v466_v20, %v6759_v10  ;;  %v551_v41 = vstv %s6289_s18  ;;  %s7325_s24 = sld [smem:[#allocation3 + $0xf]] }
  0x56   :  { %v390_v8 = vsel %vm298_vm0, %v388_v60, %v389_v2  ;;  %v434_v14 = vrot.slane %v421_v7, 2  ;;  %v392_v15 = vsel %vm298_vm0, %v389_v2, %v391_v11  ;;  %v552_v46 = vmul.f32 %v551_v41, %v6733_v1  ;;  %s7434_s25 = sld [smem:[#allocation3 + $0x14]] }
  0x57   :  { %190 = vrot.lane.b32.xlu1 %v175_v16, %s6662_s12  ;;  %188 = vrot.lane.b32.xlu0 %v174_v17, %s6662_s12  ;;  %v431_v16 = vrot.slane %v419_v12, 2  ;;  %v422_v17 = vmul.f32 %v418_v61, %v6738_v3  ;;  %v555_v48 = vmul.f32 %v551_v41, %v6738_v3  ;;  %v556_v52 = vmul.f32 %v551_v41, %v6759_v10  ;;  %s7502_s26 = sld [smem:[#allocation6 + $0x1]] }
  0x58   :  { %v564_v51 = vrot.slane %v552_v46, 4  ;;  %v557_v53 = vmul.f32 %v551_v41, %v6754_v9  ;;  %s6324_s18 = sld [smem:[#allocation3 + $0x82]] }
  0x59   :  { %v570_v58 = vrot.slane %v556_v52, 4  ;;  %s6338_s11 = sld [smem:[#allocation3 + $0x90]] }
  0x5a   :  { %s6339_s17 = sld [smem:[#allocation3 + $0x91]] }
  0x5b   :  { %194 = vrot.lane.b32.xlu1 %v177_v18, %s6662_s12  ;;  %192 = vrot.lane.b32.xlu0 %v176_v19, %s6662_s12  ;;  %v423_v18 = vmul.f32 %v418_v61, %v6759_v10  ;;  %v424_v19 = vmul.f32 %v418_v61, %v6754_v9  ;;  %v572_v61 = vrot.slane %v557_v53, 4  ;;  %s6348_s3 = sld [smem:[#allocation6 + $0x81]] }
  0x5c   :  { %s8620_s5 = sld [smem:[#allocation6 + $0x88]] }
  0x5d   :  { %v439_v27 = vrot.slane %v424_v19, 2  ;;  %v573_v6 = vsel %vm527_vm1, %v570_v58, %v572_v61  ;;  %s8884_s13 = sld [smem:[#allocation8 + $0x80]] }
  0x5e   :  { %s6420_s15 = sld [smem:[#allocation3 + $0x186]] }
  0x5f   :  { %224 = vrot.lane.b32.xlu1 %v211_v21, %s6663_s14  ;;  %222 = vrot.lane.b32.xlu0 %v210_v22, %s6663_s14  ;;  %v435_v21 = vsel %vm298_vm0, %v432_v13, %v434_v14  ;;  %v433_v22 = vsel %vm298_vm0, %v431_v16, %v432_v13 }
  0x63   :  { %228 = vrot.lane.b32.xlu1 %v213_v23, %s6663_s14  ;;  %226 = vrot.lane.b32.xlu0 %v212_v24, %s6663_s14  ;;  %v436_v23 = vrot.slane %v422_v17, 2  ;;  %v437_v24 = vrot.slane %v423_v18, 2  ;;  %v647_v17 = vstv %s6291_s20  ;;  %s6343_s20 = sld [smem:[#allocation3 + $0x95]] }
  0x67   :  { %232 = vrot.lane.b32.xlu1 %v215_v25, %s6663_s14  ;;  %230 = vrot.lane.b32.xlu0 %v214_v26, %s6663_s14  ;;  %v468_v25 = vmul.f32 %v466_v20, %v6743_v4  ;;  %v438_v26 = vsel %vm298_vm0, %v436_v23, %v437_v24 }
  0x69   :  { %v480_v30 = vrot.slane %v468_v25, 2 }
  0x6b   :  { %262 = vrot.lane.b32.xlu1 %v249_v28, %s6664_s16  ;;  %260 = vrot.lane.b32.xlu0 %v248_v29, %s6664_s16  ;;  %v469_v28 = vmul.f32 %v466_v20, %v6728_v0  ;;  %v467_v29 = vmul.f32 %v466_v20, %v6733_v1 }
  0x6d   :  { %v482_v33 = vrot.slane %v469_v28, 2  ;;  %v479_v34 = vrot.slane %v467_v29, 2  ;;  %v652_v28 = vmul.f32 %v647_v17, %v6759_v10 }
  0x6f   :  { %266 = vrot.lane.b32.xlu1 %v251_v31, %s6664_s16  ;;  %264 = vrot.lane.b32.xlu0 %v250_v32, %s6664_s16  ;;  %v470_v31 = vmul.f32 %v466_v20, %v6738_v3  ;;  %v440_v32 = vsel %vm298_vm0, %v437_v24, %v439_v27  ;;  %v481_v38 = vsel %vm298_vm0, %v479_v34, %v480_v30 }
  0x70   :  { %v651_v24 = vmul.f32 %v647_v17, %v6738_v3 }
  0x71   :  { %v484_v39 = vrot.slane %v470_v31, 2  ;;  %v653_v31 = vmul.f32 %v647_v17, %v6754_v9 }
  0x73   :  { %270 = vrot.lane.b32.xlu1 %v253_v36, %s6664_s16  ;;  %268 = vrot.lane.b32.xlu0 %v252_v37, %s6664_s16  ;;  %v472_v36 = vmul.f32 %v466_v20, %v6754_v9  ;;  %v483_v37 = vsel %vm298_vm0, %v480_v30, %v482_v33  ;;  %v649_v20 = vmul.f32 %v647_v17, %v6743_v4 }
  0x75   :  { %v487_v42 = vrot.slane %v472_v36, 2  ;;  %v661_v25 = vrot.slane %v649_v20, 4  ;;  %v666_v36 = vrot.slane %v652_v28, 4 }
  0x77   :  { %347 = vrot.lane.b32.xlu1 %v339_v44, %s6661_s8  ;;  %345 = vrot.lane.b32.xlu0 %v337_v45, %s6661_s8  ;;  %v553_v44 = vmul.f32 %v551_v41, %v6743_v4  ;;  %v554_v45 = vmul.f32 %v551_v41, %v6728_v0 }
  0x7b   :  { %351 = vrot.lane.b32.xlu1 %v342_v50, %s6661_s8  ;;  %349 = vrot.lane.b32.xlu0 %v338_v40, %s6661_s8  ;;  %v485_v40 = vrot.slane %v471_v35, 2  ;;  %v567_v50 = vrot.slane %v554_v45, 4  ;;  %v665_v35 = vrot.slane %v651_v24, 4 }
  0x7d   :  { %v486_v43 = vsel %vm298_vm0, %v484_v39, %v485_v40  ;;  %v488_v47 = vsel %vm298_vm0, %v485_v40, %v487_v42  ;;  %v667_v41 = vsel %vm527_vm1, %v665_v35, %v666_v36 }
  0x7f   :  { %355 = vrot.lane.b32.xlu1 %v343_v49, %s6661_s8  ;;  %353 = vrot.lane.b32.xlu0 %v344_v54, %s6661_s8  ;;  %v565_v49 = vrot.slane %v553_v44, 4  ;;  %v599_v54 = vstv %s6290_s19  ;;  %s6341_s19 = sld [smem:[#allocation3 + $0x93]] }
  0x80   :  { %v601_v59 = vmul.f32 %v599_v54, %v6743_v4  ;;  %v603_v5 = vmul.f32 %v599_v54, %v6738_v3  ;;  %v605_v12 = vmul.f32 %v599_v54, %v6754_v9 }
  0x81   :  { %v568_v55 = vsel %vm527_vm1, %v565_v49, %v567_v50  ;;  %v566_v56 = vsel %vm527_vm1, %v564_v51, %v565_v49 }
  0x82   :  { %v613_v2 = vrot.slane %v601_v59, 4  ;;  %v620_v18 = vrot.slane %v605_v12, 4  ;;  %v788_v59 = vstv %s6294_s22  ;;  %s6345_s22 = sld [smem:[#allocation3 + $0x97]] }
  0x83   :  { %395 = vrot.lane.b32.xlu1 %v387_v62, %s6662_s12  ;;  %393 = vrot.lane.b32.xlu0 %v385_v63, %s6662_s12  ;;  %v602_v62 = vmul.f32 %v599_v54, %v6728_v0  ;;  %v600_v63 = vmul.f32 %v599_v54, %v6733_v1  ;;  %v795_v28 = vmul.f32 %v788_v59, %v6754_v9 }
  0x85   :  { %v615_v7 = vrot.slane %v602_v62, 4  ;;  %v790_v62 = vmul.f32 %v788_v59, %v6743_v4 }
  0x87   :  { %399 = vrot.lane.b32.xlu1 %v390_v8, %s6662_s12  ;;  %397 = vrot.lane.b32.xlu0 %v386_v57, %s6662_s12  ;;  %v569_v57 = vrot.slane %v555_v48, 4  ;;  %v612_v8 = vrot.slane %v600_v63, 4  ;;  %v616_v13 = vsel %vm527_vm1, %v613_v2, %v615_v7  ;;  %v791_v63 = vmul.f32 %v788_v59, %v6728_v0 }
  0x88   :  { %v806_v12 = vrot.slane %v790_v62, 6 }
  0x89   :  { %v571_v60 = vsel %vm527_vm1, %v569_v57, %v570_v58 }
  0x8b   :  { %403 = vrot.lane.b32.xlu1 %v391_v11, %s6662_s12  ;;  %401 = vrot.lane.b32.xlu0 %v392_v15, %s6662_s12  ;;  %v604_v11 = vmul.f32 %v599_v54, %v6759_v10  ;;  %v617_v15 = vrot.slane %v603_v5, 4 }
  0x8d   :  { %v618_v16 = vrot.slane %v604_v11, 4  ;;  %v6956_v11 = vld [vmem:[%s12457_s0 + $0x18] sm:$0xf] }
  0x8e   :  { %12572 = vst [vmem:[#allocation17_spill] sm:$0xff] %v6956_v11 }
  0x8f   :  { %443 = vrot.lane.b32.xlu1 %v435_v21, %s6663_s14  ;;  %441 = vrot.lane.b32.xlu0 %v433_v22, %s6663_s14  ;;  %v619_v19 = vsel %vm527_vm1, %v617_v15, %v618_v16  ;;  %v650_v21 = vmul.f32 %v647_v17, %v6728_v0  ;;  %v648_v22 = vmul.f32 %v647_v17, %v6733_v1 }
  0x90   :  { %v621_v23 = vsel %vm527_vm1, %v618_v16, %v620_v18  ;;  %v794_v15 = vmul.f32 %v788_v59, %v6759_v10 }
  0x92   :  { %v813_v24 = vrot.slane %v794_v15, 6  ;;  %v900_v15 = vstv %s6296_s27  ;;  %s6304_s27 = sld [smem:[#allocation6 + $0x2]] }
  0x93   :  { %447 = vrot.lane.b32.xlu1 %v438_v26, %s6663_s14  ;;  %445 = vrot.lane.b32.xlu0 %v434_v14, %s6663_s14  ;;  %v614_v14 = vsel %vm527_vm1, %v612_v8, %v613_v2  ;;  %v663_v26 = vrot.slane %v650_v21, 4  ;;  %v6971_v21 = vld [vmem:[%s12457_s0 + $0x98] sm:$0xf] }
  0x94   :  { %12573 = vst [vmem:[#allocation18_spill] sm:$0xff] %v6971_v21 }
  0x97   :  { %451 = vrot.lane.b32.xlu1 %v439_v27, %s6663_s14  ;;  %449 = vrot.lane.b32.xlu0 %v440_v32, %s6663_s14  ;;  %v660_v27 = vrot.slane %v648_v22, 4  ;;  %v695_v32 = vstv %s6292_s21  ;;  %s6344_s21 = sld [smem:[#allocation3 + $0x96]] }
  0x98   :  { %v697_v39 = vmul.f32 %v695_v32, %v6743_v4  ;;  %v698_v40 = vmul.f32 %v695_v32, %v6728_v0  ;;  %v699_v48 = vmul.f32 %v695_v32, %v6738_v3  ;;  %v700_v51 = vmul.f32 %v695_v32, %v6759_v10 }
  0x99   :  { %v662_v34 = vsel %vm527_vm1, %v660_v27, %v661_v25  ;;  %v701_v58 = vmul.f32 %v695_v32, %v6754_v9 }
  0x9a   :  { %v709_v46 = vrot.slane %v697_v39, 4  ;;  %v714_v57 = vrot.slane %v700_v51, 4 }
  0x9b   :  { %491 = vrot.lane.b32.xlu1 %v483_v37, %s6664_s16  ;;  %489 = vrot.lane.b32.xlu0 %v481_v38, %s6664_s16  ;;  %v716_v5 = vrot.slane %v701_v58, 4 }
  0x9d   :  { %v717_v16 = vsel %vm527_vm1, %v714_v57, %v716_v5 }
  0x9f   :  { %495 = vrot.lane.b32.xlu1 %v486_v43, %s6664_s16  ;;  %493 = vrot.lane.b32.xlu0 %v482_v33, %s6664_s16  ;;  %v664_v33 = vsel %vm527_vm1, %v661_v25, %v663_v26  ;;  %v696_v43 = vmul.f32 %v695_v32, %v6733_v1  ;;  %v844_v25 = vstv %s6295_s23  ;;  %s6346_s23 = sld [smem:[#allocation3 + $0x98]] }
  0xa0   :  { %v846_v35 = vmul.f32 %v844_v25, %v6743_v4  ;;  %v852_v62 = vmul.f32 %v844_v25, %v6971_v21 }
  0xa3   :  { %499 = vrot.lane.b32.xlu1 %v487_v42, %s6664_s16  ;;  %497 = vrot.lane.b32.xlu0 %v488_v47, %s6664_s16  ;;  %v668_v42 = vrot.slane %v653_v31, 4  ;;  %v711_v47 = vrot.slane %v698_v40, 4  ;;  %v796_v31 = vmul.f32 %v788_v59, %v6971_v21  ;;  %v815_v40 = vrot.slane %v795_v28, 6 }
  0xa5   :  { %v669_v49 = vsel %vm527_vm1, %v666_v36, %v668_v42  ;;  %v712_v54 = vsel %vm527_vm1, %v709_v46, %v711_v47  ;;  %v847_v36 = vmul.f32 %v844_v25, %v6728_v0 }
  0xa7   :  { %576 = vrot.lane.b32.xlu1 %v568_v55, %s6661_s8  ;;  %574 = vrot.lane.b32.xlu0 %v566_v56, %s6661_s8  ;;  %v713_v55 = vrot.slane %v699_v48, 4  ;;  %v864_v48 = vrot.slane %v847_v36, 6 }
  0xa9   :  { %v715_v2 = vsel %vm527_vm1, %v713_v55, %v714_v57 }
  0xab   :  { %580 = vrot.lane.b32.xlu1 %v571_v60, %s6661_s8  ;;  %578 = vrot.lane.b32.xlu0 %v567_v50, %s6661_s8  ;;  %v708_v50 = vrot.slane %v696_v43, 4 }
  0xad   :  { %v710_v56 = vsel %vm527_vm1, %v708_v50, %v709_v46  ;;  %v850_v50 = vmul.f32 %v844_v25, %v6759_v10 }
  0xaf   :  { %584 = vrot.lane.b32.xlu1 %v572_v61, %s6661_s8  ;;  %582 = vrot.lane.b32.xlu0 %v573_v6, %s6661_s8  ;;  %v789_v6 = vmul.f32 %v788_v59, %v6733_v1 }
  0xb1   :  { %v805_v17 = vrot.slane %v789_v6, 6 }
  0xb3   :  { %624 = vrot.lane.b32.xlu1 %v616_v13, %s6662_s12  ;;  %622 = vrot.lane.b32.xlu0 %v614_v14, %s6662_s12  ;;  %v808_v13 = vrot.slane %v791_v63, 6  ;;  %v793_v14 = vmul.f32 %v788_v59, %v6738_v3 }
  0xb5   :  { %v809_v22 = vsel %vm760_vm2, %v806_v12, %v808_v13 }
  0xb7   :  { %628 = vrot.lane.b32.xlu1 %v619_v19, %s6662_s12  ;;  %626 = vrot.lane.b32.xlu0 %v615_v7, %s6662_s12 }
  0xb9   :  { %v6902_v29 = vpop.permute.xlu1 %150  ;;  %v6904_v30 = vpop.permute.xlu0 %146 }
  0xbb   :  { %632 = vrot.lane.b32.xlu1 %v620_v18, %s6662_s12  ;;  %630 = vrot.lane.b32.xlu0 %v621_v23, %s6662_s12  ;;  %v792_v18 = vmul.f32 %v788_v59, %v6956_v11  ;;  %v812_v23 = vrot.slane %v793_v14, 6  ;;  %v851_v59 = vmul.f32 %v844_v25, %v6754_v9 }
  0xbd   :  { %v6911_v37 = vpop.permute.xlu1 %152  ;;  %v6913_v38 = vpop.permute.xlu0 %148  ;;  %v810_v27 = vrot.slane %v792_v18, 6 }
  0xbf   :  { %672 = vrot.lane.b32.xlu1 %v664_v33, %s6663_s14  ;;  %670 = vrot.lane.b32.xlu0 %v662_v34, %s6663_s14  ;;  %v814_v34 = vsel %vm760_vm2, %v812_v23, %v813_v24  ;;  %v811_v39 = vsel %vm760_vm2, %v808_v13, %v810_v27  ;;  %v902_v23 = vmul.f32 %v900_v15, %v6743_v4 }
  0xc1   :  { %v6921_v44 = vpop.permute.xlu1 %156  ;;  %v6923_v45 = vpop.permute.xlu0 %154 }
  0xc3   :  { %676 = vrot.lane.b32.xlu1 %v667_v41, %s6663_s14  ;;  %674 = vrot.lane.b32.xlu0 %v663_v26, %s6663_s14  ;;  %v807_v26 = vsel %vm760_vm2, %v805_v17, %v806_v12  ;;  %v817_v41 = vrot.slane %v796_v31, 6  ;;  %v873_v17 = vrot.slane %v852_v62, 6  ;;  %v905_v31 = vmul.f32 %v900_v15, %v6738_v3 }
  0xc5   :  { %v6930_v52 = vpop.permute.xlu1 %186  ;;  %v6932_v53 = vpop.permute.xlu0 %184  ;;  %v818_v51 = vsel %vm760_vm2, %v815_v40, %v817_v41 }
  0xc7   :  { %680 = vrot.lane.b32.xlu1 %v668_v42, %s6663_s14  ;;  %678 = vrot.lane.b32.xlu0 %v669_v49, %s6663_s14  ;;  %v845_v42 = vmul.f32 %v844_v25, %v6733_v1  ;;  %v849_v49 = vmul.f32 %v844_v25, %v6738_v3 }
  0xc9   :  { %v6939_v60 = vpop.permute.xlu1 %190  ;;  %v6941_v61 = vpop.permute.xlu0 %188  ;;  %v861_v55 = vrot.slane %v845_v42, 6  ;;  %v868_v63 = vrot.slane %v849_v49, 6 }
  0xcb   :  { %720 = vrot.lane.b32.xlu1 %v712_v54, %s6664_s16  ;;  %718 = vrot.lane.b32.xlu0 %v710_v56, %s6664_s16  ;;  %v816_v54 = vsel %vm760_vm2, %v813_v24, %v815_v40  ;;  %v848_v56 = vmul.f32 %v844_v25, %v6956_v11  ;;  %v903_v24 = vmul.f32 %v900_v15, %v6728_v0 }
  0xcc   :  { %v901_v25 = vmul.f32 %v900_v15, %v6733_v1 }
  0xcd   :  { %v6949_v7 = vpop.permute.xlu1 %194  ;;  %v6951_v8 = vpop.permute.xlu0 %192  ;;  %v866_v12 = vrot.slane %v848_v56, 6  ;;  %v920_v40 = vrot.slane %v903_v24, 6  ;;  %v908_v56 = vmul.f32 %v900_v15, %v6971_v21 }
  0xce   :  { %v917_v41 = vrot.slane %v901_v25, 6 }
  0xcf   :  { %724 = vrot.lane.b32.xlu1 %v715_v2, %s6664_s16  ;;  %722 = vrot.lane.b32.xlu0 %v711_v47, %s6664_s16  ;;  %v862_v47 = vrot.slane %v846_v35, 6  ;;  %v869_v2 = vrot.slane %v850_v50, 6  ;;  %v904_v35 = vmul.f32 %v900_v15, %v6956_v11 }
  0xd1   :  { %v6964_v19 = vpop.permute.xlu1 %224  ;;  %v6966_v20 = vpop.permute.xlu0 %222  ;;  %v863_v6 = vsel %vm760_vm2, %v861_v55, %v862_v47  ;;  %v870_v18 = vsel %vm760_vm2, %v868_v63, %v869_v2  ;;  %v922_v50 = vrot.slane %v904_v35, 6  ;;  %v956_v63 = vstv %s6297_s28  ;;  %s7548_s28 = sld [smem:[#allocation6 + $0x4]] }
  0xd2   :  { %v962_v25 = vmul.f32 %v956_v63, %v6759_v10 }
  0xd3   :  { %728 = vrot.lane.b32.xlu1 %v716_v5, %s6664_s16  ;;  %726 = vrot.lane.b32.xlu0 %v717_v16, %s6664_s16  ;;  %v865_v5 = vsel %vm760_vm2, %v862_v47, %v864_v48  ;;  %v871_v16 = vrot.slane %v851_v59, 6 }
  0xd5   :  { %v6979_v32 = vpop.permute.xlu1 %228  ;;  %v6981_v33 = vpop.permute.xlu0 %226  ;;  %v874_v28 = vsel %vm760_vm2, %v871_v16, %v873_v17  ;;  %v872_v36 = vsel %vm760_vm2, %v869_v2, %v871_v16  ;;  %v958_v16 = vmul.f32 %v956_v63, %v6743_v4  ;;  %v959_v17 = vmul.f32 %v956_v63, %v6728_v0 }
  0xd7   :  { %821 = vrot.lane.b32.xlu1 %v809_v22, %s6661_s8  ;;  %819 = vrot.lane.b32.xlu0 %v807_v26, %s6661_s8  ;;  %v867_v22 = vsel %vm760_vm2, %v864_v48, %v866_v12  ;;  %v924_v48 = vrot.slane %v905_v31, 6  ;;  %v929_v12 = vrot.slane %v908_v56, 6 }
  0xd9   :  { %v6990_v43 = vpop.permute.xlu1 %232  ;;  %v6992_v46 = vpop.permute.xlu0 %230 }
  0xdb   :  { %825 = vrot.lane.b32.xlu1 %v814_v34, %s6661_s8  ;;  %823 = vrot.lane.b32.xlu0 %v811_v39, %s6661_s8  ;;  %v906_v34 = vmul.f32 %v900_v15, %v6759_v10  ;;  %v918_v39 = vrot.slane %v902_v23, 6  ;;  %v961_v23 = vmul.f32 %v956_v63, %v6738_v3 }
  0xdd   :  { %v7001_v57 = vpop.permute.xlu1 %262  ;;  %v7003_v58 = vpop.permute.xlu0 %260  ;;  %v925_v49 = vrot.slane %v906_v34, 6  ;;  %v919_v55 = vsel %vm760_vm2, %v917_v41, %v918_v39  ;;  %v974_v34 = vrot.slane %v958_v16, 6  ;;  %v980_v3 = vrot.slane %v961_v23, 6 }
  0xdf   :  { %829 = vrot.lane.b32.xlu1 %v818_v51, %s6661_s8  ;;  %827 = vrot.lane.b32.xlu0 %v816_v54, %s6661_s8  ;;  %v907_v51 = vmul.f32 %v900_v15, %v6754_v9  ;;  %v921_v54 = vsel %vm760_vm2, %v918_v39, %v920_v40  ;;  %v926_v2 = vsel %vm760_vm2, %v924_v48, %v925_v49 }
  0xe0   :  { %v957_v15 = vmul.f32 %v956_v63, %v6733_v1  ;;  %v976_v1 = vrot.slane %v959_v17, 6 }
  0xe1   :  { %v7011_v13 = vpop.permute.xlu1 %266  ;;  %v7013_v14 = vpop.permute.xlu0 %264 }
  0xe2   :  { %v973_v35 = vrot.slane %v957_v15, 6  ;;  %v977_v48 = vsel %vm760_vm2, %v974_v34, %v976_v1  ;;  %v1026_v15 = vstv %s6299_s29  ;;  %s6307_s29 = sld [smem:[#allocation6 + $0x5]] }
  0xe3   :  { %877 = vrot.lane.b32.xlu1 %v865_v5, %s6662_s12  ;;  %875 = vrot.lane.b32.xlu0 %v863_v6, %s6662_s12  ;;  %v923_v5 = vsel %vm760_vm2, %v920_v40, %v922_v50  ;;  %v927_v6 = vrot.slane %v907_v51, 6  ;;  %v981_v40 = vrot.slane %v962_v25, 6  ;;  %v963_v50 = vmul.f32 %v956_v63, %v6754_v9 }
  0xe4   :  { %v964_v51 = vmul.f32 %v956_v63, %v6971_v21  ;;  %v1028_v25 = vmul.f32 %v1026_v15, %v6728_v0 }
  0xe5   :  { %v7022_v26 = vpop.permute.xlu1 %270  ;;  %v7024_v27 = vpop.permute.xlu0 %268  ;;  %v928_v24 = vsel %vm760_vm2, %v925_v49, %v927_v6  ;;  %v930_v31 = vsel %vm760_vm2, %v927_v6, %v929_v12  ;;  %v975_v49 = vsel %vm760_vm2, %v973_v35, %v974_v34  ;;  %v982_v56 = vsel %vm760_vm2, %v980_v3, %v981_v40 }
  0xe6   :  { %v985_v6 = vrot.slane %v964_v51, 6  ;;  %v1029_v35 = vmul.f32 %v1026_v15, %v6956_v11 }
  0xe7   :  { %881 = vrot.lane.b32.xlu1 %v870_v18, %s6662_s12  ;;  %879 = vrot.lane.b32.xlu0 %v867_v22, %s6662_s12 }
  0xe9   :  { %v7033_v42 = vpop.permute.xlu1 %347  ;;  %v7035_v47 = vpop.permute.xlu0 %345 }
  0xeb   :  { %885 = vrot.lane.b32.xlu1 %v874_v28, %s6662_s12  ;;  %883 = vrot.lane.b32.xlu0 %v872_v36, %s6662_s12  ;;  %v960_v28 = vmul.f32 %v956_v63, %v6956_v11 }
  0xed   :  { %v7043_v59 = vpop.permute.xlu1 %351  ;;  %v7045_v62 = vpop.permute.xlu0 %349  ;;  %v978_v41 = vrot.slane %v960_v28, 6  ;;  %v1027_v28 = vmul.f32 %v1026_v15, %v6743_v4 }
  0xef   :  { %933 = vrot.lane.b32.xlu1 %v921_v54, %s6663_s14  ;;  %931 = vrot.lane.b32.xlu0 %v919_v55, %s6663_s14 }
  0xf1   :  { %v7054_v18 = vpop.permute.xlu1 %355  ;;  %v7056_v22 = vpop.permute.xlu0 %353 }
  0xf2   :  { %12574 = vst [vmem:[#allocation19_spill] sm:$0xff] %v7054_v18 }
  0xf3   :  { %937 = vrot.lane.b32.xlu1 %v926_v2, %s6663_s14  ;;  %935 = vrot.lane.b32.xlu0 %v923_v5, %s6663_s14  ;;  %v979_v2 = vsel %vm760_vm2, %v976_v1, %v978_v41  ;;  %v983_v5 = vrot.slane %v963_v50, 6  ;;  %v1030_v1 = vmul.f32 %v1026_v15, %v6759_v10  ;;  %v1032_v41 = vmul.f32 %v1026_v15, %v6971_v21 }
  0xf5   :  { %v7065_v36 = vpop.permute.xlu1 %395  ;;  %v7067_v39 = vpop.permute.xlu0 %393  ;;  %v986_v63 = vsel %vm760_vm2, %v983_v5, %v985_v6  ;;  %v984_v17 = vsel %vm760_vm2, %v981_v40, %v983_v5 }
  0xf7   :  { %941 = vrot.lane.b32.xlu1 %v930_v31, %s6663_s14  ;;  %939 = vrot.lane.b32.xlu0 %v928_v24, %s6663_s14 }
  0xf9   :  { %v7075_v54 = vpop.permute.xlu1 %399  ;;  %v7077_v55 = vpop.permute.xlu0 %397 }
  0xfb   :  { %989 = vrot.lane.b32.xlu1 %v977_v48, %s6664_s16  ;;  %987 = vrot.lane.b32.xlu0 %v975_v49, %s6664_s16  ;;  %v1031_v48 = vmul.f32 %v1026_v15, %v6754_v9  ;;  %v1064_v49 = vstv %s6300_s30  ;;  %s6309_s30 = sld [smem:[#allocation6 + $0x7]] }
  0xfd   :  { %v7083_v12 = vpop.permute.xlu1 %403  ;;  %v7085_v16 = vpop.permute.xlu0 %401 }
  0xfe   :  { %12575 = vst [vmem:[#allocation20_spill] sm:$0xff] %v7083_v12 }
  0xff   :  { %993 = vrot.lane.b32.xlu1 %v982_v56, %s6664_s16  ;;  %991 = vrot.lane.b32.xlu0 %v979_v2, %s6664_s16  ;;  %v1066_v56 = vmul.f32 %v1064_v49, %v6728_v0  ;;  %v1065_v2 = vmul.f32 %v1064_v49, %v6743_v4 }
 0x101   :  { %v7091_v23 = vpop.permute.xlu1 %443  ;;  %v7093_v24 = vpop.permute.xlu0 %441 }
 0x103   :  { %997 = vrot.lane.b32.xlu1 %v986_v63, %s6664_s16  ;;  %995 = vrot.lane.b32.xlu0 %v984_v17, %s6664_s16  ;;  %v1068_v63 = vmul.f32 %v1064_v49, %v6759_v10  ;;  %v1067_v17 = vmul.f32 %v1064_v49, %v6956_v11 }
 0x105   :  { %v7099_v31 = vpop.permute.xlu1 %447  ;;  %v7101_v34 = vpop.permute.xlu0 %445 }
 0x106   :  { %12576 = vst [vmem:[#allocation21_spill] sm:$0xff] %v7101_v34  ;;  %v7286_v34 = vld [vmem:[%s12457_s0 + $0x88] sm:$0xff] }
 0x107   :  { %1041 = vrot.lane.b32.xlu1 %v1028_v25, %s6661_s8  ;;  %1039 = vrot.lane.b32.xlu0 %v1027_v28, %s6661_s8  ;;  %v1070_v28 = vmul.f32 %v1064_v49, %v6971_v21 }
 0x109   :  { %v7107_v3 = vpop.permute.xlu1 %451  ;;  %v7109_v40 = vpop.permute.xlu0 %449 }
 0x10a   :  { %12577 = vst [vmem:[#allocation22_spill] sm:$0xff] %v7107_v3 }
 0x10b   :  { %1045 = vrot.lane.b32.xlu1 %v1030_v1, %s6661_s8  ;;  %1043 = vrot.lane.b32.xlu0 %v1029_v35, %s6661_s8  ;;  %v1069_v1 = vmul.f32 %v1064_v49, %v6754_v9  ;;  %v1102_v35 = vstv %s6301_s9  ;;  %s6305_s9 = sld [smem:[#allocation6 + $0x3]] }
 0x10c   :  { %v1106_v49 = vmul.f32 %v1102_v35, %v6759_v10  ;;  %v1108_v3 = vmul.f32 %v1102_v35, %v6971_v21 }
 0x10d   :  { %v7115_v50 = vpop.permute.xlu1 %491  ;;  %v7117_v51 = vpop.permute.xlu0 %489 }
 0x10f   :  { %1049 = vrot.lane.b32.xlu1 %v1032_v41, %s6661_s8  ;;  %1047 = vrot.lane.b32.xlu0 %v1031_v48, %s6661_s8 }
 0x111   :  { %v7123_v5 = vpop.permute.xlu1 %495  ;;  %v7125_v6 = vpop.permute.xlu0 %493 }
 0x112   :  { %12578 = vst [vmem:[#allocation23_spill] sm:$0xff] %v7125_v6 }
 0x113   :  { %1079 = vrot.lane.b32.xlu1 %v1066_v56, %s6662_s12  ;;  %1077 = vrot.lane.b32.xlu0 %v1065_v2, %s6662_s12  ;;  %v1104_v56 = vmul.f32 %v1102_v35, %v6728_v0  ;;  %v1103_v2 = vmul.f32 %v1102_v35, %v6743_v4 }
 0x115   :  { %v7131_v15 = vpop.permute.xlu1 %499  ;;  %v7133_v25 = vpop.permute.xlu0 %497 }
 0x116   :  { %12579 = vst [vmem:[#allocation24_spill] sm:$0xff] %v7131_v15  ;;  %12580 = vst [vmem:[#allocation25_spill] sm:$0xff] %v7133_v25  ;;  %v1105_v15 = vmul.f32 %v1102_v35, %v6956_v11 }
 0x117   :  { %1083 = vrot.lane.b32.xlu1 %v1068_v63, %s6662_s12  ;;  %1081 = vrot.lane.b32.xlu0 %v1067_v17, %s6662_s12 }
 0x119   :  { %v7139_v41 = vpop.permute.xlu1 %576  ;;  %v7141_v48 = vpop.permute.xlu0 %574 }
 0x11a   :  { %12581 = vst [vmem:[#allocation26_spill] sm:$0xff] %v7139_v41  ;;  %12582 = vst [vmem:[#allocation27_spill] sm:$0xff] %v7141_v48 }
 0x11b   :  { %1087 = vrot.lane.b32.xlu1 %v1070_v28, %s6662_s12  ;;  %1085 = vrot.lane.b32.xlu0 %v1069_v1, %s6662_s12 }
 0x11d   :  { %v7147_v63 = vpop.permute.xlu1 %580  ;;  %v7149_v17 = vpop.permute.xlu0 %578 }
 0x11e   :  { %12583 = vst [vmem:[#allocation28_spill] sm:$0xff] %v7147_v63  ;;  %12584 = vst [vmem:[#allocation29_spill] sm:$0xff] %v7149_v17  ;;  %v1107_v17 = vmul.f32 %v1102_v35, %v6754_v9  ;;  %v1140_v63 = vstv %s6302_s2  ;;  %s6310_s2 = sld [smem:[#allocation6 + $0x8]] }
 0x11f   :  { %1117 = vrot.lane.b32.xlu1 %v1104_v56, %s6663_s14  ;;  %1115 = vrot.lane.b32.xlu0 %v1103_v2, %s6663_s14  ;;  %v1144_v35 = vmul.f32 %v1140_v63, %v6759_v10  ;;  %v1143_v6 = vmul.f32 %v1140_v63, %v6956_v11  ;;  %v7271_v11 = vld [vmem:[%s12457_s0 + $0x80] sm:$0xff] }
 0x121   :  { %v7155_v28 = vpop.permute.xlu1 %584  ;;  %v7157_v1 = vpop.permute.xlu0 %582 }
 0x122   :  { %12585 = vst [vmem:[#allocation30_spill] sm:$0xff] %v7155_v28  ;;  %12586 = vst [vmem:[#allocation31_spill] sm:$0xff] %v7157_v1  ;;  %v1142_v28 = vmul.f32 %v1140_v63, %v6728_v0  ;;  %v1141_v1 = vmul.f32 %v1140_v63, %v6743_v4  ;;  %v1146_v0 = vmul.f32 %v1140_v63, %v6971_v21 }
 0x123   :  { %1121 = vrot.lane.b32.xlu1 %v1106_v49, %s6663_s14  ;;  %1119 = vrot.lane.b32.xlu0 %v1105_v15, %s6663_s14  ;;  %v1145_v4 = vmul.f32 %v1140_v63, %v6754_v9 }
 0x125   :  { %v7163_v56 = vpop.permute.xlu1 %624  ;;  %v7165_v2 = vpop.permute.xlu0 %622 }
 0x126   :  { %12587 = vst [vmem:[#allocation32_spill] sm:$0xff] %v7163_v56  ;;  %12588 = vst [vmem:[#allocation33_spill] sm:$0xff] %v7165_v2 }
 0x127   :  { %1125 = vrot.lane.b32.xlu1 %v1108_v3, %s6663_s14  ;;  %1123 = vrot.lane.b32.xlu0 %v1107_v17, %s6663_s14 }
 0x129   :  { %v7171_v49 = vpop.permute.xlu1 %628  ;;  %v7173_v15 = vpop.permute.xlu0 %626 }
 0x12a   :  { %12589 = vst [vmem:[#allocation34_spill] sm:$0xff] %v7171_v49  ;;  %12590 = vst [vmem:[#allocation35_spill] sm:$0xff] %v7173_v15 }
 0x12b   :  { %1155 = vrot.lane.b32.xlu1 %v1142_v28, %s6664_s16  ;;  %1153 = vrot.lane.b32.xlu0 %v1141_v1, %s6664_s16 }
 0x12d   :  { %v7179_v12 = vpop.permute.xlu1 %632  ;;  %v7181_v3 = vpop.permute.xlu0 %630 }
 0x12e   :  { %12591 = vst [vmem:[#allocation36_spill] sm:$0xff] %v7179_v12  ;;  %12592 = vst [vmem:[#allocation37_spill] sm:$0xff] %v7181_v3 }
 0x12f   :  { %1159 = vrot.lane.b32.xlu1 %v1144_v35, %s6664_s16  ;;  %1157 = vrot.lane.b32.xlu0 %v1143_v6, %s6664_s16 }
 0x131   :  { %v7187_v17 = vpop.permute.xlu1 %672  ;;  %v7189_v28 = vpop.permute.xlu0 %670 }
 0x132   :  { %12593 = vst [vmem:[#allocation38_spill] sm:$0xff] %v7187_v17  ;;  %12594 = vst [vmem:[#allocation39_spill] sm:$0xff] %v7189_v28 }
 0x133   :  { %1163 = vrot.lane.b32.xlu1 %v1146_v0, %s6664_s16  ;;  %1161 = vrot.lane.b32.xlu0 %v1145_v4, %s6664_s16 }
 0x135   :  { %v7193_v10 = vpop.permute.xlu1 %676  ;;  %v7195_v1 = vpop.permute.xlu0 %674 }
 0x136   :  { %12595 = vst [vmem:[#allocation40_spill] sm:$0xff] %v7193_v10  ;;  %12596 = vst [vmem:[#allocation41_spill] sm:$0xff] %v7195_v1 }
 0x139   :  { %v7197_v12 = vpop.permute.xlu1 %680  ;;  %v7199_v35 = vpop.permute.xlu0 %678 }
 0x13a   :  { %12597 = vst [vmem:[#allocation42_spill] sm:$0xff] %v7197_v12  ;;  %12598 = vst [vmem:[#allocation43_spill] sm:$0xff] %v7199_v35 }
 0x13d   :  { %v7201_v6 = vpop.permute.xlu1 %720  ;;  %v7203_v21 = vpop.permute.xlu0 %718 }
 0x13e   :  { %12599 = vst [vmem:[#allocation44_spill] sm:$0xff] %v7201_v6  ;;  %12600 = vst [vmem:[#allocation45_spill] sm:$0xff] %v7203_v21 }
 0x141   :  { %v7205_v9 = vpop.permute.xlu1 %724  ;;  %v7207_v63 = vpop.permute.xlu0 %722 }
 0x142   :  { %12601 = vst [vmem:[#allocation46_spill] sm:$0xff] %v7205_v9  ;;  %12602 = vst [vmem:[#allocation47_spill] sm:$0xff] %v7207_v63 }
 0x145   :  { %v7209_v15 = vpop.permute.xlu1 %728  ;;  %v7211_v0 = vpop.permute.xlu0 %726 }
 0x146   :  { %12603 = vst [vmem:[#allocation48_spill] sm:$0xff] %v7209_v15  ;;  %12604 = vst [vmem:[#allocation49_spill] sm:$0xff] %v7211_v0 }
 0x149   :  { %v7213_v4 = vpop.permute.xlu1 %821  ;;  %v7215_v3 = vpop.permute.xlu0 %819 }
 0x14a   :  { %12605 = vst [vmem:[#allocation50_spill] sm:$0xff] %v7213_v4  ;;  %12606 = vst [vmem:[#allocation51_spill] sm:$0xff] %v7215_v3 }
 0x14d   :  { %v7217_v1 = vpop.permute.xlu1 %825  ;;  %v7219_v12 = vpop.permute.xlu0 %823 }
 0x14e   :  { %12607 = vst [vmem:[#allocation52_spill] sm:$0xff] %v7217_v1  ;;  %12608 = vst [vmem:[#allocation53_spill] sm:$0xff] %v7219_v12  ;;  %v119_v1 = vstv %s118_s4  ;;  %s7630_s4 = sld [smem:[#allocation6 + $0x6]] }
 0x14f   :  { %v123_v28 = vmul.f32 %v7271_v11, %v119_v1 }
 0x151   :  { %v7221_v35 = vpop.permute.xlu1 %829  ;;  %v7223_v10 = vpop.permute.xlu0 %827  ;;  %v167_v56 = vadd.f32 %v6911_v37, %v123_v28 }
 0x152   :  { %12609 = vst [vmem:[#allocation54_spill] sm:$0xff] %v7221_v35  ;;  %12610 = vst [vmem:[#allocation55_spill] sm:$0xff] %v7223_v10  ;;  %v285_v10 = vstv %s6283_s10  ;;  %s6323_s10 = sld [smem:[#allocation3 + $0x81]] }
 0x155   :  { %v7225_v21 = vpop.permute.xlu1 %877  ;;  %v7227_v9 = vpop.permute.xlu0 %875 }
 0x156   :  { %12611 = vst [vmem:[#allocation56_spill] sm:$0xff] %v7225_v21  ;;  %12612 = vst [vmem:[#allocation57_spill] sm:$0xff] %v7227_v9  ;;  %v7244_v9 = vld [vmem:[%s12457_s0] sm:$0xff] }
 0x157   :  { %v286_v6 = vmul.f32 %v7244_v9, %v285_v10 }
 0x159   :  { %v7229_v15 = vpop.permute.xlu1 %881  ;;  %v7231_v63 = vpop.permute.xlu0 %879 }
 0x15a   :  { %12613 = vst [vmem:[#allocation58_spill] sm:$0xff] %v7229_v15  ;;  %12614 = vst [vmem:[#allocation59_spill] sm:$0xff] %v7231_v63  ;;  %v120_v15 = vmul.f32 %v7244_v9, %v119_v1  ;;  %v7250_v63 = vld [vmem:[%s12457_s0 + $0x8] sm:$0xff] }
 0x15c   :  { %v164_v49 = vadd.f32 %v6904_v30, %v120_v15  ;;  %v289_v15 = vmul.f32 %v7271_v11, %v285_v10 }
 0x15d   :  { %v7233_v0 = vpop.permute.xlu1 %885  ;;  %v7235_v3 = vpop.permute.xlu0 %883 }
 0x15e   :  { %12615 = vst [vmem:[#allocation60_spill] sm:$0xff] %v7233_v0  ;;  %12616 = vst [vmem:[#allocation61_spill] sm:$0xff] %v7235_v3  ;;  %v121_v0 = vmul.f32 %v7250_v63, %v119_v1  ;;  %v287_v3 = vmul.f32 %v7250_v63, %v285_v10  ;;  %v202_v30 = vadd.f32 %v6932_v53, %v164_v49 }
 0x160   :  { %v165_v17 = vadd.f32 %v6913_v38, %v121_v0  ;;  %v300_v2 = vrot.slane %v287_v3, 2  ;;  %v124_v38 = vmul.f32 %v7286_v34, %v119_v1  ;;  %v299_v3 = vrot.slane %v286_v6, 2  ;;  %v7302_v6 = vld [vmem:[%s12457_s0 + $0x90] sm:$0xff] }
 0x161   :  { %v7237_v12 = vpop.permute.xlu1 %933  ;;  %v7239_v35 = vpop.permute.xlu0 %931  ;;  %v290_v0 = vmul.f32 %v7286_v34, %v285_v10  ;;  %v7305_v18 = vmul.f32 %v7302_v6, %v285_v10 }
 0x162   :  { %12617 = vst [vmem:[#allocation62_spill] sm:$0xff] %v7237_v12  ;;  %12618 = vst [vmem:[#allocation63_spill] sm:$0xff] %v7239_v35  ;;  %v7257_v35 = vld [vmem:[%s12457_s0 + $0x10] sm:$0xff] }
 0x163   :  { %v7260_v12 = vmul.f32 %v7257_v35, %v285_v10  ;;  %v122_v53 = vmul.f32 %v7257_v35, %v119_v1  ;;  %v305_v48 = vrot.slane %v290_v0, 2 }
 0x165   :  { %v7262_v21 = vpop.permute.xlu1 %937  ;;  %v7264_v4 = vpop.permute.xlu0 %935  ;;  %v12623_v49 = vrot.slane %v7260_v12, 2 }
 0x166   :  { %12619 = vst [vmem:[#allocation64_spill] sm:$0xff] %v7262_v21  ;;  %12620 = vst [vmem:[#allocation65_spill] sm:$0xff] %v7264_v4  ;;  %v203_v4 = vadd.f32 %v6930_v52, %v165_v17  ;;  %v240_v52 = vadd.f32 %v6966_v20, %v202_v30  ;;  %v7293_v17 = vstv %s6288_s1  ;;  %v205_v20 = vadd.f32 %v6939_v60, %v167_v56  ;;  %s8449_s1 = sld [smem:[#allocation3 + $0x94]] }
 0x167   :  { %v304_v30 = vrot.slane %v289_v15, 2  ;;  %v516_v41 = vmul.f32 %v7250_v63, %v7293_v17  ;;  %v7319_v10 = vmul.f32 %v7257_v35, %v7293_v17  ;;  %v515_v60 = vmul.f32 %v7244_v9, %v7293_v17 }
 0x169   :  { %v7276_v25 = vpop.permute.xlu1 %941  ;;  %v7278_v21 = vpop.permute.xlu0 %939  ;;  %v306_v0 = vsel %vm298_vm0, %v304_v30, %v305_v48 }
 0x16a   :  { %12621 = vst [vmem:[#allocation66_spill] sm:$0xff] %v7276_v25  ;;  %12622 = vst [vmem:[#allocation67_spill] sm:$0xff] %v7278_v21  ;;  %v241_v25 = vadd.f32 %v6964_v19, %v203_v4  ;;  %v303_v21 = vsel %vm298_vm0, %v300_v2, %v12623_v49  ;;  %v278_v4 = vadd.f32 %v7003_v58, %v240_v52  ;;  %v529_v52 = vrot.slane %v516_v41, 4 }
 0x16b   :  { %v301_v49 = vsel %vm298_vm0, %v299_v3, %v300_v2  ;;  %v125_v58 = vmul.f32 %v7302_v6, %v119_v1 }
 0x16c   :  { %v279_v28 = vadd.f32 %v7001_v57, %v241_v25  ;;  %v166_v57 = vadd.f32 %v6902_v29, %v122_v53  ;;  %v307_v25 = vrot.slane %v7305_v18, 2  ;;  %v531_v29 = vrot.slane %v7319_v10, 4  ;;  %v12649_v10 = vld [vmem:[#allocation46_spill] sm:$0xff] }
 0x16d   :  { %v7307_v37 = vpop.permute.xlu1 %989  ;;  %v7309_v19 = vpop.permute.xlu0 %987 }
 0x16e   :  { %12624 = vst [vmem:[#allocation68_spill] sm:$0xff] %v7307_v37  ;;  %12625 = vst [vmem:[#allocation69_spill] sm:$0xff] %v7309_v19  ;;  %v168_v37 = vadd.f32 %v6923_v45, %v124_v38  ;;  %v243_v19 = vadd.f32 %v6979_v32, %v205_v20  ;;  %v316_v32 = vadd.f32 %v303_v21, %v279_v28  ;;  %v528_v20 = vrot.slane %v515_v60, 4 }
 0x16f   :  { %v315_v38 = vadd.f32 %v301_v49, %v278_v4  ;;  %v204_v3 = vadd.f32 %v6941_v61, %v166_v57  ;;  %v518_v61 = vmul.f32 %v7271_v11, %v7293_v17  ;;  %v7348_v21 = vmul.f32 %v7286_v34, %v7293_v17 }
 0x170   :  { %v206_v15 = vadd.f32 %v6951_v8, %v168_v37  ;;  %v281_v45 = vadd.f32 %v7011_v13, %v243_v19  ;;  %v364_v18 = vadd.f32 %v7033_v42, %v316_v32  ;;  %v169_v8 = vadd.f32 %v6921_v44, %v125_v58 }
 0x171   :  { %v7330_v56 = vpop.permute.xlu1 %993  ;;  %v7332_v2 = vpop.permute.xlu0 %991  ;;  %v363_v53 = vadd.f32 %v7035_v47, %v315_v38  ;;  %v242_v13 = vadd.f32 %v6981_v33, %v204_v3  ;;  %v308_v28 = vsel %vm298_vm0, %v305_v48, %v307_v25  ;;  %v532_v4 = vsel %vm527_vm1, %v529_v52, %v531_v29 }
 0x172   :  { %v244_v1 = vadd.f32 %v6992_v46, %v206_v15  ;;  %v318_v47 = vadd.f32 %v306_v0, %v281_v45  ;;  %v412_v37 = vadd.f32 %v7065_v36, %v364_v18  ;;  %v207_v33 = vadd.f32 %v6949_v7, %v169_v8 }
 0x173   :  { %v411_v44 = vadd.f32 %v7067_v39, %v363_v53  ;;  %v280_v19 = vadd.f32 %v7013_v14, %v242_v13  ;;  %v7367_v60 = vstv %s7325_s24  ;;  %v530_v7 = vsel %vm527_vm1, %v528_v20, %v529_v52  ;;  %v12627_v13 = vld [vmem:[#allocation26_spill] sm:$0xff]  ;;  %s6325_s24 = sld [smem:[#allocation3 + $0x83]] }
 0x174   :  { %v282_v42 = vadd.f32 %v7024_v27, %v244_v1  ;;  %v366_v30 = vadd.f32 %v7043_v59, %v318_v47  ;;  %v460_v49 = vadd.f32 %v7091_v23, %v412_v37  ;;  %v245_v36 = vadd.f32 %v6990_v43, %v207_v33  ;;  %v12629_v47 = vld [vmem:[#allocation19_spill] sm:$0xff]  ;;  %v12630_v37 = vld [vmem:[#allocation21_spill] sm:$0xff] }
 0x175   :  { %v7350_v41 = vpop.permute.xlu1 %997  ;;  %v7352_v46 = vpop.permute.xlu0 %995  ;;  %v459_v27 = vadd.f32 %v7093_v24, %v411_v44  ;;  %v533_v39 = vrot.slane %v518_v61, 4  ;;  %v534_v14 = vrot.slane %v7348_v21, 4  ;;  %v12626_v43 = vrot.slane %v7260_v12, 2  ;;  %v12628_v61 = vld [vmem:[#allocation27_spill] sm:$0xff] }
 0x176   :  { %v319_v58 = vadd.f32 %v308_v28, %v282_v42  ;;  %v414_v59 = vadd.f32 %v7075_v54, %v366_v30  ;;  %v508_v23 = vadd.f32 %v7115_v50, %v460_v49  ;;  %v283_v15 = vadd.f32 %v7022_v26, %v245_v36  ;;  %v12633_v49 = vld [vmem:[#allocation33_spill] sm:$0xff]  ;;  %v12634_v36 = vld [vmem:[#allocation20_spill] sm:$0xff] }
 0x177   :  { %v507_v24 = vadd.f32 %v7117_v51, %v459_v27  ;;  %v317_v45 = vadd.f32 %v12626_v43, %v280_v19  ;;  %v7384_v32 = vmul.f32 %v7302_v6, %v7293_v17  ;;  %v745_v38 = vmul.f32 %v7250_v63, %v7367_v60  ;;  %v12631_v19 = vld [vmem:[#allocation25_spill] sm:$0xff] }
 0x178   :  { %v367_v3 = vadd.f32 %v7056_v22, %v319_v58  ;;  %v462_v54 = vadd.f32 %v7099_v31, %v414_v59  ;;  %v7392_v50 = vmul.f32 %v7257_v35, %v7367_v60  ;;  %v535_v12 = vsel %vm527_vm1, %v533_v39, %v534_v14  ;;  %v12635_v39 = vld [vmem:[#allocation23_spill] sm:$0xff] }
 0x179   :  { %v7372_v48 = vpop.permute.xlu1 %1041  ;;  %v7374_v57 = vpop.permute.xlu0 %1039  ;;  %v365_v26 = vadd.f32 %v7045_v62, %v317_v45  ;;  %v744_v51 = vmul.f32 %v7244_v9, %v7367_v60  ;;  %v545_v31 = vadd.f32 %v532_v4, %v508_v23  ;;  %v544_v1 = vadd.f32 %v530_v7, %v507_v24  ;;  %v12632_v4 = vld [vmem:[#allocation32_spill] sm:$0xff]  ;;  %v12638_v45 = vld [vmem:[#allocation39_spill] sm:$0xff] }
 0x17a   :  { %v415_v52 = vadd.f32 %v7085_v16, %v367_v3  ;;  %v510_v22 = vadd.f32 %v7123_v5, %v462_v54  ;;  %v320_v18 = vadd.f32 %v307_v25, %v283_v15  ;;  %v536_v62 = vrot.slane %v7384_v32, 4  ;;  %v12636_v23 = vld [vmem:[#allocation28_spill] sm:$0xff]  ;;  %v12637_v15 = vld [vmem:[#allocation38_spill] sm:$0xff] }
 0x17b   :  { %v413_v53 = vadd.f32 %v7077_v55, %v365_v26  ;;  %v762_v20 = vrot.slane %v745_v38, 6  ;;  %v593_v9 = vadd.f32 %v12627_v13, %v545_v31  ;;  %v592_v21 = vadd.f32 %v12628_v61, %v544_v1  ;;  %v12639_v3 = vld [vmem:[#allocation22_spill] sm:$0xff] }
 0x17c   :  { %v463_v8 = vadd.f32 %v7109_v40, %v415_v52  ;;  %v764_v42 = vrot.slane %v7392_v50, 6  ;;  %v368_v16 = vadd.f32 %v12629_v47, %v320_v18  ;;  %v761_v44 = vrot.slane %v744_v51, 6  ;;  %v12641_v31 = vld [vmem:[#allocation34_spill] sm:$0xff]  ;;  %v12642_v18 = vld [vmem:[#allocation44_spill] sm:$0xff] }
 0x17d   :  { %v7398_v17 = vpop.permute.xlu1 %1045  ;;  %v7400_v0 = vpop.permute.xlu0 %1043  ;;  %v461_v5 = vadd.f32 %v12630_v37, %v413_v53  ;;  %v748_v25 = vmul.f32 %v7271_v11, %v7367_v60  ;;  %v547_v28 = vadd.f32 %v535_v12, %v510_v22  ;;  %v641_v30 = vadd.f32 %v12632_v4, %v593_v9  ;;  %v12640_v12 = vld [vmem:[#allocation17_spill] sm:$0xff]  ;;  %v12644_v9 = vld [vmem:[#allocation24_spill] sm:$0xff] }
 0x17e   :  { %v511_v40 = vadd.f32 %v12631_v19, %v463_v8  ;;  %v640_v27 = vadd.f32 %v12633_v49, %v592_v21  ;;  %v416_v7 = vadd.f32 %v12634_v36, %v368_v16  ;;  %v537_v59 = vsel %vm527_vm1, %v534_v14, %v536_v62  ;;  %v12643_v8 = vld [vmem:[#allocation45_spill] sm:$0xff]  ;;  %v12645_v16 = vld [vmem:[#allocation31_spill] sm:$0xff] }
 0x17f   :  { %v509_v58 = vadd.f32 %v12635_v39, %v461_v5  ;;  %v749_v11 = vmul.f32 %v7286_v34, %v7367_v60  ;;  %v595_v24 = vadd.f32 %v12636_v23, %v547_v28  ;;  %v689_v43 = vadd.f32 %v12637_v15, %v641_v30  ;;  %v12646_v5 = vld [vmem:[#allocation40_spill] sm:$0xff]  ;;  %v12648_v30 = vld [vmem:[#allocation37_spill] sm:$0xff]  ;;  %v12650_v39 = vld [vmem:[#allocation35_spill] sm:$0xff] }
 0x180   :  { %v688_v32 = vadd.f32 %v12638_v45, %v640_v27  ;;  %v765_v38 = vsel %vm760_vm2, %v762_v20, %v764_v42  ;;  %v464_v54 = vadd.f32 %v12639_v3, %v416_v7  ;;  %v763_v50 = vsel %vm760_vm2, %v761_v44, %v762_v20  ;;  %v12651_v23 = vld [vmem:[#allocation43_spill] sm:$0xff]  ;;  %v12652_v15 = vld [vmem:[#allocation50_spill] sm:$0xff] }
 0x181   :  { %v7414_v55 = vpop.permute.xlu1 %1049  ;;  %v7416_v33 = vpop.permute.xlu0 %1047  ;;  %v768_v26 = vrot.slane %v748_v25, 6  ;;  %v747_v51 = vmul.f32 %v7367_v60, %v12640_v12  ;;  %v548_v22 = vadd.f32 %v537_v59, %v511_v40  ;;  %v643_v1 = vadd.f32 %v12641_v31, %v595_v24  ;;  %v12647_v25 = vld [vmem:[#allocation29_spill] sm:$0xff]  ;;  %v12653_v45 = vld [vmem:[#allocation51_spill] sm:$0xff]  ;;  %v12654_v3 = vld [vmem:[#allocation18_spill] sm:$0xff] }
 0x182   :  { %v737_v53 = vadd.f32 %v12642_v18, %v689_v43  ;;  %v736_v13 = vadd.f32 %v12643_v8, %v688_v32  ;;  %v512_v61 = vadd.f32 %v12644_v9, %v464_v54  ;;  %v546_v20 = vadd.f32 %v531_v29, %v509_v58  ;;  %v12656_v31 = vld [vmem:[#allocation41_spill] sm:$0xff] }
 0x183   :  { %v769_v21 = vrot.slane %v749_v11, 6  ;;  %v750_v47 = vmul.f32 %v7302_v6, %v7367_v60  ;;  %v596_v37 = vadd.f32 %v12645_v16, %v548_v22  ;;  %v691_v44 = vadd.f32 %v12646_v5, %v643_v1  ;;  %v12657_v18 = vld [vmem:[#allocation49_spill] sm:$0xff]  ;;  %v12661_v16 = vld [vmem:[#allocation47_spill] sm:$0xff] }
 0x184   :  { %v594_v19 = vadd.f32 %v12647_v25, %v546_v20  ;;  %v766_v40 = vrot.slane %v747_v51, 6  ;;  %v782_v27 = vadd.f32 %v765_v38, %v737_v53  ;;  %v781_v36 = vadd.f32 %v763_v50, %v736_v13  ;;  %v12655_v51 = vld [vmem:[#allocation30_spill] sm:$0xff]  ;;  %v12658_v13 = vld [vmem:[#allocation56_spill] sm:$0xff] }
 0x185   :  { %v7436_v14 = vpop.permute.xlu1 %1079  ;;  %v7438_v52 = vpop.permute.xlu0 %1077  ;;  %v644_v49 = vadd.f32 %v12648_v30, %v596_v37  ;;  %v739_v29 = vadd.f32 %v12649_v10, %v691_v44  ;;  %v549_v7 = vadd.f32 %v536_v62, %v512_v61  ;;  %v770_v59 = vsel %vm760_vm2, %v768_v26, %v769_v21  ;;  %v12659_v61 = vld [vmem:[#allocation57_spill] sm:$0xff]  ;;  %v12662_v44 = vld [vmem:[#allocation52_spill] sm:$0xff] }
 0x186   :  { %v642_v58 = vadd.f32 %v12650_v39, %v594_v19  ;;  %v771_v11 = vrot.slane %v750_v47, 6  ;;  %v838_v43 = vadd.f32 %v12652_v15, %v782_v27  ;;  %v837_v32 = vadd.f32 %v12653_v45, %v781_v36  ;;  %v12665_v27 = vld [vmem:[#allocation42_spill] sm:$0xff] }
 0x187   :  { %v692_v24 = vadd.f32 %v12651_v23, %v644_v49  ;;  %v751_v54 = vmul.f32 %v7367_v60, %v12654_v3  ;;  %v597_v22 = vadd.f32 %v12655_v51, %v549_v7  ;;  %v767_v62 = vsel %vm760_vm2, %v764_v42, %v766_v40  ;;  %v12660_v60 = vld [vmem:[#allocation36_spill] sm:$0xff]  ;;  %v12663_v40 = vld [vmem:[#allocation62_spill] sm:$0xff]  ;;  %v12664_v49 = vld [vmem:[#allocation63_spill] sm:$0xff] }
 0x188   :  { %v690_v38 = vadd.f32 %v12656_v31, %v642_v58  ;;  %v7468_v50 = vstv %s7434_s25  ;;  %v784_v8 = vadd.f32 %v770_v59, %v739_v29  ;;  %v894_v9 = vadd.f32 %v12658_v13, %v838_v43  ;;  %v12668_v43 = vld [vmem:[#allocation69_spill] sm:$0xff]  ;;  %s6326_s25 = sld [smem:[#allocation3 + $0x84]] }
 0x189   :  { %v7451_v28 = vpop.permute.xlu1 %1083  ;;  %v7453_v4 = vpop.permute.xlu0 %1081  ;;  %v740_v53 = vadd.f32 %v12657_v18, %v692_v24  ;;  %v893_v20 = vadd.f32 %v12659_v61, %v837_v32  ;;  %v645_v47 = vadd.f32 %v12660_v60, %v597_v22  ;;  %v772_v5 = vsel %vm760_vm2, %v769_v21, %v771_v11  ;;  %v12666_v21 = vld [vmem:[#allocation58_spill] sm:$0xff]  ;;  %v12667_v24 = vld [vmem:[#allocation68_spill] sm:$0xff]  ;;  %v12672_v13 = vld [vmem:[#allocation53_spill] sm:$0xff] }
 0x18a   :  { %v738_v37 = vadd.f32 %v12661_v16, %v690_v38  ;;  %v87_v42 = vlaneseq  ;;  %v840_v25 = vadd.f32 %v12662_v44, %v784_v8  ;;  %v773_v19 = vrot.slane %v751_v54, 6  ;;  %v12669_v32 = vld [vmem:[#allocation48_spill] sm:$0xff]  ;;  %v12670_v38 = vld [vmem:[#allocation55_spill] sm:$0xff] }
 0x18b   :  { %v950_v30 = vadd.f32 %v12663_v40, %v894_v9  ;;  %v949_v10 = vadd.f32 %v12664_v49, %v893_v20  ;;  %v693_v29 = vadd.f32 %v12665_v27, %v645_v47  ;;  %v1014_v36 = vmul.f32 %v7257_v35, %v7468_v50  ;;  %v12675_v44 = vld [vmem:[#allocation67_spill] sm:$0xff]  ;;  %v12676_v40 = vld [vmem:[#allocation54_spill] sm:$0xff]  ;;  %v12677_v49 = vld [vmem:[#allocation65_spill] sm:$0xff] }
 0x18c   :  { %v1013_v7 = vmul.f32 %v7250_v63, %v7468_v50  ;;  %v785_v59 = vadd.f32 %v772_v5, %v740_v53  ;;  %v896_v23 = vadd.f32 %v12666_v21, %v840_v25  ;;  %v783_v51 = vadd.f32 %v767_v62, %v738_v37  ;;  %v12671_v63 = vld [vmem:[#allocation64_spill] sm:$0xff]  ;;  %v12673_v62 = vld [vmem:[#allocation61_spill] sm:$0xff]  ;;  %v12674_v5 = vld [vmem:[#allocation59_spill] sm:$0xff] }
 0x18d   :  { %v7470_v1 = vpop.permute.xlu1 %1087  ;;  %v7472_v26 = vpop.permute.xlu0 %1085  ;;  %v1006_v15 = vadd.f32 %v12667_v24, %v950_v30  ;;  %v1005_v45 = vadd.f32 %v12668_v43, %v949_v10  ;;  %v741_v54 = vadd.f32 %v12669_v32, %v693_v29  ;;  %v7492_v22 = vand.u32 127, %v87_v42 }
 0x18e   :  { %v88_v31 = vshrl.u32 %v87_v42, 7  ;;  %v774_v35 = vsel %vm760_vm2, %v771_v11, %v773_v19  ;;  %v841_v18 = vadd.f32 %v12670_v38, %v785_v59  ;;  %v952_v8 = vadd.f32 %v12671_v63, %v896_v23  ;;  %v12678_v59 = vld [vmem:[#allocation60_spill] sm:$0xff] }
 0x18f   :  { %v839_v53 = vadd.f32 %v12672_v13, %v783_v51  ;;  %v1016_v9 = vmul.f32 %v7286_v34, %v7468_v50  ;;  %v1020_v16 = vadd.f32 %v1014_v36, %v1006_v15  ;;  %v1019_v11 = vadd.f32 %v1013_v7, %v1005_v45 }
 0x190   :  { %v897_v60 = vadd.f32 %v12673_v62, %v841_v18  ;;  %v1008_v47 = vadd.f32 %v7330_v56, %v952_v8  ;;  %v786_v37 = vadd.f32 %v774_v35, %v741_v54  ;;  %vm102_vm3 = vcmp.ge.s32.totalorder %v7492_v22, 2 }
 0x191   :  { %v1118_v39 = vpop.permute.xlu1 %1117  ;;  %v1116_v58 = vpop.permute.xlu0 %1115  ;;  %v895_v42 = vadd.f32 %v12674_v5, %v839_v53  ;;  %vm93_vm4 = vcmp.ge.s32.totalorder %v88_v31, 2  ;;  %v1058_v34 = vadd.f32 %v7372_v48, %v1020_v16  ;;  %v1057_v19 = vadd.f32 %v7374_v57, %v1019_v11 }
 0x192   :  { %v953_v25 = vadd.f32 %v12675_v44, %v897_v60  ;;  %v842_v30 = vadd.f32 %v12676_v40, %v786_v37  ;;  %v1017_v56 = vmul.f32 %v7302_v6, %v7468_v50  ;;  %vm106_vm5 = vcmp.lt.s32.totalorder %v7492_v22, 18  ;;  %vm103_vm6 = vmand %vm93_vm4, %vm102_vm3 }
 0x193   :  { %v951_v10 = vadd.f32 %v12677_v49, %v895_v42  ;;  %v1022_v7 = vadd.f32 %v1016_v9, %v1008_v47  ;;  %v1096_v48 = vadd.f32 %v7436_v14, %v1058_v34  ;;  %v1095_v57 = vadd.f32 %v7438_v52, %v1057_v19  ;;  %vm7532_vm7 = vmand %vm102_vm3, %vm106_vm5  ;;  %v12682_v52 = vld [vmem:[#allocation66_spill] sm:$0xff] }
 0x194   :  { %v1009_v36 = vadd.f32 %v7352_v46, %v953_v25  ;;  %v898_v21 = vadd.f32 %v12678_v59, %v842_v30  ;;  %v1015_v23 = vmul.f32 %v7468_v50, %v12640_v12  ;;  %v12679_v14 = vmov 0  ;;  %vm7539_vm8 = vmand %vm103_vm6, %vm106_vm5 }
 0x195   :  { %v1122_v61 = vpop.permute.xlu1 %1121  ;;  %v7500_v20 = vpop.permute.xlu0 %1119  ;;  %v1007_v6 = vadd.f32 %v7332_v2, %v951_v10  ;;  %v1060_v24 = vadd.f32 %v7398_v17, %v1022_v7  ;;  %v1134_v15 = vadd.f32 %v1118_v39, %v1096_v48  ;;  %v1133_v46 = vadd.f32 %v1116_v58, %v1095_v57 }
 0x196   :  { %v12680_v14 = vsel %vm7532_vm7, 4294967295, %v12679_v14  ;;  %v954_v43 = vadd.f32 %v12682_v52, %v898_v21  ;;  %v12683_v2 = vmov 0  ;;  %v90_v17 = vadd.s32 16, %v88_v31 }
 0x197   :  { %12681 = vst [vmem:[#allocation26_spill] sm:$0xff] %v12680_v14  ;;  %v12684_v2 = vsel %vm7539_vm8, 4294967295, %v12683_v2  ;;  %v1200_v12 = vstv %s7502_s26  ;;  %v1023_v39 = vadd.f32 %v1017_v56, %v1009_v36  ;;  %v1098_v58 = vadd.f32 %v7451_v28, %v1060_v24  ;;  %s6328_s26 = sld [smem:[#allocation3 + $0x86]] }
 0x198   :  { %12685 = vst [vmem:[#allocation27_spill] sm:$0xff] %v12684_v2  ;;  %v1010_v35 = vadd.f32 %v7350_v41, %v954_v43  ;;  %v1021_v38 = vadd.f32 %v1015_v23, %v1007_v6  ;;  %v1018_v18 = vmul.f32 %v7468_v50, %v12654_v3  ;;  %vm98_vm9 = vcmp.lt.s32.totalorder %v90_v17, 18 }
 0x199   :  { %v7515_v27 = vpop.permute.xlu1 %1125  ;;  %v1124_v29 = vpop.permute.xlu0 %1123  ;;  %v1061_v63 = vadd.f32 %v7416_v33, %v1023_v39  ;;  %v1136_v8 = vadd.f32 %v1122_v61, %v1098_v58  ;;  %vm105_vm10 = vmand %vm98_vm9, %vm102_vm3  ;;  %v1226_v37 = vstv %s6304_s27  ;;  %v1284_v44 = vstv %s7548_s28  ;;  %s6329_s27 = sld [smem:[#allocation3 + $0x87]] }
 0x19a   :  { %v1059_v13 = vadd.f32 %v7400_v0, %v1021_v38  ;;  %v1024_v61 = vadd.f32 %v1018_v18, %v1010_v35  ;;  %vm7580_vm11 = vmand %vm105_vm10, %vm106_vm5  ;;  %v7613_v24 = vstv %s6309_s30  ;;  %v1252_v17 = vstv %s6305_s9  ;;  %s6330_s28 = sld [smem:[#allocation3 + $0x88]] }
 0x19b   :  { %v1099_v50 = vadd.f32 %v7472_v26, %v1061_v63  ;;  %s6331_s30 = sld [smem:[#allocation3 + $0x89]]  ;;  %v2527_v2 = vstv %s6346_s23  ;;  %vm5823_vm6 = vcmask 130054  }
 0x19c   :  { %v1097_v62 = vadd.f32 %v7453_v4, %v1059_v13  ;;  %v1062_v47 = vadd.f32 %v7414_v55, %v1024_v61  ;;  %v12686_v55 = vmov 0  ;;  %v7632_v13 = vstv %s6310_s2  ;;  %s6333_s9 = sld [smem:[#allocation3 + $0x8b]] }
 0x19d   :  { %v1156_v45 = vpop.permute.xlu1 %1155  ;;  %v1154_v32 = vpop.permute.xlu0 %1153  ;;  %v1137_v60 = vadd.f32 %v1124_v29, %v1099_v50  ;;  %v12687_v55 = vsel %vm7580_vm11, 4294967295, %v12686_v55  ;;  %s6334_s2 = sld [smem:[#allocation3 + $0x8c]] }
 0x19e   :  { %v1172_v54 = vadd.f32 %v1156_v45, %v1134_v15  ;;  %v1171_v51 = vadd.f32 %v1154_v32, %v1133_v46  ;;  %v1135_v16 = vadd.f32 %v7500_v20, %v1097_v62  ;;  %v1100_v5 = vadd.f32 %v7470_v1, %v1062_v47  ;;  %12688 = vst [vmem:[#allocation19_spill] sm:$0xff] %v12687_v55  ;;  %s8599_s23 = sld [smem:[#allocation6 + $0x86]] }
 0x1a0   :  { %v7553_v31 = vsel %vm7532_vm7, %v1172_v54, 0.0  ;;  %v7557_v28 = vsel %vm7539_vm8, %v1171_v51, 0.0  ;;  %v1138_v34 = vadd.f32 %v7515_v27, %v1100_v5  ;;  %v1324_v27 = vstv %s6307_s29  ;;  %s1189_s29 = sld [smem:[#allocation6]] }
 0x1a1   :  { %v1160_v41 = vpop.permute.xlu1 %1159  ;;  %v1158_v53 = vpop.permute.xlu0 %1157  ;;  %v1202_v9 = vmul.f32 %v1200_v12, %v7553_v31  ;;  %v1201_v3 = vmul.f32 %v1200_v12, %v7557_v28  ;;  %v1227_v1 = vmul.f32 %v1226_v37, %v7557_v28  ;;  %v1285_v40 = vmul.f32 %v1284_v44, %v7557_v28 }
 0x1a2   :  { %v1174_v33 = vadd.f32 %v1160_v41, %v1136_v8  ;;  %v1173_v42 = vadd.f32 %v1158_v53, %v1135_v16  ;;  %v1286_v22 = vmul.f32 %v1284_v44, %v7553_v31  ;;  %v1228_v10 = vmul.f32 %v1226_v37, %v7553_v31 }
 0x1a3   :  { %1211 = vrot.lane.b32.xlu1 %v1202_v9, %s6661_s8  ;;  %1209 = vrot.lane.b32.xlu0 %v1201_v3, %s6661_s8  ;;  %v1297_v29 = vrot.slane %v1285_v40, 2  ;;  %v1325_v6 = vmul.f32 %v1324_v27, %v7557_v28  ;;  %v1326_v23 = vmul.f32 %v1324_v27, %v7553_v31  ;;  %v1397_v54 = vmul.f32 %v7613_v24, %v7557_v28 }
 0x1a4   :  { %v7568_v0 = vsel %vm7539_vm8, %v1174_v33, 0.0  ;;  %v7595_v30 = vsel %vm7580_vm11, %v1173_v42, 0.0  ;;  %v1298_v36 = vrot.slane %v1286_v22, 2  ;;  %v1398_v8 = vmul.f32 %v7613_v24, %v7553_v31 }
 0x1a5   :  { %v1162_v26 = vpop.permute.xlu0 %1161  ;;  %v1203_v4 = vmul.f32 %v1200_v12, %v7568_v0  ;;  %v1164_v20 = vpop.permute.xlu1 %1163  ;;  %v1229_v56 = vmul.f32 %v1226_v37, %v7568_v0  ;;  %v1287_v48 = vmul.f32 %v1284_v44, %v7595_v30  ;;  %v1288_v59 = vmul.f32 %v1284_v44, %v7568_v0 }
 0x1a6   :  { %v1175_v11 = vadd.f32 %v1162_v26, %v1137_v60  ;;  %v1176_v49 = vadd.f32 %v1164_v20, %v1138_v34  ;;  %v1299_v15 = vsel %vm298_vm0, %v1297_v29, %v1298_v36  ;;  %v1327_v45 = vmul.f32 %v1324_v27, %v7595_v30 }
 0x1a7   :  { %1213 = vrot.lane.b32.xlu0 %v1203_v4, %s6661_s8  ;;  %v1300_v52 = vrot.slane %v1287_v48, 2  ;;  %v1302_v32 = vrot.slane %v1288_v59, 2  ;;  %v1338_v39 = vrot.slane %v1326_v23, 2  ;;  %v1328_v18 = vmul.f32 %v1324_v27, %v7568_v0 }
 0x1a8   :  { %v7586_v25 = vsel %vm7532_vm7, %v1175_v11, 0.0  ;;  %v7605_v57 = vsel %vm7580_vm11, %v1176_v49, 0.0  ;;  %v1340_v63 = vrot.slane %v1327_v45, 2  ;;  %v1253_v41 = vmul.f32 %v1252_v17, %v7557_v28 }
 0x1a9   :  { %v1204_v19 = vmul.f32 %v1200_v12, %v7586_v25  ;;  %v1289_v7 = vmul.f32 %v1284_v44, %v7586_v25  ;;  %v1230_v21 = vmul.f32 %v1226_v37, %v7586_v25  ;;  %v1290_v43 = vmul.f32 %v1284_v44, %v7605_v57 }
 0x1aa   :  { %v1337_v12 = vrot.slane %v1325_v6, 2  ;;  %v1329_v58 = vmul.f32 %v1324_v27, %v7586_v25  ;;  %v1301_v35 = vsel %vm298_vm0, %v1298_v36, %v1300_v52  ;;  %v1330_v3 = vmul.f32 %v1324_v27, %v7605_v57 }
 0x1ab   :  { %1215 = vrot.lane.b32.xlu1 %v1204_v19, %s6661_s8  ;;  %1235 = vrot.lane.b32.xlu0 %v1227_v1, %s6662_s12  ;;  %v1303_v46 = vrot.slane %v1289_v7, 2  ;;  %v1305_v38 = vrot.slane %v1290_v43, 2  ;;  %v1254_v50 = vmul.f32 %v1252_v17, %v7553_v31  ;;  %v1342_v61 = vrot.slane %v1328_v18, 2 }
 0x1ac   :  { %v1339_v53 = vsel %vm298_vm0, %v1337_v12, %v1338_v39  ;;  %v1343_v9 = vrot.slane %v1329_v58, 2  ;;  %v1409_v62 = vrot.slane %v1397_v54, 4  ;;  %v1265_v60 = vrot.slane %v1253_v41, 2 }
 0x1ad   :  { %v1304_v51 = vsel %vm298_vm0, %v1302_v32, %v1303_v46  ;;  %v1306_v33 = vsel %vm298_vm0, %v1303_v46, %v1305_v38  ;;  %v1341_v47 = vsel %vm298_vm0, %v1338_v39, %v1340_v63  ;;  %v1410_v16 = vrot.slane %v1398_v8, 4 }
 0x1ae   :  { %v1400_v26 = vmul.f32 %v7613_v24, %v7568_v0  ;;  %v1266_v4 = vrot.slane %v1254_v50, 2  ;;  %v1401_v11 = vmul.f32 %v7613_v24, %v7586_v25  ;;  %v1256_v37 = vmul.f32 %v1252_v17, %v7568_v0 }
 0x1af   :  { %1237 = vrot.lane.b32.xlu1 %v1228_v10, %s6662_s12  ;;  %1239 = vrot.lane.b32.xlu0 %v1229_v56, %s6662_s12  ;;  %v1257_v5 = vmul.f32 %v1252_v17, %v7586_v25  ;;  %v1255_v42 = vmul.f32 %v1252_v17, %v7595_v30  ;;  %v1344_v44 = vsel %vm298_vm0, %v1342_v61, %v1343_v9  ;;  %v1345_v20 = vrot.slane %v1330_v3, 2 }
 0x1b0   :  { %v7651_v34 = vsel %vm298_vm0, %v1265_v60, %v1266_v4  ;;  %v1258_v19 = vmul.f32 %v1252_v17, %v7605_v57  ;;  %v1399_v1 = vmul.f32 %v7613_v24, %v7595_v30  ;;  %v1270_v40 = vrot.slane %v1256_v37, 2 }
 0x1b1   :  { %v1271_v22 = vrot.slane %v1257_v5, 2  ;;  %v1268_v49 = vrot.slane %v1255_v42, 2  ;;  %v1364_v56 = vstv %s7630_s4  ;;  %v1415_v27 = vrot.slane %v1401_v11, 4  ;;  %s6335_s4 = sld [smem:[#allocation3 + $0x8d]] }
 0x1b2   :  { %v1273_v10 = vrot.slane %v1258_v19, 2  ;;  %v1437_v29 = vmul.f32 %v7632_v13, %v7557_v28  ;;  %v1411_v48 = vsel %vm527_vm1, %v1409_v62, %v1410_v16  ;;  %v1414_v59 = vrot.slane %v1400_v26, 4 }
 0x1b3   :  { %1241 = vrot.lane.b32.xlu1 %v1230_v21, %s6662_s12  ;;  %1307 = vrot.lane.b32.xlu0 %v1299_v15, %s6661_s8  ;;  %v7662_v36 = vsel %vm298_vm0, %v1270_v40, %v1271_v22  ;;  %v7665_v7 = vsel %vm298_vm0, %v1266_v4, %v1268_v49  ;;  %v1438_v21 = vmul.f32 %v7632_v13, %v7553_v31  ;;  %v1412_v15 = vrot.slane %v1399_v1, 4  ;;  %v7745_v49 = vld [vmem:[%s12457_s0 + $0xa0] sm:$0xff] }
 0x1b4   :  { %v7671_v6 = vsel %vm298_vm0, %v1271_v22, %v1273_v10  ;;  %v1346_v23 = vsel %vm298_vm0, %v1343_v9, %v1345_v20  ;;  %v1402_v46 = vmul.f32 %v7613_v24, %v7605_v57  ;;  %v1365_v52 = vmul.f32 %v1364_v56, %v7557_v28  ;;  %v7730_v20 = vld [vmem:[%s12457_s0 + $0x28] sm:$0xff] }
 0x1b5   :  { %v1366_v43 = vmul.f32 %v1364_v56, %v7553_v31  ;;  %v1416_v45 = vsel %vm527_vm1, %v1414_v59, %v1415_v27  ;;  %v1449_v32 = vrot.slane %v1437_v29, 4  ;;  %v1441_v17 = vmul.f32 %v7632_v13, %v7586_v25  ;;  %v7740_v22 = vld [vmem:[%s12457_s0 + $0xa8] sm:$0xff]  ;;  %v7754_v29 = vld [vmem:[%s12457_s0 + $0xb0] sm:$0xff] }
 0x1b6   :  { %v1377_v12 = vrot.slane %v1365_v52, 4  ;;  %v1450_v39 = vrot.slane %v1438_v21, 4  ;;  %v1368_v24 = vmul.f32 %v1364_v56, %v7568_v0  ;;  %v1369_v54 = vmul.f32 %v1364_v56, %v7586_v25 }
 0x1b7   :  { %1311 = vrot.lane.b32.xlu0 %v1304_v51, %s6661_s8  ;;  %1309 = vrot.lane.b32.xlu1 %v1301_v35, %s6661_s8  ;;  %v1378_v58 = vrot.slane %v1366_v43, 4  ;;  %v1413_v51 = vsel %vm527_vm1, %v1410_v16, %v1412_v15  ;;  %v1417_v35 = vrot.slane %v1402_v46, 4  ;;  %v1439_v38 = vmul.f32 %v7632_v13, %v7595_v30 }
 0x1b8   :  { %v1367_v18 = vmul.f32 %v1364_v56, %v7595_v30  ;;  %v1382_v8 = vrot.slane %v1368_v24, 4  ;;  %v1383_v41 = vrot.slane %v1369_v54, 4  ;;  %v1451_v3 = vsel %vm527_vm1, %v1449_v32, %v1450_v39 }
 0x1b9   :  { %v7692_v63 = vsel %vm527_vm1, %v1377_v12, %v1378_v58  ;;  %v1455_v50 = vrot.slane %v1441_v17, 4  ;;  %v1418_v61 = vsel %vm527_vm1, %v1415_v27, %v1417_v35  ;;  %v1452_v62 = vrot.slane %v1439_v38, 4 }
 0x1ba   :  { %v1380_v9 = vrot.slane %v1367_v18, 4  ;;  %v7700_v30 = vsel %vm527_vm1, %v1382_v8, %v1383_v41  ;;  %v1523_v26 = vstv %s6323_s10  ;;  %v1561_v27 = vstv %s6324_s18  ;;  %s6336_s10 = sld [smem:[#allocation3 + $0x8e]] }
 0x1bb   :  { %1347 = vrot.lane.b32.xlu0 %v1339_v53, %s6662_s12  ;;  %1313 = vrot.lane.b32.xlu1 %v1306_v33, %s6661_s8  ;;  %v1440_v53 = vmul.f32 %v7632_v13, %v7568_v0  ;;  %v1442_v33 = vmul.f32 %v7632_v13, %v7605_v57  ;;  %v7712_v13 = vld [vmem:[%s12457_s0 + $0x20] sm:$0xff]  ;;  %v1453_v37 = vsel %vm527_vm1, %v1450_v39, %v1452_v62  ;;  %v1599_v52 = vstv %s6325_s24  ;;  %s6340_s18 = sld [smem:[#allocation3 + $0x92]] }
 0x1bc   :  { %v7704_v60 = vsel %vm527_vm1, %v1378_v58, %v1380_v9  ;;  %v1525_v40 = vmul.f32 %v7730_v20, %v1523_v26  ;;  %v1528_v10 = vmul.f32 %v7740_v22, %v1523_v26  ;;  %v1529_v59 = vmul.f32 %v7754_v29, %v1523_v26  ;;  %s6369_s24 = sld [smem:[#allocation3 + $0x101]] }
 0x1bd   :  { %v1454_v16 = vrot.slane %v1440_v53, 4  ;;  %v1457_v5 = vrot.slane %v1442_v33, 4  ;;  %v1566_v15 = vmul.f32 %v7740_v22, %v1561_v27  ;;  %v1565_v46 = vmul.f32 %v7745_v49, %v1561_v27 }
 0x1be   :  { %v1600_v43 = vmul.f32 %v7712_v13, %v1599_v52  ;;  %v1601_v17 = vmul.f32 %v7730_v20, %v1599_v52  ;;  %v1604_v12 = vmul.f32 %v7740_v22, %v1599_v52  ;;  %v1603_v39 = vmul.f32 %v7745_v49, %v1599_v52 }
 0x1bf   :  { %1351 = vrot.lane.b32.xlu0 %v1344_v44, %s6662_s12  ;;  %1349 = vrot.lane.b32.xlu1 %v1341_v47, %s6662_s12  ;;  %v1370_v47 = vmul.f32 %v1364_v56, %v7605_v57  ;;  %v1456_v11 = vsel %vm527_vm1, %v1454_v16, %v1455_v50  ;;  %v1524_v57 = vmul.f32 %v7712_v13, %v1523_v26  ;;  %v7725_v44 = vld [vmem:[%s12457_s0 + $0x30] sm:$0xff]  ;;  %v1637_v58 = vstv %s6326_s25  ;;  %s6379_s25 = sld [smem:[#allocation3 + $0x10b]] }
 0x1c0   :  { %v1458_v19 = vsel %vm527_vm1, %v1455_v50, %v1457_v5  ;;  %v1526_v1 = vmul.f32 %v7725_v44, %v1523_v26  ;;  %v1527_v56 = vmul.f32 %v7745_v49, %v1523_v26  ;;  %v1564_v21 = vmul.f32 %v7725_v44, %v1561_v27 }
 0x1c1   :  { %v1385_v4 = vrot.slane %v1370_v47, 4  ;;  %v1602_v32 = vmul.f32 %v7725_v44, %v1599_v52  ;;  %v1638_v24 = vmul.f32 %v7712_v13, %v1637_v58  ;;  %v1605_v54 = vmul.f32 %v7754_v29, %v1599_v52 }
 0x1c2   :  { %v1640_v35 = vmul.f32 %v7725_v44, %v1637_v58  ;;  %v1639_v38 = vmul.f32 %v7730_v20, %v1637_v58  ;;  %v1641_v53 = vmul.f32 %v7745_v49, %v1637_v58  ;;  %v1643_v33 = vmul.f32 %v7754_v29, %v1637_v58 }
 0x1c3   :  { %1419 = vrot.lane.b32.xlu0 %v1411_v48, %s6661_s8  ;;  %1353 = vrot.lane.b32.xlu1 %v1346_v23, %s6662_s12  ;;  %v7717_v42 = vsel %vm527_vm1, %v1383_v41, %v1385_v4  ;;  %v1562_v48 = vmul.f32 %v7712_v13, %v1561_v27  ;;  %v1563_v23 = vmul.f32 %v7730_v20, %v1561_v27  ;;  %v1759_v4 = vstv %s6329_s27  ;;  %s6425_s27 = sld [smem:[#allocation3 + $0x18b]] }
 0x1c4   :  { %v1642_v41 = vmul.f32 %v7740_v22, %v1637_v58  ;;  %v1807_v52 = vstv %s6330_s28  ;;  %s6381_s28 = sld [smem:[#allocation3 + $0x10d]] }
 0x1c7   :  { %1423 = vrot.lane.b32.xlu0 %v1416_v45, %s6661_s8  ;;  %1421 = vrot.lane.b32.xlu1 %v1413_v51, %s6661_s8  ;;  %v1567_v45 = vmul.f32 %v7754_v29, %v1561_v27  ;;  %v1711_v51 = vstv %s6328_s26  ;;  %s6417_s26 = sld [smem:[#allocation3 + $0x183]] }
 0x1c8   :  { %v1712_v18 = vmul.f32 %v7712_v13, %v1711_v51  ;;  %v1713_v8 = vmul.f32 %v7730_v20, %v1711_v51  ;;  %v1714_v50 = vmul.f32 %v7725_v44, %v1711_v51  ;;  %v1717_v62 = vmul.f32 %v7754_v29, %v1711_v51 }
 0x1c9   :  { %v1715_v26 = vmul.f32 %v7745_v49, %v1711_v51 }
 0x1ca   :  { %v1724_v9 = vrot.slane %v1712_v18, 2  ;;  %v1727_v16 = vrot.slane %v1714_v50, 2  ;;  %v1190_v18 = vstv %s1189_s29  ;;  %v1855_v50 = vstv %s6331_s30  ;;  %s6418_s29 = sld [smem:[#allocation3 + $0x184]] }
 0x1cb   :  { %1459 = vrot.lane.b32.xlu0 %v1451_v3, %s6662_s12  ;;  %1425 = vrot.lane.b32.xlu1 %v1418_v61, %s6661_s8  ;;  %v1725_v3 = vrot.slane %v1713_v8, 2  ;;  %v1716_v61 = vmul.f32 %v7740_v22, %v1711_v51  ;;  %v1812_v8 = vmul.f32 %v7740_v22, %v1807_v52  ;;  %s6374_s30 = sld [smem:[#allocation3 + $0x106]] }
 0x1cd   :  { %v1726_v47 = vsel %vm298_vm0, %v1724_v9, %v1725_v3  ;;  %v1728_v5 = vsel %vm298_vm0, %v1725_v3, %v1727_v16  ;;  %v1811_v3 = vmul.f32 %v7745_v49, %v1807_v52 }
 0x1cf   :  { %1463 = vrot.lane.b32.xlu0 %v1456_v11, %s6662_s12  ;;  %1461 = vrot.lane.b32.xlu1 %v1453_v37, %s6662_s12  ;;  %v1730_v11 = vrot.slane %v1716_v61, 2  ;;  %v1732_v37 = vrot.slane %v1717_v62, 2  ;;  %v1191_v62 = vmul.f32 %v1190_v18, %v7557_v28  ;;  %v1193_v28 = vmul.f32 %v1190_v18, %v7568_v0 }
 0x1d0   :  { %v1194_v0 = vmul.f32 %v1190_v18, %v7586_v25  ;;  %v1859_v25 = vmul.f32 %v7745_v49, %v1855_v50 }
 0x1d3   :  { %1536 = vrot.lane.b32.xlu0 %v1524_v57, %s6661_s8  ;;  %1465 = vrot.lane.b32.xlu1 %v1458_v19, %s6662_s12  ;;  %v1729_v57 = vrot.slane %v1715_v26, 2  ;;  %v1760_v19 = vmul.f32 %v7712_v13, %v1759_v4  ;;  %v1856_v26 = vmul.f32 %v7712_v13, %v1855_v50 }
 0x1d7   :  { %1540 = vrot.lane.b32.xlu0 %v1526_v1, %s6661_s8  ;;  %1538 = vrot.lane.b32.xlu1 %v1525_v40, %s6661_s8  ;;  %v1761_v1 = vmul.f32 %v7730_v20, %v1759_v4  ;;  %v1733_v40 = vsel %vm298_vm0, %v1730_v11, %v1732_v37 }
 0x1d9   :  { %v1773_v27 = vrot.slane %v1761_v1, 2  ;;  %v1192_v1 = vmul.f32 %v1190_v18, %v7553_v31 }
 0x1db   :  { %1544 = vrot.lane.b32.xlu0 %v1528_v10, %s6661_s8  ;;  %1542 = vrot.lane.b32.xlu1 %v1527_v56, %s6661_s8  ;;  %v1731_v10 = vsel %vm298_vm0, %v1729_v57, %v1730_v11  ;;  %v1772_v56 = vrot.slane %v1760_v19, 2 }
 0x1df   :  { %1574 = vrot.lane.b32.xlu0 %v1562_v48, %s6662_s12  ;;  %1546 = vrot.lane.b32.xlu1 %v1529_v59, %s6661_s8  ;;  %v1762_v48 = vmul.f32 %v7725_v44, %v1759_v4  ;;  %v1764_v59 = vmul.f32 %v7740_v22, %v1759_v4 }
 0x1e3   :  { %1578 = vrot.lane.b32.xlu0 %v1564_v21, %s6662_s12  ;;  %1576 = vrot.lane.b32.xlu1 %v1563_v23, %s6662_s12  ;;  %v1765_v21 = vmul.f32 %v7754_v29, %v1759_v4  ;;  %v1774_v23 = vsel %vm298_vm0, %v1772_v56, %v1773_v27  ;;  %v1868_v56 = vrot.slane %v1856_v26, 2 }
 0x1e7   :  { %1582 = vrot.lane.b32.xlu0 %v1566_v15, %s6662_s12  ;;  %1580 = vrot.lane.b32.xlu1 %v1565_v46, %s6662_s12  ;;  %v1775_v15 = vrot.slane %v1762_v48, 2  ;;  %v1763_v46 = vmul.f32 %v7745_v49, %v1759_v4  ;;  %v1857_v4 = vmul.f32 %v7730_v20, %v1855_v50  ;;  %v1858_v48 = vmul.f32 %v7725_v44, %v1855_v50 }
 0x1eb   :  { %1612 = vrot.lane.b32.xlu0 %v1600_v43, %s6663_s14  ;;  %1584 = vrot.lane.b32.xlu1 %v1567_v45, %s6662_s12  ;;  %v1778_v43 = vrot.slane %v1764_v59, 2  ;;  %v1780_v45 = vrot.slane %v1765_v21, 2 }
 0x1ed   :  { %v1781_v58 = vsel %vm298_vm0, %v1778_v43, %v1780_v45 }
 0x1ef   :  { %1616 = vrot.lane.b32.xlu0 %v1602_v32, %s6663_s14  ;;  %1614 = vrot.lane.b32.xlu1 %v1601_v17, %s6663_s14  ;;  %v1776_v32 = vsel %vm298_vm0, %v1773_v27, %v1775_v15  ;;  %v1777_v17 = vrot.slane %v1763_v46, 2  ;;  %v1869_v27 = vrot.slane %v1857_v4, 2 }
 0x1f3   :  { %1620 = vrot.lane.b32.xlu0 %v1604_v12, %s6663_s14  ;;  %1618 = vrot.lane.b32.xlu1 %v1603_v39, %s6663_s14  ;;  %v1808_v12 = vmul.f32 %v7712_v13, %v1807_v52  ;;  %v1809_v39 = vmul.f32 %v7730_v20, %v1807_v52 }
 0x1f5   :  { %v1821_v51 = vrot.slane %v1809_v39, 2  ;;  %v1939_v39 = vstv %s6333_s9  ;;  %s6322_s9 = sld [smem:[#allocation3 + $0x80]] }
 0x1f6   :  { %v1941_v18 = vmul.f32 %v7730_v20, %v1939_v39 }
 0x1f7   :  { %1650 = vrot.lane.b32.xlu0 %v1638_v24, %s6664_s16  ;;  %1622 = vrot.lane.b32.xlu1 %v1605_v54, %s6663_s14  ;;  %v1779_v24 = vsel %vm298_vm0, %v1777_v17, %v1778_v43  ;;  %v1820_v54 = vrot.slane %v1808_v12, 2  ;;  %v1871_v17 = vrot.slane %v1858_v48, 2  ;;  %v1861_v12 = vmul.f32 %v7754_v29, %v1855_v50 }
 0x1fb   :  { %1654 = vrot.lane.b32.xlu0 %v1640_v35, %s6664_s16  ;;  %1652 = vrot.lane.b32.xlu1 %v1639_v38, %s6664_s16  ;;  %v1810_v35 = vmul.f32 %v7725_v44, %v1807_v52 }
 0x1fd   :  { %v1823_v9 = vrot.slane %v1810_v35, 2 }
 0x1ff   :  { %1658 = vrot.lane.b32.xlu0 %v1642_v41, %s6664_s16  ;;  %1656 = vrot.lane.b32.xlu1 %v1641_v53, %s6664_s16  ;;  %v1813_v41 = vmul.f32 %v7754_v29, %v1807_v52  ;;  %v1822_v53 = vsel %vm298_vm0, %v1820_v54, %v1821_v51 }
 0x203   :  { %1734 = vrot.lane.b32.xlu0 %v1726_v47, %s6661_s8  ;;  %1660 = vrot.lane.b32.xlu1 %v1643_v33, %s6664_s16  ;;  %v1826_v47 = vrot.slane %v1812_v8, 2 }
 0x207   :  { %1738 = vrot.lane.b32.xlu0 %v1727_v16, %s6661_s8  ;;  %1736 = vrot.lane.b32.xlu1 %v1728_v5, %s6661_s8  ;;  %v1828_v16 = vrot.slane %v1813_v41, 2  ;;  %v1825_v5 = vrot.slane %v1811_v3, 2  ;;  %v1872_v41 = vsel %vm298_vm0, %v1869_v27, %v1871_v17 }
 0x20b   :  { %1742 = vrot.lane.b32.xlu0 %v1733_v40, %s6661_s8  ;;  %1740 = vrot.lane.b32.xlu1 %v1731_v10, %s6661_s8  ;;  %v1829_v10 = vsel %vm298_vm0, %v1826_v47, %v1828_v16 }
 0x20f   :  { %1782 = vrot.lane.b32.xlu0 %v1774_v23, %s6662_s12  ;;  %1744 = vrot.lane.b32.xlu1 %v1732_v37, %s6661_s8  ;;  %v1824_v37 = vsel %vm298_vm0, %v1821_v51, %v1823_v9  ;;  %v1827_v23 = vsel %vm298_vm0, %v1825_v5, %v1826_v47  ;;  %v1944_v5 = vmul.f32 %v7740_v22, %v1939_v39 }
 0x213   :  { %1786 = vrot.lane.b32.xlu0 %v1775_v15, %s6662_s12  ;;  %1784 = vrot.lane.b32.xlu1 %v1776_v32, %s6662_s12  ;;  %v1870_v32 = vsel %vm298_vm0, %v1868_v56, %v1869_v27 }
 0x215   :  { %v1210_v38 = vpop.permute.xlu0 %1209  ;;  %v1212_v33 = vpop.permute.xlu1 %1211 }
 0x216   :  { %v1221_v11 = vadd.f32 %v1210_v38, %v1191_v62  ;;  %v1222_v59 = vadd.f32 %v1212_v33, %v1192_v1  ;;  %v1940_v38 = vmul.f32 %v7712_v13, %v1939_v39  ;;  %v1953_v33 = vrot.slane %v1941_v18, 4 }
 0x217   :  { %1790 = vrot.lane.b32.xlu0 %v1781_v58, %s6662_s12  ;;  %1788 = vrot.lane.b32.xlu1 %v1779_v24, %s6662_s12 }
 0x219   :  { %v1214_v61 = vpop.permute.xlu0 %1213 }
 0x21a   :  { %v1223_v21 = vadd.f32 %v1214_v61, %v1193_v28  ;;  %v1942_v61 = vmul.f32 %v7725_v44, %v1939_v39 }
 0x21b   :  { %1830 = vrot.lane.b32.xlu0 %v1822_v53, %s6663_s14  ;;  %1792 = vrot.lane.b32.xlu1 %v1780_v45, %s6662_s12  ;;  %v1860_v45 = vmul.f32 %v7740_v22, %v1855_v50  ;;  %v1876_v53 = vrot.slane %v1861_v12, 2  ;;  %v1952_v50 = vrot.slane %v1940_v38, 4 }
 0x21d   :  { %v1216_v57 = vpop.permute.xlu1 %1215  ;;  %v1236_v19 = vpop.permute.xlu0 %1235  ;;  %v1874_v8 = vrot.slane %v1860_v45, 2 }
 0x21e   :  { %v1247_v40 = vadd.f32 %v1236_v19, %v1221_v11  ;;  %v1224_v58 = vadd.f32 %v1216_v57, %v1194_v0  ;;  %v1954_v11 = vsel %vm527_vm1, %v1952_v50, %v1953_v33  ;;  %v1945_v57 = vmul.f32 %v7754_v29, %v1939_v39 }
 0x21f   :  { %1834 = vrot.lane.b32.xlu0 %v1823_v9, %s6663_s14  ;;  %1832 = vrot.lane.b32.xlu1 %v1824_v37, %s6663_s14  ;;  %v1877_v47 = vsel %vm298_vm0, %v1874_v8, %v1876_v53  ;;  %v1955_v37 = vrot.slane %v1942_v61, 4  ;;  %v1943_v19 = vmul.f32 %v7745_v49, %v1939_v39 }
 0x220   :  { %v1279_v15 = vadd.f32 %v7651_v34, %v1247_v40 }
 0x221   :  { %v1238_v31 = vpop.permute.xlu1 %1237  ;;  %v1240_v46 = vpop.permute.xlu0 %1239 }
 0x222   :  { %v1248_v52 = vadd.f32 %v1238_v31, %v1222_v59  ;;  %v1249_v43 = vadd.f32 %v1240_v46, %v1223_v21  ;;  %v1956_v21 = vsel %vm527_vm1, %v1953_v33, %v1955_v37  ;;  %v1957_v31 = vrot.slane %v1943_v19, 4 }
 0x223   :  { %1838 = vrot.lane.b32.xlu0 %v1829_v10, %s6663_s14  ;;  %1836 = vrot.lane.b32.xlu1 %v1827_v23, %s6663_s14  ;;  %v1987_v10 = vstv %s6334_s2  ;;  %v1958_v23 = vrot.slane %v1944_v5, 4  ;;  %s6327_s2 = sld [smem:[#allocation3 + $0x85]] }
 0x224   :  { %v1281_v34 = vadd.f32 %v7662_v36, %v1249_v43  ;;  %v1280_v24 = vadd.f32 %v7665_v7, %v1248_v52  ;;  %v1873_v7 = vrot.slane %v1859_v25, 2  ;;  %v1988_v46 = vmul.f32 %v7712_v13, %v1987_v10 }
 0x225   :  { %v1242_v54 = vpop.permute.xlu1 %1241  ;;  %v1308_v51 = vpop.permute.xlu0 %1307  ;;  %v1989_v43 = vmul.f32 %v7730_v20, %v1987_v10  ;;  %v1959_v39 = vsel %vm527_vm1, %v1957_v31, %v1958_v23  ;;  %v1991_v38 = vmul.f32 %v7745_v49, %v1987_v10 }
 0x226   :  { %v1250_v35 = vadd.f32 %v1242_v54, %v1224_v58  ;;  %v1319_v62 = vadd.f32 %v1308_v51, %v1279_v15  ;;  %v1960_v15 = vrot.slane %v1945_v57, 4  ;;  %v1992_v54 = vmul.f32 %v7740_v22, %v1987_v10 }
 0x227   :  { %1878 = vrot.lane.b32.xlu0 %v1870_v32, %s6664_s16  ;;  %1840 = vrot.lane.b32.xlu1 %v1828_v16, %s6663_s14  ;;  %v1875_v16 = vsel %vm298_vm0, %v1873_v7, %v1874_v8  ;;  %v2001_v58 = vrot.slane %v1989_v43, 4  ;;  %v1993_v51 = vmul.f32 %v7754_v29, %v1987_v10 }
 0x228   :  { %v1282_v36 = vadd.f32 %v7671_v6, %v1250_v35  ;;  %v1961_v12 = vsel %vm527_vm1, %v1958_v23, %v1960_v15 }
 0x229   :  { %v1312_v9 = vpop.permute.xlu0 %1311  ;;  %v1310_v3 = vpop.permute.xlu1 %1309 }
 0x22a   :  { %v1321_v1 = vadd.f32 %v1312_v9, %v1281_v34  ;;  %v1320_v28 = vadd.f32 %v1310_v3, %v1280_v24  ;;  %v1990_v34 = vmul.f32 %v7725_v44, %v1987_v10  ;;  %v2005_v9 = vrot.slane %v1991_v38, 4 }
 0x22b   :  { %1882 = vrot.lane.b32.xlu0 %v1871_v17, %s6664_s16  ;;  %1880 = vrot.lane.b32.xlu1 %v1872_v41, %s6664_s16  ;;  %v2035_v41 = vstv %s6335_s4  ;;  %s6370_s4 = sld [smem:[#allocation3 + $0x102]] }
 0x22c   :  { %v2036_v3 = vmul.f32 %v7712_v13, %v2035_v41  ;;  %v2037_v50 = vmul.f32 %v7730_v20, %v2035_v41  ;;  %v2041_v5 = vmul.f32 %v7754_v29, %v2035_v41 }
 0x22d   :  { %v1348_v26 = vpop.permute.xlu0 %1347  ;;  %v1314_v6 = vpop.permute.xlu1 %1313 }
 0x22e   :  { %v1359_v4 = vadd.f32 %v1348_v26, %v1319_v62  ;;  %v1322_v0 = vadd.f32 %v1314_v6, %v1282_v36  ;;  %v2006_v36 = vrot.slane %v1992_v54, 4  ;;  %v2049_v26 = vrot.slane %v2037_v50, 4 }
 0x22f   :  { %1886 = vrot.lane.b32.xlu0 %v1877_v47, %s6664_s16  ;;  %1884 = vrot.lane.b32.xlu1 %v1875_v16, %s6664_s16  ;;  %v2048_v16 = vrot.slane %v2036_v3, 4  ;;  %v2038_v6 = vmul.f32 %v7725_v44, %v2035_v41 }
 0x230   :  { %v7875_v40 = vadd.f32 %v7692_v63, %v1359_v4  ;;  %v2007_v47 = vsel %vm527_vm1, %v2005_v9, %v2006_v36 }
 0x231   :  { %v1352_v56 = vpop.permute.xlu0 %1351  ;;  %v1350_v27 = vpop.permute.xlu1 %1349  ;;  %v2050_v57 = vsel %vm527_vm1, %v2048_v16, %v2049_v26  ;;  %v2051_v19 = vrot.slane %v2038_v6, 4  ;;  %v7980_v16 = vld [vmem:[%s12457_s0 + $0x38] sm:$0xf] }
 0x232   :  { %12689 = vst [vmem:[#allocation21_spill] sm:$0xff] %v7875_v40  ;;  %v1361_v48 = vadd.f32 %v1352_v56, %v1321_v1  ;;  %v1360_v59 = vadd.f32 %v1350_v27, %v1320_v28  ;;  %v2039_v1 = vmul.f32 %v7745_v49, %v2035_v41  ;;  %v2083_v56 = vstv %s6336_s10  ;;  %12701 = vst [vmem:[#allocation44_spill] sm:$0xff] %v7980_v16  ;;  %s6375_s10 = sld [smem:[#allocation3 + $0x107]] }
 0x233   :  { %1962 = vrot.lane.b32.xlu0 %v1954_v11, %s6661_s8  ;;  %1888 = vrot.lane.b32.xlu1 %v1876_v53, %s6664_s16  ;;  %v2008_v53 = vrot.slane %v1993_v51, 4  ;;  %v2084_v23 = vmul.f32 %v7712_v13, %v2083_v56  ;;  %v2087_v54 = vmul.f32 %v7745_v49, %v2083_v56  ;;  %v2489_v40 = vstv %s6345_s22  ;;  %s6350_s22 = sld [smem:[#allocation6 + $0x83]] }
 0x234   :  { %v7882_v63 = vadd.f32 %v7700_v30, %v1361_v48  ;;  %v7885_v52 = vadd.f32 %v7704_v60, %v1360_v59  ;;  %v2000_v60 = vrot.slane %v1988_v46, 4  ;;  %v2056_v48 = vrot.slane %v2041_v5, 4 }
 0x235   :  { %v7888_v45 = vpop.permute.xlu0 %1419  ;;  %v1354_v32 = vpop.permute.xlu1 %1353  ;;  %v2009_v62 = vsel %vm527_vm1, %v2006_v36, %v2008_v53  ;;  %v2052_v59 = vsel %vm527_vm1, %v2049_v26, %v2051_v19  ;;  %v2492_v14 = vmul.f32 %v7980_v16, %v2489_v40 }
 0x236   :  { %12690 = vst [vmem:[#allocation25_spill] sm:$0xff] %v7882_v63  ;;  %12691 = vst [vmem:[#allocation32_spill] sm:$0xff] %v7885_v52  ;;  %v1362_v17 = vadd.f32 %v1354_v32, %v1322_v0  ;;  %v2002_v35 = vsel %vm527_vm1, %v2000_v60, %v2001_v58  ;;  %v2096_v32 = vrot.slane %v2084_v23, 4 }
 0x237   :  { %12692 = vst [vmem:[#allocation33_spill] sm:$0xff] %v7888_v45  ;;  %1966 = vrot.lane.b32.xlu0 %v1955_v37, %s6661_s8  ;;  %1964 = vrot.lane.b32.xlu1 %v1956_v21, %s6661_s8  ;;  %v2040_v37 = vmul.f32 %v7740_v22, %v2035_v41  ;;  %v2053_v21 = vrot.slane %v2039_v1, 4  ;;  %v2175_v41 = vstv %s6338_s11  ;;  %s6332_s11 = sld [smem:[#allocation3 + $0x8a]] }
 0x238   :  { %v7895_v30 = vadd.f32 %v7717_v42, %v1362_v17  ;;  %v2003_v42 = vrot.slane %v1990_v34, 4  ;;  %v2089_v34 = vmul.f32 %v7754_v29, %v2083_v56  ;;  %v2176_v3 = vmul.f32 %v7712_v13, %v2175_v41 }
 0x239   :  { %v7898_v24 = vpop.permute.xlu0 %1423  ;;  %v7900_v25 = vpop.permute.xlu1 %1421  ;;  %v2054_v27 = vrot.slane %v2040_v37, 4  ;;  %v2177_v50 = vmul.f32 %v7730_v20, %v2175_v41 }
 0x23a   :  { %12693 = vst [vmem:[#allocation20_spill] sm:$0xff] %v7895_v30  ;;  %12694 = vst [vmem:[#allocation23_spill] sm:$0xff] %v7898_v24  ;;  %v2004_v7 = vsel %vm527_vm1, %v2001_v58, %v2003_v42  ;;  %v2088_v58 = vmul.f32 %v7740_v22, %v2083_v56  ;;  %v2192_v37 = vrot.slane %v2176_v3, 6 }
 0x23b   :  { %12695 = vst [vmem:[#allocation28_spill] sm:$0xff] %v7900_v25  ;;  %1970 = vrot.lane.b32.xlu0 %v1961_v12, %s6661_s8  ;;  %1968 = vrot.lane.b32.xlu1 %v1959_v39, %s6661_s8  ;;  %v2057_v0 = vsel %vm527_vm1, %v2054_v27, %v2056_v48  ;;  %v2055_v43 = vsel %vm527_vm1, %v2053_v21, %v2054_v27  ;;  %v2193_v5 = vrot.slane %v2177_v50, 6 }
 0x23c   :  { %v2086_v12 = vmul.f32 %v7725_v44, %v2083_v56  ;;  %v2102_v36 = vrot.slane %v2088_v58, 4  ;;  %v2181_v27 = vmul.f32 %v7740_v22, %v2175_v41 }
 0x23d   :  { %v7908_v18 = vpop.permute.xlu0 %1459  ;;  %v7910_v8 = vpop.permute.xlu1 %1425  ;;  %v2194_v21 = vsel %vm760_vm2, %v2192_v37, %v2193_v5 }
 0x23e   :  { %12696 = vst [vmem:[#allocation38_spill] sm:$0xff] %v7908_v18  ;;  %12697 = vst [vmem:[#allocation39_spill] sm:$0xff] %v7910_v8 }
 0x23f   :  { %2010 = vrot.lane.b32.xlu0 %v2002_v35, %s6662_s12  ;;  %1972 = vrot.lane.b32.xlu1 %v1960_v15, %s6661_s8  ;;  %v2085_v15 = vmul.f32 %v7730_v20, %v2083_v56  ;;  %v2099_v35 = vrot.slane %v2086_v12, 4  ;;  %v2200_v12 = vrot.slane %v2181_v27, 6 }
 0x241   :  { %v7917_v33 = vpop.permute.xlu0 %1463  ;;  %v7919_v61 = vpop.permute.xlu1 %1461  ;;  %v2097_v17 = vrot.slane %v2085_v15, 4 }
 0x242   :  { %12698 = vst [vmem:[#allocation22_spill] sm:$0xff] %v7917_v33  ;;  %12699 = vst [vmem:[#allocation17_spill] sm:$0xff] %v7919_v61  ;;  %v2343_v33 = vstv %s6341_s19  ;;  %s6351_s19 = sld [smem:[#allocation6 + $0x84]] }
 0x243   :  { %2014 = vrot.lane.b32.xlu0 %v2003_v42, %s6662_s12  ;;  %2012 = vrot.lane.b32.xlu1 %v2004_v7, %s6662_s12  ;;  %v2098_v51 = vsel %vm527_vm1, %v2096_v32, %v2097_v17  ;;  %v2101_v7 = vrot.slane %v2087_v54, 4  ;;  %v2100_v9 = vsel %vm527_vm1, %v2097_v17, %v2099_v35  ;;  %v2231_v17 = vstv %s6339_s17  ;;  %s8360_s17 = sld [smem:[#allocation3 + $0x8f]] }
 0x244   :  { %v2234_v37 = vmul.f32 %v7725_v44, %v2231_v17  ;;  %v2237_v27 = vmul.f32 %v7740_v22, %v2231_v17 }
 0x245   :  { %v7926_v4 = vpop.permute.xlu0 %1536  ;;  %v7928_v11 = vpop.permute.xlu1 %1465  ;;  %v2103_v6 = vsel %vm527_vm1, %v2101_v7, %v2102_v36  ;;  %v2233_v7 = vmul.f32 %v7730_v20, %v2231_v17 }
 0x246   :  { %12700 = vst [vmem:[#allocation34_spill] sm:$0xff] %v7928_v11 }
 0x247   :  { %2018 = vrot.lane.b32.xlu0 %v2009_v62, %s6662_s12  ;;  %2016 = vrot.lane.b32.xlu1 %v2007_v47, %s6662_s12 }
 0x249   :  { %v7936_v28 = vpop.permute.xlu0 %1540  ;;  %v7938_v10 = vpop.permute.xlu1 %1538 }
 0x24b   :  { %2058 = vrot.lane.b32.xlu0 %v2050_v57, %s6663_s14  ;;  %2020 = vrot.lane.b32.xlu1 %v2008_v53, %s6662_s12  ;;  %v2104_v53 = vrot.slane %v2089_v34, 4  ;;  %v2178_v57 = vmul.f32 %v7725_v44, %v2175_v41 }
 0x24d   :  { %v7945_v31 = vpop.permute.xlu0 %1544  ;;  %v7947_v46 = vpop.permute.xlu1 %1542  ;;  %v2105_v26 = vsel %vm527_vm1, %v2102_v36, %v2104_v53  ;;  %v2195_v23 = vrot.slane %v2178_v57, 6  ;;  %v2232_v36 = vmul.f32 %v7712_v13, %v2231_v17 }
 0x24f   :  { %2062 = vrot.lane.b32.xlu0 %v2051_v19, %s6663_s14  ;;  %2060 = vrot.lane.b32.xlu1 %v2052_v59, %s6663_s14  ;;  %v2179_v19 = vmul.f32 %v7980_v16, %v2175_v41  ;;  %v2180_v59 = vmul.f32 %v7745_v49, %v2175_v41 }
 0x251   :  { %v7954_v39 = vpop.permute.xlu0 %1574  ;;  %v7956_v60 = vpop.permute.xlu1 %1546  ;;  %v2197_v15 = vrot.slane %v2179_v19, 6  ;;  %v2199_v34 = vrot.slane %v2180_v59, 6  ;;  %v2236_v59 = vmul.f32 %v7745_v49, %v2231_v17 }
 0x253   :  { %2066 = vrot.lane.b32.xlu0 %v2057_v0, %s6663_s14  ;;  %2064 = vrot.lane.b32.xlu1 %v2055_v43, %s6663_s14  ;;  %v8001_v0 = vld [vmem:[%s12457_s0 + $0xb8] sm:$0xf] }
 0x254   :  { %12702 = vst [vmem:[#allocation45_spill] sm:$0xff] %v8001_v0  ;;  %v2183_v54 = vmul.f32 %v8001_v0, %v2175_v41 }
 0x255   :  { %v7964_v42 = vpop.permute.xlu0 %1578  ;;  %v7966_v38 = vpop.permute.xlu1 %1576 }
 0x256   :  { %v2204_v50 = vrot.slane %v2183_v54, 6 }
 0x257   :  { %2106 = vrot.lane.b32.xlu0 %v2098_v51, %s6664_s16  ;;  %2068 = vrot.lane.b32.xlu1 %v2056_v48, %s6663_s14  ;;  %v2182_v48 = vmul.f32 %v7754_v29, %v2175_v41  ;;  %v2198_v51 = vsel %vm760_vm2, %v2195_v23, %v2197_v15  ;;  %v2201_v41 = vsel %vm760_vm2, %v2199_v34, %v2200_v12  ;;  %v2251_v15 = vrot.slane %v2234_v37, 6 }
 0x259   :  { %v7973_v62 = vpop.permute.xlu0 %1582  ;;  %v7975_v47 = vpop.permute.xlu1 %1580  ;;  %v2202_v58 = vrot.slane %v2182_v48, 6  ;;  %v2238_v48 = vmul.f32 %v7754_v29, %v2231_v17 }
 0x25b   :  { %2110 = vrot.lane.b32.xlu0 %v2099_v35, %s6664_s16  ;;  %2108 = vrot.lane.b32.xlu1 %v2100_v9, %s6664_s16  ;;  %v2196_v35 = vsel %vm760_vm2, %v2193_v5, %v2195_v23  ;;  %v2235_v5 = vmul.f32 %v7980_v16, %v2231_v17  ;;  %v2205_v23 = vsel %vm760_vm2, %v2202_v58, %v2204_v50 }
 0x25d   :  { %v7988_v1 = vpop.permute.xlu0 %1612  ;;  %v7990_v56 = vpop.permute.xlu1 %1584 }
 0x25f   :  { %2114 = vrot.lane.b32.xlu0 %v2105_v26, %s6664_s16  ;;  %2112 = vrot.lane.b32.xlu1 %v2103_v6, %s6664_s16  ;;  %v2248_v26 = vrot.slane %v2232_v36, 6  ;;  %v2249_v6 = vrot.slane %v2233_v7, 6  ;;  %v2258_v36 = vrot.slane %v2238_v48, 6  ;;  %v2255_v7 = vrot.slane %v2236_v59, 6 }
 0x261   :  { %v8003_v43 = vpop.permute.xlu0 %1616  ;;  %v8005_v32 = vpop.permute.xlu1 %1614 }
 0x263   :  { %2206 = vrot.lane.b32.xlu0 %v2194_v21, %s6661_s8  ;;  %2116 = vrot.lane.b32.xlu1 %v2104_v53, %s6664_s16  ;;  %v2203_v53 = vsel %vm760_vm2, %v2200_v12, %v2202_v58  ;;  %v2250_v21 = vsel %vm760_vm2, %v2248_v26, %v2249_v6  ;;  %v2253_v12 = vrot.slane %v2235_v5, 6  ;;  %v2252_v58 = vsel %vm760_vm2, %v2249_v6, %v2251_v15 }
 0x265   :  { %v8014_v9 = vpop.permute.xlu0 %1620  ;;  %v8016_v3 = vpop.permute.xlu1 %1618 }
 0x267   :  { %2210 = vrot.lane.b32.xlu0 %v2198_v51, %s6661_s8  ;;  %2208 = vrot.lane.b32.xlu1 %v2196_v35, %s6661_s8  ;;  %v2287_v51 = vstv %s6340_s18  ;;  %v2256_v35 = vrot.slane %v2237_v27, 6  ;;  %s6349_s18 = sld [smem:[#allocation6 + $0x82]] }
 0x268   :  { %v2288_v50 = vmul.f32 %v7712_v13, %v2287_v51  ;;  %v2289_v26 = vmul.f32 %v7730_v20, %v2287_v51  ;;  %v2295_v30 = vmul.f32 %v8001_v0, %v2287_v51 }
 0x269   :  { %v8024_v57 = vpop.permute.xlu0 %1650  ;;  %v8026_v19 = vpop.permute.xlu1 %1622  ;;  %v2259_v27 = vsel %vm760_vm2, %v2256_v35, %v2258_v36 }
 0x26a   :  { %v2304_v59 = vrot.slane %v2288_v50, 6  ;;  %v2305_v6 = vrot.slane %v2289_v26, 6 }
 0x26b   :  { %2214 = vrot.lane.b32.xlu0 %v2203_v53, %s6661_s8  ;;  %2212 = vrot.lane.b32.xlu1 %v2201_v41, %s6661_s8  ;;  %v2239_v53 = vmul.f32 %v8001_v0, %v2231_v17  ;;  %v2254_v41 = vsel %vm760_vm2, %v2251_v15, %v2253_v12  ;;  %v2257_v17 = vsel %vm760_vm2, %v2255_v7, %v2256_v35 }
 0x26c   :  { %v2292_v35 = vmul.f32 %v7745_v49, %v2287_v51  ;;  %v2306_v7 = vsel %vm760_vm2, %v2304_v59, %v2305_v6 }
 0x26d   :  { %v8035_v34 = vpop.permute.xlu0 %1654  ;;  %v8037_v54 = vpop.permute.xlu1 %1652  ;;  %v2260_v48 = vrot.slane %v2239_v53, 6 }
 0x26e   :  { %v2311_v8 = vrot.slane %v2292_v35, 6 }
 0x26f   :  { %2262 = vrot.lane.b32.xlu0 %v2250_v21, %s6662_s12  ;;  %2216 = vrot.lane.b32.xlu1 %v2205_v23, %s6661_s8  ;;  %v2290_v21 = vmul.f32 %v7725_v44, %v2287_v51  ;;  %v2291_v23 = vmul.f32 %v7980_v16, %v2287_v51  ;;  %v2261_v53 = vsel %vm760_vm2, %v2258_v36, %v2260_v48 }
 0x270   :  { %v2344_v48 = vmul.f32 %v7712_v13, %v2343_v33  ;;  %v2347_v13 = vmul.f32 %v7980_v16, %v2343_v33 }
 0x271   :  { %v8046_v37 = vpop.permute.xlu0 %1658  ;;  %v8048_v5 = vpop.permute.xlu1 %1656  ;;  %v2307_v50 = vrot.slane %v2290_v21, 6  ;;  %v2309_v26 = vrot.slane %v2291_v23, 6  ;;  %v2345_v21 = vmul.f32 %v7730_v20, %v2343_v33 }
 0x272   :  { %v2360_v35 = vrot.slane %v2344_v48, 6  ;;  %v2348_v48 = vmul.f32 %v7745_v49, %v2343_v33 }
 0x273   :  { %2266 = vrot.lane.b32.xlu0 %v2254_v41, %s6662_s12  ;;  %2264 = vrot.lane.b32.xlu1 %v2252_v58, %s6662_s12  ;;  %v2293_v41 = vmul.f32 %v7740_v22, %v2287_v51  ;;  %v2294_v58 = vmul.f32 %v7754_v29, %v2287_v51  ;;  %v2310_v59 = vsel %vm760_vm2, %v2307_v50, %v2309_v26 }
 0x274   :  { %v2308_v36 = vsel %vm760_vm2, %v2305_v6, %v2307_v50  ;;  %v2346_v6 = vmul.f32 %v7725_v44, %v2343_v33 }
 0x275   :  { %v8056_v15 = vpop.permute.xlu0 %1734  ;;  %v8058_v12 = vpop.permute.xlu1 %1660 }
 0x277   :  { %2270 = vrot.lane.b32.xlu0 %v2259_v27, %s6662_s12  ;;  %2268 = vrot.lane.b32.xlu1 %v2257_v17, %s6662_s12  ;;  %v2312_v27 = vrot.slane %v2293_v41, 6  ;;  %v2314_v17 = vrot.slane %v2294_v58, 6  ;;  %v2316_v58 = vrot.slane %v2295_v30, 6  ;;  %v2350_v30 = vmul.f32 %v7754_v29, %v2343_v33 }
 0x279   :  { %v8067_v11 = vpop.permute.xlu0 %1738  ;;  %v8069_v61 = vpop.permute.xlu1 %1736  ;;  %v2315_v41 = vsel %vm760_vm2, %v2312_v27, %v2314_v17  ;;  %v2313_v51 = vsel %vm760_vm2, %v2311_v8, %v2312_v27  ;;  %v2317_v26 = vsel %vm760_vm2, %v2314_v17, %v2316_v58  ;;  %v2363_v27 = vrot.slane %v2346_v6, 6 }
 0x27a   :  { %v2351_v6 = vmul.f32 %v8001_v0, %v2343_v33 }
 0x27b   :  { %2318 = vrot.lane.b32.xlu0 %v2306_v7, %s6663_s14  ;;  %2272 = vrot.lane.b32.xlu1 %v2261_v53, %s6662_s12  ;;  %v2361_v7 = vrot.slane %v2345_v21, 6 }
 0x27d   :  { %v8078_v23 = vpop.permute.xlu0 %1742  ;;  %v8080_v25 = vpop.permute.xlu1 %1740  ;;  %v2362_v8 = vsel %vm760_vm2, %v2360_v35, %v2361_v7  ;;  %v2364_v58 = vsel %vm760_vm2, %v2361_v7, %v2363_v27  ;;  %v2367_v35 = vrot.slane %v2348_v48, 6 }
 0x27f   :  { %2322 = vrot.lane.b32.xlu0 %v2310_v59, %s6663_s14  ;;  %2320 = vrot.lane.b32.xlu1 %v2308_v36, %s6663_s14  ;;  %v2349_v59 = vmul.f32 %v7740_v22, %v2343_v33  ;;  %v2365_v36 = vrot.slane %v2347_v13, 6 }
 0x281   :  { %v8088_v53 = vpop.permute.xlu0 %1782  ;;  %v8090_v50 = vpop.permute.xlu1 %1744  ;;  %v2368_v17 = vrot.slane %v2349_v59, 6  ;;  %v2413_v59 = vstv %s6343_s20  ;;  %s6352_s20 = sld [smem:[#allocation6 + $0x85]] }
 0x282   :  { %12703 = vst [vmem:[#allocation24_spill] sm:$0xff] %v8090_v50  ;;  %v2414_v33 = vmul.f32 %v7730_v20, %v2413_v59  ;;  %v2419_v24 = vmul.f32 %v8001_v0, %v2413_v59 }
 0x283   :  { %2326 = vrot.lane.b32.xlu0 %v2315_v41, %s6663_s14  ;;  %2324 = vrot.lane.b32.xlu1 %v2313_v51, %s6663_s14  ;;  %v2370_v41 = vrot.slane %v2350_v30, 6  ;;  %v2366_v51 = vsel %vm760_vm2, %v2363_v27, %v2365_v36  ;;  %v2372_v30 = vrot.slane %v2351_v6, 6 }
 0x285   :  { %v8099_v21 = vpop.permute.xlu0 %1786  ;;  %v8101_v52 = vpop.permute.xlu1 %1784  ;;  %v2373_v27 = vsel %vm760_vm2, %v2370_v41, %v2372_v30 }
 0x287   :  { %2374 = vrot.lane.b32.xlu0 %v2362_v8, %s6664_s16  ;;  %2328 = vrot.lane.b32.xlu1 %v2317_v26, %s6663_s14  ;;  %v2371_v8 = vsel %vm760_vm2, %v2368_v17, %v2370_v41  ;;  %v2369_v26 = vsel %vm760_vm2, %v2367_v35, %v2368_v17  ;;  %v2416_v17 = vmul.f32 %v7980_v16, %v2413_v59 }
 0x288   :  { %v2418_v41 = vmul.f32 %v7754_v29, %v2413_v59 }
 0x289   :  { %v8108_v13 = vpop.permute.xlu0 %1790  ;;  %v8110_v49 = vpop.permute.xlu1 %1788 }
 0x28b   :  { %2378 = vrot.lane.b32.xlu0 %v2366_v51, %s6664_s16  ;;  %2376 = vrot.lane.b32.xlu1 %v2364_v58, %s6664_s16  ;;  %v2415_v58 = vmul.f32 %v7725_v44, %v2413_v59 }
 0x28d   :  { %v8116_v36 = vpop.permute.xlu0 %1830  ;;  %v8118_v7 = vpop.permute.xlu1 %1792 }
 0x28e   :  { %12704 = vst [vmem:[#allocation31_spill] sm:$0xff] %v8118_v7 }
 0x28f   :  { %2382 = vrot.lane.b32.xlu0 %v2371_v8, %s6664_s16  ;;  %2380 = vrot.lane.b32.xlu1 %v2369_v26, %s6664_s16  ;;  %v2417_v8 = vmul.f32 %v7740_v22, %v2413_v59  ;;  %v2451_v26 = vstv %s6344_s21  ;;  %s6354_s21 = sld [smem:[#allocation6 + $0x87]] }
 0x290   :  { %v2454_v63 = vmul.f32 %v7980_v16, %v2451_v26  ;;  %v2453_v18 = vmul.f32 %v7725_v44, %v2451_v26  ;;  %v2456_v59 = vmul.f32 %v7754_v29, %v2451_v26  ;;  %v2455_v45 = vmul.f32 %v7740_v22, %v2451_v26 }
 0x291   :  { %v8124_v48 = vpop.permute.xlu0 %1834  ;;  %v8126_v51 = vpop.permute.xlu1 %1832  ;;  %v2490_v44 = vmul.f32 %v7730_v20, %v2489_v40  ;;  %v2457_v55 = vmul.f32 %v8001_v0, %v2451_v26 }
 0x292   :  { %12705 = vst [vmem:[#allocation40_spill] sm:$0xff] %v8124_v48 }
 0x293   :  { %2426 = vrot.lane.b32.xlu0 %v2414_v33, %s6661_s8  ;;  %2384 = vrot.lane.b32.xlu1 %v2373_v27, %s6664_s16  ;;  %v2452_v27 = vmul.f32 %v7730_v20, %v2451_v26 }
 0x295   :  { %v8132_v35 = vpop.permute.xlu0 %1838  ;;  %v8134_v6 = vpop.permute.xlu1 %1836 }
 0x296   :  { %12706 = vst [vmem:[#allocation29_spill] sm:$0xff] %v8132_v35  ;;  %12707 = vst [vmem:[#allocation37_spill] sm:$0xff] %v8134_v6 }
 0x297   :  { %2430 = vrot.lane.b32.xlu0 %v2416_v17, %s6661_s8  ;;  %2428 = vrot.lane.b32.xlu1 %v2415_v58, %s6661_s8 }
 0x299   :  { %v8140_v30 = vpop.permute.xlu0 %1878  ;;  %v8142_v33 = vpop.permute.xlu1 %1840 }
 0x29a   :  { %12708 = vst [vmem:[#allocation46_spill] sm:$0xff] %v8142_v33 }
 0x29b   :  { %2434 = vrot.lane.b32.xlu0 %v2418_v41, %s6661_s8  ;;  %2432 = vrot.lane.b32.xlu1 %v2417_v8, %s6661_s8 }
 0x29d   :  { %v8148_v17 = vpop.permute.xlu0 %1882  ;;  %v8150_v58 = vpop.permute.xlu1 %1880 }
 0x29e   :  { %12709 = vst [vmem:[#allocation35_spill] sm:$0xff] %v8148_v17 }
 0x29f   :  { %2464 = vrot.lane.b32.xlu0 %v2452_v27, %s6662_s12  ;;  %2436 = vrot.lane.b32.xlu1 %v2419_v24, %s6661_s8 }
 0x2a1   :  { %v8156_v41 = vpop.permute.xlu0 %1886  ;;  %v8158_v8 = vpop.permute.xlu1 %1884 }
 0x2a2   :  { %12710 = vst [vmem:[#allocation43_spill] sm:$0xff] %v8156_v41  ;;  %12711 = vst [vmem:[#allocation50_spill] sm:$0xff] %v8158_v8 }
 0x2a3   :  { %2468 = vrot.lane.b32.xlu0 %v2454_v63, %s6662_s12  ;;  %2466 = vrot.lane.b32.xlu1 %v2453_v18, %s6662_s12 }
 0x2a5   :  { %v8164_v27 = vpop.permute.xlu0 %1962  ;;  %v8166_v24 = vpop.permute.xlu1 %1888 }
 0x2a6   :  { %12712 = vst [vmem:[#allocation51_spill] sm:$0xff] %v8164_v27  ;;  %12713 = vst [vmem:[#allocation18_spill] sm:$0xff] %v8166_v24  ;;  %v1903_v27 = vstv %s6332_s11  ;;  %s8880_s11 = sld [smem:[#allocation8]] }
 0x2a7   :  { %2472 = vrot.lane.b32.xlu0 %v2456_v59, %s6662_s12  ;;  %2470 = vrot.lane.b32.xlu1 %v2455_v45, %s6662_s12  ;;  %v8182_v59 = vld [vmem:[%s12457_s0 + $0x30] sm:$0xff] }
 0x2a8   :  { %v2491_v20 = vmul.f32 %v8182_v59, %v2489_v40 }
 0x2a9   :  { %v8172_v63 = vpop.permute.xlu0 %1966  ;;  %v8174_v18 = vpop.permute.xlu1 %1964 }
 0x2aa   :  { %12714 = vst [vmem:[#allocation30_spill] sm:$0xff] %v8172_v63  ;;  %12715 = vst [vmem:[#allocation41_spill] sm:$0xff] %v8174_v18 }
 0x2ab   :  { %2502 = vrot.lane.b32.xlu0 %v2490_v44, %s6663_s14  ;;  %2474 = vrot.lane.b32.xlu1 %v2457_v55, %s6662_s12  ;;  %v2494_v44 = vmul.f32 %v7754_v29, %v2489_v40  ;;  %v2493_v55 = vmul.f32 %v7740_v22, %v2489_v40  ;;  %v2495_v29 = vmul.f32 %v8001_v0, %v2489_v40  ;;  %v8223_v40 = vld [vmem:[%s12457_s0 + $0xb0] sm:$0xff] }
 0x2ad   :  { %v8185_v45 = vpop.permute.xlu0 %1970  ;;  %v8187_v26 = vpop.permute.xlu1 %1968 }
 0x2ae   :  { %12716 = vst [vmem:[#allocation49_spill] sm:$0xff] %v8185_v45  ;;  %12717 = vst [vmem:[#allocation56_spill] sm:$0xff] %v8187_v26  ;;  %v8202_v26 = vld [vmem:[%s12457_s0 + $0x28] sm:$0xff] }
 0x2af   :  { %2506 = vrot.lane.b32.xlu0 %v2492_v14, %s6663_s14  ;;  %2504 = vrot.lane.b32.xlu1 %v2491_v20, %s6663_s14  ;;  %v2528_v14 = vmul.f32 %v8202_v26, %v2527_v2 }
 0x2b1   :  { %v8193_v63 = vpop.permute.xlu0 %2010  ;;  %v8195_v24 = vpop.permute.xlu1 %1972 }
 0x2b2   :  { %12718 = vst [vmem:[#allocation57_spill] sm:$0xff] %v8193_v63  ;;  %12719 = vst [vmem:[#allocation36_spill] sm:$0xff] %v8195_v24 }
 0x2b3   :  { %2510 = vrot.lane.b32.xlu0 %v2494_v44, %s6663_s14  ;;  %2508 = vrot.lane.b32.xlu1 %v2493_v55, %s6663_s14  ;;  %v2530_v44 = vmul.f32 %v7980_v16, %v2527_v2  ;;  %v2529_v55 = vmul.f32 %v8182_v59, %v2527_v2 }
 0x2b5   :  { %v8206_v20 = vpop.permute.xlu0 %2014  ;;  %v8208_v22 = vpop.permute.xlu1 %2012 }
 0x2b6   :  { %12720 = vst [vmem:[#allocation47_spill] sm:$0xff] %v8206_v20  ;;  %12721 = vst [vmem:[#allocation52_spill] sm:$0xff] %v8208_v22 }
 0x2b7   :  { %2540 = vrot.lane.b32.xlu0 %v2528_v14, %s6664_s16  ;;  %2512 = vrot.lane.b32.xlu1 %v2495_v29, %s6663_s14  ;;  %v2532_v14 = vmul.f32 %v8223_v40, %v2527_v2  ;;  %v8229_v29 = vld [vmem:[%s12457_s0 + $0xa8] sm:$0xff] }
 0x2b8   :  { %v2531_v20 = vmul.f32 %v8229_v29, %v2527_v2 }
 0x2b9   :  { %v8214_v24 = vpop.permute.xlu0 %2018  ;;  %v8216_v45 = vpop.permute.xlu1 %2016 }
 0x2ba   :  { %12722 = vst [vmem:[#allocation62_spill] sm:$0xff] %v8214_v24  ;;  %12723 = vst [vmem:[#allocation63_spill] sm:$0xff] %v8216_v45 }
 0x2bb   :  { %2544 = vrot.lane.b32.xlu0 %v2530_v44, %s6664_s16  ;;  %2542 = vrot.lane.b32.xlu1 %v2529_v55, %s6664_s16  ;;  %v2533_v44 = vmul.f32 %v8001_v0, %v2527_v2 }
 0x2bd   :  { %v8232_v24 = vpop.permute.xlu0 %2058  ;;  %v8234_v45 = vpop.permute.xlu1 %2020 }
 0x2be   :  { %12724 = vst [vmem:[#allocation42_spill] sm:$0xff] %v8232_v24  ;;  %12725 = vst [vmem:[#allocation58_spill] sm:$0xff] %v8234_v45 }
 0x2bf   :  { %2548 = vrot.lane.b32.xlu0 %v2532_v14, %s6664_s16  ;;  %2546 = vrot.lane.b32.xlu1 %v2531_v20, %s6664_s16 }
 0x2c1   :  { %v8239_v55 = vpop.permute.xlu0 %2062  ;;  %v8241_v22 = vpop.permute.xlu1 %2060 }
 0x2c2   :  { %12726 = vst [vmem:[#allocation68_spill] sm:$0xff] %v8239_v55  ;;  %12727 = vst [vmem:[#allocation69_spill] sm:$0xff] %v8241_v22 }
 0x2c3   :  { %2550 = vrot.lane.b32.xlu1 %v2533_v44, %s6664_s16 }
 0x2c5   :  { %v8244_v33 = vpop.permute.xlu0 %2066  ;;  %v8246_v16 = vpop.permute.xlu1 %2064 }
 0x2c6   :  { %12728 = vst [vmem:[#allocation48_spill] sm:$0xff] %v8244_v33  ;;  %12729 = vst [vmem:[#allocation55_spill] sm:$0xff] %v8246_v16 }
 0x2c9   :  { %v8248_v18 = vpop.permute.xlu0 %2106  ;;  %v8250_v24 = vpop.permute.xlu1 %2068 }
 0x2ca   :  { %12730 = vst [vmem:[#allocation64_spill] sm:$0xff] %v8248_v18  ;;  %12731 = vst [vmem:[#allocation53_spill] sm:$0xff] %v8250_v24 }
 0x2cd   :  { %v8252_v45 = vpop.permute.xlu0 %2110  ;;  %v8254_v14 = vpop.permute.xlu1 %2108 }
 0x2ce   :  { %12732 = vst [vmem:[#allocation61_spill] sm:$0xff] %v8252_v45  ;;  %12733 = vst [vmem:[#allocation59_spill] sm:$0xff] %v8254_v14 }
 0x2d1   :  { %v8256_v20 = vpop.permute.xlu0 %2114  ;;  %v8258_v2 = vpop.permute.xlu1 %2112 }
 0x2d2   :  { %12734 = vst [vmem:[#allocation67_spill] sm:$0xff] %v8256_v20  ;;  %12735 = vst [vmem:[#allocation54_spill] sm:$0xff] %v8258_v2 }
 0x2d5   :  { %v8260_v55 = vpop.permute.xlu0 %2206  ;;  %v8262_v0 = vpop.permute.xlu1 %2116 }
 0x2d6   :  { %12736 = vst [vmem:[#allocation65_spill] sm:$0xff] %v8260_v55  ;;  %12737 = vst [vmem:[#allocation60_spill] sm:$0xff] %v8262_v0 }
 0x2d9   :  { %v8264_v44 = vpop.permute.xlu0 %2210  ;;  %v8266_v33 = vpop.permute.xlu1 %2208 }
 0x2da   :  { %12738 = vst [vmem:[#allocation66_spill] sm:$0xff] %v8264_v44  ;;  %12739 = vst [vmem:[#allocation70_spill] sm:$0xff] %v8266_v33  ;;  %v1509_v44 = vstv %s6322_s9  ;;  %s6347_s9 = sld [smem:[#allocation6 + $0x80]] }
 0x2dd   :  { %v8268_v16 = vpop.permute.xlu0 %2214  ;;  %v8270_v22 = vpop.permute.xlu1 %2212 }
 0x2de   :  { %12740 = vst [vmem:[#allocation71_spill] sm:$0xff] %v8268_v16  ;;  %12741 = vst [vmem:[#allocation72_spill] sm:$0xff] %v8270_v22  ;;  %v8291_v22 = vld [vmem:[%s12457_s0 + $0x20] sm:$0xff] }
 0x2e1   :  { %v8272_v24 = vpop.permute.xlu0 %2262  ;;  %v8274_v45 = vpop.permute.xlu1 %2216 }
 0x2e2   :  { %12742 = vst [vmem:[#allocation73_spill] sm:$0xff] %v8272_v24  ;;  %12743 = vst [vmem:[#allocation74_spill] sm:$0xff] %v8274_v45  ;;  %v1510_v45 = vmul.f32 %v8291_v22, %v1509_v44 }
 0x2e5   :  { %v8276_v20 = vpop.permute.xlu0 %2266  ;;  %v8278_v2 = vpop.permute.xlu1 %2264 }
 0x2e6   :  { %12744 = vst [vmem:[#allocation75_spill] sm:$0xff] %v8276_v20  ;;  %12745 = vst [vmem:[#allocation76_spill] sm:$0xff] %v8278_v2  ;;  %v1675_v20 = vstv %s6327_s2  ;;  %s6392_s2 = sld [smem:[#allocation3 + $0x118]] }
 0x2e7   :  { %v8303_v14 = vmul.f32 %v8182_v59, %v1675_v20  ;;  %v8312_v8 = vmul.f32 %v8223_v40, %v1675_v20 }
 0x2e9   :  { %v8280_v55 = vpop.permute.xlu0 %2270  ;;  %v8282_v0 = vpop.permute.xlu1 %2268  ;;  %v1696_v6 = vrot.slane %v8312_v8, 2  ;;  %v12759_v8 = vld [vmem:[#allocation24_spill] sm:$0xff] }
 0x2ea   :  { %12746 = vst [vmem:[#allocation77_spill] sm:$0xff] %v8280_v55  ;;  %12747 = vst [vmem:[#allocation78_spill] sm:$0xff] %v8282_v0  ;;  %v1676_v0 = vmul.f32 %v8291_v22, %v1675_v20  ;;  %v1677_v55 = vmul.f32 %v8202_v26, %v1675_v20 }
 0x2ec   :  { %v1688_v7 = vrot.slane %v1676_v0, 2  ;;  %v1689_v63 = vrot.slane %v1677_v55, 2  ;;  %v1512_v0 = vmul.f32 %v8182_v59, %v1509_v44  ;;  %v1691_v55 = vrot.slane %v8303_v14, 2 }
 0x2ed   :  { %v8284_v33 = vpop.permute.xlu0 %2318  ;;  %v8286_v16 = vpop.permute.xlu1 %2272 }
 0x2ee   :  { %12748 = vst [vmem:[#allocation79_spill] sm:$0xff] %v8284_v33  ;;  %12749 = vst [vmem:[#allocation80_spill] sm:$0xff] %v8286_v16  ;;  %v1554_v33 = vadd.f32 %v7926_v4, %v1510_v45  ;;  %v1511_v16 = vmul.f32 %v8202_v26, %v1509_v44  ;;  %v8317_v4 = vld [vmem:[%s12457_s0 + $0xa0] sm:$0xff] }
 0x2ef   :  { %v1679_v45 = vmul.f32 %v8317_v4, %v1675_v20 }
 0x2f1   :  { %v8294_v24 = vpop.permute.xlu0 %2322  ;;  %v8296_v2 = vpop.permute.xlu1 %2320  ;;  %v1693_v35 = vrot.slane %v1679_v45, 2 }
 0x2f2   :  { %12750 = vst [vmem:[#allocation81_spill] sm:$0xff] %v8294_v24  ;;  %12751 = vst [vmem:[#allocation82_spill] sm:$0xff] %v8296_v2  ;;  %v1592_v24 = vadd.f32 %v7954_v39, %v1554_v33  ;;  %v1680_v2 = vmul.f32 %v8229_v29, %v1675_v20  ;;  %v1513_v39 = vmul.f32 %v8317_v4, %v1509_v44 }
 0x2f4   :  { %v1630_v33 = vadd.f32 %v7988_v1, %v1592_v24  ;;  %v1557_v24 = vadd.f32 %v7947_v46, %v1513_v39 }
 0x2f5   :  { %v8305_v18 = vpop.permute.xlu0 %2326  ;;  %v8307_v17 = vpop.permute.xlu1 %2324 }
 0x2f6   :  { %12752 = vst [vmem:[#allocation83_spill] sm:$0xff] %v8305_v18  ;;  %12753 = vst [vmem:[#allocation84_spill] sm:$0xff] %v8307_v17  ;;  %v1555_v18 = vadd.f32 %v7938_v10, %v1511_v16  ;;  %v1514_v17 = vmul.f32 %v8229_v29, %v1509_v44  ;;  %v1668_v20 = vadd.f32 %v8024_v57, %v1630_v33  ;;  %v1694_v16 = vrot.slane %v1680_v2, 2 }
 0x2f7   :  { %v1690_v10 = vsel %vm298_vm0, %v1688_v7, %v1689_v63  ;;  %v1904_v57 = vmul.f32 %v8291_v22, %v1903_v27 }
 0x2f8   :  { %v1593_v50 = vadd.f32 %v7966_v38, %v1555_v18  ;;  %v1558_v1 = vadd.f32 %v7945_v31, %v1514_v17  ;;  %v1692_v38 = vsel %vm298_vm0, %v1689_v63, %v1691_v55  ;;  %v1595_v31 = vadd.f32 %v7975_v47, %v1557_v24 }
 0x2f9   :  { %v8326_v41 = vpop.permute.xlu0 %2374  ;;  %v8328_v48 = vpop.permute.xlu1 %2328  ;;  %v1704_v17 = vadd.f32 %v1690_v10, %v1668_v20  ;;  %v1905_v63 = vmul.f32 %v8202_v26, %v1903_v27  ;;  %v8358_v47 = vmul.f32 %v8182_v59, %v1903_v27 }
 0x2fa   :  { %12754 = vst [vmem:[#allocation85_spill] sm:$0xff] %v8326_v41  ;;  %12755 = vst [vmem:[#allocation86_spill] sm:$0xff] %v8328_v48  ;;  %v1631_v14 = vadd.f32 %v8005_v32, %v1593_v50  ;;  %v1556_v41 = vadd.f32 %v7936_v28, %v1512_v0  ;;  %v1515_v48 = vmul.f32 %v8223_v40, %v1509_v44 }
 0x2fb   :  { %v1596_v2 = vadd.f32 %v7973_v62, %v1558_v1  ;;  %v1697_v28 = vsel %vm298_vm0, %v1694_v16, %v1696_v6  ;;  %v1695_v50 = vsel %vm298_vm0, %v1693_v35, %v1694_v16  ;;  %v1633_v45 = vadd.f32 %v8016_v3, %v1595_v31 }
 0x2fc   :  { %v1669_v46 = vadd.f32 %v8037_v54, %v1631_v14  ;;  %v1594_v32 = vadd.f32 %v7964_v42, %v1556_v41  ;;  %v1752_v62 = vadd.f32 %v8056_v15, %v1704_v17  ;;  %v1559_v42 = vadd.f32 %v7956_v60, %v1515_v48 }
 0x2fd   :  { %v8341_v18 = vpop.permute.xlu0 %2378  ;;  %v8343_v7 = vpop.permute.xlu1 %2376  ;;  %v1634_v44 = vadd.f32 %v8014_v9, %v1596_v2  ;;  %v1916_v41 = vrot.slane %v1904_v57, 4  ;;  %v1908_v35 = vmul.f32 %v8229_v29, %v1903_v27  ;;  %v1671_v3 = vadd.f32 %v8048_v5, %v1633_v45  ;;  %v12756_v45 = vld [vmem:[#allocation29_spill] sm:$0xff] }
 0x2fe   :  { %v1632_v54 = vadd.f32 %v8003_v43, %v1594_v32  ;;  %v1705_v15 = vadd.f32 %v1692_v38, %v1669_v46  ;;  %v1800_v0 = vadd.f32 %v8088_v53, %v1752_v62  ;;  %v1597_v20 = vadd.f32 %v7990_v56, %v1559_v42  ;;  %v12757_v42 = vld [vmem:[#allocation37_spill] sm:$0xff] }
 0x2ff   :  { %v1672_v9 = vadd.f32 %v8046_v37, %v1634_v44  ;;  %v1917_v48 = vrot.slane %v1905_v63, 4  ;;  %v8375_v43 = vmul.f32 %v8223_v40, %v1903_v27  ;;  %v1919_v37 = vrot.slane %v8358_v47, 4 }
 0x300   :  { %v1670_v60 = vadd.f32 %v8035_v34, %v1632_v54  ;;  %v1753_v10 = vadd.f32 %v8069_v61, %v1705_v15  ;;  %v1848_v16 = vadd.f32 %v8116_v36, %v1800_v0  ;;  %v1635_v1 = vadd.f32 %v8026_v19, %v1597_v20  ;;  %v12758_v54 = vld [vmem:[#allocation51_spill] sm:$0xff]  ;;  %v12762_v20 = vld [vmem:[#allocation50_spill] sm:$0xff] }
 0x301   :  { %v8365_v39 = vpop.permute.xlu0 %2382  ;;  %v8367_v33 = vpop.permute.xlu1 %2380  ;;  %v1922_v5 = vrot.slane %v1908_v35, 4  ;;  %v1907_v53 = vmul.f32 %v8317_v4, %v1903_v27  ;;  %v1708_v34 = vadd.f32 %v1697_v28, %v1672_v9  ;;  %v1707_v14 = vadd.f32 %v1695_v50, %v1671_v3  ;;  %v12761_v15 = vld [vmem:[#allocation43_spill] sm:$0xff] }
 0x302   :  { %v1801_v38 = vadd.f32 %v8101_v52, %v1753_v10  ;;  %v1896_v61 = vadd.f32 %v8140_v30, %v1848_v16  ;;  %v1673_v36 = vadd.f32 %v8058_v12, %v1635_v1  ;;  %v1706_v57 = vadd.f32 %v1691_v55, %v1670_v60  ;;  %v12763_v10 = vld [vmem:[#allocation57_spill] sm:$0xff]  ;;  %v12764_v1 = vld [vmem:[#allocation31_spill] sm:$0xff] }
 0x303   :  { %v1918_v19 = vsel %vm527_vm1, %v1916_v41, %v1917_v48  ;;  %v1924_v2 = vrot.slane %v8375_v43, 4  ;;  %v1756_v31 = vadd.f32 %v8078_v23, %v1708_v34  ;;  %v1755_v27 = vadd.f32 %v8080_v25, %v1707_v14  ;;  %v12760_v41 = vld [vmem:[#allocation40_spill] sm:$0xff]  ;;  %v12765_v34 = vld [vmem:[#allocation35_spill] sm:$0xff] }
 0x304   :  { %v1849_v46 = vadd.f32 %v8126_v51, %v1801_v38  ;;  %v8395_v17 = vstv %s8360_s17  ;;  %v1754_v32 = vadd.f32 %v8067_v11, %v1706_v57  ;;  %v1920_v52 = vsel %vm527_vm1, %v1917_v48, %v1919_v37  ;;  %v12767_v57 = vld [vmem:[#allocation42_spill] sm:$0xff]  ;;  %s6415_s17 = sld [smem:[#allocation3 + $0x181]] }
 0x305   :  { %v8382_v24 = vpop.permute.xlu0 %2426  ;;  %v8384_v56 = vpop.permute.xlu1 %2384  ;;  %v1921_v12 = vrot.slane %v1907_v53, 4  ;;  %v1804_v28 = vadd.f32 %v8108_v13, %v1756_v31  ;;  %v1803_v23 = vadd.f32 %v8110_v49, %v1755_v27  ;;  %v1932_v51 = vadd.f32 %v1918_v19, %v1896_v61  ;;  %v12766_v61 = vld [vmem:[#allocation41_spill] sm:$0xff]  ;;  %v12768_v31 = vld [vmem:[#allocation44_spill] sm:$0xff] }
 0x306   :  { %v1897_v25 = vadd.f32 %v8150_v58, %v1849_v46  ;;  %v1709_v50 = vadd.f32 %v1696_v6, %v1673_v36  ;;  %v1802_v11 = vadd.f32 %v8099_v21, %v1754_v32  ;;  %v2132_v63 = vmul.f32 %v8291_v22, %v8395_v17  ;;  %v12769_v46 = vld [vmem:[#allocation46_spill] sm:$0xff] }
 0x307   :  { %v2133_v44 = vmul.f32 %v8202_v26, %v8395_v17  ;;  %v1852_v62 = vadd.f32 %v12756_v45, %v1804_v28  ;;  %v1851_v13 = vadd.f32 %v12757_v42, %v1803_v23  ;;  %v1980_v49 = vadd.f32 %v12758_v54, %v1932_v51 }
 0x308   :  { %v1925_v58 = vsel %vm527_vm1, %v1922_v5, %v1924_v2  ;;  %v1757_v6 = vadd.f32 %v12759_v8, %v1709_v50  ;;  %v1850_v21 = vadd.f32 %v12760_v41, %v1802_v11  ;;  %v1923_v35 = vsel %vm527_vm1, %v1921_v12, %v1922_v5  ;;  %v12770_v11 = vld [vmem:[#allocation52_spill] sm:$0xff]  ;;  %v12773_v8 = vld [vmem:[#allocation49_spill] sm:$0xff] }
 0x309   :  { %v8401_v30 = vpop.permute.xlu0 %2430  ;;  %v8403_v55 = vpop.permute.xlu1 %2428  ;;  %v8426_v22 = vmul.f32 %v8182_v59, %v8395_v17  ;;  %v1900_v0 = vadd.f32 %v12761_v15, %v1852_v62  ;;  %v1899_v60 = vadd.f32 %v12762_v20, %v1851_v13  ;;  %v1933_v48 = vadd.f32 %v1920_v52, %v1897_v25  ;;  %v12772_v62 = vld [vmem:[#allocation18_spill] sm:$0xff]  ;;  %v12774_v41 = vld [vmem:[#allocation56_spill] sm:$0xff] }
 0x30a   :  { %v2028_v16 = vadd.f32 %v12763_v10, %v1980_v49  ;;  %v1805_v53 = vadd.f32 %v12764_v1, %v1757_v6  ;;  %v1898_v14 = vadd.f32 %v12765_v34, %v1850_v21  ;;  %v2148_v5 = vrot.slane %v2132_v63, 6  ;;  %v12779_v1 = vld [vmem:[#allocation59_spill] sm:$0xff] }
 0x30b   :  { %v2149_v38 = vrot.slane %v2133_v44, 6  ;;  %v1981_v36 = vadd.f32 %v12766_v61, %v1933_v48  ;;  %v2135_v27 = vmul.f32 %v12768_v31, %v8395_v17  ;;  %v2151_v12 = vrot.slane %v8426_v22, 6  ;;  %v12771_v44 = vld [vmem:[#allocation64_spill] sm:$0xff]  ;;  %v12776_v22 = vld [vmem:[#allocation30_spill] sm:$0xff] }
 0x30c   :  { %v2076_v19 = vadd.f32 %v12767_v57, %v2028_v16  ;;  %v1853_v32 = vadd.f32 %v12769_v46, %v1805_v53  ;;  %v2137_v52 = vmul.f32 %v8229_v29, %v8395_v17  ;;  %v8447_v28 = vmul.f32 %v8223_v40, %v8395_v17  ;;  %v12782_v46 = vld [vmem:[#allocation55_spill] sm:$0xff] }
 0x30d   :  { %v8428_v9 = vpop.permute.xlu0 %2434  ;;  %v8430_v3 = vpop.permute.xlu1 %2432  ;;  %v1936_v51 = vadd.f32 %v1925_v58, %v1900_v0  ;;  %v1935_v50 = vadd.f32 %v1923_v35, %v1899_v60  ;;  %v2029_v63 = vadd.f32 %v12770_v11, %v1981_v36  ;;  %v1934_v13 = vadd.f32 %v1919_v37, %v1898_v14  ;;  %v12775_v58 = vld [vmem:[#allocation69_spill] sm:$0xff]  ;;  %v12777_v37 = vld [vmem:[#allocation62_spill] sm:$0xff]  ;;  %v12785_v11 = vld [vmem:[#allocation36_spill] sm:$0xff] }
 0x30e   :  { %v2124_v45 = vadd.f32 %v12771_v44, %v2076_v19  ;;  %v1901_v42 = vadd.f32 %v12772_v62, %v1853_v32  ;;  %v2150_v54 = vsel %vm760_vm2, %v2148_v5, %v2149_v38  ;;  %v2136_v49 = vmul.f32 %v8317_v4, %v8395_v17  ;;  %v12778_v4 = vld [vmem:[#allocation63_spill] sm:$0xff]  ;;  %v12781_v19 = vld [vmem:[#allocation48_spill] sm:$0xff] }
 0x30f   :  { %v1984_v6 = vadd.f32 %v12773_v8, %v1936_v51  ;;  %v1983_v21 = vadd.f32 %v12774_v41, %v1935_v50  ;;  %v2077_v35 = vadd.f32 %v12775_v58, %v2029_v63  ;;  %v1982_v15 = vadd.f32 %v12776_v22, %v1934_v13  ;;  %v12780_v5 = vld [vmem:[#allocation47_spill] sm:$0xff]  ;;  %v12784_v51 = vld [vmem:[#allocation45_spill] sm:$0xff]  ;;  %v12786_v44 = vld [vmem:[#allocation68_spill] sm:$0xff] }
 0x310   :  { %v2153_v0 = vrot.slane %v2135_v27, 6  ;;  %v2156_v20 = vrot.slane %v2137_v52, 6  ;;  %v2158_v60 = vrot.slane %v8447_v28, 6  ;;  %v2168_v34 = vadd.f32 %v2150_v54, %v2124_v45  ;;  %v12783_v52 = vld [vmem:[#allocation65_spill] sm:$0xff]  ;;  %v12788_v13 = vld [vmem:[#allocation54_spill] sm:$0xff] }
 0x311   :  { %v8451_v23 = vpop.permute.xlu0 %2464  ;;  %v8453_v25 = vpop.permute.xlu1 %2436  ;;  %v2032_v10 = vadd.f32 %v12777_v37, %v1984_v6  ;;  %v2031_v16 = vadd.f32 %v12778_v4, %v1983_v21  ;;  %v2125_v53 = vadd.f32 %v12779_v1, %v2077_v35  ;;  %v1937_v14 = vadd.f32 %v1924_v2, %v1901_v42  ;;  %v12789_v8 = vld [vmem:[#allocation73_spill] sm:$0xff]  ;;  %v12790_v41 = vld [vmem:[#allocation58_spill] sm:$0xff] }
 0x312   :  { %v2030_v61 = vadd.f32 %v12780_v5, %v1982_v15  ;;  %v2152_v36 = vsel %vm760_vm2, %v2149_v38, %v2151_v12  ;;  %v2155_v57 = vrot.slane %v2136_v49, 6  ;;  %v2224_v28 = vadd.f32 %v12783_v52, %v2168_v34  ;;  %v12787_v38 = vld [vmem:[#allocation67_spill] sm:$0xff]  ;;  %v12792_v37 = vld [vmem:[#allocation70_spill] sm:$0xff]  ;;  %v12794_v34 = vld [vmem:[#allocation53_spill] sm:$0xff] }
 0x313   :  { %v2080_v27 = vadd.f32 %v12781_v19, %v2032_v10  ;;  %v2079_v32 = vadd.f32 %v12782_v46, %v2031_v16  ;;  %v2139_v50 = vmul.f32 %v12784_v51, %v8395_v17  ;;  %v1985_v63 = vadd.f32 %v12785_v11, %v1937_v14  ;;  %v12791_v17 = vld [vmem:[#allocation61_spill] sm:$0xff]  ;;  %v12793_v16 = vld [vmem:[#allocation79_spill] sm:$0xff] }
 0x314   :  { %v2078_v45 = vadd.f32 %v12786_v44, %v2030_v61  ;;  %v8487_v43 = vstv %s8449_s1  ;;  %v2169_v49 = vadd.f32 %v2152_v36, %v2125_v53  ;;  %v2280_v6 = vadd.f32 %v12789_v8, %v2224_v28  ;;  %v12798_v52 = vld [vmem:[#allocation71_spill] sm:$0xff]  ;;  %v12800_v44 = vld [vmem:[#allocation82_spill] sm:$0xff]  ;;  %s6371_s1 = sld [smem:[#allocation3 + $0x103]] }
 0x315   :  { %v8468_v48 = vpop.permute.xlu0 %2468  ;;  %v8470_v47 = vpop.permute.xlu1 %2466  ;;  %v2128_v42 = vadd.f32 %v12787_v38, %v2080_v27  ;;  %v2127_v54 = vadd.f32 %v12788_v13, %v2079_v32  ;;  %v2033_v21 = vadd.f32 %v12790_v41, %v1985_v63  ;;  %v2159_v35 = vsel %vm760_vm2, %v2156_v20, %v2158_v60  ;;  %v12795_v27 = vld [vmem:[#allocation76_spill] sm:$0xff] }
 0x316   :  { %v2126_v58 = vadd.f32 %v12791_v17, %v2078_v45  ;;  %v2157_v22 = vsel %vm760_vm2, %v2155_v57, %v2156_v20  ;;  %v2154_v15 = vsel %vm760_vm2, %v2151_v12, %v2153_v0  ;;  %v2225_v10 = vadd.f32 %v12792_v37, %v2169_v49  ;;  %v12796_v20 = vld [vmem:[#allocation85_spill] sm:$0xff]  ;;  %v12797_v12 = vld [vmem:[#allocation60_spill] sm:$0xff]  ;;  %v12801_v45 = vld [vmem:[#allocation66_spill] sm:$0xff] }
 0x317   :  { %v2160_v4 = vrot.slane %v2139_v50, 6  ;;  %v2336_v1 = vadd.f32 %v12793_v16, %v2280_v6  ;;  %v2081_v14 = vadd.f32 %v12794_v34, %v2033_v21  ;;  %v2400_v53 = vmul.f32 %v8202_v26, %v8487_v43  ;;  %v12799_v50 = vld [vmem:[#allocation72_spill] sm:$0xff]  ;;  %v12802_v49 = vld [vmem:[#allocation77_spill] sm:$0xff]  ;;  %v12803_v6 = vld [vmem:[#allocation78_spill] sm:$0xff] }
 0x318   :  { %v2172_v36 = vadd.f32 %v2159_v35, %v2128_v42  ;;  %v2171_v19 = vadd.f32 %v2157_v22, %v2127_v54  ;;  %v2281_v46 = vadd.f32 %v12795_v27, %v2225_v10  ;;  %v2170_v32 = vadd.f32 %v2154_v15, %v2126_v58  ;;  %v12804_v35 = vld [vmem:[#allocation75_spill] sm:$0xff]  ;;  %v12806_v37 = vld [vmem:[#allocation84_spill] sm:$0xff] }
 0x319   :  { %v8489_v2 = vpop.permute.xlu0 %2472  ;;  %v8491_v62 = vpop.permute.xlu1 %2470  ;;  %v2392_v57 = vadd.f32 %v12796_v20, %v2336_v1  ;;  %v2129_v0 = vadd.f32 %v12797_v12, %v2081_v14  ;;  %v2161_v63 = vsel %vm760_vm2, %v2158_v60, %v2160_v4  ;;  %v2401_v42 = vmul.f32 %v8182_v59, %v8487_v43  ;;  %v12805_v22 = vld [vmem:[#allocation83_spill] sm:$0xff]  ;;  %v12807_v59 = vld [vmem:[#allocation74_spill] sm:$0xff]  ;;  %v12808_v1 = vld [vmem:[#allocation81_spill] sm:$0xff] }
 0x31a   :  { %v2228_v28 = vadd.f32 %v12798_v52, %v2172_v36  ;;  %v2227_v11 = vadd.f32 %v12799_v50, %v2171_v19  ;;  %v2337_v26 = vadd.f32 %v12800_v44, %v2281_v46  ;;  %v2226_v38 = vadd.f32 %v12801_v45, %v2170_v32 }
 0x31b   :  { %v2406_v17 = vadd.f32 %v2400_v53, %v2392_v57  ;;  %v2173_v58 = vadd.f32 %v2161_v63, %v2129_v0  ;;  %v2404_v14 = vmul.f32 %v8223_v40, %v8487_v43  ;;  %v2402_v0 = vmul.f32 %v12768_v31, %v8487_v43 }
 0x31c   :  { %v2284_v8 = vadd.f32 %v12802_v49, %v2228_v28  ;;  %v2283_v41 = vadd.f32 %v12803_v6, %v2227_v11  ;;  %v2393_v21 = vadd.f32 %v8343_v7, %v2337_v26  ;;  %v2282_v60 = vadd.f32 %v12804_v35, %v2226_v38 }
 0x31d   :  { %v2503_v5 = vpop.permute.xlu0 %2502  ;;  %v8506_v61 = vpop.permute.xlu1 %2474  ;;  %v2444_v4 = vadd.f32 %v8382_v24, %v2406_v17  ;;  %v2229_v16 = vadd.f32 %v12807_v59, %v2173_v58  ;;  %v2403_v7 = vmul.f32 %v8229_v29, %v8487_v43  ;;  %v12809_v24 = vld [vmem:[#allocation80_spill] sm:$0xff]  ;;  %v12810_v29 = vld [vmem:[#allocation86_spill] sm:$0xff]  ;;  %v2607_v59 = vstv %s6349_s18  ;;  %s8985_s18 = sld [smem:[#allocation3 + $0x187]] }
 0x31e   :  { %v2340_v15 = vadd.f32 %v12805_v22, %v2284_v8  ;;  %v2339_v10 = vadd.f32 %v12806_v37, %v2283_v41  ;;  %v2338_v34 = vadd.f32 %v12808_v1, %v2282_v60  ;;  %v2407_v46 = vadd.f32 %v2401_v42, %v2393_v21 }
 0x31f   :  { %v2482_v20 = vadd.f32 %v8451_v23, %v2444_v4  ;;  %v2285_v57 = vadd.f32 %v12809_v24, %v2229_v16 }
 0x320   :  { %v2396_v19 = vadd.f32 %v8365_v39, %v2340_v15  ;;  %v2395_v27 = vadd.f32 %v8367_v33, %v2339_v10  ;;  %v2394_v12 = vadd.f32 %v8341_v18, %v2338_v34  ;;  %v2445_v40 = vadd.f32 %v8403_v55, %v2407_v46 }
 0x321   :  { %v2507_v13 = vpop.permute.xlu0 %2506  ;;  %v2505_v54 = vpop.permute.xlu1 %2504  ;;  %v2520_v32 = vadd.f32 %v2503_v5, %v2482_v20  ;;  %v2341_v52 = vadd.f32 %v12810_v29, %v2285_v57  ;;  %v2581_v39 = vstv %s6348_s3  ;;  %v2405_v18 = vmul.f32 %v12784_v51, %v8487_v43  ;;  %s8960_s3 = sld [smem:[#allocation3 + $0x108]] }
 0x322   :  { %v2410_v11 = vadd.f32 %v2404_v14, %v2396_v19  ;;  %v2409_v33 = vadd.f32 %v2403_v7, %v2395_v27  ;;  %v2483_v63 = vadd.f32 %v8470_v47, %v2445_v40  ;;  %v2408_v26 = vadd.f32 %v2402_v0, %v2394_v12 }
 0x323   :  { %v2397_v44 = vadd.f32 %v8384_v56, %v2341_v52  ;;  %v2665_v7 = vstv %s6351_s19  ;;  %s8989_s19 = sld [smem:[#allocation8 + $0x1]] }
 0x324   :  { %v2448_v31 = vadd.f32 %v8428_v9, %v2410_v11  ;;  %v2447_v55 = vadd.f32 %v8430_v3, %v2409_v33  ;;  %v2521_v5 = vadd.f32 %v2505_v54, %v2483_v63  ;;  %v2446_v42 = vadd.f32 %v8401_v30, %v2408_v26 }
 0x325   :  { %v2511_v53 = vpop.permute.xlu0 %2510  ;;  %v2509_v36 = vpop.permute.xlu1 %2508  ;;  %v2411_v9 = vadd.f32 %v2405_v18, %v2397_v44  ;;  %v2633_v33 = vstv %s6350_s22  ;;  %s9028_s22 = sld [smem:[#allocation8 + $0x181]] }
 0x326   :  { %v2486_v56 = vadd.f32 %v8489_v2, %v2448_v31  ;;  %v2485_v6 = vadd.f32 %v8491_v62, %v2447_v55  ;;  %v2484_v3 = vadd.f32 %v8468_v48, %v2446_v42 }
 0x327   :  { %v2449_v21 = vadd.f32 %v8453_v25, %v2411_v9 }
 0x328   :  { %v2524_v43 = vadd.f32 %v2511_v53, %v2486_v56  ;;  %v2523_v54 = vadd.f32 %v2509_v36, %v2485_v6  ;;  %v2522_v17 = vadd.f32 %v2507_v13, %v2484_v3 }
 0x329   :  { %v2541_v28 = vpop.permute.xlu0 %2540  ;;  %v2513_v50 = vpop.permute.xlu1 %2512  ;;  %v2487_v48 = vadd.f32 %v8506_v61, %v2449_v21 }
 0x32a   :  { %v2558_v23 = vadd.f32 %v2541_v28, %v2520_v32  ;;  %v2705_v32 = vstv %s6352_s20  ;;  %s9007_s20 = sld [smem:[#allocation8 + $0x81]] }
 0x32b   :  { %v2525_v13 = vadd.f32 %v2513_v50, %v2487_v48  ;;  %v2777_v50 = vstv %s6354_s21  ;;  %s6416_s21 = sld [smem:[#allocation3 + $0x182]] }
 0x32c   :  { %v8548_v38 = vsel %vm7539_vm8, %v2558_v23, 0.0 }
 0x32d   :  { %v2545_v49 = vpop.permute.xlu0 %2544  ;;  %v2543_v47 = vpop.permute.xlu1 %2542  ;;  %v2582_v8 = vmul.f32 %v2581_v39, %v8548_v38  ;;  %v2608_v14 = vmul.f32 %v2607_v59, %v8548_v38  ;;  %v2666_v27 = vmul.f32 %v2665_v7, %v8548_v38  ;;  %v2706_v26 = vmul.f32 %v2705_v32, %v8548_v38 }
 0x32e   :  { %v2559_v51 = vadd.f32 %v2543_v47, %v2521_v5  ;;  %v2560_v22 = vadd.f32 %v2545_v49, %v2522_v17  ;;  %v2778_v31 = vmul.f32 %v2777_v50, %v8548_v38  ;;  %v2634_v42 = vmul.f32 %v2633_v33, %v8548_v38 }
 0x32f   :  { %2590 = vrot.lane.b32.xlu0 %v2582_v8, %s6661_s8  ;;  %v2678_v52 = vrot.slane %v2666_v27, 2 }
 0x330   :  { %v8558_v30 = vsel %vm7532_vm7, %v2559_v51, 0.0  ;;  %v8576_v16 = vsel %vm7580_vm11, %v2560_v22, 0.0  ;;  %v2646_v3 = vrot.slane %v2634_v42, 2 }
 0x331   :  { %v2549_v58 = vpop.permute.xlu0 %2548  ;;  %v2547_v2 = vpop.permute.xlu1 %2546  ;;  %v2583_v62 = vmul.f32 %v2581_v39, %v8558_v30  ;;  %v2609_v34 = vmul.f32 %v2607_v59, %v8558_v30  ;;  %v2667_v53 = vmul.f32 %v2665_v7, %v8558_v30  ;;  %v2668_v36 = vmul.f32 %v2665_v7, %v8576_v16 }
 0x332   :  { %v2562_v35 = vadd.f32 %v2549_v58, %v2524_v43  ;;  %v2561_v60 = vadd.f32 %v2547_v2, %v2523_v54  ;;  %v2707_v29 = vmul.f32 %v2705_v32, %v8558_v30  ;;  %v2708_v28 = vmul.f32 %v2705_v32, %v8576_v16 }
 0x333   :  { %2592 = vrot.lane.b32.xlu1 %v2583_v62, %s6661_s8  ;;  %v2679_v12 = vrot.slane %v2667_v53, 2  ;;  %v2681_v0 = vrot.slane %v2668_v36, 2  ;;  %v2779_v55 = vmul.f32 %v2777_v50, %v8558_v30  ;;  %v2635_v49 = vmul.f32 %v2633_v33, %v8558_v30 }
 0x334   :  { %v8566_v15 = vsel %vm7532_vm7, %v2562_v35, 0.0  ;;  %v8570_v25 = vsel %vm7539_vm8, %v2561_v60, 0.0  ;;  %v2719_v18 = vrot.slane %v2707_v29, 2  ;;  %v2721_v5 = vrot.slane %v2708_v28, 2 }
 0x335   :  { %v2551_v37 = vpop.permute.xlu1 %2550  ;;  %v2585_v10 = vmul.f32 %v2581_v39, %v8566_v15  ;;  %v2584_v4 = vmul.f32 %v2581_v39, %v8570_v25  ;;  %v2611_v46 = vmul.f32 %v2607_v59, %v8566_v15  ;;  %v2610_v20 = vmul.f32 %v2607_v59, %v8570_v25 }
 0x336   :  { %v2563_v1 = vadd.f32 %v2551_v37, %v2525_v13  ;;  %v2669_v24 = vmul.f32 %v2665_v7, %v8570_v25  ;;  %v2670_v57 = vmul.f32 %v2665_v7, %v8566_v15  ;;  %v2682_v63 = vsel %vm298_vm0, %v2679_v12, %v2681_v0 }
 0x337   :  { %2596 = vrot.lane.b32.xlu1 %v2585_v10, %s6661_s8  ;;  %2594 = vrot.lane.b32.xlu0 %v2584_v4, %s6661_s8  ;;  %v2680_v23 = vsel %vm298_vm0, %v2678_v52, %v2679_v12  ;;  %v2636_v47 = vmul.f32 %v2633_v33, %v8576_v16  ;;  %v2709_v56 = vmul.f32 %v2705_v32, %v8570_v25  ;;  %v2647_v43 = vrot.slane %v2635_v49, 2 }
 0x338   :  { %v8586_v19 = vsel %vm7580_vm11, %v2563_v1, 0.0  ;;  %v2683_v39 = vrot.slane %v2669_v24, 2  ;;  %v2684_v11 = vrot.slane %v2670_v57, 2  ;;  %v2710_v6 = vmul.f32 %v2705_v32, %v8566_v15 }
 0x339   :  { %v2671_v40 = vmul.f32 %v2665_v7, %v8586_v19  ;;  %v2711_v51 = vmul.f32 %v2705_v32, %v8586_v19  ;;  %v2649_v54 = vrot.slane %v2636_v47, 2  ;;  %v2780_v21 = vmul.f32 %v2777_v50, %v8576_v16 }
 0x33a   :  { %v2685_v8 = vsel %vm298_vm0, %v2683_v39, %v2684_v11  ;;  %v2637_v17 = vmul.f32 %v2633_v33, %v8570_v25  ;;  %v2638_v58 = vmul.f32 %v2633_v33, %v8566_v15  ;;  %v2745_v2 = vstv %s8599_s23  ;;  %s9145_s23 = sld [smem:[#allocation3 + $0x109]] }
 0x33b   :  { %2618 = vrot.lane.b32.xlu1 %v2609_v34, %s6662_s12  ;;  %2616 = vrot.lane.b32.xlu0 %v2608_v14, %s6662_s12  ;;  %v2686_v44 = vrot.slane %v2671_v40, 2  ;;  %v2718_v62 = vrot.slane %v2706_v26, 2  ;;  %v8626_v35 = vsel %vm298_vm0, %v2646_v3, %v2647_v43  ;;  %v8629_v60 = vsel %vm298_vm0, %v2647_v43, %v2649_v54 }
 0x33c   :  { %v2639_v48 = vmul.f32 %v2633_v33, %v8586_v19  ;;  %v2723_v22 = vrot.slane %v2709_v56, 2  ;;  %v2724_v13 = vrot.slane %v2710_v6, 2  ;;  %v2651_v37 = vrot.slane %v2637_v17, 2 }
 0x33d   :  { %v2687_v9 = vsel %vm298_vm0, %v2684_v11, %v2686_v44  ;;  %v2652_v10 = vrot.slane %v2638_v58, 2  ;;  %v2720_v4 = vsel %vm298_vm0, %v2718_v62, %v2719_v18  ;;  %v2722_v59 = vsel %vm298_vm0, %v2719_v18, %v2721_v5 }
 0x33e   :  { %v2726_v1 = vrot.slane %v2711_v51, 2  ;;  %v2654_v34 = vrot.slane %v2639_v48, 2  ;;  %v2791_v14 = vrot.slane %v2779_v55, 4  ;;  %v2793_v7 = vrot.slane %v2780_v21, 4 }
 0x33f   :  { %2622 = vrot.lane.b32.xlu1 %v2611_v46, %s6662_s12  ;;  %2620 = vrot.lane.b32.xlu0 %v2610_v20, %s6662_s12  ;;  %v2781_v53 = vmul.f32 %v2777_v50, %v8570_v25  ;;  %v8638_v36 = vsel %vm298_vm0, %v2651_v37, %v2652_v10  ;;  %v2782_v27 = vmul.f32 %v2777_v50, %v8566_v15  ;;  %v2790_v24 = vrot.slane %v2778_v31, 4 }
 0x340   :  { %v8642_v46 = vsel %vm298_vm0, %v2652_v10, %v2654_v34  ;;  %v2725_v20 = vsel %vm298_vm0, %v2723_v22, %v2724_v13  ;;  %v2746_v57 = vmul.f32 %v2745_v2, %v8548_v38  ;;  %v2727_v12 = vsel %vm298_vm0, %v2724_v13, %v2726_v1  ;;  %v8694_v10 = vld [vmem:[%s12457_s0 + $0x48] sm:$0xff] }
 0x341   :  { %v2783_v0 = vmul.f32 %v2777_v50, %v8586_v19  ;;  %v2747_v40 = vmul.f32 %v2745_v2, %v8558_v30  ;;  %v2748_v32 = vmul.f32 %v2745_v2, %v8576_v16  ;;  %v2792_v29 = vsel %vm527_vm1, %v2790_v24, %v2791_v14  ;;  %v8724_v24 = vld [vmem:[%s12457_s0 + $0xd0] sm:$0xff] }
 0x342   :  { %v2794_v52 = vsel %vm527_vm1, %v2791_v14, %v2793_v7  ;;  %v2795_v28 = vrot.slane %v2781_v53, 4  ;;  %v2817_v39 = vstv %s8620_s5  ;;  %v2796_v11 = vrot.slane %v2782_v27, 4  ;;  %v8705_v14 = vld [vmem:[%s12457_s0 + $0x50] sm:$0xff]  ;;  %v8710_v7 = vld [vmem:[%s12457_s0 + $0xc0] sm:$0xff]  ;;  %s6372_s5 = sld [smem:[#allocation3 + $0x104]] }
 0x343   :  { %2690 = vrot.lane.b32.xlu1 %v2682_v63, %s6661_s8  ;;  %2688 = vrot.lane.b32.xlu0 %v2680_v23, %s6661_s8  ;;  %v2758_v33 = vrot.slane %v2746_v57, 4  ;;  %v2759_v63 = vrot.slane %v2747_v40, 4  ;;  %v2761_v23 = vrot.slane %v2748_v32, 4  ;;  %v2819_v50 = vmul.f32 %v2817_v39, %v8558_v30  ;;  %12814 = vst [vmem:[#allocation29_spill] sm:$0xff] %v8705_v14 }
 0x344   :  { %v2749_v44 = vmul.f32 %v2745_v2, %v8570_v25  ;;  %v2750_v26 = vmul.f32 %v2745_v2, %v8566_v15  ;;  %v2751_v18 = vmul.f32 %v2745_v2, %v8586_v19  ;;  %v2798_v31 = vrot.slane %v2783_v0, 4 }
 0x345   :  { %v2820_v55 = vmul.f32 %v2817_v39, %v8576_v16  ;;  %v8661_v5 = vsel %vm527_vm1, %v2758_v33, %v2759_v63  ;;  %v8664_v42 = vsel %vm527_vm1, %v2759_v63, %v2761_v23  ;;  %v2818_v56 = vmul.f32 %v2817_v39, %v8548_v38  ;;  %v8752_v63 = vld [vmem:[%s12457_s0 + $0x68] sm:$0xff] }
 0x346   :  { %v2763_v49 = vrot.slane %v2749_v44, 4  ;;  %v2764_v47 = vrot.slane %v2750_v26, 4  ;;  %v2821_v6 = vmul.f32 %v2817_v39, %v8570_v25  ;;  %v2797_v16 = vsel %vm527_vm1, %v2795_v28, %v2796_v11  ;;  %12816 = vst [vmem:[#allocation51_spill] sm:$0xff] %v8752_v63 }
 0x347   :  { %2692 = vrot.lane.b32.xlu0 %v2685_v8, %s6661_s8  ;;  %2694 = vrot.lane.b32.xlu1 %v2687_v9, %s6661_s8  ;;  %v2766_v8 = vrot.slane %v2751_v18, 4  ;;  %v2822_v51 = vmul.f32 %v2817_v39, %v8566_v15  ;;  %v2799_v43 = vsel %vm527_vm1, %v2796_v11, %v2798_v31  ;;  %v2831_v54 = vrot.slane %v2819_v50, 4  ;;  %v8745_v11 = vld [vmem:[%s12457_s0 + $0x60] sm:$0xff] }
 0x348   :  { %v8673_v9 = vsel %vm527_vm1, %v2763_v49, %v2764_v47  ;;  %v2833_v21 = vrot.slane %v2820_v55, 4  ;;  %v2823_v17 = vmul.f32 %v2817_v39, %v8586_v19  ;;  %v2830_v58 = vrot.slane %v2818_v56, 4  ;;  %v8689_v19 = vld [vmem:[%s12457_s0 + $0x40] sm:$0xff]  ;;  %12815 = vst [vmem:[#allocation37_spill] sm:$0xff] %v8745_v11 }
 0x349   :  { %v8676_v3 = vsel %vm527_vm1, %v2764_v47, %v2766_v8  ;;  %v2835_v2 = vrot.slane %v2821_v6, 4  ;;  %v2836_v22 = vrot.slane %v2822_v51, 4  ;;  %v2920_v37 = vstv %s6369_s24  ;;  %v8771_v31 = vld [vmem:[%s12457_s0 + $0xe0] sm:$0xff]  ;;  %v8784_v8 = vld [vmem:[%s12457_s0 + $0x70] sm:$0xff]  ;;  %s6423_s24 = sld [smem:[#allocation3 + $0x189]] }
 0x34a   :  { %v2832_v62 = vsel %vm527_vm1, %v2830_v58, %v2831_v54  ;;  %v2834_v48 = vsel %vm527_vm1, %v2831_v54, %v2833_v21  ;;  %v2838_v13 = vrot.slane %v2823_v17, 4  ;;  %v2921_v1 = vmul.f32 %v8689_v19, %v2920_v37  ;;  %12817 = vst [vmem:[#allocation24_spill] sm:$0xff] %v8771_v31  ;;  %12818 = vst [vmem:[#allocation40_spill] sm:$0xff] %v8784_v8  ;;  %v8803_v54 = vld [vmem:[%s12457_s0 + $0xe8] sm:$0xff] }
 0x34b   :  { %2728 = vrot.lane.b32.xlu0 %v2720_v4, %s6662_s12  ;;  %2730 = vrot.lane.b32.xlu1 %v2722_v59, %s6662_s12  ;;  %v2837_v4 = vsel %vm527_vm1, %v2835_v2, %v2836_v22  ;;  %v2922_v34 = vmul.f32 %v8694_v10, %v2920_v37  ;;  %v2923_v53 = vmul.f32 %v8705_v14, %v2920_v37  ;;  %v2958_v0 = vstv %s6370_s4  ;;  %s6384_s4 = sld [smem:[#allocation3 + $0x110]] }
 0x34c   :  { %v2839_v59 = vsel %vm527_vm1, %v2836_v22, %v2838_v13  ;;  %v2924_v27 = vmul.f32 %v8710_v7, %v2920_v37  ;;  %v2959_v40 = vmul.f32 %v8689_v19, %v2958_v0  ;;  %v2960_v32 = vmul.f32 %v8694_v10, %v2958_v0  ;;  %12819 = vst [vmem:[#allocation43_spill] sm:$0xff] %v8803_v54 }
 0x34d   :  { %v2964_v39 = vmul.f32 %v8724_v24, %v2958_v0  ;;  %v8747_v33 = vstv %s6415_s17  ;;  %v8760_v44 = vstv %s6371_s1  ;;  %v8773_v55 = vstv %s6416_s21  ;;  %s8895_s17 = sld [smem:[#allocation8 + $0x100]] }
 0x34e   :  { %v4318_v23 = vmul.f32 %v8745_v11, %v8747_v33  ;;  %v4319_v50 = vmul.f32 %v8752_v63, %v8747_v33  ;;  %v2997_v26 = vmul.f32 %v8689_v19, %v8760_v44  ;;  %v2998_v18 = vmul.f32 %v8694_v10, %v8760_v44  ;;  %s8899_s1 = sld [smem:[#allocation8 + $0x180]] }
 0x34f   :  { %2732 = vrot.lane.b32.xlu0 %v2725_v20, %s6662_s12  ;;  %2734 = vrot.lane.b32.xlu1 %v2727_v12, %s6662_s12  ;;  %v8719_v20 = vld [vmem:[%s12457_s0 + $0xc8] sm:$0xff]  ;;  %v2926_v12 = vmul.f32 %v8724_v24, %v2920_v37  ;;  %v4321_v49 = vmul.f32 %v8771_v31, %v8747_v33  ;;  %v4356_v47 = vmul.f32 %v8745_v11, %v8773_v55  ;;  %v8811_v58 = vstv %s6417_s26  ;;  %s9018_s21 = sld [smem:[#allocation8 + $0x101]] }
 0x350   :  { %v2925_v57 = vmul.f32 %v8719_v20, %v2920_v37  ;;  %v2963_v28 = vmul.f32 %v8719_v20, %v2958_v0  ;;  %v4357_v56 = vmul.f32 %v8752_v63, %v8773_v55  ;;  %v4320_v6 = vmul.f32 %v8784_v8, %v8747_v33  ;;  %s6380_s26 = sld [smem:[#allocation3 + $0x10c]] }
 0x351   :  { %v3000_v51 = vmul.f32 %v8710_v7, %v8760_v44  ;;  %v4322_v17 = vmul.f32 %v8803_v54, %v8747_v33  ;;  %v4359_v2 = vmul.f32 %v8771_v31, %v8773_v55  ;;  %v2999_v22 = vmul.f32 %v8705_v14, %v8760_v44 }
 0x352   :  { %v4358_v13 = vmul.f32 %v8784_v8, %v8773_v55  ;;  %v3001_v37 = vmul.f32 %v8719_v20, %v8760_v44 }
 0x353   :  { %2800 = vrot.lane.b32.xlu0 %v2792_v29, %s6661_s8  ;;  %2802 = vrot.lane.b32.xlu1 %v2794_v52, %s6661_s8  ;;  %v2961_v29 = vmul.f32 %v8705_v14, %v2958_v0  ;;  %v2962_v52 = vmul.f32 %v8710_v7, %v2958_v0  ;;  %v8856_v0 = vld [vmem:[%s12457_s0 + $0xf0] sm:$0xff] }
 0x354   :  { %v4399_v45 = vmul.f32 %v8856_v0, %v8811_v58 }
 0x357   :  { %2804 = vrot.lane.b32.xlu0 %v2797_v16, %s6661_s8  ;;  %2806 = vrot.lane.b32.xlu1 %v2799_v43, %s6661_s8  ;;  %v8792_v16 = vstv %s6372_s5  ;;  %s6422_s5 = sld [smem:[#allocation3 + $0x188]] }
 0x358   :  { %v3035_v43 = vmul.f32 %v8689_v19, %v8792_v16  ;;  %v3036_v21 = vmul.f32 %v8694_v10, %v8792_v16 }
 0x35b   :  { %2840 = vrot.lane.b32.xlu0 %v2832_v62, %s6662_s12  ;;  %2842 = vrot.lane.b32.xlu1 %v2834_v48, %s6662_s12  ;;  %v4394_v62 = vmul.f32 %v8745_v11, %v8811_v58  ;;  %v4395_v48 = vmul.f32 %v8752_v63, %v8811_v58 }
 0x35f   :  { %2844 = vrot.lane.b32.xlu0 %v2837_v4, %s6662_s12  ;;  %2846 = vrot.lane.b32.xlu1 %v2839_v59, %s6662_s12  ;;  %v3038_v4 = vmul.f32 %v8710_v7, %v8792_v16  ;;  %v4360_v59 = vmul.f32 %v8803_v54, %v8773_v55 }
 0x363   :  { %2933 = vrot.lane.b32.xlu0 %v2921_v1, %s6661_s8  ;;  %2935 = vrot.lane.b32.xlu1 %v2922_v34, %s6661_s8  ;;  %v8837_v1 = vstv %s6418_s29  ;;  %v4397_v34 = vmul.f32 %v8771_v31, %v8811_v58  ;;  %s6426_s29 = sld [smem:[#allocation3 + $0x18c]] }
 0x367   :  { %2937 = vrot.lane.b32.xlu0 %v2923_v53, %s6661_s8  ;;  %2939 = vrot.lane.b32.xlu1 %v2924_v27, %s6661_s8  ;;  %v4432_v53 = vmul.f32 %v8745_v11, %v8837_v1  ;;  %v8845_v27 = vstv %s6374_s30  ;;  %s6428_s30 = sld [smem:[#allocation3 + $0x18e]] }
 0x36b   :  { %2941 = vrot.lane.b32.xlu0 %v2925_v57, %s6661_s8  ;;  %2943 = vrot.lane.b32.xlu1 %v2926_v12, %s6661_s8  ;;  %v4433_v57 = vmul.f32 %v8752_v63, %v8837_v1  ;;  %v3037_v12 = vmul.f32 %v8705_v14, %v8792_v16 }
 0x36f   :  { %2971 = vrot.lane.b32.xlu0 %v2959_v40, %s6662_s12  ;;  %2973 = vrot.lane.b32.xlu1 %v2960_v32, %s6662_s12  ;;  %v3109_v40 = vmul.f32 %v8689_v19, %v8845_v27  ;;  %v3110_v32 = vmul.f32 %v8694_v10, %v8845_v27 }
 0x373   :  { %2975 = vrot.lane.b32.xlu0 %v2961_v29, %s6662_s12  ;;  %2977 = vrot.lane.b32.xlu1 %v2962_v52, %s6662_s12 }
 0x377   :  { %2979 = vrot.lane.b32.xlu0 %v2963_v28, %s6662_s12  ;;  %2981 = vrot.lane.b32.xlu1 %v2964_v39, %s6662_s12  ;;  %v2571_v28 = vstv %s6347_s9  ;;  %v4323_v39 = vmul.f32 %v8856_v0, %v8747_v33  ;;  %v3039_v33 = vmul.f32 %v8719_v20, %v8792_v16  ;;  %s10748_s9 = sld [smem:[#allocation3 + $0x10a]] }
 0x37b   :  { %4330 = vrot.lane.b32.xlu0 %v4318_v23, %s6661_s8  ;;  %4332 = vrot.lane.b32.xlu1 %v4319_v50, %s6661_s8  ;;  %v4396_v23 = vmul.f32 %v8784_v8, %v8811_v58  ;;  %v8870_v50 = vmul.f32 %v8705_v14, %v8845_v27 }
 0x37f   :  { %3009 = vrot.lane.b32.xlu0 %v2997_v26, %s6663_s14  ;;  %3011 = vrot.lane.b32.xlu1 %v2998_v18, %s6663_s14  ;;  %v3121_v26 = vrot.slane %v3109_v40, 2  ;;  %v3122_v18 = vrot.slane %v3110_v32, 2  ;;  %v4435_v32 = vmul.f32 %v8771_v31, %v8837_v1 }
 0x383   :  { %4336 = vrot.lane.b32.xlu0 %v4321_v49, %s6661_s8  ;;  %4368 = vrot.lane.b32.xlu1 %v4356_v47, %s6662_s12 }
 0x387   :  { %4370 = vrot.lane.b32.xlu0 %v4357_v56, %s6662_s12  ;;  %4334 = vrot.lane.b32.xlu1 %v4320_v6, %s6661_s8  ;;  %v2572_v56 = vmul.f32 %v2571_v28, %v8548_v38  ;;  %v2573_v6 = vmul.f32 %v2571_v28, %v8558_v30  ;;  %v2574_v38 = vmul.f32 %v2571_v28, %v8570_v25 }
 0x388   :  { %v2575_v30 = vmul.f32 %v2571_v28, %v8566_v15 }
 0x38b   :  { %3015 = vrot.lane.b32.xlu0 %v3000_v51, %s6663_s14  ;;  %3047 = vrot.lane.b32.xlu1 %v3035_v43, %s6664_s16  ;;  %v12479_v51 = vrot.slane %v8870_v50, 2 }
 0x38f   :  { %3049 = vrot.lane.b32.xlu0 %v3036_v21, %s6664_s16  ;;  %4338 = vrot.lane.b32.xlu1 %v4322_v17, %s6661_s8  ;;  %v3123_v17 = vsel %vm298_vm0, %v3121_v26, %v3122_v18 }
 0x393   :  { %4374 = vrot.lane.b32.xlu0 %v4359_v2, %s6662_s12  ;;  %4406 = vrot.lane.b32.xlu1 %v4394_v62, %s6663_s14 }
 0x397   :  { %4408 = vrot.lane.b32.xlu0 %v4395_v48, %s6663_s14  ;;  %3013 = vrot.lane.b32.xlu1 %v2999_v22, %s6663_s14 }
 0x39b   :  { %4372 = vrot.lane.b32.xlu0 %v4358_v13, %s6662_s12  ;;  %3017 = vrot.lane.b32.xlu1 %v3001_v37, %s6663_s14  ;;  %v3125_v13 = vsel %vm298_vm0, %v3122_v18, %v12479_v51  ;;  %v4398_v37 = vmul.f32 %v8803_v54, %v8811_v58  ;;  %v12820_v18 = vld [vmem:[#allocation21_spill] sm:$0xff] }
 0x39f   :  { %3053 = vrot.lane.b32.xlu0 %v3038_v4, %s6664_s16  ;;  %4376 = vrot.lane.b32.xlu1 %v4360_v59, %s6662_s12 }
 0x3a1   :  { %v2591_v29 = vpop.permute.xlu0 %2590 }
 0x3a2   :  { %v2602_v43 = vadd.f32 %v2591_v29, %v2572_v56  ;;  %v8911_v29 = vmul.f32 %v8719_v20, %v8845_v27 }
 0x3a3   :  { %4412 = vrot.lane.b32.xlu0 %v4397_v34, %s6663_s14  ;;  %4444 = vrot.lane.b32.xlu1 %v4432_v53, %s6664_s16 }
 0x3a5   :  { %v2593_v52 = vpop.permute.xlu1 %2592 }
 0x3a6   :  { %v2603_v21 = vadd.f32 %v2593_v52, %v2573_v6 }
 0x3a7   :  { %4446 = vrot.lane.b32.xlu0 %v4433_v57, %s6664_s16  ;;  %3051 = vrot.lane.b32.xlu1 %v3037_v12, %s6664_s16  ;;  %v8897_v57 = vstv %s6375_s10  ;;  %s6385_s10 = sld [smem:[#allocation3 + $0x111]] }
 0x3a8   :  { %v8929_v6 = vmul.f32 %v8705_v14, %v8897_v57 }
 0x3a9   :  { %v2595_v49 = vpop.permute.xlu0 %2594  ;;  %v2597_v47 = vpop.permute.xlu1 %2596 }
 0x3aa   :  { %v2604_v4 = vadd.f32 %v2595_v49, %v2574_v38  ;;  %v2605_v59 = vadd.f32 %v2597_v47, %v2575_v30  ;;  %v12821_v49 = vld [vmem:[#allocation33_spill] sm:$0xff] }
 0x3ab   :  { %4340 = vrot.lane.b32.xlu0 %v4323_v39, %s6661_s8  ;;  %4410 = vrot.lane.b32.xlu1 %v4396_v23, %s6663_s14  ;;  %v3157_v39 = vmul.f32 %v8689_v19, %v8897_v57  ;;  %v3158_v23 = vmul.f32 %v8694_v10, %v8897_v57  ;;  %v1431_v47 = vadd.f32 %v12821_v49, %v12820_v18  ;;  %v12828_v18 = vld [vmem:[#allocation28_spill] sm:$0xff] }
 0x3ad   :  { %v2617_v2 = vpop.permute.xlu0 %2616  ;;  %v2619_v62 = vpop.permute.xlu1 %2618 }
 0x3ae   :  { %v2628_v48 = vadd.f32 %v2617_v2, %v2602_v43  ;;  %v2629_v22 = vadd.f32 %v2619_v62, %v2603_v21  ;;  %v3169_v43 = vrot.slane %v3157_v39, 2  ;;  %v3170_v21 = vrot.slane %v3158_v23, 2  ;;  %v12823_v62 = vld [vmem:[#allocation38_spill] sm:$0xff]  ;;  %v12827_v23 = vld [vmem:[#allocation32_spill] sm:$0xff] }
 0x3af   :  { %3055 = vrot.lane.b32.xlu0 %v3039_v33, %s6664_s16  ;;  %3131 = vrot.lane.b32.xlu1 %v3123_v17, %s6661_s8  ;;  %v12482_v33 = vrot.slane %v8911_v29, 2  ;;  %v8932_v17 = vstv %s6420_s15  ;;  %v8935_v2 = vstv %s8880_s11  ;;  %v1471_v38 = vadd.f32 %v12823_v62, %v1431_v47  ;;  %s6430_s11 = sld [smem:[#allocation3 + $0x190]] }
 0x3b0   :  { %v2660_v25 = vadd.f32 %v8626_v35, %v2628_v48  ;;  %v2661_v15 = vadd.f32 %v8629_v60, %v2629_v22  ;;  %v3002_v35 = vmul.f32 %v8724_v24, %v8760_v44  ;;  %v3112_v60 = vmul.f32 %v8710_v7, %v8845_v27  ;;  %12822 = vst [vmem:[#allocation50_spill] sm:$0xff] %v8932_v17  ;;  %v12824_v48 = vld [vmem:[#allocation25_spill] sm:$0xff]  ;;  %v12825_v22 = vld [vmem:[#allocation23_spill] sm:$0xff]  ;;  %s11575_s15 = sld [smem:[#allocation6 + $0x184]] }
 0x3b1   :  { %v2621_v34 = vpop.permute.xlu0 %2620  ;;  %v2623_v53 = vpop.permute.xlu1 %2622  ;;  %v3171_v39 = vsel %vm298_vm0, %v3169_v43, %v3170_v21  ;;  %v1432_v49 = vadd.f32 %v12828_v18, %v12827_v23  ;;  %v8969_v47 = vmul.f32 %v8935_v2, %v1471_v38 }
 0x3b2   :  { %v2630_v12 = vadd.f32 %v2621_v34, %v2604_v4  ;;  %v2631_v40 = vadd.f32 %v2623_v53, %v2605_v59  ;;  %v3126_v56 = vrot.slane %v3112_v60, 2  ;;  %v8944_v4 = vstv %s8895_s17  ;;  %s6386_s17 = sld [smem:[#allocation3 + $0x112]] }
 0x3b3   :  { %3133 = vrot.lane.b32.xlu0 %v3125_v13, %s6661_s8  ;;  %4414 = vrot.lane.b32.xlu1 %v4398_v37, %s6663_s14  ;;  %v1433_v13 = vadd.f32 %v12825_v22, %v12824_v48  ;;  %v8941_v37 = vstv %s8884_s13  ;;  %v8947_v59 = vstv %s8899_s1  ;;  %v12481_v34 = vrot.slane %v8929_v6, 2  ;;  %v12831_v48 = vld [vmem:[#allocation22_spill] sm:$0xff]  ;;  %s6431_s1 = sld [smem:[#allocation3 + $0x191]] }
 0x3b4   :  { %v2662_v52 = vadd.f32 %v8638_v36, %v2630_v12  ;;  %v2663_v28 = vadd.f32 %v8642_v46, %v2631_v40  ;;  %v4361_v36 = vmul.f32 %v8856_v0, %v8773_v55  ;;  %v4434_v46 = vmul.f32 %v8784_v8, %v8837_v1  ;;  %s11556_s13 = sld [smem:[#allocation6 + $0x182]] }
 0x3b5   :  { %v2689_v26 = vpop.permute.xlu0 %2688  ;;  %v2691_v44 = vpop.permute.xlu1 %2690  ;;  %v4506_v53 = vmul.f32 %v8745_v11, %v8932_v17  ;;  %v4507_v12 = vmul.f32 %v8752_v63, %v8932_v17  ;;  %v8958_v40 = vmul.f32 %v8784_v8, %v8932_v17  ;;  %v3128_v60 = vsel %vm298_vm0, %v3126_v56, %v12482_v33 }
 0x3b6   :  { %v1473_v22 = vadd.f32 %v12831_v48, %v1433_v13  ;;  %v4436_v56 = vmul.f32 %v8803_v54, %v8837_v1  ;;  %v3173_v43 = vsel %vm298_vm0, %v3170_v21, %v12481_v34  ;;  %v9095_v33 = vstv %s9007_s20  ;;  %s6432_s20 = sld [smem:[#allocation3 + $0x192]] }
 0x3b7   :  { %4450 = vrot.lane.b32.xlu0 %v4435_v32, %s6664_s16  ;;  %3019 = vrot.lane.b32.xlu1 %v3002_v35, %s6663_s14  ;;  %12826 = vst [vmem:[#allocation57_spill] sm:$0xff] %v8958_v40  ;;  %v2700_v32 = vadd.f32 %v2689_v26, %v2660_v25  ;;  %v2701_v35 = vadd.f32 %v2691_v44, %v2661_v15  ;;  %v4518_v23 = vrot.slane %v4506_v53, 2  ;;  %v4519_v13 = vrot.slane %v4507_v12, 2  ;;  %v12832_v53 = vld [vmem:[#allocation17_spill] sm:$0xff] }
 0x3b8   :  { %v8975_v15 = vmul.f32 %v8941_v37, %v1471_v38  ;;  %v12480_v18 = vrot.slane %v8958_v40, 2  ;;  %v8998_v21 = vmul.f32 %v8935_v2, %v1473_v22  ;;  %v1472_v12 = vadd.f32 %v12832_v53, %v1432_v49 }
 0x3b9   :  { %v2693_v30 = vpop.permute.xlu0 %2692  ;;  %v2695_v55 = vpop.permute.xlu1 %2694  ;;  %v4520_v49 = vsel %vm298_vm0, %v4518_v23, %v4519_v13  ;;  %v12838_v40 = vrot.slane %v8911_v29, 2 }
 0x3bb   :  { %4378 = vrot.lane.b32.xlu0 %v4361_v36, %s6662_s12  ;;  %4448 = vrot.lane.b32.xlu1 %v4434_v46, %s6664_s16  ;;  %v12829_v36 = vld [vmem:[#allocation20_spill] sm:$0xff]  ;;  %v12830_v46 = vld [vmem:[#allocation39_spill] sm:$0xff] }
 0x3bc   :  { %v1434_v62 = vadd.f32 %v12830_v46, %v12829_v36  ;;  %v2702_v36 = vadd.f32 %v2693_v30, %v2662_v52  ;;  %v12833_v46 = vld [vmem:[#allocation34_spill] sm:$0xff] }
 0x3bd   :  { %v2729_v51 = vpop.permute.xlu0 %2728  ;;  %v2731_v25 = vpop.permute.xlu1 %2730 }
 0x3be   :  { %v2740_v26 = vadd.f32 %v2729_v51, %v2700_v32  ;;  %v2741_v44 = vadd.f32 %v2731_v25, %v2701_v35  ;;  %v2703_v51 = vadd.f32 %v2695_v55, %v2663_v28  ;;  %v9013_v48 = vadd.f32 %v12833_v46, %v1434_v62 }
 0x3bf   :  { %3137 = vrot.lane.b32.xlu0 %v3128_v60, %s6661_s8  ;;  %3179 = vrot.lane.b32.xlu1 %v3171_v39, %s6662_s12  ;;  %v8992_v60 = vmul.f32 %v8944_v4, %v1471_v38  ;;  %v8995_v39 = vmul.f32 %v8947_v59, %v1471_v38  ;;  %v9010_v38 = vmul.f32 %v8947_v59, %v1473_v22  ;;  %v9021_v25 = vstv %s8960_s3  ;;  %s6387_s3 = sld [smem:[#allocation3 + $0x113]] }
 0x3c0   :  { %v2772_v32 = vadd.f32 %v8661_v5, %v2740_v26  ;;  %v2773_v35 = vadd.f32 %v8664_v42, %v2741_v44  ;;  %v9002_v5 = vmul.f32 %v8941_v37, %v1473_v22  ;;  %v9005_v42 = vmul.f32 %v8944_v4, %v1473_v22 }
 0x3c1   :  { %v2733_v52 = vpop.permute.xlu0 %2732  ;;  %v2735_v28 = vpop.permute.xlu1 %2734  ;;  %v4522_v26 = vsel %vm298_vm0, %v4519_v13, %v12480_v18  ;;  %v9032_v62 = vmul.f32 %v8724_v24, %v8845_v27  ;;  %v9047_v27 = vmul.f32 %v8944_v4, %v1472_v12  ;;  %v9056_v53 = vmul.f32 %v8694_v10, %v9021_v25 }
 0x3c2   :  { %v2742_v30 = vadd.f32 %v2733_v52, %v2702_v36  ;;  %v2743_v55 = vadd.f32 %v2735_v28, %v2703_v51  ;;  %v9050_v36 = vmul.f32 %v8947_v59, %v1472_v12  ;;  %v3205_v51 = vmul.f32 %v8689_v19, %v9021_v25 }
 0x3c3   :  { %3181 = vrot.lane.b32.xlu0 %v3173_v43, %s6662_s12  ;;  %4452 = vrot.lane.b32.xlu1 %v4436_v56, %s6664_s16  ;;  %12834 = vst [vmem:[#allocation31_spill] sm:$0xff] %v9032_v62  ;;  %v9035_v56 = vmul.f32 %v8935_v2, %v1472_v12  ;;  %v9038_v43 = vmul.f32 %v8941_v37, %v1472_v12  ;;  %v3218_v61 = vrot.slane %v9056_v53, 2 }
 0x3c4   :  { %v2774_v22 = vadd.f32 %v8673_v9, %v2742_v30  ;;  %v2775_v44 = vadd.f32 %v8676_v3, %v2743_v55  ;;  %v3160_v9 = vmul.f32 %v8710_v7, %v8897_v57  ;;  %v9044_v3 = vmul.f32 %v8719_v20, %v8897_v57 }
 0x3c5   :  { %v2801_v23 = vpop.permute.xlu0 %2800  ;;  %v2803_v13 = vpop.permute.xlu1 %2802  ;;  %v9060_v52 = vmul.f32 %v8935_v2, %v9013_v48  ;;  %v9064_v28 = vmul.f32 %v8941_v37, %v9013_v48  ;;  %v3040_v12 = vmul.f32 %v8724_v24, %v8792_v16  ;;  %v9071_v30 = vstv %s8985_s18  ;;  %s6393_s18 = sld [smem:[#allocation6 + $0x100]] }
 0x3c6   :  { %12835 = vst [vmem:[#allocation35_spill] sm:$0xff] %v9071_v30  ;;  %v9075_v55 = vmul.f32 %v8944_v4, %v9013_v48  ;;  %v9078_v2 = vstv %s8989_s19  ;;  %v9083_v37 = vmul.f32 %v8771_v31, %v8932_v17  ;;  %v3174_v18 = vrot.slane %v3160_v9, 2  ;;  %s6438_s19 = sld [smem:[#allocation3 + $0x198]] }
 0x3c7   :  { %4528 = vrot.lane.b32.xlu0 %v4520_v49, %s6661_s8  ;;  %4530 = vrot.lane.b32.xlu1 %v4522_v26, %s6661_s8  ;;  %v9088_v34 = vmul.f32 %v8705_v14, %v9021_v25  ;;  %v9092_v4 = vmul.f32 %v8803_v54, %v8932_v17  ;;  %v3217_v46 = vrot.slane %v3205_v51, 2  ;;  %v4554_v41 = vmul.f32 %v8745_v11, %v9071_v30 }
 0x3c8   :  { %v12836_v9 = vrot.slane %v8870_v50, 2  ;;  %v2877_v16 = vstv %s9018_s21  ;;  %v4555_v54 = vmul.f32 %v8752_v63, %v9071_v30  ;;  %v9111_v51 = vmul.f32 %v8784_v8, %v9071_v30  ;;  %s6405_s21 = sld [smem:[#allocation8 + $0x182]] }
 0x3c9   :  { %v2805_v49 = vpop.permute.xlu0 %2804  ;;  %v2807_v26 = vpop.permute.xlu1 %2806  ;;  %v2812_v53 = vadd.f32 %v2801_v23, %v2772_v32  ;;  %v2813_v31 = vadd.f32 %v2803_v13, %v2773_v35  ;;  %v2887_v11 = vstv %s9028_s22  ;;  %v12839_v58 = vrot.slane %v9044_v3, 2  ;;  %s6448_s22 = sld [smem:[#allocation8 + $0x3]] }
 0x3ca   :  { %v12505_v63 = vrot.slane %v9088_v34, 2  ;;  %v4523_v8 = vrot.slane %v9083_v37, 2  ;;  %v3219_v13 = vsel %vm298_vm0, %v3217_v46, %v3218_v61  ;;  %v2814_v29 = vadd.f32 %v2805_v49, %v2774_v22 }
 0x3cb   :  { %3057 = vrot.lane.b32.xlu0 %v3040_v12, %s6664_s16  ;;  %3135 = vrot.lane.b32.xlu1 %v12836_v9, %s6661_s8  ;;  %v12837_v12 = vrot.slane %v9032_v62, 2  ;;  %v3176_v14 = vsel %vm298_vm0, %v3174_v18, %v12839_v58  ;;  %v4566_v62 = vrot.slane %v4554_v41, 2  ;;  %v2815_v30 = vadd.f32 %v2807_v26, %v2775_v44 }
 0x3cc   :  { %v12504_v18 = vrot.slane %v9111_v51, 2 }
 0x3cd   :  { %v3130_v50 = vsel %vm298_vm0, %v12838_v40, %v12837_v12  ;;  %v2841_v9 = vpop.permute.xlu0 %2840  ;;  %v2843_v17 = vpop.permute.xlu1 %2842  ;;  %v4567_v40 = vrot.slane %v4555_v54, 2 }
 0x3ce   :  { %v2852_v35 = vadd.f32 %v2841_v9, %v2812_v53  ;;  %v2853_v23 = vadd.f32 %v2843_v17, %v2813_v31 }
 0x3cf   :  { %4416 = vrot.lane.b32.xlu0 %v4399_v45, %s6663_s14  ;;  %3139 = vrot.lane.b32.xlu1 %v3130_v50, %s6661_s8 }
 0x3d0   :  { %v2858_v12 = vmul.f32 %v9078_v2, %v2852_v35  ;;  %v2868_v37 = vmul.f32 %v9095_v33, %v2852_v35  ;;  %v2878_v58 = vmul.f32 %v2877_v16, %v2852_v35  ;;  %v2888_v32 = vmul.f32 %v2887_v11, %v2852_v35 }
 0x3d1   :  { %v2859_v31 = vmul.f32 %v9078_v2, %v2853_v23  ;;  %v2869_v17 = vmul.f32 %v9095_v33, %v2853_v23  ;;  %v2879_v41 = vmul.f32 %v2877_v16, %v2853_v23  ;;  %v2889_v22 = vmul.f32 %v2887_v11, %v2853_v23  ;;  %v2845_v44 = vpop.permute.xlu0 %2844  ;;  %v2847_v46 = vpop.permute.xlu1 %2846 }
 0x3d2   :  { %v9134_v45 = vadd.f32 %v2858_v12, %v8969_v47  ;;  %v9137_v54 = vadd.f32 %v2868_v37, %v8975_v15  ;;  %v9140_v49 = vadd.f32 %v2878_v58, %v8992_v60  ;;  %v9143_v26 = vadd.f32 %v2888_v32, %v8995_v39 }
 0x3d3   :  { %v9148_v53 = vadd.f32 %v2859_v31, %v9035_v56  ;;  %v9151_v50 = vadd.f32 %v2869_v17, %v9038_v43  ;;  %v9154_v47 = vadd.f32 %v2879_v41, %v9047_v27  ;;  %v9157_v15 = vadd.f32 %v2889_v22, %v9050_v36  ;;  %3185 = vrot.lane.b32.xlu0 %v3176_v14, %s6662_s12 }
 0x3d4   :  { %12840 = vst [vmem:[#allocation41_spill] sm:$0xff] %v9134_v45  ;;  %12841 = vst [vmem:[#allocation42_spill] sm:$0xff] %v9137_v54  ;;  %v1498_v60 = vmul.f32 %v8947_v59, %v9013_v48  ;;  %v2854_v39 = vadd.f32 %v2845_v44, %v2814_v29  ;;  %v2855_v9 = vadd.f32 %v2847_v46, %v2815_v30  ;;  %3227 = vrot.lane.b32.xlu1 %v3219_v13, %s6663_s14  ;;  %v12858_v46 = vld [vmem:[#allocation29_spill] sm:$0xff] }
 0x3d5   :  { %12842 = vst [vmem:[#allocation44_spill] sm:$0xff] %v9140_v49  ;;  %12843 = vst [vmem:[#allocation46_spill] sm:$0xff] %v9143_v26  ;;  %v3221_v56 = vsel %vm298_vm0, %v3218_v61, %v12505_v63  ;;  %v9166_v43 = vpop.permute.xlu0 %2933  ;;  %v9168_v27 = vpop.permute.xlu1 %2935  ;;  %v12848_v36 = vrot.slane %v9092_v4, 2  ;;  %v4568_v14 = vsel %vm298_vm0, %v4566_v62, %v4567_v40  ;;  %v4570_v59 = vsel %vm298_vm0, %v4567_v40, %v12504_v18 }
 0x3d6   :  { %12844 = vst [vmem:[#allocation52_spill] sm:$0xff] %v9148_v53  ;;  %12845 = vst [vmem:[#allocation64_spill] sm:$0xff] %v9151_v50  ;;  %v9179_v48 = vmul.f32 %v8724_v24, %v8897_v57  ;;  %v2860_v61 = vmul.f32 %v9078_v2, %v2854_v39  ;;  %v2870_v30 = vmul.f32 %v9095_v33, %v2854_v39 }
 0x3d7   :  { %12846 = vst [vmem:[#allocation18_spill] sm:$0xff] %v9154_v47  ;;  %12847 = vst [vmem:[#allocation49_spill] sm:$0xff] %v9157_v15  ;;  %v4525_v32 = vsel %vm298_vm0, %v4523_v8, %v12848_v36  ;;  %v2880_v35 = vmul.f32 %v2877_v16, %v2854_v39  ;;  %v2890_v23 = vmul.f32 %v2887_v11, %v2854_v39  ;;  %3229 = vrot.lane.b32.xlu0 %v3221_v56, %s6663_s14 }
 0x3d8   :  { %v2861_v13 = vmul.f32 %v9078_v2, %v2855_v9  ;;  %v2871_v8 = vmul.f32 %v9095_v33, %v2855_v9  ;;  %v2881_v62 = vmul.f32 %v2877_v16, %v2855_v9  ;;  %v2891_v29 = vmul.f32 %v2887_v11, %v2855_v9  ;;  %4534 = vrot.lane.b32.xlu1 %v4525_v32, %s6661_s8 }
 0x3d9   :  { %v9187_v40 = vadd.f32 %v2860_v61, %v8998_v21  ;;  %v9190_v57 = vadd.f32 %v2870_v30, %v9002_v5  ;;  %v9193_v12 = vadd.f32 %v2880_v35, %v9005_v42  ;;  %v9196_v37 = vadd.f32 %v2890_v23, %v9010_v38  ;;  %v9210_v5 = vpop.permute.xlu0 %2937  ;;  %v9212_v42 = vpop.permute.xlu1 %2939  ;;  %v12861_v30 = vld [vmem:[#allocation57_spill] sm:$0xff] }
 0x3da   :  { %v9200_v33 = vadd.f32 %v2861_v13, %v9060_v52  ;;  %v9203_v11 = vadd.f32 %v2871_v8, %v9064_v28  ;;  %v9206_v21 = vadd.f32 %v2881_v62, %v9075_v55  ;;  %v9208_v2 = vadd.f32 %v2891_v29, %v1498_v60  ;;  %v12863_v13 = vld [vmem:[#allocation35_spill] sm:$0xff]  ;;  %v12864_v8 = vld [vmem:[#allocation24_spill] sm:$0xff] }
 0x3db   :  { %12849 = vst [vmem:[#allocation56_spill] sm:$0xff] %v9187_v40  ;;  %12850 = vst [vmem:[#allocation69_spill] sm:$0xff] %v9190_v57  ;;  %v9215_v16 = vstv %s9145_s23  ;;  %4576 = vrot.lane.b32.xlu0 %v4568_v14, %s6662_s12  ;;  %v4437_v38 = vmul.f32 %v8856_v0, %v8837_v1  ;;  %v3208_v52 = vmul.f32 %v8710_v7, %v9021_v25  ;;  %v12503_v31 = vrot.slane %v9179_v48, 2  ;;  %v12860_v14 = vld [vmem:[#allocation50_spill] sm:$0xff]  ;;  %v12865_v29 = vld [vmem:[#allocation43_spill] sm:$0xff]  ;;  %s6382_s23 = sld [smem:[#allocation3 + $0x10e]] }
 0x3dc   :  { %12851 = vst [vmem:[#allocation30_spill] sm:$0xff] %v9193_v12  ;;  %12852 = vst [vmem:[#allocation62_spill] sm:$0xff] %v9196_v37  ;;  %4578 = vrot.lane.b32.xlu1 %v4570_v59, %s6662_s12  ;;  %v9225_v28 = vmul.f32 %v8719_v20, %v9021_v25  ;;  %v3253_v17 = vmul.f32 %v8689_v19, %v9215_v16  ;;  %v3254_v41 = vmul.f32 %v8694_v10, %v9215_v16 }
 0x3dd   :  { %12853 = vst [vmem:[#allocation63_spill] sm:$0xff] %v9200_v33  ;;  %12854 = vst [vmem:[#allocation59_spill] sm:$0xff] %v9203_v11  ;;  %v9227_v55 = vpop.permute.xlu0 %2941  ;;  %v9229_v58 = vpop.permute.xlu1 %2943  ;;  %v12857_v1 = vrot.slane %v8929_v6, 2  ;;  %v3222_v22 = vrot.slane %v3208_v52, 2  ;;  %v9243_v60 = vmul.f32 %v12858_v46, %v9215_v16  ;;  %v12859_v56 = vrot.slane %v9044_v3, 2 }
 0x3de   :  { %12855 = vst [vmem:[#allocation47_spill] sm:$0xff] %v9206_v21  ;;  %12856 = vst [vmem:[#allocation48_spill] sm:$0xff] %v9208_v2  ;;  %v3223_v44 = vrot.slane %v9225_v28, 2  ;;  %v3265_v36 = vrot.slane %v3253_v17, 2  ;;  %v3266_v32 = vrot.slane %v3254_v41, 2  ;;  %v9256_v59 = vmul.f32 %v8856_v0, %v12860_v14 }
 0x3df   :  { %3183 = vrot.lane.b32.xlu0 %v12857_v1, %s6662_s12  ;;  %v3178_v6 = vsel %vm298_vm0, %v12859_v56, %v12503_v31  ;;  %v9258_v61 = vstv %s6422_s5  ;;  %v12862_v35 = vrot.slane %v12861_v30, 2  ;;  %v12506_v3 = vrot.slane %v9243_v60, 2  ;;  %v12866_v1 = vld [vmem:[#allocation37_spill] sm:$0xff]  ;;  %s6368_s5 = sld [smem:[#allocation3 + $0x100]] }
 0x3e0   :  { %4454 = vrot.lane.b32.xlu1 %v4437_v38, %s6664_s16  ;;  %v3224_v23 = vsel %vm298_vm0, %v3222_v22, %v3223_v44  ;;  %v4557_v62 = vmul.f32 %v12864_v8, %v12863_v13  ;;  %v4558_v38 = vmul.f32 %v12865_v29, %v12863_v13  ;;  %v3267_v17 = vsel %vm298_vm0, %v3265_v36, %v3266_v32  ;;  %v12867_v22 = vld [vmem:[#allocation51_spill] sm:$0xff]  ;;  %v12868_v36 = vld [vmem:[#allocation40_spill] sm:$0xff] }
 0x3e1   :  { %v9245_v39 = vpop.permute.xlu0 %2971  ;;  %v9247_v9 = vpop.permute.xlu1 %2973  ;;  %v12508_v41 = vrot.slane %v9256_v59, 2  ;;  %v4602_v56 = vmul.f32 %v12866_v1, %v9258_v61  ;;  %v3269_v14 = vsel %vm298_vm0, %v3266_v32, %v12506_v3  ;;  %v9287_v31 = vmul.f32 %v12868_v36, %v9258_v61 }
 0x3e2   :  { %v4571_v30 = vrot.slane %v4557_v62, 2  ;;  %v4605_v33 = vmul.f32 %v12864_v8, %v9258_v61 }
 0x3e3   :  { %4532 = vrot.lane.b32.xlu0 %v12862_v35, %s6661_s8  ;;  %v4572_v35 = vrot.slane %v4558_v38, 2  ;;  %v4614_v2 = vrot.slane %v4602_v56, 2  ;;  %v12507_v62 = vrot.slane %v9287_v31, 2  ;;  %v9314_v56 = vmul.f32 %v8724_v24, %v9021_v25 }
 0x3e4   :  { %3187 = vrot.lane.b32.xlu1 %v3178_v6, %s6662_s12  ;;  %v4603_v6 = vmul.f32 %v12867_v22, %v9258_v61 }
 0x3e5   :  { %v9270_v52 = vpop.permute.xlu0 %2975  ;;  %v9272_v28 = vpop.permute.xlu1 %2977  ;;  %v4573_v32 = vsel %vm298_vm0, %v4571_v30, %v4572_v35 }
 0x3e6   :  { %v4615_v21 = vrot.slane %v4603_v6, 2  ;;  %v3256_v6 = vmul.f32 %v8710_v7, %v9215_v16 }
 0x3e7   :  { %3233 = vrot.lane.b32.xlu0 %v3224_v23, %s6663_s14  ;;  %v12869_v23 = vrot.slane %v9092_v4, 2 }
 0x3e8   :  { %3275 = vrot.lane.b32.xlu1 %v3267_v17, %s6664_s16  ;;  %v4616_v11 = vsel %vm298_vm0, %v4614_v2, %v4615_v21  ;;  %v4618_v4 = vsel %vm298_vm0, %v4615_v21, %v12507_v62  ;;  %v3257_v2 = vmul.f32 %v8719_v20, %v9215_v16  ;;  %v12509_v21 = vrot.slane %v9314_v56, 2 }
 0x3e9   :  { %v9289_v18 = vpop.permute.xlu0 %2979  ;;  %v9291_v63 = vpop.permute.xlu1 %2981  ;;  %v4527_v17 = vsel %vm298_vm0, %v12869_v23, %v12508_v41  ;;  %v3270_v25 = vrot.slane %v3256_v6, 2  ;;  %v12873_v6 = vrot.slane %v9088_v34, 2 }
 0x3ea   :  { %v3271_v41 = vrot.slane %v3257_v2, 2  ;;  %v3226_v2 = vsel %vm298_vm0, %v3223_v44, %v12509_v21 }
 0x3eb   :  { %3277 = vrot.lane.b32.xlu0 %v3269_v14, %s6664_s16 }
 0x3ec   :  { %4536 = vrot.lane.b32.xlu1 %v4527_v17, %s6661_s8  ;;  %v9331_v17 = vmul.f32 %v8856_v0, %v12863_v13  ;;  %v12874_v13 = vrot.slane %v9111_v51, 2  ;;  %v4619_v51 = vrot.slane %v4605_v33, 2 }
 0x3ed   :  { %v9302_v38 = vpop.permute.xlu0 %4330  ;;  %v9304_v3 = vpop.permute.xlu1 %4332 }
 0x3ef   :  { %4582 = vrot.lane.b32.xlu0 %v4573_v32, %s6662_s12 }
 0x3f0   :  { %4624 = vrot.lane.b32.xlu1 %v4616_v11, %s6663_s14  ;;  %v12870_v11 = vld [vmem:[#allocation31_spill] sm:$0xff] }
 0x3f1   :  { %v9318_v14 = vpop.permute.xlu0 %3009  ;;  %v9320_v30 = vpop.permute.xlu1 %3011  ;;  %v12871_v23 = vrot.slane %v12870_v11, 2  ;;  %v9343_v11 = vstv %s6423_s24  ;;  %s6373_s24 = sld [smem:[#allocation3 + $0x105]] }
 0x3f2   :  { %v4650_v37 = vmul.f32 %v12866_v1, %v9343_v11  ;;  %v4651_v12 = vmul.f32 %v12867_v22, %v9343_v11  ;;  %v9367_v44 = vmul.f32 %v12868_v36, %v9343_v11 }
 0x3f3   :  { %4626 = vrot.lane.b32.xlu0 %v4618_v4, %s6663_s14  ;;  %v9341_v4 = vmul.f32 %v12865_v29, %v9258_v61 }
 0x3f4   :  { %3141 = vrot.lane.b32.xlu1 %v12871_v23, %s6661_s8  ;;  %v12511_v23 = vrot.slane %v9331_v17, 2  ;;  %v4662_v40 = vrot.slane %v4650_v37, 2  ;;  %v4663_v15 = vrot.slane %v4651_v12, 2  ;;  %v9390_v37 = vstv %s6379_s25  ;;  %s6427_s25 = sld [smem:[#allocation3 + $0x18d]] }
 0x3f5   :  { %v9333_v32 = vpop.permute.xlu0 %4336  ;;  %v9335_v62 = vpop.permute.xlu1 %4368 }
 0x3f6   :  { %12872 = vst [vmem:[#allocation55_spill] sm:$0xff] %v9335_v62  ;;  %v4575_v21 = vsel %vm298_vm0, %v4572_v35, %v12511_v23  ;;  %v9396_v35 = vmul.f32 %v8724_v24, %v9215_v16 }
 0x3f7   :  { %3231 = vrot.lane.b32.xlu0 %v12873_v6, %s6663_s14  ;;  %v3272_v6 = vsel %vm298_vm0, %v3270_v25, %v3271_v41 }
 0x3f8   :  { %4580 = vrot.lane.b32.xlu1 %v12874_v13, %s6662_s12  ;;  %v4620_v13 = vrot.slane %v9341_v4, 2  ;;  %v12510_v4 = vrot.slane %v9367_v44, 2  ;;  %v12512_v16 = vrot.slane %v9396_v35, 2 }
 0x3f9   :  { %v9359_v57 = vpop.permute.xlu0 %4370  ;;  %v9361_v34 = vpop.permute.xlu1 %4334 }
 0x3fa   :  { %12875 = vst [vmem:[#allocation65_spill] sm:$0xff] %v9359_v57  ;;  %12876 = vst [vmem:[#allocation45_spill] sm:$0xff] %v9361_v34  ;;  %v4621_v25 = vsel %vm298_vm0, %v4619_v51, %v4620_v13  ;;  %v4666_v12 = vsel %vm298_vm0, %v4663_v15, %v12510_v4  ;;  %v3337_v51 = vmul.f32 %v8689_v19, %v9390_v37 }
 0x3fb   :  { %3235 = vrot.lane.b32.xlu0 %v3226_v2, %s6663_s14  ;;  %v4664_v2 = vsel %vm298_vm0, %v4662_v40, %v4663_v15  ;;  %v3338_v15 = vmul.f32 %v8694_v10, %v9390_v37 }
 0x3fc   :  { %3281 = vrot.lane.b32.xlu1 %v3272_v6, %s6664_s16  ;;  %v3349_v53 = vrot.slane %v3337_v51, 4 }
 0x3fd   :  { %v9374_v47 = vpop.permute.xlu0 %3015  ;;  %v9376_v33 = vpop.permute.xlu1 %3047  ;;  %v3350_v26 = vrot.slane %v3338_v15, 4  ;;  %v4653_v15 = vmul.f32 %v12864_v8, %v9343_v11 }
 0x3fe   :  { %12877 = vst [vmem:[#allocation36_spill] sm:$0xff] %v9374_v47 }
 0x3ff   :  { %4584 = vrot.lane.b32.xlu0 %v4575_v21, %s6662_s12 }
 0x400   :  { %4630 = vrot.lane.b32.xlu1 %v4621_v25, %s6663_s14  ;;  %v12881_v25 = vrot.slane %v9179_v48, 2  ;;  %v9423_v48 = vmul.f32 %v8856_v0, %v9258_v61  ;;  %v4654_v61 = vmul.f32 %v12865_v29, %v9343_v11 }
 0x401   :  { %v9383_v6 = vpop.permute.xlu0 %3049  ;;  %v9385_v50 = vpop.permute.xlu1 %4338 }
 0x402   :  { %12878 = vst [vmem:[#allocation68_spill] sm:$0xff] %v9385_v50 }
 0x403   :  { %4672 = vrot.lane.b32.xlu0 %v4664_v2, %s6664_s16  ;;  %v12882_v2 = vrot.slane %v9243_v60, 2  ;;  %v12885_v60 = vrot.slane %v9256_v59, 2 }
 0x404   :  { %4674 = vrot.lane.b32.xlu1 %v4666_v12, %s6664_s16  ;;  %v9415_v12 = vmul.f32 %v12858_v46, %v9390_v37 }
 0x405   :  { %v9398_v21 = vpop.permute.xlu0 %4374  ;;  %v9400_v40 = vpop.permute.xlu1 %4406 }
 0x406   :  { %12879 = vst [vmem:[#allocation67_spill] sm:$0xff] %v9398_v21  ;;  %12880 = vst [vmem:[#allocation54_spill] sm:$0xff] %v9400_v40  ;;  %v12514_v51 = vrot.slane %v9415_v12, 4 }
 0x407   :  { %3189 = vrot.lane.b32.xlu0 %v12881_v25, %s6662_s12  ;;  %v12886_v25 = vrot.slane %v9287_v31, 2  ;;  %v12513_v31 = vrot.slane %v9423_v48, 2 }
 0x408   :  { %3279 = vrot.lane.b32.xlu1 %v12882_v2, %s6664_s16  ;;  %v3274_v2 = vsel %vm298_vm0, %v3271_v41, %v12512_v16  ;;  %v3353_v41 = vsel %vm527_vm1, %v3350_v26, %v12514_v51  ;;  %v4668_v16 = vrot.slane %v4654_v61, 2 }
 0x409   :  { %v9417_v4 = vpop.permute.xlu0 %4408  ;;  %v9419_v23 = vpop.permute.xlu1 %3013 }
 0x40a   :  { %12883 = vst [vmem:[#allocation73_spill] sm:$0xff] %v9417_v4  ;;  %12884 = vst [vmem:[#allocation58_spill] sm:$0xff] %v9419_v23 }
 0x40b   :  { %4538 = vrot.lane.b32.xlu0 %v12885_v60, %s6661_s8  ;;  %v3351_v60 = vsel %vm527_vm1, %v3349_v53, %v3350_v26  ;;  %v4623_v53 = vsel %vm298_vm0, %v4620_v13, %v12513_v31  ;;  %v3340_v26 = vmul.f32 %v8710_v7, %v9390_v37 }
 0x40c   :  { %4628 = vrot.lane.b32.xlu1 %v12886_v25, %s6663_s14  ;;  %v4667_v25 = vrot.slane %v4653_v15, 2  ;;  %v3341_v15 = vmul.f32 %v8719_v20, %v9390_v37 }
 0x40d   :  { %v9439_v49 = vpop.permute.xlu0 %4372  ;;  %v9441_v59 = vpop.permute.xlu1 %3017  ;;  %v3354_v7 = vrot.slane %v3340_v26, 4 }
 0x40e   :  { %12887 = vst [vmem:[#allocation61_spill] sm:$0xff] %v9439_v49  ;;  %12888 = vst [vmem:[#allocation70_spill] sm:$0xff] %v9441_v59  ;;  %v9457_v59 = vstv %s6380_s26  ;;  %s6390_s26 = sld [smem:[#allocation3 + $0x116]] }
 0x40f   :  { %3283 = vrot.lane.b32.xlu0 %v3274_v2, %s6664_s16  ;;  %v4669_v2 = vsel %vm298_vm0, %v4667_v25, %v4668_v16  ;;  %v3385_v13 = vmul.f32 %v8689_v19, %v9457_v59  ;;  %v12893_v25 = vrot.slane %v9314_v56, 2  ;;  %v9480_v20 = vmul.f32 %v12858_v46, %v9457_v59 }
 0x410   :  { %3359 = vrot.lane.b32.xlu1 %v3351_v60, %s6661_s8  ;;  %v12896_v56 = vrot.slane %v9331_v17, 2  ;;  %v12897_v46 = vrot.slane %v9367_v44, 2 }
 0x411   :  { %v9450_v54 = vpop.permute.xlu0 %3053  ;;  %v9452_v45 = vpop.permute.xlu1 %4376  ;;  %v3397_v19 = vrot.slane %v3385_v13, 4 }
 0x412   :  { %12889 = vst [vmem:[#allocation79_spill] sm:$0xff] %v9450_v54  ;;  %12890 = vst [vmem:[#allocation53_spill] sm:$0xff] %v9452_v45 }
 0x413   :  { %3361 = vrot.lane.b32.xlu0 %v3353_v41, %s6661_s8  ;;  %v3386_v41 = vmul.f32 %v8694_v10, %v9457_v59  ;;  %v9488_v10 = vmul.f32 %v8856_v0, %v9343_v11 }
 0x414   :  { %4632 = vrot.lane.b32.xlu1 %v4623_v53, %s6663_s14  ;;  %v3355_v53 = vrot.slane %v3341_v15, 4  ;;  %v12517_v15 = vrot.slane %v9480_v20, 4 }
 0x415   :  { %v9466_v61 = vpop.permute.xlu0 %4412  ;;  %v9468_v60 = vpop.permute.xlu1 %4444 }
 0x416   :  { %12891 = vst [vmem:[#allocation76_spill] sm:$0xff] %v9466_v61  ;;  %12892 = vst [vmem:[#allocation85_spill] sm:$0xff] %v9468_v60  ;;  %v3398_v61 = vrot.slane %v3386_v41, 4  ;;  %v3356_v26 = vsel %vm527_vm1, %v3354_v7, %v3355_v53 }
 0x417   :  { %4678 = vrot.lane.b32.xlu0 %v4669_v2, %s6664_s16  ;;  %v9490_v2 = vstv %s6425_s27  ;;  %s6435_s27 = sld [smem:[#allocation3 + $0x195]] }
 0x418   :  { %3237 = vrot.lane.b32.xlu1 %v12893_v25, %s6663_s14  ;;  %v4734_v13 = vmul.f32 %v12866_v1, %v9490_v2  ;;  %v4735_v11 = vmul.f32 %v12867_v22, %v9490_v2  ;;  %v3399_v17 = vsel %vm527_vm1, %v3397_v19, %v3398_v61  ;;  %v9512_v44 = vmul.f32 %v12868_v36, %v9490_v2 }
 0x419   :  { %v9482_v31 = vpop.permute.xlu0 %4446  ;;  %v9484_v51 = vpop.permute.xlu1 %3051  ;;  %v3401_v1 = vsel %vm527_vm1, %v3398_v61, %v12517_v15 }
 0x41a   :  { %12894 = vst [vmem:[#allocation60_spill] sm:$0xff] %v9482_v31  ;;  %12895 = vst [vmem:[#allocation71_spill] sm:$0xff] %v9484_v51  ;;  %v4746_v22 = vrot.slane %v4734_v13, 4  ;;  %v4747_v7 = vrot.slane %v4735_v11, 4  ;;  %v9640_v51 = vld [vmem:[%s12457_s0 + $0x70] sm:$0xff] }
 0x41b   :  { %4586 = vrot.lane.b32.xlu0 %v12896_v56, %s6662_s12  ;;  %v12516_v56 = vrot.slane %v9488_v10, 2 }
 0x41c   :  { %4676 = vrot.lane.b32.xlu1 %v12897_v46, %s6664_s16  ;;  %v4748_v61 = vsel %vm527_vm1, %v4746_v22, %v4747_v7  ;;  %v9556_v22 = vld [vmem:[%s12457_s0 + $0xc8] sm:$0xff] }
 0x41d   :  { %v9504_v41 = vpop.permute.xlu0 %4340  ;;  %v9506_v25 = vpop.permute.xlu1 %4410  ;;  %v4671_v36 = vsel %vm298_vm0, %v4668_v16, %v12516_v56  ;;  %v9576_v56 = vld [vmem:[%s12457_s0 + $0x48] sm:$0xff] }
 0x41e   :  { %12898 = vst [vmem:[#allocation72_spill] sm:$0xff] %v9504_v41  ;;  %12899 = vst [vmem:[#allocation82_spill] sm:$0xff] %v9506_v25  ;;  %v12515_v41 = vrot.slane %v9512_v44, 4  ;;  %v9593_v25 = vld [vmem:[%s12457_s0 + $0x50] sm:$0xff] }
 0x41f   :  { %3365 = vrot.lane.b32.xlu0 %v3356_v26, %s6661_s8  ;;  %v9530_v26 = vmul.f32 %v8724_v24, %v9390_v37  ;;  %v9549_v37 = vld [vmem:[%s12457_s0 + $0xc0] sm:$0xff]  ;;  %v12906_v24 = vrot.slane %v9396_v35, 2 }
 0x420   :  { %3407 = vrot.lane.b32.xlu1 %v3399_v17, %s6662_s12  ;;  %v4750_v16 = vsel %vm527_vm1, %v4747_v7, %v12515_v41  ;;  %v9541_v17 = vstv %s6381_s28  ;;  %v9560_v7 = vmul.f32 %v9556_v22, %v9457_v59  ;;  %s6391_s28 = sld [smem:[#allocation3 + $0x117]] }
 0x421   :  { %v9519_v46 = vpop.permute.xlu0 %3055  ;;  %v9521_v19 = vpop.permute.xlu1 %3131  ;;  %v3434_v15 = vmul.f32 %v9576_v56, %v9541_v17  ;;  %v9597_v35 = vmul.f32 %v9593_v25, %v9541_v17 }
 0x422   :  { %12900 = vst [vmem:[#allocation66_spill] sm:$0xff] %v9519_v46  ;;  %12901 = vst [vmem:[#allocation77_spill] sm:$0xff] %v9521_v19  ;;  %v12908_v19 = vrot.slane %v9415_v12, 4  ;;  %v12911_v46 = vrot.slane %v9423_v48, 2 }
 0x423   :  { %3409 = vrot.lane.b32.xlu0 %v3401_v1, %s6662_s12  ;;  %v3388_v1 = vmul.f32 %v9549_v37, %v9457_v59 }
 0x424   :  { %4680 = vrot.lane.b32.xlu1 %v4671_v36, %s6664_s16 }
 0x425   :  { %v9534_v13 = vpop.permute.xlu0 %3133  ;;  %v9536_v11 = vpop.permute.xlu1 %4414 }
 0x426   :  { %12902 = vst [vmem:[#allocation78_spill] sm:$0xff] %v9534_v13  ;;  %12903 = vst [vmem:[#allocation75_spill] sm:$0xff] %v9536_v11  ;;  %v3402_v11 = vrot.slane %v3388_v1, 4  ;;  %v9607_v1 = vmul.f32 %v12865_v29, %v9490_v2 }
 0x427   :  { %4756 = vrot.lane.b32.xlu0 %v4748_v61, %s6661_s8 }
 0x428   :  { %4758 = vrot.lane.b32.xlu1 %v4750_v16, %s6661_s8  ;;  %v9569_v16 = vld [vmem:[%s12457_s0 + $0x40] sm:$0xff]  ;;  %v12917_v49 = vrot.slane %v9607_v1, 4 }
 0x429   :  { %v9562_v36 = vpop.permute.xlu0 %4450  ;;  %v9564_v61 = vpop.permute.xlu1 %3019  ;;  %v3433_v41 = vmul.f32 %v9569_v16, %v9541_v17 }
 0x42a   :  { %12904 = vst [vmem:[#allocation83_spill] sm:$0xff] %v9562_v36  ;;  %12905 = vst [vmem:[#allocation84_spill] sm:$0xff] %v9564_v61  ;;  %v12907_v61 = vrot.slane %v9530_v26, 4  ;;  %v3403_v36 = vrot.slane %v9560_v7, 4  ;;  %v9609_v7 = vstv %s6426_s29  ;;  %s6436_s29 = sld [smem:[#allocation3 + $0x196]] }
 0x42b   :  { %3285 = vrot.lane.b32.xlu0 %v12906_v24, %s6664_s16  ;;  %v4737_v24 = vmul.f32 %v12864_v8, %v9490_v2  ;;  %v3445_v12 = vrot.slane %v3433_v41, 4  ;;  %v9627_v41 = vld [vmem:[%s12457_s0 + $0x68] sm:$0xff]  ;;  %v9644_v45 = vmul.f32 %v9640_v51, %v9609_v7 }
 0x42c   :  { %v3358_v13 = vsel %vm527_vm1, %v3355_v53, %v12907_v61  ;;  %3363 = vrot.lane.b32.xlu1 %v12908_v19, %s6661_s8  ;;  %v3446_v19 = vrot.slane %v3434_v15, 4  ;;  %v3404_v8 = vsel %vm527_vm1, %v3402_v11, %v3403_v36  ;;  %v9620_v15 = vld [vmem:[%s12457_s0 + $0x60] sm:$0xff]  ;;  %v4783_v48 = vmul.f32 %v9627_v41, %v9609_v7 }
 0x42d   :  { %v9601_v53 = vpop.permute.xlu0 %4378  ;;  %v9603_v61 = vpop.permute.xlu1 %4448  ;;  %v4782_v29 = vmul.f32 %v9620_v15, %v9609_v7  ;;  %v12518_v54 = vrot.slane %v9644_v45, 4 }
 0x42e   :  { %12909 = vst [vmem:[#allocation74_spill] sm:$0xff] %v9601_v53  ;;  %12910 = vst [vmem:[#allocation81_spill] sm:$0xff] %v9603_v61  ;;  %v3447_v11 = vsel %vm527_vm1, %v3445_v12, %v3446_v19  ;;  %v4751_v53 = vrot.slane %v4737_v24, 4  ;;  %v4795_v61 = vrot.slane %v4783_v48, 4  ;;  %v3436_v48 = vmul.f32 %v9549_v37, %v9541_v17 }
 0x42f   :  { %4634 = vrot.lane.b32.xlu0 %v12911_v46, %s6663_s14  ;;  %v4794_v12 = vrot.slane %v4782_v29, 4 }
 0x430   :  { %3367 = vrot.lane.b32.xlu1 %v3358_v13, %s6661_s8  ;;  %v4753_v60 = vsel %vm527_vm1, %v4751_v53, %v12917_v49  ;;  %v4798_v29 = vsel %vm527_vm1, %v4795_v61, %v12518_v54  ;;  %v9672_v49 = vld [vmem:[%s12457_s0 + $0xd0] sm:$0xff]  ;;  %v12923_v54 = vrot.slane %v9488_v10, 2  ;;  %v9719_v10 = vstv %s6427_s25  ;;  %s6389_s25 = sld [smem:[#allocation3 + $0x115]] }
 0x431   :  { %v9631_v46 = vpop.permute.xlu0 %3137  ;;  %v9633_v13 = vpop.permute.xlu1 %3179  ;;  %v9676_v53 = vmul.f32 %v9672_v49, %v9457_v59 }
 0x432   :  { %12912 = vst [vmem:[#allocation80_spill] sm:$0xff] %v9631_v46  ;;  %12913 = vst [vmem:[#allocation86_spill] sm:$0xff] %v9633_v13  ;;  %v12914_v46 = vrot.slane %v9597_v35, 4 }
 0x433   :  { %3413 = vrot.lane.b32.xlu0 %v3404_v8, %s6662_s12  ;;  %v4796_v8 = vsel %vm527_vm1, %v4794_v12, %v4795_v61  ;;  %v9686_v61 = vmul.f32 %v9556_v22, %v9541_v17 }
 0x434   :  { %3455 = vrot.lane.b32.xlu1 %v3447_v11, %s6663_s14  ;;  %v3449_v24 = vsel %vm527_vm1, %v3446_v19, %v12914_v46 }
 0x435   :  { %v9651_v13 = vpop.permute.xlu0 %3181  ;;  %v9653_v31 = vpop.permute.xlu1 %4452 }
 0x436   :  { %12915 = vst [vmem:[#allocation21_spill] sm:$0xff] %v9651_v13  ;;  %12916 = vst [vmem:[#allocation33_spill] sm:$0xff] %v9653_v31 }
 0x437   :  { %3457 = vrot.lane.b32.xlu0 %v3449_v24, %s6663_s14 }
 0x438   :  { %4762 = vrot.lane.b32.xlu1 %v4753_v60, %s6661_s8  ;;  %v9678_v60 = vstv %s6382_s23  ;;  %s6433_s23 = sld [smem:[#allocation3 + $0x193]] }
 0x439   :  { %v9662_v11 = vpop.permute.xlu0 %4528  ;;  %v9664_v19 = vpop.permute.xlu1 %4530  ;;  %v3481_v12 = vmul.f32 %v9569_v16, %v9678_v60  ;;  %v9706_v59 = vmul.f32 %v9593_v25, %v9678_v60 }
 0x43a   :  { %12918 = vst [vmem:[#allocation38_spill] sm:$0xff] %v9662_v11  ;;  %12919 = vst [vmem:[#allocation25_spill] sm:$0xff] %v9664_v19  ;;  %v3450_v19 = vrot.slane %v3436_v48, 4  ;;  %v12519_v11 = vrot.slane %v9686_v61, 4  ;;  %v12927_v48 = vrot.slane %v9512_v44, 4 }
 0x43b   :  { %4804 = vrot.lane.b32.xlu0 %v4796_v8, %s6662_s12  ;;  %v3482_v8 = vmul.f32 %v9576_v56, %v9678_v60 }
 0x43c   :  { %4806 = vrot.lane.b32.xlu1 %v4798_v29, %s6662_s12  ;;  %v12922_v29 = vrot.slane %v9480_v20, 4 }
 0x43d   :  { %v9688_v46 = vpop.permute.xlu0 %3057  ;;  %v9690_v24 = vpop.permute.xlu1 %3135  ;;  %v3494_v31 = vrot.slane %v3482_v8, 4  ;;  %v9763_v8 = vmul.f32 %v9640_v51, %v9719_v10 }
 0x43e   :  { %12920 = vst [vmem:[#allocation23_spill] sm:$0xff] %v9688_v46  ;;  %12921 = vst [vmem:[#allocation32_spill] sm:$0xff] %v9690_v24  ;;  %v12926_v46 = vrot.slane %v9676_v53, 4 }
 0x43f   :  { %3411 = vrot.lane.b32.xlu0 %v12922_v29, %s6662_s12  ;;  %v3493_v29 = vrot.slane %v3481_v12, 4 }
 0x440   :  { %4682 = vrot.lane.b32.xlu1 %v12923_v54, %s6664_s16  ;;  %v3406_v20 = vsel %vm527_vm1, %v3403_v36, %v12926_v46  ;;  %v9717_v54 = vmul.f32 %v8856_v0, %v9490_v2  ;;  %v12520_v36 = vrot.slane %v9706_v59, 4  ;;  %v9732_v46 = vld [vmem:[%s12457_s0 + $0xe0] sm:$0xff]  ;;  %v9739_v2 = vld [vmem:[%s12457_s0 + $0xe8] sm:$0xff] }
 0x441   :  { %v9708_v24 = vpop.permute.xlu0 %4416  ;;  %v9710_v13 = vpop.permute.xlu1 %3139  ;;  %v4785_v0 = vmul.f32 %v9732_v46, %v9609_v7  ;;  %v9743_v44 = vmul.f32 %v9739_v2, %v9609_v7  ;;  %v3495_v12 = vsel %vm527_vm1, %v3493_v29, %v3494_v31 }
 0x442   :  { %12924 = vst [vmem:[#allocation28_spill] sm:$0xff] %v9708_v24  ;;  %12925 = vst [vmem:[#allocation20_spill] sm:$0xff] %v9710_v13  ;;  %v3452_v13 = vsel %vm527_vm1, %v3450_v19, %v12519_v11  ;;  %v12931_v4 = vrot.slane %v9717_v54, 4 }
 0x443   :  { %4760 = vrot.lane.b32.xlu0 %v12927_v48, %s6661_s8  ;;  %v4831_v48 = vmul.f32 %v9627_v41, %v9719_v10  ;;  %v4799_v24 = vrot.slane %v4785_v0, 4  ;;  %v4800_v29 = vrot.slane %v9743_v44, 4  ;;  %v12521_v0 = vrot.slane %v9763_v8, 4 }
 0x444   :  { %3415 = vrot.lane.b32.xlu1 %v3406_v20, %s6662_s12  ;;  %v4830_v20 = vmul.f32 %v9620_v15, %v9719_v10 }
 0x445   :  { %v9745_v19 = vpop.permute.xlu0 %3185  ;;  %v4843_v21 = vrot.slane %v4831_v48, 4 }
 0x446   :  { %12928 = vst [vmem:[#allocation39_spill] sm:$0xff] %v9745_v19  ;;  %v9753_v11 = vpop.permute.xlu1 %3227  ;;  %v3497_v19 = vsel %vm527_vm1, %v3494_v31, %v12520_v36  ;;  %v4801_v31 = vsel %vm527_vm1, %v4799_v24, %v4800_v29  ;;  %v3484_v24 = vmul.f32 %v9549_v37, %v9678_v60 }
 0x447   :  { %12929 = vst [vmem:[#allocation22_spill] sm:$0xff] %v9753_v11  ;;  %3461 = vrot.lane.b32.xlu0 %v3452_v13, %s6663_s14  ;;  %v12932_v11 = vrot.slane %v9607_v1, 4 }
 0x448   :  { %3503 = vrot.lane.b32.xlu1 %v3495_v12, %s6664_s16  ;;  %v4842_v12 = vrot.slane %v4830_v20, 4  ;;  %v9798_v20 = vmul.f32 %v9556_v22, %v9678_v60 }
 0x449   :  { %v9765_v23 = vpop.permute.xlu0 %3229  ;;  %v4755_v13 = vsel %vm527_vm1, %v12932_v11, %v12931_v4  ;;  %v4846_v4 = vsel %vm527_vm1, %v4843_v21, %v12521_v0  ;;  %v9790_v11 = vmul.f32 %v9672_v49, %v9541_v17  ;;  %v12941_v17 = vrot.slane %v9597_v35, 4 }
 0x44a   :  { %12930 = vst [vmem:[#allocation17_spill] sm:$0xff] %v9765_v23  ;;  %v9772_v40 = vpop.permute.xlu1 %4534  ;;  %v4844_v36 = vsel %vm527_vm1, %v4842_v12, %v4843_v21  ;;  %v12938_v21 = vrot.slane %v9530_v26, 4  ;;  %v4833_v26 = vmul.f32 %v9732_v46, %v9719_v10 }
 0x44b   :  { %12933 = vst [vmem:[#allocation34_spill] sm:$0xff] %v9772_v40  ;;  %3505 = vrot.lane.b32.xlu0 %v3497_v19, %s6664_s16 }
 0x44c   :  { %4764 = vrot.lane.b32.xlu1 %v4755_v13, %s6661_s8  ;;  %v9810_v13 = vld [vmem:[%s12457_s0 + $0xf0] sm:$0xff] }
 0x44d   :  { %v9778_v44 = vpop.permute.xlu0 %4576  ;;  %v9814_v12 = vmul.f32 %v9810_v13, %v9609_v7  ;;  %v12942_v7 = vrot.slane %v9644_v45, 4  ;;  %v4847_v45 = vrot.slane %v4833_v26, 4 }
 0x44e   :  { %12934 = vst [vmem:[#allocation29_spill] sm:$0xff] %v9778_v44  ;;  %v9781_v1 = vpop.permute.xlu1 %4578 }
 0x44f   :  { %12935 = vst [vmem:[#allocation50_spill] sm:$0xff] %v9781_v1  ;;  %4810 = vrot.lane.b32.xlu0 %v4801_v31, %s6662_s12  ;;  %v12523_v1 = vrot.slane %v9814_v12, 4 }
 0x450   :  { %4852 = vrot.lane.b32.xlu1 %v4844_v36, %s6663_s14  ;;  %v3498_v36 = vrot.slane %v3484_v24, 4  ;;  %v9825_v24 = vstv %s6428_s30  ;;  %s11333_s30 = sld [smem:[#allocation6 + $0x106]] }
 0x451   :  { %v9794_v19 = vpop.permute.xlu0 %3183  ;;  %v4878_v44 = vmul.f32 %v9620_v15, %v9825_v24 }
 0x452   :  { %12936 = vst [vmem:[#allocation57_spill] sm:$0xff] %v9794_v19  ;;  %v9800_v48 = vpop.permute.xlu1 %4454 }
 0x453   :  { %12937 = vst [vmem:[#allocation35_spill] sm:$0xff] %v9800_v48  ;;  %4854 = vrot.lane.b32.xlu0 %v4846_v4, %s6663_s14  ;;  %v3499_v4 = vrot.slane %v9798_v20, 4  ;;  %v12943_v20 = vrot.slane %v9790_v11, 4 }
 0x454   :  { %3369 = vrot.lane.b32.xlu1 %v12938_v21, %s6661_s8  ;;  %v9823_v21 = vmul.f32 %v9739_v2, %v9719_v10 }
 0x455   :  { %v9816_v31 = vpop.permute.xlu0 %4532 }
 0x456   :  { %12939 = vst [vmem:[#allocation24_spill] sm:$0xff] %v9816_v31  ;;  %v9827_v0 = vpop.permute.xlu1 %3187  ;;  %v12944_v31 = vrot.slane %v9686_v61, 4  ;;  %v9851_v61 = vmul.f32 %v9640_v51, %v9825_v24 }
 0x457   :  { %12940 = vst [vmem:[#allocation43_spill] sm:$0xff] %v9827_v0  ;;  %3459 = vrot.lane.b32.xlu0 %v12941_v17, %s6663_s14  ;;  %v4879_v0 = vmul.f32 %v9627_v41, %v9825_v24  ;;  %v3500_v17 = vsel %vm527_vm1, %v3498_v36, %v3499_v4 }
 0x458   :  { %4808 = vrot.lane.b32.xlu1 %v12942_v7, %s6662_s12  ;;  %v3454_v19 = vsel %vm527_vm1, %v12944_v31, %v12943_v20  ;;  %v4848_v7 = vrot.slane %v9823_v21, 4  ;;  %v4803_v20 = vsel %vm527_vm1, %v4800_v29, %v12523_v1  ;;  %v12522_v40 = vrot.slane %v9851_v61, 4 }
 0x459   :  { %v9845_v35 = vpop.permute.xlu0 %3233  ;;  %v4891_v36 = vrot.slane %v4879_v0, 4 }
 0x45a   :  { %12945 = vst [vmem:[#allocation37_spill] sm:$0xff] %v9845_v35  ;;  %v9853_v31 = vpop.permute.xlu1 %3275  ;;  %v4890_v35 = vrot.slane %v4878_v44, 4  ;;  %v4849_v21 = vsel %vm527_vm1, %v4847_v45, %v4848_v7  ;;  %v9876_v44 = vstv %s6384_s4  ;;  %v9882_v45 = vmul.f32 %v9672_v49, %v9678_v60  ;;  %s6437_s4 = sld [smem:[#allocation3 + $0x197]] }
 0x45b   :  { %12946 = vst [vmem:[#allocation51_spill] sm:$0xff] %v9853_v31  ;;  %3463 = vrot.lane.b32.xlu0 %v3454_v19, %s6663_s14  ;;  %v4894_v29 = vsel %vm527_vm1, %v4891_v36, %v12522_v40  ;;  %v12953_v40 = vrot.slane %v9676_v53, 4 }
 0x45c   :  { %3509 = vrot.lane.b32.xlu1 %v3500_v17, %s6664_s16  ;;  %v4892_v19 = vsel %vm527_vm1, %v4890_v35, %v4891_v36  ;;  %v3573_v35 = vmul.f32 %v9569_v16, %v9876_v44  ;;  %v3574_v36 = vmul.f32 %v9576_v56, %v9876_v44  ;;  %v12524_v60 = vrot.slane %v9882_v45, 4 }
 0x45d   :  { %v9860_v26 = vpop.permute.xlu0 %3277 }
 0x45e   :  { %12947 = vst [vmem:[#allocation40_spill] sm:$0xff] %v9860_v26  ;;  %v9864_v48 = vpop.permute.xlu1 %4536 }
 0x45f   :  { %12948 = vst [vmem:[#allocation31_spill] sm:$0xff] %v9864_v48  ;;  %4812 = vrot.lane.b32.xlu0 %v4803_v20, %s6662_s12 }
 0x460   :  { %4858 = vrot.lane.b32.xlu1 %v4849_v21, %s6663_s14 }
 0x461   :  { %v9869_v17 = vpop.permute.xlu0 %4582 }
 0x462   :  { %12949 = vst [vmem:[#allocation87_spill] sm:$0xff] %v9869_v17  ;;  %v9874_v0 = vpop.permute.xlu1 %4624  ;;  %v9972_v17 = vmul.f32 %v9810_v13, %v9825_v24 }
 0x463   :  { %12950 = vst [vmem:[#allocation88_spill] sm:$0xff] %v9874_v0  ;;  %4900 = vrot.lane.b32.xlu0 %v4892_v19, %s6664_s16  ;;  %v12954_v19 = vrot.slane %v9706_v59, 4  ;;  %v3590_v0 = vrot.slane %v3574_v36, 6  ;;  %v12958_v59 = vrot.slane %v9763_v8, 4 }
 0x464   :  { %4902 = vrot.lane.b32.xlu1 %v4894_v29, %s6664_s16  ;;  %v9901_v29 = vmul.f32 %v9593_v25, %v9876_v44 }
 0x465   :  { %v9884_v20 = vpop.permute.xlu0 %4626 }
 0x466   :  { %12951 = vst [vmem:[#allocation89_spill] sm:$0xff] %v9884_v20  ;;  %v9890_v21 = vpop.permute.xlu1 %3141  ;;  %v3589_v20 = vrot.slane %v3573_v35, 6  ;;  %v3502_v35 = vsel %vm527_vm1, %v3499_v4, %v12524_v60  ;;  %v12526_v36 = vrot.slane %v9901_v29, 6 }
 0x467   :  { %12952 = vst [vmem:[#allocation90_spill] sm:$0xff] %v9890_v21  ;;  %3417 = vrot.lane.b32.xlu0 %v12953_v40, %s6662_s12  ;;  %v9907_v21 = vmul.f32 %v9810_v13, %v9719_v10  ;;  %v12957_v40 = vrot.slane %v9717_v54, 4  ;;  %v4881_v10 = vmul.f32 %v9732_v46, %v9825_v24 }
 0x468   :  { %3507 = vrot.lane.b32.xlu1 %v12954_v19, %s6664_s16  ;;  %v4882_v19 = vmul.f32 %v9739_v2, %v9825_v24  ;;  %v3591_v54 = vsel %vm760_vm2, %v3589_v20, %v3590_v0  ;;  %v3593_v4 = vsel %vm760_vm2, %v3590_v0, %v12526_v36  ;;  %v3577_v0 = vmul.f32 %v9549_v37, %v9876_v44 }
 0x469   :  { %v9903_v1 = vpop.permute.xlu0 %3231 }
 0x46a   :  { %12955 = vst [vmem:[#allocation91_spill] sm:$0xff] %v9903_v1  ;;  %v9909_v53 = vpop.permute.xlu1 %4580  ;;  %v4896_v60 = vrot.slane %v4882_v19, 4 }
 0x46b   :  { %12956 = vst [vmem:[#allocation92_spill] sm:$0xff] %v9909_v53  ;;  %4766 = vrot.lane.b32.xlu0 %v12957_v40, %s6661_s8  ;;  %v12525_v40 = vrot.slane %v9907_v21, 4 }
 0x46c   :  { %4856 = vrot.lane.b32.xlu1 %v12958_v59, %s6663_s14  ;;  %v4895_v59 = vrot.slane %v4881_v10, 4  ;;  %v3578_v10 = vmul.f32 %v9556_v22, %v9876_v44 }
 0x46d   :  { %v9925_v53 = vpop.permute.xlu0 %3235  ;;  %v4851_v20 = vsel %vm527_vm1, %v4848_v7, %v12525_v40 }
 0x46e   :  { %12959 = vst [vmem:[#allocation93_spill] sm:$0xff] %v9925_v53  ;;  %v9929_v8 = vpop.permute.xlu1 %3281 }
 0x46f   :  { %12960 = vst [vmem:[#allocation94_spill] sm:$0xff] %v9929_v8  ;;  %3511 = vrot.lane.b32.xlu0 %v3502_v35, %s6664_s16  ;;  %v9943_v8 = vstv %s6385_s10  ;;  %v4897_v35 = vsel %vm527_vm1, %v4895_v59, %v4896_v60  ;;  %v3596_v59 = vrot.slane %v3577_v0, 6  ;;  %v12969_v0 = vrot.slane %v9851_v61, 4  ;;  %s11542_s10 = sld [smem:[#allocation6 + $0x104]] }
 0x470   :  { %3603 = vrot.lane.b32.xlu1 %v3591_v54, %s6661_s8  ;;  %v3629_v7 = vmul.f32 %v9569_v16, %v9943_v8  ;;  %v3630_v54 = vmul.f32 %v9576_v56, %v9943_v8  ;;  %v9966_v36 = vmul.f32 %v9593_v25, %v9943_v8 }
 0x471   :  { %v9936_v1 = vpop.permute.xlu0 %4584 }
 0x472   :  { %12961 = vst [vmem:[#allocation95_spill] sm:$0xff] %v9936_v1  ;;  %v9941_v53 = vpop.permute.xlu1 %4630  ;;  %v3645_v1 = vrot.slane %v3629_v7, 6  ;;  %v12527_v7 = vrot.slane %v9966_v36, 6 }
 0x473   :  { %12962 = vst [vmem:[#allocation96_spill] sm:$0xff] %v9941_v53  ;;  %3605 = vrot.lane.b32.xlu0 %v3593_v4, %s6661_s8  ;;  %v12965_v4 = vrot.slane %v9790_v11, 4  ;;  %v12968_v11 = vrot.slane %v9814_v12, 4 }
 0x474   :  { %4860 = vrot.lane.b32.xlu1 %v4851_v20, %s6663_s14  ;;  %v3597_v20 = vrot.slane %v3578_v10, 6 }
 0x475   :  { %v9952_v19 = vpop.permute.xlu0 %4672 }
 0x476   :  { %12963 = vst [vmem:[#allocation97_spill] sm:$0xff] %v9952_v19  ;;  %v9958_v40 = vpop.permute.xlu1 %4674  ;;  %v3646_v19 = vrot.slane %v3630_v54, 6  ;;  %v3598_v10 = vsel %vm760_vm2, %v3596_v59, %v3597_v20  ;;  %v10003_v59 = vld [vmem:[%s12457_s0 + $0x58] sm:$0xf] }
 0x477   :  { %12964 = vst [vmem:[#allocation98_spill] sm:$0xff] %v9958_v40  ;;  %4906 = vrot.lane.b32.xlu0 %v4897_v35, %s6664_s16  ;;  %v9974_v40 = vstv %s6430_s11  ;;  %v3576_v26 = vmul.f32 %v10003_v59, %v9876_v44  ;;  %s11548_s11 = sld [smem:[#allocation6 + $0x105]] }
 0x478   :  { %3465 = vrot.lane.b32.xlu1 %v12965_v4, %s6663_s14  ;;  %v4970_v24 = vmul.f32 %v9620_v15, %v9974_v40  ;;  %v4971_v54 = vmul.f32 %v9627_v41, %v9974_v40  ;;  %v9996_v61 = vmul.f32 %v9640_v51, %v9974_v40 }
 0x479   :  { %v9968_v53 = vpop.permute.xlu0 %3189 }
 0x47a   :  { %12966 = vst [vmem:[#allocation99_spill] sm:$0xff] %v9968_v53  ;;  %v9976_v35 = vpop.permute.xlu1 %3279  ;;  %v3647_v53 = vsel %vm760_vm2, %v3645_v1, %v3646_v19  ;;  %v3649_v1 = vsel %vm760_vm2, %v3646_v19, %v12527_v7  ;;  %v4987_v12 = vrot.slane %v4971_v54, 6  ;;  %v12528_v48 = vrot.slane %v9996_v61, 6 }
 0x47b   :  { %12967 = vst [vmem:[#allocation100_spill] sm:$0xff] %v9976_v35  ;;  %4814 = vrot.lane.b32.xlu0 %v12968_v11, %s6662_s12  ;;  %v3594_v54 = vrot.slane %v3576_v26, 6  ;;  %v10034_v7 = vstv %s6386_s17  ;;  %v12978_v26 = vrot.slane %v9901_v29, 6  ;;  %s10836_s17 = sld [smem:[#allocation3 + $0x18a]] }
 0x47c   :  { %4904 = vrot.lane.b32.xlu1 %v12969_v0, %s6664_s16  ;;  %v4986_v0 = vrot.slane %v4970_v24, 6 }
 0x47d   :  { %v9990_v4 = vpop.permute.xlu0 %4538 }
 0x47e   :  { %12970 = vst [vmem:[#allocation101_spill] sm:$0xff] %v9990_v4  ;;  %v9998_v11 = vpop.permute.xlu1 %4628  ;;  %v4988_v19 = vsel %vm760_vm2, %v4986_v0, %v4987_v12  ;;  %v10043_v0 = vmul.f32 %v9556_v22, %v9943_v8 }
 0x47f   :  { %12971 = vst [vmem:[#allocation102_spill] sm:$0xff] %v9998_v11  ;;  %3609 = vrot.lane.b32.xlu0 %v3598_v10, %s6661_s8  ;;  %v12973_v11 = vrot.slane %v9972_v17, 4 }
 0x480   :  { %3659 = vrot.lane.b32.xlu1 %v3647_v53, %s6662_s12  ;;  %v10023_v53 = vmul.f32 %v9672_v49, %v9876_v44 }
 0x481   :  { %v10010_v4 = vpop.permute.xlu0 %3283  ;;  %v4899_v35 = vsel %vm527_vm1, %v4896_v60, %v12973_v11  ;;  %v4990_v60 = vsel %vm760_vm2, %v4987_v12, %v12528_v48  ;;  %v3595_v48 = vsel %vm760_vm2, %v12978_v26, %v3594_v54  ;;  %v12529_v54 = vrot.slane %v10043_v0, 6 }
 0x482   :  { %12972 = vst [vmem:[#allocation103_spill] sm:$0xff] %v10010_v4  ;;  %v10018_v10 = vpop.permute.xlu1 %3359  ;;  %v12981_v4 = vrot.slane %v10023_v53, 6  ;;  %v10066_v26 = vmul.f32 %v9593_v25, %v10034_v7 }
 0x483   :  { %12974 = vst [vmem:[#allocation104_spill] sm:$0xff] %v10018_v10  ;;  %3661 = vrot.lane.b32.xlu0 %v3649_v1, %s6662_s12  ;;  %v3686_v1 = vmul.f32 %v9576_v56, %v10034_v7  ;;  %v10074_v10 = vmul.f32 %v9739_v2, %v9974_v40 }
 0x484   :  { %4908 = vrot.lane.b32.xlu1 %v4899_v35, %s6664_s16  ;;  %v3633_v35 = vmul.f32 %v9549_v37, %v9943_v8 }
 0x485   :  { %v10027_v24 = vpop.permute.xlu0 %3361  ;;  %v12988_v23 = vrot.slane %v10074_v10, 6  ;;  %v13006_v57 = vrot.slane %v10074_v10, 6 }
 0x486   :  { %12975 = vst [vmem:[#allocation105_spill] sm:$0xff] %v10027_v24  ;;  %v10032_v11 = vpop.permute.xlu1 %4632  ;;  %v3652_v29 = vrot.slane %v3633_v35, 6 }
 0x487   :  { %12976 = vst [vmem:[#allocation106_spill] sm:$0xff] %v10032_v11  ;;  %5000 = vrot.lane.b32.xlu0 %v4988_v19, %s6661_s8  ;;  %v3685_v19 = vmul.f32 %v9569_v16, %v10034_v7  ;;  %v12980_v11 = vrot.slane %v9882_v45, 4 }
 0x488   :  { %5002 = vrot.lane.b32.xlu1 %v4990_v60, %s6661_s8  ;;  %v3654_v35 = vsel %vm760_vm2, %v3652_v29, %v12529_v54 }
 0x489   :  { %v10045_v12 = vpop.permute.xlu0 %4678  ;;  %v3701_v45 = vrot.slane %v3685_v19, 6 }
 0x48a   :  { %12977 = vst [vmem:[#allocation107_spill] sm:$0xff] %v10045_v12  ;;  %v10054_v60 = vpop.permute.xlu1 %3237  ;;  %v3600_v12 = vsel %vm760_vm2, %v3597_v20, %v12981_v4  ;;  %v10076_v20 = vstv %s6431_s1  ;;  %v12984_v4 = vrot.slane %v9907_v21, 4  ;;  %s11034_s1 = sld [smem:[#allocation3 + $0x18f]] }
 0x48b   :  { %12979 = vst [vmem:[#allocation108_spill] sm:$0xff] %v10054_v60  ;;  %3513 = vrot.lane.b32.xlu0 %v12980_v11, %s6664_s16  ;;  %v4974_v60 = vmul.f32 %v9732_v46, %v9974_v40  ;;  %v3702_v11 = vrot.slane %v3686_v1, 6  ;;  %v12530_v1 = vrot.slane %v10066_v26, 6  ;;  %v5026_v19 = vmul.f32 %v9620_v15, %v10076_v20 }
 0x48c   :  { %3607 = vrot.lane.b32.xlu1 %v3595_v48, %s6661_s8 }
 0x48d   :  { %v10070_v24 = vpop.permute.xlu0 %4586  ;;  %v4993_v21 = vrot.slane %v4974_v60, 6  ;;  %v3705_v54 = vsel %vm760_vm2, %v3702_v11, %v12530_v1  ;;  %v3632_v60 = vmul.f32 %v10003_v59, %v9943_v8  ;;  %v10134_v1 = vmul.f32 %v9672_v49, %v9943_v8 }
 0x48e   :  { %12982 = vst [vmem:[#allocation109_spill] sm:$0xff] %v10070_v24  ;;  %v10078_v48 = vpop.permute.xlu1 %4676  ;;  %v5027_v24 = vmul.f32 %v9627_v41, %v10076_v20 }
 0x48f   :  { %12983 = vst [vmem:[#allocation110_spill] sm:$0xff] %v10078_v48  ;;  %4862 = vrot.lane.b32.xlu0 %v12984_v4, %s6663_s14  ;;  %v3703_v48 = vsel %vm760_vm2, %v3701_v45, %v3702_v11  ;;  %v3650_v11 = vrot.slane %v3632_v60, 6 }
 0x490   :  { %3611 = vrot.lane.b32.xlu1 %v3600_v12, %s6661_s8  ;;  %v10098_v12 = vmul.f32 %v9640_v51, %v10076_v20  ;;  %v5043_v45 = vrot.slane %v5027_v24, 6 }
 0x491   :  { %v10092_v31 = vpop.permute.xlu0 %3365 }
 0x492   :  { %12985 = vst [vmem:[#allocation111_spill] sm:$0xff] %v10092_v31  ;;  %v10100_v29 = vpop.permute.xlu1 %3407  ;;  %v5042_v31 = vrot.slane %v5026_v19, 6  ;;  %v12531_v50 = vrot.slane %v10098_v12, 6 }
 0x493   :  { %12986 = vst [vmem:[#allocation112_spill] sm:$0xff] %v10100_v29  ;;  %3665 = vrot.lane.b32.xlu0 %v3654_v35, %s6662_s12  ;;  %v4995_v29 = vsel %vm760_vm2, %v4993_v21, %v12988_v23 }
 0x494   :  { %3715 = vrot.lane.b32.xlu1 %v3703_v48, %s6663_s14  ;;  %v10118_v48 = vld [vmem:[%s12457_s0 + $0x78] sm:$0xf]  ;;  %v5044_v24 = vsel %vm760_vm2, %v5042_v31, %v5043_v45  ;;  %v5046_v21 = vsel %vm760_vm2, %v5043_v45, %v12531_v50  ;;  %v12992_v31 = vrot.slane %v9966_v36, 6  ;;  %v3689_v45 = vmul.f32 %v9549_v37, %v10034_v7 }
 0x495   :  { %v10109_v4 = vpop.permute.xlu0 %3409  ;;  %v4973_v19 = vmul.f32 %v10118_v48, %v9974_v40  ;;  %v10149_v50 = vmul.f32 %v9556_v22, %v10034_v7 }
 0x496   :  { %12987 = vst [vmem:[#allocation113_spill] sm:$0xff] %v10109_v4  ;;  %v10120_v35 = vpop.permute.xlu1 %4680 }
 0x497   :  { %12989 = vst [vmem:[#allocation114_spill] sm:$0xff] %v10120_v35  ;;  %3717 = vrot.lane.b32.xlu0 %v3705_v54, %s6663_s14  ;;  %v10138_v54 = vstv %s6387_s3  ;;  %v4991_v60 = vrot.slane %v4973_v19, 6  ;;  %v12996_v19 = vrot.slane %v9996_v61, 6  ;;  %v10181_v61 = vmul.f32 %v9810_v13, %v9974_v40  ;;  %s6446_s3 = sld [smem:[#allocation6 + $0x187]] }
 0x498   :  { %5006 = vrot.lane.b32.xlu1 %v4995_v29, %s6661_s8  ;;  %v3651_v29 = vsel %vm760_vm2, %v12992_v31, %v3650_v11  ;;  %v3742_v36 = vmul.f32 %v9576_v56, %v10138_v54  ;;  %v12995_v11 = vrot.slane %v9972_v17, 4 }
 0x499   :  { %v10127_v23 = vpop.permute.xlu0 %4756  ;;  %v4992_v31 = vsel %vm760_vm2, %v12996_v19, %v4991_v60  ;;  %v13005_v34 = vrot.slane %v10181_v61, 6 }
 0x49a   :  { %12990 = vst [vmem:[#allocation115_spill] sm:$0xff] %v10127_v23  ;;  %v10136_v35 = vpop.permute.xlu1 %4758  ;;  %v12532_v23 = vrot.slane %v10149_v50, 6  ;;  %v3758_v47 = vrot.slane %v3742_v36, 6  ;;  %v10197_v36 = vmul.f32 %v9739_v2, %v10076_v20 }
 0x49b   :  { %12991 = vst [vmem:[#allocation116_spill] sm:$0xff] %v10136_v35  ;;  %5056 = vrot.lane.b32.xlu0 %v5044_v24, %s6662_s12  ;;  %v3741_v24 = vmul.f32 %v9569_v16, %v10138_v54  ;;  %v10170_v16 = vmul.f32 %v9593_v25, %v10138_v54 }
 0x49c   :  { %5058 = vrot.lane.b32.xlu1 %v5046_v21, %s6662_s12 }
 0x49d   :  { %v10151_v35 = vpop.permute.xlu0 %3285 }
 0x49e   :  { %12993 = vst [vmem:[#allocation117_spill] sm:$0xff] %v10151_v35  ;;  %v10158_v21 = vpop.permute.xlu1 %3363  ;;  %v3708_v35 = vrot.slane %v3689_v45, 6  ;;  %v10185_v45 = vstv %s6432_s20  ;;  %s6404_s20 = sld [smem:[#allocation8 + $0x102]] }
 0x49f   :  { %12994 = vst [vmem:[#allocation118_spill] sm:$0xff] %v10158_v21  ;;  %3663 = vrot.lane.b32.xlu0 %v3651_v29, %s6662_s12  ;;  %v12998_v21 = vrot.slane %v10134_v1, 6  ;;  %v12999_v29 = vrot.slane %v10043_v0, 6 }
 0x4a0   :  { %4910 = vrot.lane.b32.xlu1 %v12995_v11, %s6664_s16  ;;  %v3757_v11 = vrot.slane %v3741_v24, 6  ;;  %v3710_v0 = vsel %vm760_vm2, %v3708_v35, %v12532_v23  ;;  %v5030_v24 = vmul.f32 %v9732_v46, %v10076_v20  ;;  %v5083_v35 = vmul.f32 %v9627_v41, %v10185_v45 }
 0x4a1   :  { %v10172_v4 = vpop.permute.xlu0 %4634  ;;  %v3656_v17 = vsel %vm760_vm2, %v12999_v29, %v12998_v21  ;;  %v10212_v21 = vld [vmem:[%s12457_s0 + $0xd8] sm:$0xf] }
 0x4a2   :  { %12997 = vst [vmem:[#allocation119_spill] sm:$0xff] %v10172_v4  ;;  %v10183_v60 = vpop.permute.xlu1 %3367  ;;  %v3759_v29 = vsel %vm760_vm2, %v3757_v11, %v3758_v47  ;;  %v13003_v11 = vrot.slane %v10170_v16, 6  ;;  %v10222_v4 = vmul.f32 %v9640_v51, %v10185_v45  ;;  %v5099_v62 = vrot.slane %v5083_v35, 6 }
 0x4a3   :  { %13000 = vst [vmem:[#allocation120_spill] sm:$0xff] %v10183_v60  ;;  %5004 = vrot.lane.b32.xlu0 %v4992_v31, %s6661_s8  ;;  %v5049_v60 = vrot.slane %v5030_v24, 6 }
 0x4a4   :  { %3667 = vrot.lane.b32.xlu1 %v3656_v17, %s6662_s12  ;;  %v5082_v17 = vmul.f32 %v9620_v15, %v10185_v45  ;;  %v3761_v31 = vsel %vm760_vm2, %v3758_v47, %v13003_v11  ;;  %v3580_v47 = vmul.f32 %v10212_v21, %v9876_v44  ;;  %v12533_v10 = vrot.slane %v10222_v4, 6 }
 0x4a5   :  { %v10199_v19 = vpop.permute.xlu0 %3413 }
 0x4a6   :  { %13001 = vst [vmem:[#allocation121_spill] sm:$0xff] %v10199_v19  ;;  %v10207_v23 = vpop.permute.xlu1 %3455  ;;  %v5050_v19 = vrot.slane %v10197_v36, 6  ;;  %v3688_v36 = vmul.f32 %v10003_v59, %v10034_v7 }
 0x4a7   :  { %13002 = vst [vmem:[#allocation122_spill] sm:$0xff] %v10207_v23  ;;  %3721 = vrot.lane.b32.xlu0 %v3710_v0, %s6663_s14  ;;  %v4997_v0 = vsel %vm760_vm2, %v13006_v57, %v13005_v34  ;;  %v5029_v57 = vmul.f32 %v10118_v48, %v10076_v20 }
 0x4a8   :  { %3771 = vrot.lane.b32.xlu1 %v3759_v29, %s6664_s16  ;;  %v5098_v29 = vrot.slane %v5082_v17, 6  ;;  %v5051_v11 = vsel %vm760_vm2, %v5049_v60, %v5050_v19  ;;  %v3601_v17 = vrot.slane %v3580_v47, 6  ;;  %v5102_v60 = vsel %vm760_vm2, %v5099_v62, %v12533_v10 }
 0x4a9   :  { %v10224_v23 = vpop.permute.xlu0 %3457  ;;  %v10281_v10 = vmul.f32 %v9810_v13, %v10076_v20 }
 0x4aa   :  { %13004 = vst [vmem:[#allocation123_spill] sm:$0xff] %v10224_v23  ;;  %v10233_v24 = vpop.permute.xlu1 %4762  ;;  %v5100_v44 = vsel %vm760_vm2, %v5098_v29, %v5099_v62  ;;  %v3745_v29 = vmul.f32 %v9549_v37, %v10138_v54  ;;  %v13013_v62 = vrot.slane %v10066_v26, 6  ;;  %v13014_v37 = vrot.slane %v10098_v12, 6 }
 0x4ab   :  { %13007 = vst [vmem:[#allocation124_spill] sm:$0xff] %v10233_v24  ;;  %3773 = vrot.lane.b32.xlu0 %v3761_v31, %s6664_s16  ;;  %v3706_v31 = vrot.slane %v3688_v36, 6  ;;  %v10255_v24 = vmul.f32 %v9672_v49, %v10034_v7  ;;  %v5086_v26 = vmul.f32 %v9732_v46, %v10185_v45  ;;  %v10292_v12 = vstv %s6433_s23  ;;  %s6449_s23 = sld [smem:[#allocation8 + $0x83]] }
 0x4ac   :  { %5008 = vrot.lane.b32.xlu1 %v4997_v0, %s6661_s8  ;;  %v5047_v0 = vrot.slane %v5029_v57, 6 }
 0x4ad   :  { %v10243_v34 = vpop.permute.xlu0 %4804  ;;  %v3707_v57 = vsel %vm760_vm2, %v13013_v62, %v3706_v31  ;;  %v10290_v31 = vmul.f32 %v9739_v2, %v10185_v45  ;;  %v5138_v62 = vmul.f32 %v9620_v15, %v10292_v12 }
 0x4ae   :  { %13008 = vst [vmem:[#allocation125_spill] sm:$0xff] %v10243_v34  ;;  %v10246_v35 = vpop.permute.xlu1 %4806 }
 0x4af   :  { %13009 = vst [vmem:[#allocation126_spill] sm:$0xff] %v10246_v35  ;;  %5062 = vrot.lane.b32.xlu0 %v5051_v11, %s6662_s12  ;;  %v13011_v35 = vrot.slane %v10023_v53, 6  ;;  %v10266_v11 = vmul.f32 %v9556_v22, %v10138_v54  ;;  %v5048_v53 = vsel %vm760_vm2, %v13014_v37, %v5047_v0  ;;  %v5139_v37 = vmul.f32 %v9627_v41, %v10292_v12 }
 0x4b0   :  { %5112 = vrot.lane.b32.xlu1 %v5100_v44, %s6663_s14 }
 0x4b1   :  { %v10259_v47 = vpop.permute.xlu0 %3411  ;;  %v3602_v36 = vsel %vm760_vm2, %v13011_v35, %v3601_v17  ;;  %v12534_v17 = vrot.slane %v10255_v24, 6  ;;  %v3764_v35 = vrot.slane %v3745_v29, 6  ;;  %v13017_v29 = vrot.slane %v10149_v50, 6 }
 0x4b2   :  { %13010 = vst [vmem:[#allocation127_spill] sm:$0xff] %v10259_v47  ;;  %v10268_v44 = vpop.permute.xlu1 %4682  ;;  %v10314_v50 = vmul.f32 %v9640_v51, %v10292_v12  ;;  %v5155_v34 = vrot.slane %v5139_v37, 6 }
 0x4b3   :  { %13012 = vst [vmem:[#allocation128_spill] sm:$0xff] %v10268_v44  ;;  %5114 = vrot.lane.b32.xlu0 %v5102_v60, %s6663_s14  ;;  %v3765_v60 = vrot.slane %v10266_v11, 6  ;;  %v12535_v11 = vrot.slane %v10281_v10, 6 }
 0x4b4   :  { %3613 = vrot.lane.b32.xlu1 %v3602_v36, %s6661_s8  ;;  %v3712_v36 = vsel %vm760_vm2, %v13017_v29, %v12534_v17  ;;  %v5154_v17 = vrot.slane %v5138_v62, 6 }
 0x4b5   :  { %v10283_v47 = vpop.permute.xlu0 %4760  ;;  %v5053_v15 = vsel %vm760_vm2, %v5050_v19, %v12535_v11 }
 0x4b6   :  { %13015 = vst [vmem:[#allocation129_spill] sm:$0xff] %v10283_v47  ;;  %v10294_v0 = vpop.permute.xlu1 %3415 }
 0x4b7   :  { %13016 = vst [vmem:[#allocation130_spill] sm:$0xff] %v10294_v0  ;;  %3719 = vrot.lane.b32.xlu0 %v3707_v57, %s6663_s14  ;;  %v3766_v57 = vsel %vm760_vm2, %v3764_v35, %v3765_v60  ;;  %v5105_v0 = vrot.slane %v5086_v26, 6  ;;  %v3636_v35 = vmul.f32 %v10212_v21, %v9943_v8  ;;  %v5156_v8 = vsel %vm760_vm2, %v5154_v17, %v5155_v34 }
 0x4b8   :  { %5060 = vrot.lane.b32.xlu1 %v5048_v53, %s6662_s12  ;;  %v5106_v53 = vrot.slane %v10290_v31, 6  ;;  %v13024_v17 = vrot.slane %v10134_v1, 6  ;;  %v13028_v1 = vrot.slane %v10181_v61, 6 }
 0x4b9   :  { %v10308_v47 = vpop.permute.xlu0 %3461  ;;  %v3657_v62 = vrot.slane %v3636_v35, 6 }
 0x4ba   :  { %13018 = vst [vmem:[#allocation131_spill] sm:$0xff] %v10308_v47  ;;  %v10316_v29 = vpop.permute.xlu1 %3503  ;;  %v5107_v31 = vsel %vm760_vm2, %v5105_v0, %v5106_v53  ;;  %v12536_v47 = vrot.slane %v10314_v50, 6 }
 0x4bb   :  { %13019 = vst [vmem:[#allocation132_spill] sm:$0xff] %v10316_v29  ;;  %3723 = vrot.lane.b32.xlu0 %v3712_v36, %s6663_s14  ;;  %v3744_v36 = vmul.f32 %v10003_v59, %v10138_v54 }
 0x4bc   :  { %3777 = vrot.lane.b32.xlu1 %v3766_v57, %s6664_s16  ;;  %v10334_v57 = vld [vmem:[%s12457_s0 + $0xf8] sm:$0xf]  ;;  %v5158_v11 = vsel %vm760_vm2, %v5155_v34, %v12536_v47 }
 0x4bd   :  { %v10325_v26 = vpop.permute.xlu0 %3505  ;;  %v4977_v0 = vmul.f32 %v10334_v57, %v9974_v40  ;;  %v3762_v44 = vrot.slane %v3744_v36, 6  ;;  %v3658_v40 = vsel %vm760_vm2, %v13024_v17, %v3657_v62  ;;  %v13026_v36 = vrot.slane %v10170_v16, 6 }
 0x4be   :  { %13020 = vst [vmem:[#allocation133_spill] sm:$0xff] %v10325_v26  ;;  %v10336_v19 = vpop.permute.xlu1 %4764 }
 0x4bf   :  { %13021 = vst [vmem:[#allocation134_spill] sm:$0xff] %v10336_v19  ;;  %5064 = vrot.lane.b32.xlu0 %v5053_v15, %s6662_s12  ;;  %v5085_v19 = vmul.f32 %v10118_v48, %v10185_v45  ;;  %v4998_v35 = vrot.slane %v4977_v0, 6  ;;  %v3763_v47 = vsel %vm760_vm2, %v13026_v36, %v3762_v44  ;;  %v13030_v0 = vrot.slane %v10222_v4, 6 }
 0x4c0   :  { %5118 = vrot.lane.b32.xlu1 %v5107_v31, %s6663_s14  ;;  %v10359_v31 = vmul.f32 %v9672_v49, %v10138_v54  ;;  %v10379_v44 = vstv %s6389_s25  ;;  %v3692_v36 = vmul.f32 %v10212_v21, %v10034_v7  ;;  %s6414_s25 = sld [smem:[#allocation3 + $0x180]] }
 0x4c1   :  { %v10343_v37 = vpop.permute.xlu0 %4810  ;;  %v3811_v4 = vmul.f32 %v9576_v56, %v10379_v44 }
 0x4c2   :  { %13022 = vst [vmem:[#allocation135_spill] sm:$0xff] %v10343_v37  ;;  %v10350_v15 = vpop.permute.xlu1 %4852  ;;  %v5103_v37 = vrot.slane %v5085_v19, 6  ;;  %v10383_v19 = vmul.f32 %v9810_v13, %v10185_v45 }
 0x4c3   :  { %13023 = vst [vmem:[#allocation136_spill] sm:$0xff] %v10350_v15  ;;  %5168 = vrot.lane.b32.xlu0 %v5156_v8, %s6664_s16  ;;  %v12537_v8 = vrot.slane %v10359_v31, 6 }
 0x4c4   :  { %5170 = vrot.lane.b32.xlu1 %v5158_v11, %s6664_s16  ;;  %v4999_v11 = vsel %vm760_vm2, %v13028_v1, %v4998_v35  ;;  %v5104_v16 = vsel %vm760_vm2, %v13030_v0, %v5103_v37  ;;  %v5143_v37 = vmul.f32 %v9739_v2, %v10292_v12  ;;  %v12538_v35 = vrot.slane %v10383_v19, 6 }
 0x4c5   :  { %v10361_v34 = vpop.permute.xlu0 %4854  ;;  %v3768_v61 = vsel %vm760_vm2, %v3765_v60, %v12537_v8  ;;  %v3812_v60 = vmul.f32 %v9593_v25, %v10379_v44  ;;  %v5033_v0 = vmul.f32 %v10334_v57, %v10076_v20  ;;  %v3713_v8 = vrot.slane %v3692_v36, 6 }
 0x4c6   :  { %13025 = vst [vmem:[#allocation137_spill] sm:$0xff] %v10361_v34  ;;  %v10366_v15 = vpop.permute.xlu1 %3369  ;;  %v5109_v7 = vsel %vm760_vm2, %v5106_v53, %v12538_v35 }
 0x4c7   :  { %13027 = vst [vmem:[#allocation138_spill] sm:$0xff] %v10366_v15  ;;  %3669 = vrot.lane.b32.xlu0 %v3658_v40, %s6662_s12  ;;  %v5054_v20 = vrot.slane %v5033_v0, 6  ;;  %v13041_v0 = vrot.slane %v10314_v50, 6 }
 0x4c8   :  { %3775 = vrot.lane.b32.xlu1 %v3763_v47, %s6664_s16  ;;  %v5142_v47 = vmul.f32 %v9732_v46, %v10292_v12 }
 0x4c9   :  { %v10374_v62 = vpop.permute.xlu0 %3459 }
 0x4ca   :  { %13029 = vst [vmem:[#allocation139_spill] sm:$0xff] %v10374_v62  ;;  %v10385_v17 = vpop.permute.xlu1 %4808  ;;  %v5161_v46 = vrot.slane %v5142_v47, 6 }
 0x4cb   :  { %13031 = vst [vmem:[#allocation140_spill] sm:$0xff] %v10385_v17  ;;  %5010 = vrot.lane.b32.xlu0 %v4999_v11, %s6661_s8  ;;  %v5162_v11 = vrot.slane %v5143_v37, 6  ;;  %v13037_v37 = vrot.slane %v10255_v24, 6 }
 0x4cc   :  { %5116 = vrot.lane.b32.xlu1 %v5104_v16, %s6663_s14 }
 0x4cd   :  { %v10398_v40 = vpop.permute.xlu0 %3463  ;;  %v3714_v53 = vsel %vm760_vm2, %v13037_v37, %v3713_v8  ;;  %v10444_v8 = vmul.f32 %v9810_v13, %v10292_v12 }
 0x4ce   :  { %13032 = vst [vmem:[#allocation141_spill] sm:$0xff] %v10398_v40  ;;  %v10403_v1 = vpop.permute.xlu1 %3509 }
 0x4cf   :  { %13033 = vst [vmem:[#allocation142_spill] sm:$0xff] %v10403_v1  ;;  %3779 = vrot.lane.b32.xlu0 %v3768_v61, %s6664_s16  ;;  %v5141_v61 = vmul.f32 %v10118_v48, %v10292_v12  ;;  %v10758_v1 = vld [vmem:[%s12457_s0 + $0x60] sm:$0xff] }
 0x4d0   :  { %3823 = vrot.lane.b32.xlu1 %v3811_v4, %s6661_s8  ;;  %v5163_v4 = vsel %vm760_vm2, %v5161_v46, %v5162_v11  ;;  %13093 = vst [vmem:[#allocation197_spill] sm:$0xff] %v10758_v1 }
 0x4d1   :  { %v10411_v16 = vpop.permute.xlu0 %4812  ;;  %v5159_v36 = vrot.slane %v5141_v61, 6 }
 0x4d2   :  { %13034 = vst [vmem:[#allocation143_spill] sm:$0xff] %v10411_v16  ;;  %v10418_v40 = vpop.permute.xlu1 %4858 }
 0x4d3   :  { %13035 = vst [vmem:[#allocation144_spill] sm:$0xff] %v10418_v40  ;;  %3825 = vrot.lane.b32.xlu0 %v3812_v60, %s6661_s8  ;;  %v13039_v60 = vrot.slane %v10281_v10, 6  ;;  %v5160_v24 = vsel %vm760_vm2, %v13041_v0, %v5159_v36  ;;  %v10440_v40 = vstv %s6390_s26  ;;  %v3814_v10 = vmul.f32 %v9556_v22, %v10379_v44  ;;  %s6419_s26 = sld [smem:[#allocation3 + $0x185]] }
 0x4d4   :  { %5120 = vrot.lane.b32.xlu1 %v5109_v7, %s6663_s14  ;;  %v3849_v50 = vmul.f32 %v9576_v56, %v10440_v40  ;;  %v10463_v36 = vstv %s6435_s27  ;;  %v3748_v22 = vmul.f32 %v10212_v21, %v10138_v54  ;;  %v5089_v54 = vmul.f32 %v10334_v57, %v10185_v45  ;;  %s11288_s27 = sld [smem:[#allocation6 + $0x108]] }
 0x4d5   :  { %v10423_v47 = vpop.permute.xlu0 %4900  ;;  %v5055_v7 = vsel %vm760_vm2, %v13039_v60, %v5054_v20  ;;  %v5164_v20 = vrot.slane %v10444_v8, 6  ;;  %v5209_v8 = vmul.f32 %v9640_v51, %v10463_v36  ;;  %v3854_v17 = vmul.f32 %v10212_v21, %v10440_v40 }
 0x4d6   :  { %13036 = vst [vmem:[#allocation145_spill] sm:$0xff] %v10423_v47  ;;  %v10428_v35 = vpop.permute.xlu1 %4902 }
 0x4d7   :  { %13038 = vst [vmem:[#allocation146_spill] sm:$0xff] %v10428_v35  ;;  %5174 = vrot.lane.b32.xlu0 %v5163_v4, %s6664_s16 }
 0x4d8   :  { %3725 = vrot.lane.b32.xlu1 %v3714_v53, %s6663_s14  ;;  %v3850_v53 = vmul.f32 %v9593_v25, %v10440_v40 }
 0x4d9   :  { %v10435_v46 = vpop.permute.xlu0 %3417  ;;  %v4469_v15 = vstv %s6419_s26  ;;  %s11279_s26 = sld [smem:[#allocation6 + $0x107]] }
 0x4da   :  { %13040 = vst [vmem:[#allocation147_spill] sm:$0xff] %v10435_v46  ;;  %v10446_v61 = vpop.permute.xlu1 %3507 }
 0x4db   :  { %13042 = vst [vmem:[#allocation148_spill] sm:$0xff] %v10446_v61  ;;  %5066 = vrot.lane.b32.xlu0 %v5055_v7, %s6662_s12  ;;  %v5165_v7 = vsel %vm760_vm2, %v5162_v11, %v5164_v20 }
 0x4dc   :  { %5172 = vrot.lane.b32.xlu1 %v5160_v24, %s6664_s16  ;;  %v5208_v24 = vmul.f32 %v9627_v41, %v10463_v36 }
 0x4dd   :  { %v10454_v4 = vpop.permute.xlu0 %4766 }
 0x4de   :  { %13043 = vst [vmem:[#allocation149_spill] sm:$0xff] %v10454_v4  ;;  %v10457_v37 = vpop.permute.xlu1 %4856 }
 0x4df   :  { %13044 = vst [vmem:[#allocation150_spill] sm:$0xff] %v10457_v37  ;;  %3829 = vrot.lane.b32.xlu0 %v3814_v10, %s6661_s8  ;;  %v3769_v10 = vrot.slane %v3748_v22, 6  ;;  %v3813_v37 = vmul.f32 %v10003_v59, %v10379_v44  ;;  %v5110_v22 = vrot.slane %v5089_v54, 6 }
 0x4e0   :  { %3861 = vrot.lane.b32.xlu1 %v3849_v50, %s6662_s12 }
 0x4e1   :  { %v10467_v60 = vpop.permute.xlu0 %3511 }
 0x4e2   :  { %13045 = vst [vmem:[#allocation151_spill] sm:$0xff] %v10467_v60  ;;  %v10470_v0 = vpop.permute.xlu1 %3603 }
 0x4e3   :  { %13046 = vst [vmem:[#allocation152_spill] sm:$0xff] %v10470_v0  ;;  %3863 = vrot.lane.b32.xlu0 %v3850_v53, %s6662_s12  ;;  %v13049_v53 = vrot.slane %v10359_v31, 6  ;;  %v3815_v31 = vmul.f32 %v9672_v49, %v10379_v44 }
 0x4e4   :  { %5176 = vrot.lane.b32.xlu1 %v5165_v7, %s6664_s16 }
 0x4e5   :  { %v10480_v50 = vpop.permute.xlu0 %3605  ;;  %v3770_v7 = vsel %vm760_vm2, %v13049_v53, %v3769_v10  ;;  %v10504_v53 = vstv %s6391_s28  ;;  %s11312_s28 = sld [smem:[#allocation6 + $0x103]] }
 0x4e6   :  { %13047 = vst [vmem:[#allocation153_spill] sm:$0xff] %v10480_v50  ;;  %v10482_v11 = vpop.permute.xlu1 %4860 }
 0x4e7   :  { %13048 = vst [vmem:[#allocation154_spill] sm:$0xff] %v10482_v11  ;;  %5220 = vrot.lane.b32.xlu0 %v5208_v24, %s6661_s8  ;;  %v13052_v24 = vrot.slane %v10383_v19, 6 }
 0x4e8   :  { %5222 = vrot.lane.b32.xlu1 %v5209_v8, %s6661_s8 }
 0x4e9   :  { %v10491_v4 = vpop.permute.xlu0 %4906  ;;  %v5111_v8 = vsel %vm760_vm2, %v13052_v24, %v5110_v22 }
 0x4ea   :  { %13050 = vst [vmem:[#allocation155_spill] sm:$0xff] %v10491_v4  ;;  %v10493_v45 = vpop.permute.xlu1 %3465 }
 0x4eb   :  { %13051 = vst [vmem:[#allocation156_spill] sm:$0xff] %v10493_v45  ;;  %3781 = vrot.lane.b32.xlu0 %v3770_v7, %s6664_s16  ;;  %v3887_v7 = vmul.f32 %v9576_v56, %v10504_v53  ;;  %v5145_v56 = vmul.f32 %v10334_v57, %v10292_v12  ;;  %v3851_v12 = vmul.f32 %v10003_v59, %v10440_v40 }
 0x4ec   :  { %3827 = vrot.lane.b32.xlu1 %v3813_v37, %s6661_s8  ;;  %v10512_v37 = vld [vmem:[%s12457_s0 + $0xc8] sm:$0xff] }
 0x4ed   :  { %v10502_v10 = vpop.permute.xlu0 %4814  ;;  %v3852_v19 = vmul.f32 %v10512_v37, %v10440_v40  ;;  %v5166_v11 = vrot.slane %v5145_v56, 6  ;;  %v3853_v56 = vmul.f32 %v9672_v49, %v10440_v40 }
 0x4ee   :  { %13053 = vst [vmem:[#allocation157_spill] sm:$0xff] %v10502_v10  ;;  %v10506_v54 = vpop.permute.xlu1 %4904  ;;  %v5211_v10 = vmul.f32 %v9739_v2, %v10463_v36 }
 0x4ef   :  { %13054 = vst [vmem:[#allocation158_spill] sm:$0xff] %v10506_v54  ;;  %5122 = vrot.lane.b32.xlu0 %v5111_v8, %s6663_s14  ;;  %v3888_v8 = vmul.f32 %v9593_v25, %v10504_v53  ;;  %v10529_v54 = vstv %s6436_s29  ;;  %s11326_s29 = sld [smem:[#allocation6 + $0x102]] }
 0x4f0   :  { %3831 = vrot.lane.b32.xlu1 %v3815_v31, %s6661_s8  ;;  %v5247_v25 = vmul.f32 %v9640_v51, %v10529_v54  ;;  %v5210_v51 = vmul.f32 %v10118_v48, %v10463_v36 }
 0x4f1   :  { %v10519_v22 = vpop.permute.xlu0 %3609 }
 0x4f2   :  { %13055 = vst [vmem:[#allocation159_spill] sm:$0xff] %v10519_v22  ;;  %v10521_v24 = vpop.permute.xlu1 %3659 }
 0x4f3   :  { %13056 = vst [vmem:[#allocation160_spill] sm:$0xff] %v10521_v24  ;;  %3867 = vrot.lane.b32.xlu0 %v3852_v19, %s6662_s12  ;;  %v5246_v19 = vmul.f32 %v9627_v41, %v10529_v54  ;;  %v5167_v41 = vsel %vm760_vm2, %v5164_v20, %v5166_v11  ;;  %v3890_v20 = vmul.f32 %v10512_v37, %v10504_v53  ;;  %v10575_v11 = vld [vmem:[%s12457_s0 + $0x48] sm:$0xff] }
 0x4f4   :  { %3899 = vrot.lane.b32.xlu1 %v3887_v7, %s6663_s14 }
 0x4f5   :  { %v10531_v31 = vpop.permute.xlu0 %3661 }
 0x4f6   :  { %13057 = vst [vmem:[#allocation161_spill] sm:$0xff] %v10531_v31  ;;  %v10535_v45 = vpop.permute.xlu1 %4908 }
 0x4f7   :  { %13058 = vst [vmem:[#allocation162_spill] sm:$0xff] %v10535_v45  ;;  %3901 = vrot.lane.b32.xlu0 %v3888_v8, %s6663_s14  ;;  %v10564_v45 = vstv %s6392_s2  ;;  %s11492_s2 = sld [smem:[#allocation6 + $0x181]] }
 0x4f8   :  { %5226 = vrot.lane.b32.xlu1 %v5211_v10, %s6661_s8  ;;  %v3925_v49 = vmul.f32 %v10575_v11, %v10564_v45 }
 0x4f9   :  { %v10543_v7 = vpop.permute.xlu0 %5000 }
 0x4fa   :  { %13059 = vst [vmem:[#allocation163_spill] sm:$0xff] %v10543_v7  ;;  %v10545_v4 = vpop.permute.xlu1 %5002 }
 0x4fb   :  { %13060 = vst [vmem:[#allocation164_spill] sm:$0xff] %v10545_v4  ;;  %5258 = vrot.lane.b32.xlu0 %v5246_v19, %s6662_s12 }
 0x4fc   :  { %5260 = vrot.lane.b32.xlu1 %v5247_v25, %s6662_s12 }
 0x4fd   :  { %v10551_v8 = vpop.permute.xlu0 %3513 }
 0x4fe   :  { %13061 = vst [vmem:[#allocation165_spill] sm:$0xff] %v10551_v8  ;;  %v10554_v10 = vpop.permute.xlu1 %3607 }
 0x4ff   :  { %13062 = vst [vmem:[#allocation166_spill] sm:$0xff] %v10554_v10  ;;  %3865 = vrot.lane.b32.xlu0 %v3851_v12, %s6662_s12 }
 0x500   :  { %5178 = vrot.lane.b32.xlu1 %v5167_v41, %s6664_s16 }
 0x501   :  { %v10562_v19 = vpop.permute.xlu0 %4862 }
 0x502   :  { %13063 = vst [vmem:[#allocation167_spill] sm:$0xff] %v10562_v19  ;;  %v10566_v25 = vpop.permute.xlu1 %3611  ;;  %v5212_v19 = vmul.f32 %v9810_v13, %v10463_v36 }
 0x503   :  { %13064 = vst [vmem:[#allocation168_spill] sm:$0xff] %v10566_v25  ;;  %5224 = vrot.lane.b32.xlu0 %v5210_v51, %s6661_s8  ;;  %v10587_v51 = vld [vmem:[%s12457_s0 + $0x50] sm:$0xff]  ;;  %v10596_v25 = vstv %s6437_s4  ;;  %s11516_s4 = sld [smem:[#allocation6 + $0x188]] }
 0x504   :  { %3869 = vrot.lane.b32.xlu1 %v3853_v56, %s6662_s12  ;;  %v3926_v56 = vmul.f32 %v10587_v51, %v10564_v45  ;;  %v5286_v40 = vmul.f32 %v10118_v48, %v10596_v25 }
 0x505   :  { %v10579_v12 = vpop.permute.xlu0 %3665 }
 0x506   :  { %13065 = vst [vmem:[#allocation169_spill] sm:$0xff] %v10579_v12  ;;  %v10581_v41 = vpop.permute.xlu1 %3715 }
 0x507   :  { %13066 = vst [vmem:[#allocation170_spill] sm:$0xff] %v10581_v41  ;;  %3905 = vrot.lane.b32.xlu0 %v3890_v20, %s6663_s14  ;;  %v5249_v20 = vmul.f32 %v9739_v2, %v10529_v54  ;;  %v10619_v2 = vld [vmem:[%s12457_s0 + $0x70] sm:$0xff] }
 0x508   :  { %3937 = vrot.lane.b32.xlu1 %v3925_v49, %s6664_s16  ;;  %v10607_v49 = vld [vmem:[%s12457_s0 + $0x68] sm:$0xff]  ;;  %13072 = vst [vmem:[#allocation176_spill] sm:$0xff] %v10619_v2  ;;  %v10788_v24 = vmul.f32 %v10619_v2, %v4469_v15 }
 0x509   :  { %v10594_v8 = vpop.permute.xlu0 %3717  ;;  %13069 = vst [vmem:[#allocation173_spill] sm:$0xff] %v10607_v49  ;;  %v5284_v10 = vmul.f32 %v10607_v49, %v10596_v25  ;;  %v4471_v50 = vmul.f32 %v10607_v49, %v4469_v15 }
 0x50a   :  { %13067 = vst [vmem:[#allocation171_spill] sm:$0xff] %v10594_v8  ;;  %v10598_v46 = vpop.permute.xlu1 %5006  ;;  %v5251_v8 = vmul.f32 %v10334_v57, %v10529_v54 }
 0x50b   :  { %13068 = vst [vmem:[#allocation172_spill] sm:$0xff] %v10598_v46  ;;  %3939 = vrot.lane.b32.xlu0 %v3926_v56, %s6664_s16  ;;  %v3816_v56 = vmul.f32 %v10212_v21, %v10379_v44  ;;  %v10644_v44 = vld [vmem:[%s12457_s0 + $0xd0] sm:$0xff] }
 0x50c   :  { %5228 = vrot.lane.b32.xlu1 %v5212_v19, %s6661_s8  ;;  %v5285_v19 = vmul.f32 %v10619_v2, %v10596_v25  ;;  %13077 = vst [vmem:[#allocation181_spill] sm:$0xff] %v10644_v44 }
 0x50d   :  { %v10611_v60 = vpop.permute.xlu0 %5056 }
 0x50e   :  { %13070 = vst [vmem:[#allocation174_spill] sm:$0xff] %v10611_v60  ;;  %v10613_v4 = vpop.permute.xlu1 %5058 }
 0x50f   :  { %13071 = vst [vmem:[#allocation175_spill] sm:$0xff] %v10613_v4  ;;  %5264 = vrot.lane.b32.xlu0 %v5249_v20, %s6662_s12  ;;  %v3889_v20 = vmul.f32 %v10003_v59, %v10504_v53  ;;  %v5248_v4 = vmul.f32 %v10118_v48, %v10529_v54 }
 0x510   :  { %5296 = vrot.lane.b32.xlu1 %v5284_v10, %s6663_s14 }
 0x511   :  { %v10626_v46 = vpop.permute.xlu0 %3663 }
 0x512   :  { %13073 = vst [vmem:[#allocation177_spill] sm:$0xff] %v10626_v46  ;;  %v10628_v60 = vpop.permute.xlu1 %4910  ;;  %v10666_v46 = vstv %s6438_s19  ;;  %s11144_s19 = sld [smem:[#allocation3 + $0x114]] }
 0x513   :  { %13074 = vst [vmem:[#allocation178_spill] sm:$0xff] %v10628_v60  ;;  %5298 = vrot.lane.b32.xlu0 %v5285_v19, %s6663_s14  ;;  %v3891_v19 = vmul.f32 %v10644_v44, %v10504_v53 }
 0x514   :  { %3833 = vrot.lane.b32.xlu1 %v3816_v56, %s6661_s8  ;;  %v3928_v56 = vmul.f32 %v10512_v37, %v10564_v45 }
 0x515   :  { %v10636_v7 = vpop.permute.xlu0 %5004 }
 0x516   :  { %13075 = vst [vmem:[#allocation179_spill] sm:$0xff] %v10636_v7  ;;  %v10638_v10 = vpop.permute.xlu1 %3667 }
 0x517   :  { %13076 = vst [vmem:[#allocation180_spill] sm:$0xff] %v10638_v10  ;;  %3903 = vrot.lane.b32.xlu0 %v3889_v20, %s6663_s14  ;;  %v5250_v20 = vmul.f32 %v9810_v13, %v10529_v54  ;;  %v10662_v10 = vld [vmem:[%s12457_s0 + $0xe8] sm:$0xff]  ;;  %v4470_v54 = vmul.f32 %v10758_v1, %v4469_v15 }
 0x518   :  { %5262 = vrot.lane.b32.xlu1 %v5248_v4, %s6662_s12  ;;  %13080 = vst [vmem:[#allocation184_spill] sm:$0xff] %v10662_v10  ;;  %v5287_v4 = vmul.f32 %v10662_v10, %v10596_v25 }
 0x519   :  { %v10651_v60 = vpop.permute.xlu0 %3721 }
 0x51a   :  { %13078 = vst [vmem:[#allocation182_spill] sm:$0xff] %v10651_v60  ;;  %v10653_v7 = vpop.permute.xlu1 %3771 }
 0x51b   :  { %13079 = vst [vmem:[#allocation183_spill] sm:$0xff] %v10653_v7  ;;  %3907 = vrot.lane.b32.xlu0 %v3891_v19, %s6663_s14  ;;  %v5322_v19 = vmul.f32 %v10607_v49, %v10666_v46 }
 0x51c   :  { %3943 = vrot.lane.b32.xlu1 %v3928_v56, %s6664_s16  ;;  %v5323_v56 = vmul.f32 %v10619_v2, %v10666_v46 }
 0x51d   :  { %v10668_v60 = vpop.permute.xlu0 %3773 }
 0x51e   :  { %13081 = vst [vmem:[#allocation185_spill] sm:$0xff] %v10668_v60  ;;  %v10670_v61 = vpop.permute.xlu1 %5008 }
 0x51f   :  { %13082 = vst [vmem:[#allocation186_spill] sm:$0xff] %v10670_v61  ;;  %5266 = vrot.lane.b32.xlu0 %v5250_v20, %s6662_s12  ;;  %v3927_v20 = vmul.f32 %v10003_v59, %v10564_v45 }
 0x520   :  { %5302 = vrot.lane.b32.xlu1 %v5287_v4, %s6663_s14 }
 0x521   :  { %v10678_v12 = vpop.permute.xlu0 %5062 }
 0x522   :  { %13083 = vst [vmem:[#allocation187_spill] sm:$0xff] %v10678_v12  ;;  %v10680_v16 = vpop.permute.xlu1 %5112  ;;  %v5213_v12 = vmul.f32 %v10334_v57, %v10463_v36  ;;  %v2906_v36 = vstv %s6368_s5  ;;  %s6450_s5 = sld [smem:[#allocation8 + $0x103]] }
 0x523   :  { %13084 = vst [vmem:[#allocation188_spill] sm:$0xff] %v10680_v16  ;;  %5334 = vrot.lane.b32.xlu0 %v5322_v19, %s6664_s16  ;;  %v10733_v16 = vld [vmem:[%s12457_s0 + $0xc0] sm:$0xff]  ;;  %v10739_v22 = vmul.f32 %v10512_v37, %v2906_v36  ;;  %v10753_v34 = vmul.f32 %v10644_v44, %v2906_v36 }
 0x524   :  { %5336 = vrot.lane.b32.xlu1 %v5323_v56, %s6664_s16  ;;  %v3929_v56 = vmul.f32 %v10644_v44, %v10564_v45 }
 0x525   :  { %v10688_v61 = vpop.permute.xlu0 %5114 }
 0x526   :  { %13085 = vst [vmem:[#allocation189_spill] sm:$0xff] %v10688_v61  ;;  %v10690_v4 = vpop.permute.xlu1 %3613  ;;  %v3072_v61 = vstv %s6373_s24  ;;  %s6451_s24 = sld [smem:[#allocation8 + $0x183]] }
 0x527   :  { %13086 = vst [vmem:[#allocation190_spill] sm:$0xff] %v10690_v4  ;;  %3871 = vrot.lane.b32.xlu0 %v3854_v17, %s6662_s12  ;;  %v5288_v17 = vmul.f32 %v9810_v13, %v10596_v25  ;;  %v4303_v13 = vstv %s6414_s25  ;;  %v3074_v35 = vmul.f32 %v10575_v11, %v3072_v61  ;;  %v10746_v62 = vmul.f32 %v10587_v51, %v3072_v61  ;;  %s11272_s25 = sld [smem:[#allocation6 + $0x101]] }
 0x528   :  { %3941 = vrot.lane.b32.xlu1 %v3927_v20, %s6664_s16  ;;  %v10764_v60 = vmul.f32 %v10607_v49, %v4303_v13  ;;  %v3076_v7 = vmul.f32 %v10733_v16, %v3072_v61  ;;  %v3077_v31 = vmul.f32 %v10512_v37, %v3072_v61  ;;  %v10783_v41 = vmul.f32 %v10619_v2, %v4303_v13 }
 0x529   :  { %v10698_v19 = vpop.permute.xlu0 %3719  ;;  %v3086_v23 = vrot.slane %v3074_v35, 2  ;;  %v4474_v49 = vmul.f32 %v10662_v10, %v4469_v15  ;;  %v10807_v35 = vld [vmem:[%s12457_s0 + $0xf0] sm:$0xff]  ;;  %v10831_v2 = vstv %s10748_s9  ;;  %s11342_s9 = sld [smem:[#allocation3 + $0x194]] }
 0x52a   :  { %13087 = vst [vmem:[#allocation191_spill] sm:$0xff] %v10698_v19  ;;  %v10700_v59 = vpop.permute.xlu1 %5060  ;;  %v2908_v19 = vmul.f32 %v10575_v11, %v2906_v36  ;;  %13095 = vst [vmem:[#allocation199_spill] sm:$0xff] %v10783_v41  ;;  %v10799_v41 = vmul.f32 %v10662_v10, %v4303_v13  ;;  %v3091_v29 = vrot.slane %v3077_v31, 2  ;;  %v13101_v31 = vrot.slane %v10746_v62, 2 }
 0x52b   :  { %13088 = vst [vmem:[#allocation192_spill] sm:$0xff] %v10700_v59  ;;  %5230 = vrot.lane.b32.xlu0 %v5213_v12, %s6661_s8  ;;  %v5325_v59 = vmul.f32 %v10662_v10, %v10666_v46  ;;  %v10718_v12 = vld [vmem:[%s12457_s0 + $0x40] sm:$0xff]  ;;  %13099 = vst [vmem:[#allocation203_spill] sm:$0xff] %v10807_v35  ;;  %v4482_v10 = vrot.slane %v4470_v54, 2 }
 0x52c   :  { %5300 = vrot.lane.b32.xlu1 %v5286_v40, %s6663_s14  ;;  %v10721_v40 = vmul.f32 %v10718_v12, %v2906_v36  ;;  %13098 = vst [vmem:[#allocation202_spill] sm:$0xff] %v10799_v41 }
 0x52d   :  { %v10708_v20 = vpop.permute.xlu0 %3723 }
 0x52e   :  { %13089 = vst [vmem:[#allocation193_spill] sm:$0xff] %v10708_v20  ;;  %v10710_v4 = vpop.permute.xlu1 %3777  ;;  %v3892_v20 = vmul.f32 %v10212_v21, %v10504_v53  ;;  %v3073_v53 = vmul.f32 %v10718_v12, %v3072_v61 }
 0x52f   :  { %13090 = vst [vmem:[#allocation194_spill] sm:$0xff] %v10710_v4  ;;  %3945 = vrot.lane.b32.xlu0 %v3929_v56, %s6664_s16  ;;  %v10728_v56 = vmul.f32 %v10587_v51, %v2906_v36  ;;  %v10736_v4 = vmul.f32 %v10733_v16, %v2906_v36  ;;  %v10772_v36 = vld [vmem:[%s12457_s0 + $0xe0] sm:$0xff] }
 0x530   :  { %5304 = vrot.lane.b32.xlu1 %v5288_v17, %s6663_s14  ;;  %13094 = vst [vmem:[#allocation198_spill] sm:$0xff] %v10772_v36  ;;  %v3085_v26 = vrot.slane %v3073_v53, 2  ;;  %v3090_v53 = vrot.slane %v3076_v7, 2 }
 0x531   :  { %v10741_v17 = vpop.permute.xlu0 %5064 }
 0x532   :  { %13091 = vst [vmem:[#allocation195_spill] sm:$0xff] %v10741_v17  ;;  %v10750_v47 = vpop.permute.xlu1 %5118  ;;  %v10761_v17 = vmul.f32 %v10758_v1, %v4303_v13  ;;  %v4473_v1 = vmul.f32 %v10772_v36, %v4469_v15  ;;  %v3087_v7 = vsel %vm298_vm0, %v3085_v26, %v3086_v23  ;;  %v5289_v26 = vmul.f32 %v10334_v57, %v10596_v25 }
 0x533   :  { %13092 = vst [vmem:[#allocation196_spill] sm:$0xff] %v10750_v47  ;;  %5340 = vrot.lane.b32.xlu0 %v5325_v59, %s6664_s16  ;;  %v10775_v47 = vmul.f32 %v10772_v36, %v4303_v13  ;;  %v5324_v59 = vmul.f32 %v10118_v48, %v10666_v46  ;;  %v4483_v36 = vrot.slane %v4471_v50, 2  ;;  %v10844_v54 = vsel %vm298_vm0, %v3090_v53, %v3091_v29 }
 0x534   :  { %3909 = vrot.lane.b32.xlu1 %v3892_v20, %s6663_s14  ;;  %v10794_v20 = vmul.f32 %v10644_v44, %v3072_v61  ;;  %v5326_v61 = vmul.f32 %v10807_v35, %v10666_v46  ;;  %v12553_v44 = vrot.slane %v10788_v24, 2  ;;  %v4487_v50 = vrot.slane %v4473_v1, 2 }
 0x535   :  { %v10790_v0 = vpop.permute.xlu0 %5168  ;;  %v10851_v1 = vsel %vm298_vm0, %v4482_v10, %v4483_v36 }
 0x536   :  { %13096 = vst [vmem:[#allocation200_spill] sm:$0xff] %v10790_v0  ;;  %v10796_v48 = vpop.permute.xlu1 %5170  ;;  %v3930_v0 = vmul.f32 %v10212_v21, %v10564_v45  ;;  %v2952_v45 = vadd.f32 %v9168_v27, %v2908_v19  ;;  %v5327_v27 = vmul.f32 %v10334_v57, %v10666_v46  ;;  %v10856_v25 = vsel %vm298_vm0, %v4483_v36, %v12553_v44  ;;  %v13120_v44 = vld [vmem:[#allocation58_spill] sm:$0xff] }
 0x537   :  { %13097 = vst [vmem:[#allocation201_spill] sm:$0xff] %v10796_v48  ;;  %5268 = vrot.lane.b32.xlu0 %v5251_v8, %s6662_s12  ;;  %v10812_v48 = vmul.f32 %v10807_v35, %v4469_v15  ;;  %v10818_v8 = vmul.f32 %v10807_v35, %v4303_v13  ;;  %v10827_v15 = vsel %vm298_vm0, %v3086_v23, %v13101_v31  ;;  %v4488_v13 = vrot.slane %v4474_v49, 2 }
 0x538   :  { %5338 = vrot.lane.b32.xlu1 %v5324_v59, %s6664_s16  ;;  %v12552_v59 = vrot.slane %v10794_v20, 2  ;;  %v2951_v23 = vadd.f32 %v9166_v43, %v10721_v40  ;;  %v3301_v43 = vmul.f32 %v10718_v12, %v10831_v2  ;;  %v3302_v49 = vmul.f32 %v10575_v11, %v10831_v2 }
 0x539   :  { %v10821_v41 = vpop.permute.xlu0 %3669  ;;  %v12551_v31 = vrot.slane %v10812_v48, 2  ;;  %v2954_v57 = vadd.f32 %v9212_v42, %v10736_v4  ;;  %v2956_v36 = vadd.f32 %v9229_v58, %v10753_v34  ;;  %v10880_v53 = vsel %vm298_vm0, %v4487_v50, %v4488_v13 }
 0x53a   :  { %13100 = vst [vmem:[#allocation204_spill] sm:$0xff] %v10821_v41  ;;  %v10833_v21 = vpop.permute.xlu1 %3775  ;;  %v2989_v46 = vadd.f32 %v9245_v39, %v2951_v23  ;;  %v10872_v10 = vsel %vm298_vm0, %v3091_v29, %v12552_v59  ;;  %v2955_v42 = vadd.f32 %v9227_v55, %v10739_v22  ;;  %v3313_v4 = vrot.slane %v3301_v43, 4  ;;  %v13121_v41 = vld [vmem:[#allocation79_spill] sm:$0xff] }
 0x53b   :  { %13102 = vst [vmem:[#allocation205_spill] sm:$0xff] %v10833_v21  ;;  %5342 = vrot.lane.b32.xlu0 %v5326_v61, %s6664_s16  ;;  %v2990_v61 = vadd.f32 %v9247_v9, %v2952_v45  ;;  %v10894_v58 = vsel %vm298_vm0, %v4488_v13, %v12551_v31  ;;  %v4349_v9 = vadd.f32 %v9304_v3, %v10764_v60  ;;  %v4697_v60 = vstv %s10836_s17  ;;  %v13172_v21 = vld [vmem:[#allocation50_spill] sm:$0xff]  ;;  %s11619_s17 = sld [smem:[#allocation6 + $0x185]] }
 0x53c   :  { %3947 = vrot.lane.b32.xlu1 %v3930_v0, %s6664_s16  ;;  %v2953_v0 = vadd.f32 %v9210_v5, %v10728_v56  ;;  %v10884_v5 = vmul.f32 %v10587_v51, %v10831_v2  ;;  %v3027_v29 = vadd.f32 %v9318_v14, %v2989_v46  ;;  %v3314_v56 = vrot.slane %v3302_v49, 4 }
 0x53d   :  { %v10862_v19 = vpop.permute.xlu0 %5010  ;;  %v3028_v34 = vadd.f32 %v9320_v30, %v2990_v61  ;;  %v2993_v14 = vadd.f32 %v9289_v18, %v2955_v42  ;;  %v4348_v22 = vadd.f32 %v9302_v38, %v10761_v17  ;;  %v10910_v13 = vadd.f32 %v9291_v63, %v2956_v36  ;;  %v13107_v17 = vld [vmem:[#allocation65_spill] sm:$0xff]  ;;  %v13108_v63 = vld [vmem:[#allocation199_spill] sm:$0xff]  ;;  %v13113_v42 = vld [vmem:[#allocation176_spill] sm:$0xff] }
 0x53e   :  { %13103 = vst [vmem:[#allocation206_spill] sm:$0xff] %v10862_v19  ;;  %v10874_v40 = vpop.permute.xlu1 %5116  ;;  %v2991_v39 = vadd.f32 %v9270_v52, %v2953_v0  ;;  %v2992_v52 = vadd.f32 %v9272_v28, %v2954_v57  ;;  %v3065_v45 = vadd.f32 %v9376_v33, %v3027_v29  ;;  %v12554_v30 = vrot.slane %v10884_v5, 4  ;;  %v13112_v36 = vld [vmem:[#allocation173_spill] sm:$0xff] }
 0x53f   :  { %13104 = vst [vmem:[#allocation207_spill] sm:$0xff] %v10874_v40  ;;  %5306 = vrot.lane.b32.xlu0 %v5289_v26, %s6663_s14  ;;  %v3066_v3 = vadd.f32 %v9383_v6, %v3028_v34  ;;  %v4351_v28 = vadd.f32 %v9333_v32, %v10775_v47  ;;  %v13106_v26 = vld [vmem:[#allocation55_spill] sm:$0xff]  ;;  %v3304_v38 = vmul.f32 %v10733_v16, %v10831_v2  ;;  %v13110_v6 = vld [vmem:[#allocation36_spill] sm:$0xff]  ;;  %v13111_v47 = vld [vmem:[#allocation197_spill] sm:$0xff] }
 0x540   :  { %5344 = vrot.lane.b32.xlu1 %v5327_v27, %s6664_s16  ;;  %v4386_v18 = vadd.f32 %v13106_v26, %v4348_v22  ;;  %v3305_v33 = vmul.f32 %v10512_v37, %v10831_v2  ;;  %v4387_v23 = vadd.f32 %v13107_v17, %v4349_v9  ;;  %v13109_v27 = vld [vmem:[#allocation45_spill] sm:$0xff]  ;;  %v3030_v49 = vadd.f32 %v13110_v6, %v2992_v52  ;;  %v13115_v9 = vld [vmem:[#allocation202_spill] sm:$0xff]  ;;  %v13116_v22 = vld [vmem:[#allocation68_spill] sm:$0xff]  ;;  %s10956_s16 = sld [smem:[#allocation3 + $0x10f]] }
 0x541   :  { %v10900_v55 = vpop.permute.xlu0 %3779  ;;  %v4350_v43 = vadd.f32 %v13109_v27, %v13108_v63  ;;  %v10927_v0 = vsel %vm527_vm1, %v3313_v4, %v3314_v56  ;;  %v3101_v32 = vadd.f32 %v3087_v7, %v3065_v45  ;;  %v4698_v46 = vmul.f32 %v13111_v47, %v4697_v60  ;;  %v13117_v17 = vld [vmem:[#allocation54_spill] sm:$0xff]  ;;  %v13118_v45 = vld [vmem:[#allocation67_spill] sm:$0xff]  ;;  %v13119_v27 = vld [vmem:[#allocation73_spill] sm:$0xff] }
 0x542   :  { %13105 = vst [vmem:[#allocation208_spill] sm:$0xff] %v10900_v55  ;;  %v10907_v50 = vpop.permute.xlu1 %3823  ;;  %v4699_v61 = vmul.f32 %v13112_v36, %v4697_v60  ;;  %v10934_v29 = vmul.f32 %v13113_v42, %v4697_v60  ;;  %v4352_v26 = vadd.f32 %v13116_v22, %v13115_v9  ;;  %v4424_v52 = vadd.f32 %v13117_v17, %v4386_v18  ;;  %v13122_v9 = vld [vmem:[#allocation85_spill] sm:$0xff]  ;;  %v13132_v40 = vld [vmem:[#allocation76_spill] sm:$0xff]  ;;  %v13133_v55 = vld [vmem:[#allocation71_spill] sm:$0xff] }
 0x543   :  { %v3102_v4 = vadd.f32 %v10827_v15, %v3066_v3  ;;  %v10945_v7 = vsel %vm527_vm1, %v3314_v56, %v12554_v30  ;;  %v4389_v63 = vadd.f32 %v13118_v45, %v4351_v28  ;;  %v4425_v6 = vadd.f32 %v13119_v27, %v4387_v23  ;;  %v13123_v18 = vld [vmem:[#allocation181_spill] sm:$0xff] }
 0x544   :  { %v3318_v31 = vrot.slane %v3304_v38, 4  ;;  %v3319_v59 = vrot.slane %v3305_v33, 4  ;;  %v3029_v19 = vadd.f32 %v13120_v44, %v2991_v39  ;;  %v4462_v22 = vadd.f32 %v13122_v9, %v4424_v52  ;;  %v13125_v3 = vld [vmem:[#allocation61_spill] sm:$0xff]  ;;  %v13127_v44 = vld [vmem:[#allocation70_spill] sm:$0xff]  ;;  %v13128_v39 = vld [vmem:[#allocation60_spill] sm:$0xff] }
 0x545   :  { %v10929_v57 = vpop.permute.xlu0 %3825  ;;  %v10954_v15 = vmul.f32 %v13123_v18, %v10831_v2  ;;  %v4388_v28 = vadd.f32 %v13125_v3, %v4350_v43  ;;  %v4710_v17 = vrot.slane %v4698_v46, 4  ;;  %v4711_v23 = vrot.slane %v4699_v61, 4  ;;  %v13129_v52 = vld [vmem:[#allocation198_spill] sm:$0xff]  ;;  %v13130_v2 = vld [vmem:[#allocation184_spill] sm:$0xff]  ;;  %v13131_v9 = vld [vmem:[#allocation53_spill] sm:$0xff] }
 0x546   :  { %v10936_v34 = vpop.permute.xlu1 %5120  ;;  %v4701_v45 = vmul.f32 %v13129_v52, %v4697_v60  ;;  %v4702_v27 = vmul.f32 %v13130_v2, %v4697_v60  ;;  %v4390_v30 = vadd.f32 %v13131_v9, %v4352_v26  ;;  %v3067_v43 = vadd.f32 %v13133_v55, %v3029_v19  ;;  %v13134_v61 = vld [vmem:[#allocation66_spill] sm:$0xff]  ;;  %v13137_v26 = vld [vmem:[#allocation83_spill] sm:$0xff]  ;;  %v13142_v9 = vld [vmem:[#allocation81_spill] sm:$0xff] }
 0x547   :  { %13114 = vst [vmem:[#allocation55_spill] sm:$0xff] %v10936_v34  ;;  %v3068_v34 = vadd.f32 %v13121_v41, %v3030_v49  ;;  %v3031_v41 = vadd.f32 %v13127_v44, %v2993_v14  ;;  %v4463_v49 = vadd.f32 %v13128_v39, %v4425_v6  ;;  %v10972_v46 = vsel %vm527_vm1, %v3318_v31, %v3319_v59  ;;  %v13136_v39 = vld [vmem:[#allocation82_spill] sm:$0xff] }
 0x548   :  { %v4498_v14 = vadd.f32 %v10851_v1, %v4462_v22  ;;  %v10983_v19 = vsel %vm527_vm1, %v4710_v17, %v4711_v23  ;;  %v13138_v31 = vrot.slane %v10934_v29, 4  ;;  %v10994_v22 = vmul.f32 %v10807_v35, %v4697_v60 }
 0x549   :  { %v10958_v56 = vpop.permute.xlu0 %5174  ;;  %v3069_v3 = vadd.f32 %v13134_v61, %v3031_v41  ;;  %v3104_v38 = vadd.f32 %v10844_v54, %v3068_v34  ;;  %v4499_v1 = vadd.f32 %v10856_v25, %v4463_v49  ;;  %v4715_v34 = vrot.slane %v4701_v45, 4  ;;  %v13141_v41 = vld [vmem:[#allocation75_spill] sm:$0xff] }
 0x54a   :  { %13124 = vst [vmem:[#allocation65_spill] sm:$0xff] %v10958_v56  ;;  %v10962_v33 = vpop.permute.xlu1 %3725  ;;  %v4427_v56 = vadd.f32 %v13132_v40, %v4389_v63  ;;  %v10988_v55 = vsel %vm527_vm1, %v4711_v23, %v13138_v31  ;;  %v4716_v63 = vrot.slane %v4702_v27, 4  ;;  %v4428_v17 = vadd.f32 %v13141_v41, %v4390_v30  ;;  %v13150_v41 = vld [vmem:[#allocation86_spill] sm:$0xff] }
 0x54b   :  { %13126 = vst [vmem:[#allocation199_spill] sm:$0xff] %v10962_v33  ;;  %v4426_v33 = vadd.f32 %v13136_v39, %v4388_v28  ;;  %v13140_v28 = vld [vmem:[#allocation72_spill] sm:$0xff]  ;;  %v13143_v39 = vrot.slane %v10746_v62, 2  ;;  %v3105_v6 = vadd.f32 %v10872_v10, %v3069_v3  ;;  %v13145_v25 = vrot.slane %v10954_v15, 4  ;;  %v13148_v62 = vld [vmem:[#allocation33_spill] sm:$0xff]  ;;  %v13149_v10 = vld [vmem:[#allocation74_spill] sm:$0xff] }
 0x54c   :  { %v4465_v40 = vadd.f32 %v13137_v26, %v4427_v56  ;;  %v4353_v56 = vadd.f32 %v13140_v28, %v10818_v8  ;;  %v13144_v26 = vld [vmem:[#allocation77_spill] sm:$0xff]  ;;  %v11010_v60 = vstv %s10956_s16  ;;  %v13146_v8 = vld [vmem:[#allocation78_spill] sm:$0xff]  ;;  %s11644_s16 = sld [smem:[#allocation6 + $0x183]] }
 0x54d   :  { %v10978_v44 = vpop.permute.xlu0 %5066  ;;  %v4464_v61 = vadd.f32 %v13142_v9, %v4426_v33  ;;  %v3103_v23 = vadd.f32 %v13143_v39, %v3067_v43  ;;  %v3149_v31 = vadd.f32 %v13144_v26, %v3101_v32  ;;  %v11007_v49 = vsel %vm527_vm1, %v3319_v59, %v13145_v25  ;;  %v13147_v33 = vld [vmem:[#allocation84_spill] sm:$0xff]  ;;  %v13151_v26 = vld [vmem:[#allocation23_spill] sm:$0xff] }
 0x54e   :  { %13135 = vst [vmem:[#allocation45_spill] sm:$0xff] %v10978_v44  ;;  %v10990_v54 = vpop.permute.xlu1 %5172  ;;  %v3150_v30 = vadd.f32 %v13146_v8, %v3102_v4  ;;  %v3032_v27 = vadd.f32 %v13147_v33, %v10910_v13  ;;  %v4466_v43 = vadd.f32 %v13148_v62, %v4428_v17  ;;  %v4501_v32 = vadd.f32 %v10880_v53, %v4465_v40  ;;  %v13153_v40 = vld [vmem:[#allocation80_spill] sm:$0xff]  ;;  %v13156_v62 = vld [vmem:[#allocation22_spill] sm:$0xff] }
 0x54f   :  { %13139 = vst [vmem:[#allocation36_spill] sm:$0xff] %v10990_v54  ;;  %v4391_v3 = vadd.f32 %v13149_v10, %v4353_v56  ;;  %v3197_v59 = vadd.f32 %v13150_v41, %v3149_v31  ;;  %v11024_v9 = vsel %vm527_vm1, %v4715_v34, %v4716_v63  ;;  %v13152_v25 = vrot.slane %v10788_v24, 2  ;;  %v13154_v31 = vld [vmem:[#allocation21_spill] sm:$0xff]  ;;  %v13155_v8 = vld [vmem:[#allocation28_spill] sm:$0xff]  ;;  %v13157_v24 = vld [vmem:[#allocation38_spill] sm:$0xff] }
 0x550   :  { %v3070_v4 = vadd.f32 %v13151_v26, %v3032_v27  ;;  %v3529_v17 = vmul.f32 %v10718_v12, %v11010_v60  ;;  %v3530_v53 = vmul.f32 %v10575_v11, %v11010_v60  ;;  %v3152_v56 = vadd.f32 %v13153_v40, %v3104_v38  ;;  %v13158_v41 = vld [vmem:[#allocation25_spill] sm:$0xff]  ;;  %v13161_v40 = vld [vmem:[#allocation35_spill] sm:$0xff]  ;;  %v13166_v44 = vld [vmem:[#allocation20_spill] sm:$0xff] }
 0x551   :  { %v11012_v45 = vpop.permute.xlu0 %3829  ;;  %v4500_v13 = vadd.f32 %v13152_v25, %v4464_v61  ;;  %v3198_v34 = vadd.f32 %v13154_v31, %v3150_v30  ;;  %v4429_v33 = vadd.f32 %v13155_v8, %v4391_v3  ;;  %v3245_v10 = vadd.f32 %v13156_v62, %v3197_v59  ;;  %v13160_v38 = vld [vmem:[#allocation17_spill] sm:$0xff]  ;;  %v13162_v31 = vld [vmem:[#allocation51_spill] sm:$0xff] }
 0x552   :  { %v11019_v28 = vpop.permute.xlu1 %3861  ;;  %v4546_v61 = vadd.f32 %v13157_v24, %v4498_v14  ;;  %v4547_v26 = vadd.f32 %v13158_v41, %v4499_v1  ;;  %v4502_v12 = vadd.f32 %v10894_v58, %v4466_v43  ;;  %v11047_v25 = vmul.f32 %v10587_v51, %v11010_v60  ;;  %v13164_v1 = vld [vmem:[#allocation32_spill] sm:$0xff]  ;;  %v13167_v54 = vld [vmem:[#allocation39_spill] sm:$0xff] }
 0x553   :  { %v3246_v30 = vadd.f32 %v13160_v38, %v3198_v34  ;;  %v4467_v3 = vadd.f32 %v13161_v40, %v4429_v33  ;;  %v3293_v59 = vadd.f32 %v13162_v31, %v3245_v10  ;;  %v13163_v8 = vrot.slane %v10994_v22, 4  ;;  %v13168_v38 = vld [vmem:[#allocation34_spill] sm:$0xff]  ;;  %v13169_v10 = vld [vmem:[#allocation40_spill] sm:$0xff] }
 0x554   :  { %v3151_v62 = vadd.f32 %v13164_v1, %v3103_v23  ;;  %v13165_v58 = vrot.slane %v10794_v20, 2  ;;  %v3545_v24 = vrot.slane %v3529_v17, 6  ;;  %v3546_v41 = vrot.slane %v3530_v53, 6  ;;  %v13173_v1 = vld [vmem:[#allocation57_spill] sm:$0xff] }
 0x555   :  { %v11040_v27 = vpop.permute.xlu0 %3863  ;;  %v11057_v14 = vsel %vm527_vm1, %v4716_v63, %v13163_v8  ;;  %v3200_v34 = vadd.f32 %v13167_v54, %v3152_v56  ;;  %v4549_v33 = vadd.f32 %v13168_v38, %v4501_v32  ;;  %v3294_v40 = vadd.f32 %v13169_v10, %v3246_v30  ;;  %v13171_v63 = vld [vmem:[#allocation29_spill] sm:$0xff]  ;;  %v13176_v54 = vld [vmem:[#allocation43_spill] sm:$0xff]  ;;  %v13180_v10 = vld [vmem:[#allocation104_spill] sm:$0xff] }
 0x556   :  { %v11049_v39 = vpop.permute.xlu1 %5176  ;;  %v3106_v43 = vadd.f32 %v13165_v58, %v3070_v4  ;;  %v4594_v8 = vadd.f32 %v13171_v63, %v4546_v61  ;;  %v4595_v23 = vadd.f32 %v13172_v21, %v4547_v26  ;;  %v3199_v20 = vadd.f32 %v13173_v1, %v3151_v62  ;;  %v13178_v58 = vld [vmem:[#allocation37_spill] sm:$0xff]  ;;  %v13179_v38 = vld [vmem:[#allocation31_spill] sm:$0xff] }
 0x557   :  { %13159 = vst [vmem:[#allocation197_spill] sm:$0xff] %v11049_v39  ;;  %v3153_v39 = vadd.f32 %v13166_v44, %v3105_v6  ;;  %v12555_v4 = vrot.slane %v11047_v25, 6  ;;  %v13175_v6 = vld [vmem:[#allocation24_spill] sm:$0xff]  ;;  %v13177_v32 = vrot.slane %v10812_v48, 2  ;;  %v3329_v30 = vadd.f32 %v10927_v0, %v3293_v59 }
 0x558   :  { %v4548_v44 = vadd.f32 %v13175_v6, %v4500_v13  ;;  %v3248_v61 = vadd.f32 %v13178_v58, %v3200_v34  ;;  %v4550_v21 = vadd.f32 %v13179_v38, %v4502_v12  ;;  %v3547_v26 = vsel %vm760_vm2, %v3545_v24, %v3546_v41  ;;  %v13183_v12 = vld [vmem:[#allocation88_spill] sm:$0xff]  ;;  %v13184_v24 = vld [vmem:[#allocation89_spill] sm:$0xff]  ;;  %v13188_v58 = vld [vmem:[#allocation91_spill] sm:$0xff] }
 0x559   :  { %v11066_v31 = vpop.permute.xlu0 %5220  ;;  %v3201_v53 = vadd.f32 %v13176_v54, %v3153_v39  ;;  %v11078_v56 = vadd.f32 %v13177_v32, %v4467_v3  ;;  %v11085_v62 = vstv %s11034_s1  ;;  %v3377_v63 = vadd.f32 %v13180_v10, %v3329_v30  ;;  %v13182_v3 = vld [vmem:[#allocation87_spill] sm:$0xff]  ;;  %v13187_v54 = vld [vmem:[#allocation112_spill] sm:$0xff]  ;;  %v13189_v38 = vld [vmem:[#allocation94_spill] sm:$0xff]  ;;  %s11655_s1 = sld [smem:[#allocation6 + $0x186]] }
 0x55a   :  { %13170 = vst [vmem:[#allocation173_spill] sm:$0xff] %v11066_v31  ;;  %v11072_v17 = vpop.permute.xlu1 %5222  ;;  %v3330_v13 = vadd.f32 %v10945_v7, %v3294_v40  ;;  %v3533_v39 = vmul.f32 %v10733_v16, %v11010_v60  ;;  %v11093_v48 = vmul.f32 %v10512_v37, %v11010_v60  ;;  %v4597_v59 = vadd.f32 %v13182_v3, %v4549_v33  ;;  %v13186_v40 = vld [vmem:[#allocation90_spill] sm:$0xff]  ;;  %v13190_v10 = vld [vmem:[#allocation105_spill] sm:$0xff] }
 0x55b   :  { %13174 = vst [vmem:[#allocation176_spill] sm:$0xff] %v11072_v17  ;;  %v4642_v34 = vadd.f32 %v13183_v12, %v4594_v8  ;;  %v4643_v1 = vadd.f32 %v13184_v24, %v4595_v23  ;;  %v3549_v6 = vsel %vm760_vm2, %v3546_v41, %v12555_v4  ;;  %v3154_v16 = vadd.f32 %v13186_v40, %v3106_v43  ;;  %v13191_v12 = vld [vmem:[#allocation122_spill] sm:$0xff]  ;;  %v13199_v31 = vld [vmem:[#allocation93_spill] sm:$0xff] }
 0x55c   :  { %v3425_v32 = vadd.f32 %v13187_v54, %v3377_v63  ;;  %v4926_v30 = vmul.f32 %v13111_v47, %v11085_v62  ;;  %v4927_v33 = vmul.f32 %v13112_v36, %v11085_v62  ;;  %v3247_v8 = vadd.f32 %v13188_v58, %v3199_v20  ;;  %v11123_v47 = vld [vmem:[%s12457_s0 + $0x58] sm:$0xf]  ;;  %v13194_v54 = vld [vmem:[#allocation97_spill] sm:$0xff] }
 0x55d   :  { %v11095_v0 = vpop.permute.xlu0 %3781  ;;  %v3296_v23 = vadd.f32 %v13189_v38, %v3248_v61  ;;  %v3378_v3 = vadd.f32 %v13190_v10, %v3330_v13  ;;  %v11116_v41 = vmul.f32 %v13113_v42, %v11085_v62  ;;  %v3552_v24 = vrot.slane %v3533_v39, 6  ;;  %v13193_v13 = vld [vmem:[#allocation92_spill] sm:$0xff]  ;;  %v13195_v38 = vld [vmem:[#allocation98_spill] sm:$0xff] }
 0x55e   :  { %13181 = vst [vmem:[#allocation202_spill] sm:$0xff] %v11095_v0  ;;  %v11103_v7 = vpop.permute.xlu1 %3827  ;;  %v3473_v43 = vadd.f32 %v13191_v12, %v3425_v32  ;;  %v3553_v63 = vrot.slane %v11093_v48, 6  ;;  %v3532_v20 = vmul.f32 %v11123_v47, %v11010_v60  ;;  %v4596_v40 = vadd.f32 %v13193_v13, %v4548_v44  ;;  %v13196_v32 = vld [vmem:[#allocation113_spill] sm:$0xff]  ;;  %v13198_v48 = vld [vmem:[#allocation132_spill] sm:$0xff]  ;;  %v13200_v13 = vld [vmem:[#allocation123_spill] sm:$0xff] }
 0x55f   :  { %13185 = vst [vmem:[#allocation68_spill] sm:$0xff] %v11103_v7  ;;  %v4690_v58 = vadd.f32 %v13194_v54, %v4642_v34  ;;  %v4691_v10 = vadd.f32 %v13195_v38, %v4643_v1  ;;  %v3426_v39 = vadd.f32 %v13196_v32, %v3378_v3  ;;  %v4942_v0 = vrot.slane %v4926_v30, 6  ;;  %v13201_v3 = vld [vmem:[#allocation95_spill] sm:$0xff]  ;;  %v13202_v38 = vld [vmem:[#allocation100_spill] sm:$0xff] }
 0x560   :  { %v3521_v4 = vadd.f32 %v13198_v48, %v3473_v43  ;;  %v4943_v7 = vrot.slane %v4927_v33, 6  ;;  %v11138_v17 = vmul.f32 %v13123_v18, %v11010_v60  ;;  %v3332_v44 = vadd.f32 %v10972_v46, %v3296_v23  ;;  %v13203_v48 = vld [vmem:[#allocation96_spill] sm:$0xff]  ;;  %v13204_v23 = vld [vmem:[#allocation133_spill] sm:$0xff] }
 0x561   :  { %v11127_v61 = vpop.permute.xlu0 %5122  ;;  %v3474_v34 = vadd.f32 %v13200_v13, %v3426_v39  ;;  %v12556_v1 = vrot.slane %v11116_v41, 6  ;;  %v4598_v54 = vadd.f32 %v13201_v3, %v4550_v21  ;;  %v3295_v43 = vadd.f32 %v13202_v38, %v3247_v8  ;;  %v13205_v21 = vld [vmem:[#allocation103_spill] sm:$0xff] }
 0x562   :  { %13192 = vst [vmem:[#allocation54_spill] sm:$0xff] %v11127_v61  ;;  %v11133_v12 = vpop.permute.xlu1 %3831  ;;  %v3249_v61 = vadd.f32 %v13199_v31, %v3201_v53  ;;  %v11149_v30 = vsel %vm760_vm2, %v3552_v24, %v3553_v63  ;;  %v3550_v33 = vrot.slane %v3532_v20, 6  ;;  %v4645_v31 = vadd.f32 %v13203_v48, %v4597_v59  ;;  %v13206_v38 = vld [vmem:[#allocation99_spill] sm:$0xff]  ;;  %v13212_v48 = vld [vmem:[#allocation102_spill] sm:$0xff] }
 0x563   :  { %13197 = vst [vmem:[#allocation67_spill] sm:$0xff] %v11133_v12  ;;  %v11155_v46 = vadd.f32 %v10983_v19, %v4690_v58  ;;  %v11158_v53 = vadd.f32 %v10988_v55, %v4691_v10  ;;  %v3522_v39 = vadd.f32 %v13204_v23, %v3474_v34  ;;  %v3565_v3 = vadd.f32 %v3547_v26, %v3521_v4 }
 0x564   :  { %v3297_v8 = vadd.f32 %v13205_v21, %v3249_v61  ;;  %v11165_v24 = vsel %vm760_vm2, %v4942_v0, %v4943_v7  ;;  %v12557_v20 = vrot.slane %v11138_v17, 6  ;;  %v3202_v59 = vadd.f32 %v13206_v38, %v3154_v16  ;;  %v13208_v0 = vld [vmem:[#allocation152_spill] sm:$0xff] }
 0x565   :  { %v11151_v32 = vpop.permute.xlu0 %3867  ;;  %v11172_v19 = vsel %vm760_vm2, %v4943_v7, %v12556_v1  ;;  %v4930_v55 = vmul.f32 %v13129_v52, %v11085_v62  ;;  %v4931_v58 = vmul.f32 %v13130_v2, %v11085_v62  ;;  %v13207_v4 = vrot.slane %v10884_v5, 4  ;;  %v11189_v7 = vld [vmem:[%s12457_s0 + $0x78] sm:$0xf]  ;;  %v13211_v5 = vld [vmem:[#allocation101_spill] sm:$0xff] }
 0x566   :  { %v11161_v13 = vpop.permute.xlu1 %3899  ;;  %v3621_v61 = vadd.f32 %v13208_v0, %v3565_v3  ;;  %v13209_v10 = vrot.slane %v11047_v25, 6  ;;  %13210 = vst [vmem:[#allocation73_spill] sm:$0xff] %v11189_v7  ;;  %v4929_v52 = vmul.f32 %v11189_v7, %v11085_v62  ;;  %v4644_v23 = vadd.f32 %v13212_v48, %v4596_v40  ;;  %v13213_v25 = vld [vmem:[#allocation107_spill] sm:$0xff] }
 0x567   :  { %v3331_v26 = vadd.f32 %v13207_v4, %v3295_v43  ;;  %v4551_v43 = vadd.f32 %v13211_v5, %v11078_v56  ;;  %v4693_v21 = vadd.f32 %v13213_v25, %v4645_v31  ;;  %v3333_v38 = vadd.f32 %v11007_v49, %v3297_v8  ;;  %v13215_v4 = vld [vmem:[#allocation160_spill] sm:$0xff]  ;;  %v13216_v56 = vld [vmem:[#allocation153_spill] sm:$0xff]  ;;  %v13218_v49 = vld [vmem:[#allocation110_spill] sm:$0xff] }
 0x568   :  { %v11184_v16 = vsel %vm760_vm2, %v13209_v10, %v3550_v33  ;;  %v3566_v33 = vadd.f32 %v3549_v6, %v3522_v39  ;;  %v3677_v0 = vadd.f32 %v13215_v4, %v3621_v61  ;;  %v11206_v10 = vsel %vm760_vm2, %v3553_v63, %v12557_v20  ;;  %v13217_v39 = vld [vmem:[#allocation106_spill] sm:$0xff]  ;;  %v13220_v63 = vld [vmem:[#allocation108_spill] sm:$0xff] }
 0x569   :  { %v11193_v34 = vpop.permute.xlu0 %3901  ;;  %v11210_v1 = vmul.f32 %v10807_v35, %v11085_v62  ;;  %v4949_v5 = vrot.slane %v4930_v55, 6  ;;  %v4950_v31 = vrot.slane %v4931_v58, 6  ;;  %v11214_v6 = vstv %s11144_s19  ;;  %v13219_v61 = vld [vmem:[#allocation170_spill] sm:$0xff]  ;;  %v13221_v35 = vld [vmem:[#allocation161_spill] sm:$0xff]  ;;  %v11227_v55 = vld [vmem:[%s12457_s0 + $0xd8] sm:$0xf] }
 0x56a   :  { %v11199_v3 = vpop.permute.xlu1 %5226  ;;  %v3622_v40 = vadd.f32 %v13216_v56, %v3566_v33  ;;  %v4646_v48 = vadd.f32 %v13217_v39, %v4598_v54  ;;  %v4692_v8 = vadd.f32 %v13218_v49, %v4644_v23  ;;  %v3733_v25 = vadd.f32 %v13219_v61, %v3677_v0  ;;  %13222 = vst [vmem:[#allocation79_spill] sm:$0xff] %v11227_v55  ;;  %v13223_v23 = vld [vmem:[#allocation114_spill] sm:$0xff]  ;;  %v13224_v33 = vld [vmem:[#allocation183_spill] sm:$0xff]  ;;  %v13228_v61 = vld [vmem:[#allocation117_spill] sm:$0xff]  ;;  %s6439_s19 = sld [smem:[#allocation6 + $0x180]] }
 0x56b   :  { %13214 = vst [vmem:[#allocation58_spill] sm:$0xff] %v11199_v3  ;;  %v4947_v4 = vrot.slane %v4929_v52, 6  ;;  %v3250_v20 = vadd.f32 %v13220_v63, %v3202_v59  ;;  %v4729_v12 = vadd.f32 %v11024_v9, %v4693_v21  ;;  %v3536_v54 = vmul.f32 %v11227_v55, %v11010_v60  ;;  %v13226_v56 = vld [vmem:[#allocation171_spill] sm:$0xff]  ;;  %v11246_v60 = vld [vmem:[%s12457_s0 + $0xf8] sm:$0xf] }
 0x56c   :  { %v3678_v7 = vadd.f32 %v13221_v35, %v3622_v40  ;;  %v4694_v52 = vadd.f32 %v13223_v23, %v4646_v48  ;;  %v3789_v0 = vadd.f32 %v13224_v33, %v3733_v25  ;;  %v4952_v59 = vrot.slane %v11210_v1, 6  ;;  %v13225_v35 = vld [vmem:[#allocation109_spill] sm:$0xff]  ;;  %v13227_v49 = vld [vmem:[#allocation111_spill] sm:$0xff] }
 0x56d   :  { %v11219_v3 = vpop.permute.xlu0 %5258  ;;  %v3797_v9 = vmul.f32 %v10575_v11, %v11214_v6  ;;  %v4599_v21 = vadd.f32 %v13225_v35, %v4551_v43  ;;  %v11241_v39 = vsel %vm760_vm2, %v4949_v5, %v4950_v31  ;;  %v4933_v48 = vmul.f32 %v11246_v60, %v11085_v62  ;;  %v13231_v23 = vld [vmem:[#allocation119_spill] sm:$0xff]  ;;  %v13232_v35 = vld [vmem:[#allocation185_spill] sm:$0xff] }
 0x56e   :  { %v11231_v58 = vpop.permute.xlu1 %5260  ;;  %v3734_v40 = vadd.f32 %v13226_v56, %v3678_v7  ;;  %v3380_v1 = vadd.f32 %v13227_v49, %v3332_v44  ;;  %v3298_v25 = vadd.f32 %v13228_v61, %v3250_v20  ;;  %v13229_v11 = vrot.slane %v10934_v29, 4  ;;  %v13233_v20 = vld [vmem:[#allocation121_spill] sm:$0xff]  ;;  %v13236_v61 = vld [vmem:[#allocation128_spill] sm:$0xff] }
 0x56f   :  { %v13230_v7 = vrot.slane %v11116_v41, 6  ;;  %v4647_v33 = vadd.f32 %v13231_v23, %v4599_v21  ;;  %v3557_v55 = vrot.slane %v3536_v54, 6  ;;  %v3798_v62 = vmul.f32 %v10587_v51, %v11214_v6  ;;  %v13234_v21 = vld [vmem:[#allocation115_spill] sm:$0xff]  ;;  %v13235_v54 = vld [vmem:[#allocation116_spill] sm:$0xff] }
 0x570   :  { %v4728_v43 = vadd.f32 %v13229_v11, %v4692_v8  ;;  %v3790_v56 = vadd.f32 %v13232_v35, %v3734_v40  ;;  %v3428_v29 = vadd.f32 %v13233_v20, %v3380_v1  ;;  %v4730_v8 = vadd.f32 %v11057_v14, %v4694_v52  ;;  %v13237_v1 = vld [vmem:[#allocation118_spill] sm:$0xff]  ;;  %v13238_v14 = vld [vmem:[#allocation131_spill] sm:$0xff]  ;;  %v13241_v35 = vld [vmem:[#allocation124_spill] sm:$0xff] }
 0x571   :  { %v11257_v5 = vsel %vm760_vm2, %v13230_v7, %v4947_v4  ;;  %v11259_v63 = vpop.permute.xlu0 %3865  ;;  %v11270_v41 = vsel %vm760_vm2, %v4950_v31, %v4952_v59  ;;  %v3803_v4 = vadd.f32 %v3797_v9, %v3789_v0  ;;  %v4774_v49 = vadd.f32 %v13234_v21, %v11155_v46  ;;  %v13240_v46 = vld [vmem:[#allocation120_spill] sm:$0xff]  ;;  %v13244_v21 = vld [vmem:[#allocation126_spill] sm:$0xff] }
 0x572   :  { %v11265_v44 = vpop.permute.xlu1 %5178  ;;  %v4775_v40 = vadd.f32 %v13235_v54, %v11158_v53  ;;  %v4695_v51 = vadd.f32 %v13236_v61, %v4647_v33  ;;  %v4954_v11 = vrot.slane %v4933_v48, 6  ;;  %v3379_v7 = vadd.f32 %v13237_v1, %v3331_v26  ;;  %v13246_v1 = vld [vmem:[#allocation127_spill] sm:$0xff] }
 0x573   :  { %v3476_v52 = vadd.f32 %v13238_v14, %v3428_v29  ;;  %v13239_v31 = vrot.slane %v10954_v15, 4  ;;  %v3841_v9 = vadd.f32 %v10907_v50, %v3803_v4  ;;  %v3381_v53 = vadd.f32 %v13240_v46, %v3333_v38  ;;  %v13243_v15 = vld [vmem:[#allocation125_spill] sm:$0xff]  ;;  %v13245_v4 = vld [vmem:[#allocation142_spill] sm:$0xff] }
 0x574   :  { %v4777_v33 = vadd.f32 %v13241_v35, %v4729_v12  ;;  %v13242_v48 = vrot.slane %v11138_v17, 6  ;;  %v3804_v26 = vadd.f32 %v3798_v62, %v3790_v56  ;;  %v4823_v50 = vadd.f32 %v13244_v21, %v4775_v40  ;;  %v13248_v56 = vld [vmem:[#allocation129_spill] sm:$0xff] }
 0x575   :  { %v3334_v0 = vadd.f32 %v13239_v31, %v3298_v25  ;;  %v11286_v23 = vpop.permute.xlu0 %5224  ;;  %v4822_v25 = vadd.f32 %v13243_v15, %v4774_v49  ;;  %v3524_v54 = vadd.f32 %v13245_v4, %v3476_v52  ;;  %v3879_v61 = vadd.f32 %v11019_v28, %v3841_v9  ;;  %v13249_v49 = vld [vmem:[#allocation130_spill] sm:$0xff]  ;;  %v13250_v52 = vld [vmem:[#allocation136_spill] sm:$0xff]  ;;  %v13252_v9 = vld [vmem:[#allocation135_spill] sm:$0xff] }
 0x576   :  { %v11295_v20 = vsel %vm760_vm2, %v13242_v48, %v3557_v55  ;;  %v11297_v29 = vpop.permute.xlu1 %3869  ;;  %v3427_v38 = vadd.f32 %v13246_v1, %v3379_v7  ;;  %v13247_v12 = vrot.slane %v10994_v22, 4  ;;  %v11309_v17 = vsel %vm760_vm2, %v4952_v59, %v4954_v11  ;;  %v13251_v22 = vld [vmem:[#allocation134_spill] sm:$0xff]  ;;  %v13253_v11 = vld [vmem:[#allocation137_spill] sm:$0xff]  ;;  %v13256_v15 = vld [vmem:[#allocation139_spill] sm:$0xff] }
 0x577   :  { %v3842_v55 = vadd.f32 %v10929_v57, %v3804_v26  ;;  %v4776_v62 = vadd.f32 %v13248_v56, %v4728_v43  ;;  %v3429_v40 = vadd.f32 %v13249_v49, %v3381_v53  ;;  %v4870_v28 = vadd.f32 %v13250_v52, %v4822_v25  ;;  %v13254_v43 = vld [vmem:[#allocation145_spill] sm:$0xff]  ;;  %v13258_v4 = vld [vmem:[#allocation159_spill] sm:$0xff] }
 0x578   :  { %v11306_v14 = vadd.f32 %v13247_v12, %v4695_v51  ;;  %v3917_v7 = vadd.f32 %v11161_v13, %v3879_v61  ;;  %v4778_v51 = vadd.f32 %v13251_v22, %v4730_v8  ;;  %v11322_v59 = vadd.f32 %v13252_v9, %v4777_v33  ;;  %v13255_v8 = vld [vmem:[#allocation138_spill] sm:$0xff]  ;;  %v13263_v56 = vld [vmem:[#allocation141_spill] sm:$0xff] }
 0x579   :  { %v11318_v31 = vpop.permute.xlu0 %3905  ;;  %v4871_v57 = vadd.f32 %v13253_v11, %v4823_v50  ;;  %v3880_v46 = vadd.f32 %v11040_v27, %v3842_v55  ;;  %v4918_v53 = vadd.f32 %v13254_v43, %v4870_v28  ;;  %v3568_v13 = vadd.f32 %v11149_v30, %v3524_v54  ;;  %v13257_v27 = vld [vmem:[#allocation146_spill] sm:$0xff]  ;;  %v13262_v55 = vld [vmem:[#allocation140_spill] sm:$0xff]  ;;  %v13265_v11 = vld [vmem:[#allocation169_spill] sm:$0xff] }
 0x57a   :  { %v3938_v35 = vpop.permute.xlu1 %3937  ;;  %v11331_v26 = vstv %s11272_s25  ;;  %v11336_v33 = vadd.f32 %v13255_v8, %v3334_v0  ;;  %v3475_v25 = vadd.f32 %v13256_v15, %v3427_v38  ;;  %v11349_v12 = vstv %s11279_s26 }
 0x57b   :  { %v3955_v48 = vadd.f32 %v3938_v35, %v3917_v7  ;;  %v4919_v21 = vadd.f32 %v13257_v27, %v4871_v57  ;;  %v3918_v50 = vadd.f32 %v11193_v34, %v3880_v46  ;;  %v3624_v61 = vadd.f32 %v13258_v4, %v3568_v13  ;;  %13260 = vst [vmem:[#allocation85_spill] sm:$0xff] %v11349_v12  ;;  %v13264_v7 = vld [vmem:[#allocation143_spill] sm:$0xff] }
 0x57c   :  { %v11352_v0 = vstv %s11288_s27  ;;  %v11355_v38 = vadd.f32 %v13262_v55, %v4776_v62  ;;  %v3477_v49 = vadd.f32 %v13263_v56, %v3429_v40  ;;  %v11363_v22 = vadd.f32 %v13264_v7, %v4778_v51  ;;  %v13269_v27 = vld [vmem:[#allocation163_spill] sm:$0xff]  ;;  %v13273_v55 = vld [vmem:[#allocation194_spill] sm:$0xff] }
 0x57d   :  { %v11346_v30 = vsel %vm7539_vm8, %v3955_v48, 0.0  ;;  %v3940_v54 = vpop.permute.xlu0 %3939  ;;  %13261 = vst [vmem:[#allocation181_spill] sm:$0xff] %v11352_v0  ;;  %v4962_v9 = vadd.f32 %v11165_v24, %v4918_v53  ;;  %v3680_v57 = vadd.f32 %v13265_v11, %v3624_v61  ;;  %v3800_v62 = vmul.f32 %v10512_v37, %v11214_v6  ;;  %v13267_v24 = vld [vmem:[#allocation148_spill] sm:$0xff]  ;;  %v13268_v37 = vld [vmem:[#allocation182_spill] sm:$0xff] }
 0x57e   :  { %v3956_v34 = vadd.f32 %v3940_v54, %v3918_v50  ;;  %v11358_v52 = vpop.permute.xlu1 %5228  ;;  %v3979_v28 = vmul.f32 %v11331_v26, %v11346_v30  ;;  %v4215_v35 = vmul.f32 %v11352_v0, %v11346_v30  ;;  %v4175_v51 = vmul.f32 %v11349_v12, %v11346_v30 }
 0x57f   :  { %v11379_v43 = vstv %s11312_s28  ;;  %v3523_v53 = vadd.f32 %v13267_v24, %v3475_v25  ;;  %v4963_v13 = vadd.f32 %v11172_v19, %v4919_v21  ;;  %v3736_v48 = vadd.f32 %v13268_v37, %v3680_v57  ;;  %v13272_v25 = vld [vmem:[#allocation164_spill] sm:$0xff]  ;;  %v13275_v24 = vld [vmem:[#allocation174_spill] sm:$0xff] }
 0x580   :  { %v11371_v40 = vsel %vm7532_vm7, %v3956_v34, 0.0  ;;  %3987 = vrot.lane.b32.xlu0 %v3979_v28, %s6661_s8  ;;  %v5018_v50 = vadd.f32 %v13269_v27, %v4962_v9  ;;  %v11392_v61 = vstv %s11326_s29  ;;  %v4031_v34 = vmul.f32 %v11379_v43, %v11346_v30 }
 0x581   :  { %v11384_v8 = vpop.permute.xlu0 %5264  ;;  %v3980_v15 = vmul.f32 %v11331_v26, %v11371_v40  ;;  %v11396_v54 = vmul.f32 %v11349_v12, %v11371_v40  ;;  %v11400_v19 = vmul.f32 %v11352_v0, %v11371_v40  ;;  %v5019_v21 = vadd.f32 %v13272_v25, %v4963_v13  ;;  %v13276_v25 = vld [vmem:[#allocation175_spill] sm:$0xff] }
 0x582   :  { %v11389_v4 = vpop.permute.xlu1 %5296  ;;  %v3792_v56 = vadd.f32 %v13273_v55, %v3736_v48  ;;  %v11408_v28 = vstv %s11333_s30  ;;  %v4227_v9 = vrot.slane %v4215_v35, 4  ;;  %v4187_v57 = vrot.slane %v4175_v51, 4 }
 0x583   :  { %13270 = vst [vmem:[#allocation61_spill] sm:$0xff] %v11396_v54  ;;  %13271 = vst [vmem:[#allocation70_spill] sm:$0xff] %v11400_v19  ;;  %3989 = vrot.lane.b32.xlu1 %v3980_v15, %s6661_s8  ;;  %v12564_v11 = vrot.slane %v11400_v19, 4  ;;  %v5074_v37 = vadd.f32 %v13275_v24, %v5018_v50  ;;  %v11414_v27 = vstv %s11342_s9  ;;  %v4005_v48 = vmul.f32 %v11392_v61, %v11346_v30  ;;  %s6665_s9 = smov 0.0  }
 0x584   :  { %13274 = vst [vmem:[#allocation60_spill] sm:$0xff] %v11408_v28  ;;  %v11422_v15 = vmul.f32 %v11379_v43, %v11371_v40  ;;  %v5075_v55 = vadd.f32 %v13276_v25, %v5019_v21  ;;  %v13278_v51 = vrot.slane %v11396_v54, 4  ;;  %v11439_v24 = vmul.f32 %v11408_v28, %v11371_v40  ;;  %v13282_v54 = vld [vmem:[#allocation189_spill] sm:$0xff] }
 0x585   :  { %v11416_v13 = vpop.permute.xlu0 %5298  ;;  %v11430_v35 = vsel %vm527_vm1, %v4227_v9, %v12564_v11  ;;  %v3806_v0 = vadd.f32 %v3800_v62, %v3792_v56  ;;  %v4043_v25 = vrot.slane %v4031_v34, 2  ;;  %v4143_v19 = vmul.f32 %v11408_v28, %v11346_v30  ;;  %v13280_v9 = vld [vmem:[#allocation144_spill] sm:$0xff]  ;;  %v13284_v28 = vld [vmem:[#allocation151_spill] sm:$0xff] }
 0x586   :  { %v11425_v7 = vpop.permute.xlu1 %3833  ;;  %13277 = vst [vmem:[#allocation198_spill] sm:$0xff] %v11430_v35  ;;  %v11435_v50 = vsel %vm527_vm1, %v4187_v57, %v13278_v51  ;;  %v12571_v21 = vrot.slane %v11422_v15, 2  ;;  %v4873_v11 = vadd.f32 %v13280_v9, %v11322_v59  ;;  %v3567_v35 = vadd.f32 %v11184_v16, %v3523_v53  ;;  %v13281_v57 = vld [vmem:[#allocation188_spill] sm:$0xff]  ;;  %v13285_v9 = vld [vmem:[#allocation166_spill] sm:$0xff] }
 0x587   :  { %13279 = vst [vmem:[#allocation184_spill] sm:$0xff] %v11435_v50  ;;  %4013 = vrot.lane.b32.xlu1 %v4005_v48, %s6662_s12  ;;  %v5130_v51 = vadd.f32 %v13281_v57, %v5074_v37  ;;  %v12570_v50 = vrot.slane %v11439_v24, 4  ;;  %v5131_v12 = vadd.f32 %v13282_v54, %v5075_v55  ;;  %v3844_v62 = vadd.f32 %v11012_v45, %v3806_v0  ;;  %v13286_v53 = vld [vmem:[#allocation200_spill] sm:$0xff]  ;;  %v13287_v45 = vld [vmem:[#allocation201_spill] sm:$0xff] }
 0x588   :  { %v11457_v34 = vsel %vm298_vm0, %v4043_v25, %v12571_v21  ;;  %v4155_v48 = vrot.slane %v4143_v19, 4  ;;  %v3525_v59 = vadd.f32 %v13284_v28, %v3477_v49  ;;  %v3623_v16 = vadd.f32 %v13285_v9, %v3567_v35  ;;  %v13289_v19 = vld [vmem:[#allocation147_spill] sm:$0xff]  ;;  %v13290_v35 = vld [vmem:[#allocation149_spill] sm:$0xff]  ;;  %v13298_v21 = vld [vmem:[#allocation168_spill] sm:$0xff] }
 0x589   :  { %v11452_v56 = vpop.permute.xlu0 %3903  ;;  %13283 = vst [vmem:[#allocation53_spill] sm:$0xff] %v11457_v34  ;;  %v5186_v37 = vadd.f32 %v13286_v53, %v5130_v51  ;;  %v5194_v57 = vmul.f32 %v13112_v36, %v11414_v27  ;;  %v5187_v0 = vadd.f32 %v13287_v45, %v5131_v12  ;;  %v5195_v55 = vmul.f32 %v13113_v42, %v11414_v27  ;;  %v13291_v51 = vld [vmem:[#allocation177_spill] sm:$0xff]  ;;  %v13292_v42 = vld [vmem:[#allocation150_spill] sm:$0xff] }
 0x58a   :  { %v11464_v54 = vpop.permute.xlu1 %5262  ;;  %v3882_v25 = vadd.f32 %v11151_v32, %v3844_v62  ;;  %v11473_v49 = vsel %vm527_vm1, %v4155_v48, %v12570_v50  ;;  %v3430_v28 = vadd.f32 %v13289_v19, %v11336_v33  ;;  %v4779_v36 = vadd.f32 %v13290_v35, %v11306_v14  ;;  %v13293_v32 = vld [vmem:[#allocation155_spill] sm:$0xff]  ;;  %v13294_v14 = vld [vmem:[#allocation154_spill] sm:$0xff]  ;;  %v13299_v34 = vld [vmem:[#allocation205_spill] sm:$0xff] }
 0x58b   :  { %13288 = vst [vmem:[#allocation76_spill] sm:$0xff] %v11473_v49  ;;  %v3679_v9 = vadd.f32 %v13291_v51, %v3623_v16  ;;  %v3799_v12 = vmul.f32 %v11123_v47, %v11214_v6  ;;  %v4872_v53 = vadd.f32 %v13292_v42, %v11355_v38  ;;  %v4921_v62 = vadd.f32 %v13293_v32, %v4873_v11  ;;  %v13295_v19 = vld [vmem:[#allocation191_spill] sm:$0xff]  ;;  %v13296_v11 = vld [vmem:[#allocation156_spill] sm:$0xff] }
 0x58c   :  { %v11487_v48 = vmul.f32 %v13123_v18, %v11214_v6  ;;  %v3920_v45 = vadd.f32 %v11318_v31, %v3882_v25  ;;  %v4874_v16 = vadd.f32 %v13294_v14, %v11363_v22  ;;  %v3569_v47 = vadd.f32 %v11206_v10, %v3525_v59  ;;  %v13297_v25 = vld [vmem:[#allocation158_spill] sm:$0xff]  ;;  %v13300_v14 = vld [vmem:[#allocation173_spill] sm:$0xff] }
 0x58d   :  { %v11490_v33 = vpop.permute.xlu0 %3907  ;;  %v3735_v35 = vadd.f32 %v13295_v19, %v3679_v9  ;;  %v5200_v38 = vadd.f32 %v5194_v57, %v5186_v37  ;;  %v3478_v42 = vadd.f32 %v13296_v11, %v3430_v28  ;;  %v5201_v32 = vadd.f32 %v5195_v55, %v5187_v0  ;;  %v13301_v59 = vld [vmem:[#allocation157_spill] sm:$0xff]  ;;  %v13302_v57 = vld [vmem:[#allocation176_spill] sm:$0xff] }
 0x58e   :  { %v3944_v51 = vpop.permute.xlu1 %3943  ;;  %v11501_v18 = vmul.f32 %v13130_v2, %v11414_v27  ;;  %v4920_v50 = vadd.f32 %v13297_v25, %v4872_v53  ;;  %v3625_v49 = vadd.f32 %v13298_v21, %v3569_v47  ;;  %v4827_v9 = vadd.f32 %v13301_v59, %v4779_v36  ;;  %v13303_v55 = vld [vmem:[#allocation180_spill] sm:$0xff]  ;;  %v13304_v53 = vld [vmem:[#allocation73_spill] sm:$0xff]  ;;  %v13310_v59 = vld [vmem:[#allocation187_spill] sm:$0xff] }
 0x58f   :  { %v3958_v31 = vadd.f32 %v3944_v51, %v3920_v45  ;;  %v3791_v22 = vadd.f32 %v13299_v34, %v3735_v35  ;;  %v5238_v10 = vadd.f32 %v13300_v14, %v5200_v38  ;;  %v4965_v37 = vadd.f32 %v11241_v39, %v4921_v62  ;;  %v13305_v62 = vld [vmem:[#allocation162_spill] sm:$0xff]  ;;  %v13306_v19 = vld [vmem:[#allocation165_spill] sm:$0xff]  ;;  %v13307_v38 = vld [vmem:[#allocation172_spill] sm:$0xff] }
 0x590   :  { %v5239_v28 = vadd.f32 %v13302_v57, %v5201_v32  ;;  %v3681_v21 = vadd.f32 %v13303_v55, %v3625_v49  ;;  %v11522_v45 = vmul.f32 %v13304_v53, %v11414_v27  ;;  %v4922_v47 = vadd.f32 %v13305_v62, %v4874_v16  ;;  %v13308_v11 = vld [vmem:[#allocation193_spill] sm:$0xff]  ;;  %v13309_v14 = vld [vmem:[#allocation167_spill] sm:$0xff]  ;;  %v13314_v53 = vld [vmem:[#allocation178_spill] sm:$0xff] }
 0x591   :  { %v11512_v0 = vsel %vm7539_vm8, %v3958_v31, 0.0  ;;  %v11514_v2 = vpop.permute.xlu0 %5266  ;;  %v5276_v34 = vadd.f32 %v11219_v3, %v5238_v10  ;;  %v3526_v35 = vadd.f32 %v13306_v19, %v3478_v42  ;;  %v5021_v51 = vadd.f32 %v13307_v38, %v4965_v37  ;;  %v13315_v62 = vld [vmem:[#allocation196_spill] sm:$0xff] }
 0x592   :  { %v11524_v39 = vpop.permute.xlu1 %5302  ;;  %v3981_v36 = vmul.f32 %v11331_v26, %v11512_v0  ;;  %v5277_v49 = vadd.f32 %v11231_v58, %v5239_v28  ;;  %v4964_v3 = vadd.f32 %v11257_v5, %v4920_v50  ;;  %v3737_v32 = vadd.f32 %v13308_v11, %v3681_v21  ;;  %v13311_v58 = vld [vmem:[#allocation208_spill] sm:$0xff]  ;;  %v13313_v28 = vld [vmem:[#allocation203_spill] sm:$0xff]  ;;  %v13317_v11 = vld [vmem:[#allocation65_spill] sm:$0xff] }
 0x593   :  { %v3805_v31 = vadd.f32 %v3799_v12, %v3791_v22  ;;  %v5314_v25 = vadd.f32 %v11389_v4, %v5276_v34  ;;  %v4875_v10 = vadd.f32 %v13309_v14, %v4827_v9  ;;  %v5077_v57 = vadd.f32 %v13310_v59, %v5021_v51  ;;  %v13312_v50 = vld [vmem:[#allocation68_spill] sm:$0xff] }
 0x594   :  { %3991 = vrot.lane.b32.xlu0 %v3981_v36, %s6661_s8  ;;  %v5315_v16 = vadd.f32 %v11416_v13, %v5277_v49  ;;  %v11540_v55 = vstv %s11492_s2  ;;  %v3793_v5 = vadd.f32 %v13311_v58, %v3737_v32  ;;  %v4006_v4 = vmul.f32 %v11392_v61, %v11371_v40 }
 0x595   :  { %v5335_v42 = vpop.permute.xlu0 %5334  ;;  %v3843_v37 = vadd.f32 %v13312_v50, %v3805_v31  ;;  %v4966_v9 = vadd.f32 %v11270_v41, %v4922_v47  ;;  %v3570_v13 = vadd.f32 %v11295_v20, %v3526_v35  ;;  %v11554_v21 = vmul.f32 %v13313_v28, %v11414_v27  ;;  %v13316_v41 = vld [vmem:[#allocation179_spill] sm:$0xff] }
 0x596   :  { %v5352_v12 = vadd.f32 %v5335_v42, %v5314_v25  ;;  %v5337_v22 = vpop.permute.xlu1 %5336  ;;  %v4923_v36 = vadd.f32 %v13314_v53, %v4875_v10  ;;  %v5133_v19 = vadd.f32 %v13315_v62, %v5077_v57  ;;  %v5020_v20 = vadd.f32 %v13316_v41, %v4964_v3  ;;  %v13318_v10 = vld [vmem:[#allocation186_spill] sm:$0xff]  ;;  %v13319_v57 = vld [vmem:[#allocation192_spill] sm:$0xff]  ;;  %v13320_v42 = vld [vmem:[#allocation79_spill] sm:$0xff] }
 0x597   :  { %v5353_v34 = vadd.f32 %v5337_v22, %v5315_v16  ;;  %v3881_v38 = vadd.f32 %v11259_v63, %v3843_v37  ;;  %v11578_v63 = vstv %s11516_s4  ;;  %v3807_v31 = vadd.f32 %v11487_v48, %v3793_v5  ;;  %v13321_v5 = vld [vmem:[#allocation67_spill] sm:$0xff] }
 0x598   :  { %v11563_v51 = vsel %vm7539_vm8, %v5352_v12, 0.0  ;;  %4015 = vrot.lane.b32.xlu0 %v4006_v4, %s6662_s12  ;;  %v5189_v32 = vadd.f32 %v13317_v11, %v5133_v19  ;;  %v5022_v59 = vadd.f32 %v13318_v10, %v4966_v9  ;;  %v5076_v16 = vadd.f32 %v13319_v57, %v5020_v20  ;;  %v13323_v4 = vld [vmem:[#allocation207_spill] sm:$0xff]  ;;  %v13324_v19 = vld [vmem:[#allocation190_spill] sm:$0xff]  ;;  %v13329_v10 = vld [vmem:[#allocation204_spill] sm:$0xff] }
 0x599   :  { %v11569_v47 = vsel %vm7532_vm7, %v5353_v34, 0.0  ;;  %v11571_v35 = vpop.permute.xlu0 %3871  ;;  %v5376_v49 = vmul.f32 %v11540_v55, %v11563_v51  ;;  %v3919_v25 = vadd.f32 %v11452_v56, %v3881_v38  ;;  %v11589_v58 = vmul.f32 %v13320_v42, %v11214_v6  ;;  %v13322_v6 = vld [vmem:[#allocation195_spill] sm:$0xff] }
 0x59a   :  { %v3942_v3 = vpop.permute.xlu1 %3941  ;;  %v5377_v14 = vmul.f32 %v11540_v55, %v11569_v47  ;;  %v11594_v48 = vmul.f32 %v11246_v60, %v11414_v27  ;;  %v4967_v56 = vadd.f32 %v11309_v17, %v4923_v36  ;;  %v3845_v50 = vadd.f32 %v13321_v5, %v3807_v31  ;;  %v13325_v41 = vld [vmem:[#allocation55_spill] sm:$0xff] }
 0x59b   :  { %5384 = vrot.lane.b32.xlu1 %v5376_v49, %s6661_s8  ;;  %v3957_v37 = vadd.f32 %v3942_v3, %v3919_v25  ;;  %v5612_v12 = vmul.f32 %v11578_v63, %v11563_v51  ;;  %v5078_v22 = vadd.f32 %v13322_v6, %v5022_v59  ;;  %v5132_v9 = vadd.f32 %v13323_v4, %v5076_v16  ;;  %v13326_v49 = vld [vmem:[#allocation36_spill] sm:$0xff] }
 0x59c   :  { %5386 = vrot.lane.b32.xlu0 %v5377_v14, %s6661_s8  ;;  %v11606_v34 = vstv %s11542_s10  ;;  %v11610_v60 = vmul.f32 %v11578_v63, %v11569_v47  ;;  %v5203_v17 = vadd.f32 %v11501_v18, %v5189_v32  ;;  %v3883_v27 = vadd.f32 %v11297_v29, %v3845_v50  ;;  %v13327_v18 = vld [vmem:[#allocation58_spill] sm:$0xff]  ;;  %v13331_v50 = vld [vmem:[#allocation197_spill] sm:$0xff]  ;;  %s5737_s10 = sld [smem:[#allocation9]] }
 0x59d   :  { %v11603_v28 = vpop.permute.xlu0 %5230  ;;  %v4007_v36 = vmul.f32 %v11392_v61, %v11512_v0  ;;  %v11617_v62 = vstv %s11548_s11  ;;  %v3626_v38 = vadd.f32 %v13324_v19, %v3570_v13  ;;  %v5134_v20 = vadd.f32 %v13325_v41, %v5078_v22  ;;  %v13330_v13 = vld [vmem:[#allocation206_spill] sm:$0xff]  ;;  %s5739_s11 = sld [smem:[#allocation11]] }
 0x59e   :  { %v5301_v53 = vpop.permute.xlu1 %5300  ;;  %v5188_v11 = vadd.f32 %v13326_v49, %v5132_v9  ;;  %v11625_v31 = vstv %s11556_s13  ;;  %v5241_v32 = vadd.f32 %v13327_v18, %v5203_v17  ;;  %v3921_v29 = vadd.f32 %v11490_v33, %v3883_v27  ;;  %v13333_v17 = vld [vmem:[#allocation45_spill] sm:$0xff] }
 0x59f   :  { %v11631_v3 = vsel %vm7580_vm11, %v3957_v37, 0.0  ;;  %v5624_v14 = vrot.slane %v5612_v12, 4  ;;  %v3682_v59 = vadd.f32 %v13329_v10, %v3626_v38  ;;  %v5023_v57 = vadd.f32 %v13330_v13, %v4967_v56  ;;  %v13332_v12 = vld [vmem:[#allocation199_spill] sm:$0xff]  ;;  %v13335_v13 = vld [vmem:[#allocation54_spill] sm:$0xff] }
 0x5a0   :  { %4017 = vrot.lane.b32.xlu0 %v4007_v36, %s6662_s12  ;;  %v11637_v42 = vstv %s11575_s15  ;;  %v5625_v5 = vrot.slane %v11610_v60, 4  ;;  %v5190_v6 = vadd.f32 %v13331_v50, %v5134_v20  ;;  %v5279_v33 = vadd.f32 %v11384_v8, %v5241_v32  ;;  %v13334_v20 = vld [vmem:[#allocation202_spill] sm:$0xff] }
 0x5a1   :  { %v3946_v16 = vpop.permute.xlu0 %3945  ;;  %v5402_v37 = vmul.f32 %v11625_v31, %v11563_v51  ;;  %v3738_v9 = vadd.f32 %v13332_v12, %v3682_v59  ;;  %v5079_v56 = vadd.f32 %v13333_v17, %v5023_v57  ;;  %v4065_v27 = vmul.f32 %v11606_v34, %v11631_v3 }
 0x5a2   :  { %v3959_v22 = vadd.f32 %v3946_v16, %v3921_v29  ;;  %v5305_v4 = vpop.permute.xlu1 %5304  ;;  %v11653_v36 = vsel %vm527_vm1, %v5624_v14, %v5625_v5  ;;  %v5202_v8 = vadd.f32 %v11522_v45, %v5188_v11  ;;  %v5317_v19 = vadd.f32 %v11524_v39, %v5279_v33 }
 0x5a3   :  { %v4033_v41 = vmul.f32 %v11379_v43, %v11631_v3  ;;  %v3794_v49 = vadd.f32 %v13334_v20, %v3738_v9  ;;  %v4064_v39 = vmul.f32 %v11606_v34, %v11371_v40  ;;  %v5204_v29 = vadd.f32 %v11554_v21, %v5190_v6 }
 0x5a4   :  { %v11661_v38 = vsel %vm7532_vm7, %v3959_v22, 0.0  ;;  %5410 = vrot.lane.b32.xlu0 %v5402_v37, %s6662_s12  ;;  %v5240_v11 = vadd.f32 %v11286_v23, %v5202_v8  ;;  %v11676_v59 = vstv %s11619_s17  ;;  %v5135_v57 = vadd.f32 %v13335_v13, %v5079_v56 }
 0x5a5   :  { %v5341_v18 = vpop.permute.xlu0 %5340  ;;  %v3982_v32 = vmul.f32 %v11331_v26, %v11661_v38  ;;  %v4008_v45 = vmul.f32 %v11392_v61, %v11661_v38  ;;  %v4078_v16 = vrot.slane %v4065_v27, 2  ;;  %v4063_v26 = vmul.f32 %v11606_v34, %v11346_v30 }
 0x5a6   :  { %v5355_v14 = vadd.f32 %v5341_v18, %v5317_v19  ;;  %v3910_v10 = vpop.permute.xlu1 %3909  ;;  %v11684_v61 = vmul.f32 %v11617_v62, %v11371_v40  ;;  %v5242_v23 = vadd.f32 %v11358_v52, %v5204_v29  ;;  %v5278_v21 = vadd.f32 %v11464_v54, %v5240_v11 }
 0x5a7   :  { %3993 = vrot.lane.b32.xlu1 %v3982_v32, %s6661_s8  ;;  %v4046_v6 = vrot.slane %v4033_v41, 2  ;;  %v3808_v33 = vadd.f32 %v11589_v58, %v3794_v49  ;;  %v4076_v12 = vrot.slane %v4064_v39, 2  ;;  %v4103_v52 = vmul.f32 %v11617_v62, %v11346_v30 }
 0x5a8   :  { %v11690_v50 = vsel %vm7539_vm8, %v5355_v14, 0.0  ;;  %4019 = vrot.lane.b32.xlu0 %v4008_v45, %s6662_s12  ;;  %v5191_v54 = vadd.f32 %v11265_v44, %v5135_v57  ;;  %v5280_v1 = vadd.f32 %v11514_v2, %v5242_v23  ;;  %v5316_v9 = vadd.f32 %v5301_v53, %v5278_v21 }
 0x5a9   :  { %v5269_v22 = vpop.permute.xlu0 %5268  ;;  %v5378_v37 = vmul.f32 %v11540_v55, %v11690_v50  ;;  %v11701_v56 = vstv %s11644_s16  ;;  %v3846_v27 = vadd.f32 %v11425_v7, %v3808_v33  ;;  %v4079_v58 = vsel %vm298_vm0, %v4076_v12, %v4078_v16 }
 0x5aa   :  { %v5339_v17 = vpop.permute.xlu1 %5338  ;;  %v4116_v8 = vrot.slane %v11684_v61, 2  ;;  %v11708_v19 = vstv %s11655_s1  ;;  %v5318_v41 = vadd.f32 %v5305_v4, %v5280_v1  ;;  %v4075_v44 = vrot.slane %v4063_v26, 2 }
 0x5ab   :  { %5388 = vrot.lane.b32.xlu1 %v5378_v37, %s6661_s8  ;;  %v5354_v20 = vadd.f32 %v5339_v17, %v5316_v9  ;;  %v13336_v2 = vrot.slane %v11422_v15, 2  ;;  %v3884_v7 = vadd.f32 %v11571_v35, %v3846_v27  ;;  %v5403_v18 = vmul.f32 %v11625_v31, %v11569_v47  ;;  %v13337_v17 = vld [vmem:[#allocation60_spill] sm:$0xff] }
 0x5ac   :  { %4087 = vrot.lane.b32.xlu0 %v4079_v58, %s6661_s8  ;;  %v4115_v32 = vrot.slane %v4103_v52, 2  ;;  %v4066_v45 = vmul.f32 %v11606_v34, %v11512_v0  ;;  %v5205_v4 = vadd.f32 %v11594_v48, %v5191_v54  ;;  %v5404_v15 = vmul.f32 %v11625_v31, %v11690_v50 }
 0x5ad   :  { %v11714_v53 = vsel %vm298_vm0, %v13336_v2, %v4046_v6  ;;  %v5343_v49 = vpop.permute.xlu0 %5342  ;;  %v4077_v29 = vsel %vm298_vm0, %v4075_v44, %v4076_v12  ;;  %v3922_v14 = vadd.f32 %v3910_v10, %v3884_v7  ;;  %v4106_v13 = vmul.f32 %v11617_v62, %v11512_v0 }
 0x5ae   :  { %v5356_v39 = vadd.f32 %v5343_v49, %v5318_v41  ;;  %v3948_v11 = vpop.permute.xlu1 %3947  ;;  %v4117_v35 = vsel %vm298_vm0, %v4115_v32, %v4116_v8  ;;  %v5460_v48 = vmul.f32 %v11637_v42, %v11563_v51  ;;  %v11735_v57 = vsel %vm7580_vm11, %v5354_v20, 0.0  ;;  %v13338_v49 = vld [vmem:[#allocation85_spill] sm:$0xff] }
 0x5af   :  { %5412 = vrot.lane.b32.xlu1 %v5403_v18, %s6662_s12  ;;  %v5461_v10 = vmul.f32 %v11637_v42, %v11569_v47  ;;  %v5500_v16 = vmul.f32 %v11676_v59, %v11563_v51  ;;  %v11744_v26 = vmul.f32 %v11676_v59, %v11569_v47  ;;  %v5243_v23 = vadd.f32 %v11603_v28, %v5205_v4 }
 0x5b0   :  { %5414 = vrot.lane.b32.xlu0 %v5404_v15, %s6662_s12  ;;  %v3960_v21 = vadd.f32 %v3948_v11, %v3922_v14  ;;  %v4080_v6 = vrot.slane %v4066_v45, 2  ;;  %v4034_v33 = vmul.f32 %v11379_v43, %v11512_v0  ;;  %v11751_v37 = vsel %vm7532_vm7, %v5356_v39, 0.0 }
 0x5b1   :  { %v5307_v12 = vpop.permute.xlu0 %5306  ;;  %v11755_v52 = vmul.f32 %v11606_v34, %v11661_v38  ;;  %v4105_v54 = vmul.f32 %v11617_v62, %v11631_v3  ;;  %v11761_v28 = vmul.f32 %v11617_v62, %v11661_v38  ;;  %v5281_v1 = vadd.f32 %v5269_v22, %v5243_v23 }
 0x5b2   :  { %v5462_v46 = vmul.f32 %v11637_v42, %v11735_v57  ;;  %v4120_v9 = vrot.slane %v4106_v13, 2  ;;  %v11768_v27 = vmul.f32 %v13337_v17, %v11512_v0  ;;  %v5473_v58 = vrot.slane %v5461_v10, 2  ;;  %v5345_v32 = vpop.permute.xlu1 %5344 }
 0x5b3   :  { %4085 = vrot.lane.b32.xlu1 %v4077_v29, %s6661_s8  ;;  %v5472_v41 = vrot.slane %v5460_v48, 2  ;;  %v5512_v20 = vrot.slane %v5500_v16, 2  ;;  %v5513_v44 = vrot.slane %v11744_v26, 2  ;;  %v11774_v22 = vsel %vm7580_vm11, %v3960_v21, 0.0  ;;  %v13342_v26 = vld [vmem:[#allocation184_spill] sm:$0xff] }
 0x5b4   :  { %4125 = vrot.lane.b32.xlu0 %v4117_v35, %s6662_s12  ;;  %v5319_v2 = vadd.f32 %v5307_v12, %v5281_v1  ;;  %v5379_v7 = vmul.f32 %v11540_v55, %v11751_v37  ;;  %v11780_v18 = vmul.f32 %v13338_v49, %v11631_v3  ;;  %v5405_v45 = vmul.f32 %v11625_v31, %v11751_v37 }
 0x5b5   :  { %v4081_v4 = vrot.slane %v11755_v52, 2  ;;  %v4118_v39 = vrot.slane %v4105_v54, 2  ;;  %v4121_v11 = vrot.slane %v11761_v28, 2  ;;  %v5475_v15 = vrot.slane %v5462_v46, 2 }
 0x5b6   :  { %v5429_v29 = vmul.f32 %v11701_v56, %v11569_v47  ;;  %v4048_v55 = vrot.slane %v4034_v33, 2  ;;  %v4160_v14 = vrot.slane %v11768_v27, 4  ;;  %v11793_v35 = vmul.f32 %v11617_v62, %v11774_v22 }
 0x5b7   :  { %5390 = vrot.lane.b32.xlu1 %v5379_v7, %s6661_s8  ;;  %v11797_v31 = vmul.f32 %v11637_v42, %v11751_v37  ;;  %v5430_v13 = vmul.f32 %v11701_v56, %v11735_v57  ;;  %v4035_v48 = vmul.f32 %v11379_v43, %v11661_v38  ;;  %v5357_v10 = vadd.f32 %v5345_v32, %v5319_v2 }
 0x5b8   :  { %5416 = vrot.lane.b32.xlu0 %v5405_v45, %s6662_s12  ;;  %v5474_v16 = vsel %vm298_vm0, %v5472_v41, %v5473_v58  ;;  %v5514_v23 = vsel %vm298_vm0, %v5512_v20, %v5513_v44  ;;  %v4190_v62 = vrot.slane %v11780_v18, 4  ;;  %v4082_v21 = vsel %vm298_vm0, %v4080_v6, %v4081_v4 }
 0x5b9   :  { %v4119_v33 = vsel %vm298_vm0, %v4116_v8, %v4118_v39  ;;  %v4122_v12 = vsel %vm298_vm0, %v4120_v9, %v4121_v11  ;;  %v4068_v54 = vmul.f32 %v11606_v34, %v11774_v22  ;;  %v5476_v1 = vsel %vm298_vm0, %v5473_v58, %v5475_v15 }
 0x5ba   :  { %v11823_v46 = vmul.f32 %v11637_v42, %v11690_v50  ;;  %v11827_v61 = vmul.f32 %v11676_v59, %v11735_v57  ;;  %v5441_v8 = vrot.slane %v5429_v29, 2  ;;  %v4123_v6 = vrot.slane %v11793_v35, 2 }
 0x5bb   :  { %4089 = vrot.lane.b32.xlu1 %v4082_v21, %s6661_s8  ;;  %v5478_v9 = vrot.slane %v11797_v31, 2  ;;  %v5443_v34 = vrot.slane %v5430_v13, 2  ;;  %v4049_v41 = vrot.slane %v4035_v48, 2  ;;  %v11834_v58 = vsel %vm7580_vm11, %v5357_v10, 0.0 }
 0x5bc   :  { %5484 = vrot.lane.b32.xlu0 %v5476_v1, %s6661_s8  ;;  %v5428_v20 = vmul.f32 %v11701_v56, %v11563_v51  ;;  %v4036_v2 = vmul.f32 %v11379_v43, %v11774_v22  ;;  %v4145_v7 = vmul.f32 %v13337_v17, %v11631_v3  ;;  %v4083_v32 = vrot.slane %v4068_v54, 2 }
 0x5bd   :  { %v11843_v45 = vsel %vm298_vm0, %v5441_v8, %v5443_v34  ;;  %v11846_v39 = vsel %vm298_vm0, %v4048_v55, %v4049_v41  ;;  %v5431_v25 = vmul.f32 %v11701_v56, %v11690_v50  ;;  %v5432_v43 = vmul.f32 %v11701_v56, %v11751_v37 }
 0x5be   :  { %v5440_v15 = vrot.slane %v5428_v20, 2  ;;  %v4051_v29 = vrot.slane %v4036_v2, 2  ;;  %v4158_v35 = vrot.slane %v4145_v7, 4  ;;  %v5433_v48 = vmul.f32 %v11701_v56, %v11834_v58 }
 0x5bf   :  { %4127 = vrot.lane.b32.xlu1 %v4119_v33, %s6662_s12  ;;  %v5445_v13 = vrot.slane %v5431_v25, 2  ;;  %v5541_v55 = vmul.f32 %v11708_v19, %v11569_v47  ;;  %v5542_v10 = vmul.f32 %v11708_v19, %v11735_v57  ;;  %v13339_v54 = vrot.slane %v11439_v24, 4 }
 0x5c0   :  { %4129 = vrot.lane.b32.xlu0 %v4122_v12, %s6662_s12  ;;  %v11861_v21 = vsel %vm298_vm0, %v5440_v15, %v5441_v8  ;;  %v11864_v33 = vsel %vm298_vm0, %v4049_v41, %v4051_v29  ;;  %v5446_v1 = vrot.slane %v5432_v43, 2  ;;  %v5448_v34 = vrot.slane %v5433_v48, 2 }
 0x5c1   :  { %v11869_v12 = vsel %vm527_vm1, %v13339_v54, %v4158_v35  ;;  %v5553_v56 = vrot.slane %v5541_v55, 4  ;;  %v5555_v20 = vrot.slane %v5542_v10, 4  ;;  %v4147_v2 = vmul.f32 %v13337_v17, %v11661_v38 }
 0x5c2   :  { %v11875_v8 = vsel %vm298_vm0, %v5445_v13, %v5446_v1  ;;  %v5540_v41 = vmul.f32 %v11708_v19, %v11563_v51  ;;  %v4148_v24 = vmul.f32 %v13337_v17, %v11774_v22  ;;  %v5543_v7 = vmul.f32 %v11708_v19, %v11690_v50 }
 0x5c3   :  { %5482 = vrot.lane.b32.xlu1 %v5474_v16, %s6661_s8  ;;  %v11885_v25 = vsel %vm298_vm0, %v5446_v1, %v5448_v34  ;;  %v11888_v15 = vsel %vm527_vm1, %v5553_v56, %v5555_v20  ;;  %v4161_v16 = vrot.slane %v4147_v2, 4  ;;  %v5544_v29 = vmul.f32 %v11708_v19, %v11751_v37 }
 0x5c4   :  { %5522 = vrot.lane.b32.xlu0 %v5514_v23, %s6662_s12  ;;  %v5504_v35 = vmul.f32 %v11676_v59, %v11751_v37  ;;  %v5552_v43 = vrot.slane %v5540_v41, 4  ;;  %v4163_v17 = vrot.slane %v4148_v24, 4  ;;  %v5545_v13 = vmul.f32 %v11708_v19, %v11834_v58 }
 0x5c5   :  { %v4084_v23 = vsel %vm298_vm0, %v4081_v4, %v4083_v32  ;;  %v11902_v48 = vsel %vm527_vm1, %v4160_v14, %v4161_v16  ;;  %v5557_v55 = vrot.slane %v5543_v7, 4  ;;  %v5558_v10 = vrot.slane %v5544_v29, 4  ;;  %v13340_v32 = vld [vmem:[#allocation61_spill] sm:$0xff] }
 0x5c6   :  { %v4124_v54 = vsel %vm298_vm0, %v4121_v11, %v4123_v6  ;;  %v11909_v1 = vsel %vm527_vm1, %v5552_v43, %v5553_v56  ;;  %v11912_v19 = vsel %vm527_vm1, %v4161_v16, %v4163_v17  ;;  %v5560_v52 = vrot.slane %v5545_v13, 4  ;;  %v13343_v16 = vld [vmem:[#allocation198_spill] sm:$0xff]  ;;  %v13344_v17 = vld [vmem:[#allocation181_spill] sm:$0xff] }
 0x5c7   :  { %4091 = vrot.lane.b32.xlu1 %v4084_v23, %s6661_s8  ;;  %v5477_v27 = vrot.slane %v11823_v46, 2  ;;  %v11917_v4 = vsel %vm527_vm1, %v5557_v55, %v5558_v10  ;;  %v5503_v28 = vmul.f32 %v11676_v59, %v11690_v50  ;;  %v5515_v6 = vrot.slane %v11827_v61, 2 }
 0x5c8   :  { %4131 = vrot.lane.b32.xlu0 %v4124_v54, %s6662_s12  ;;  %v11922_v11 = vsel %vm527_vm1, %v5558_v10, %v5560_v52  ;;  %v13341_v46 = vrot.slane %v13340_v32, 4  ;;  %v5518_v56 = vrot.slane %v5504_v35, 2  ;;  %v5465_v61 = vmul.f32 %v11637_v42, %v11834_v58  ;;  %v13345_v32 = vld [vmem:[#allocation70_spill] sm:$0xff] }
 0x5c9   :  { %v5479_v14 = vsel %vm298_vm0, %v5477_v27, %v5478_v9  ;;  %v5517_v20 = vrot.slane %v5503_v28, 2  ;;  %v5516_v2 = vsel %vm298_vm0, %v5513_v44, %v5515_v6  ;;  %v5505_v18 = vmul.f32 %v11676_v59, %v11834_v58 }
 0x5ca   :  { %v4191_v34 = vsel %vm527_vm1, %v13341_v46, %v4190_v62  ;;  %v5480_v62 = vrot.slane %v5465_v61, 2  ;;  %v5571_v24 = vstv %s6446_s3  ;;  %v4179_v7 = vmul.f32 %v13338_v49, %v11661_v38 }
 0x5cb   :  { %5486 = vrot.lane.b32.xlu1 %v5479_v14, %s6661_s8  ;;  %v5519_v41 = vsel %vm298_vm0, %v5517_v20, %v5518_v56  ;;  %v5520_v44 = vrot.slane %v5505_v18, 2  ;;  %v5574_v42 = vmul.f32 %v5571_v24, %v11735_v57  ;;  %v4178_v29 = vmul.f32 %v13338_v49, %v11512_v0 }
 0x5cc   :  { %4199 = vrot.lane.b32.xlu0 %v4191_v34, %s6661_s8  ;;  %v5573_v59 = vmul.f32 %v5571_v24, %v11569_v47  ;;  %v5481_v35 = vsel %vm298_vm0, %v5478_v9, %v5480_v62  ;;  %v4193_v43 = vrot.slane %v4179_v7, 4  ;;  %v4217_v13 = vmul.f32 %v13344_v17, %v11631_v3 }
 0x5cd   :  { %v5521_v23 = vsel %vm298_vm0, %v5518_v56, %v5520_v44  ;;  %v5587_v55 = vrot.slane %v5574_v42, 4  ;;  %v4219_v10 = vmul.f32 %v13344_v17, %v11661_v38  ;;  %v4192_v54 = vrot.slane %v4178_v29, 4 }
 0x5ce   :  { %v5585_v52 = vrot.slane %v5573_v59, 4  ;;  %v4218_v31 = vmul.f32 %v13344_v17, %v11512_v0  ;;  %v4230_v27 = vrot.slane %v4217_v13, 4  ;;  %v5572_v3 = vmul.f32 %v5571_v24, %v11563_v51 }
 0x5cf   :  { %5524 = vrot.lane.b32.xlu1 %v5516_v2, %s6662_s12  ;;  %v4194_v9 = vsel %vm527_vm1, %v4192_v54, %v4193_v43  ;;  %v4233_v14 = vrot.slane %v4219_v10, 4  ;;  %v13346_v46 = vrot.slane %v13345_v32, 4  ;;  %v4180_v20 = vmul.f32 %v13338_v49, %v11774_v22 }
 0x5d0   :  { %5526 = vrot.lane.b32.xlu0 %v5519_v41, %s6662_s12  ;;  %v5588_v28 = vsel %vm527_vm1, %v5585_v52, %v5587_v55  ;;  %v4232_v6 = vrot.slane %v4218_v31, 4  ;;  %v5584_v56 = vrot.slane %v5572_v3, 4  ;;  %v4220_v61 = vmul.f32 %v13344_v17, %v11774_v22 }
 0x5d1   :  { %v4231_v34 = vsel %vm527_vm1, %v13346_v46, %v4230_v27  ;;  %v4195_v18 = vrot.slane %v4180_v20, 4  ;;  %v5576_v62 = vmul.f32 %v5571_v24, %v11751_v37  ;;  %v5616_v49 = vmul.f32 %v11578_v63, %v11751_v37 }
 0x5d2   :  { %v4234_v2 = vsel %vm527_vm1, %v4232_v6, %v4233_v14  ;;  %v5586_v41 = vsel %vm527_vm1, %v5584_v56, %v5585_v52  ;;  %v4235_v7 = vrot.slane %v4220_v61, 4  ;;  %v5615_v22 = vmul.f32 %v11578_v63, %v11690_v50 }
 0x5d3   :  { %4197 = vrot.lane.b32.xlu1 %v13342_v26, %s6661_s8  ;;  %v5575_v26 = vmul.f32 %v5571_v24, %v11690_v50  ;;  %v4196_v44 = vsel %vm527_vm1, %v4193_v43, %v4195_v18  ;;  %v5590_v42 = vrot.slane %v5576_v62, 4  ;;  %v5630_v59 = vrot.slane %v5616_v49, 4 }
 0x5d4   :  { %4237 = vrot.lane.b32.xlu0 %v13343_v16, %s6662_s12  ;;  %v5614_v16 = vmul.f32 %v11578_v63, %v11735_v57  ;;  %v4236_v29 = vsel %vm527_vm1, %v4233_v14, %v4235_v7  ;;  %v5617_v10 = vmul.f32 %v11578_v63, %v11834_v58  ;;  %v3968_v52 = vstv %s6393_s18  ;;  %v13347_v63 = vld [vmem:[#allocation53_spill] sm:$0xff] }
 0x5d5   :  { %v3969_v27 = vmul.f32 %v3968_v52, %v11346_v30  ;;  %v3970_v6 = vmul.f32 %v3968_v52, %v11371_v40  ;;  %v3971_v61 = vmul.f32 %v3968_v52, %v11512_v0  ;;  %vm5826_vm7 = vcmask 128000  }
 0x5d6   :  { %v5627_v13 = vrot.slane %v5614_v16, 4  ;;  %v3972_v16 = vmul.f32 %v3968_v52, %v11661_v38 }
 0x5d7   :  { %5488 = vrot.lane.b32.xlu1 %v5481_v35, %s6661_s8  ;;  %v5589_v35 = vrot.slane %v5575_v26, 4 }
 0x5d8   :  { %5528 = vrot.lane.b32.xlu0 %v5521_v23, %s6662_s12  ;;  %v5577_v23 = vmul.f32 %v5571_v24, %v11834_v58  ;;  %v5628_v57 = vsel %vm527_vm1, %v5625_v5, %v5627_v13  ;;  %v5632_v24 = vrot.slane %v5617_v10, 4 }
 0x5d9   :  { %v5591_v17 = vsel %vm527_vm1, %v5589_v35, %v5590_v42 }
 0x5da   :  { %v5592_v55 = vrot.slane %v5577_v23, 4  ;;  %v5633_v60 = vsel %vm527_vm1, %v5630_v59, %v5632_v24 }
 0x5db   :  { %4201 = vrot.lane.b32.xlu1 %v4194_v9, %s6661_s8 }
 0x5dc   :  { %5596 = vrot.lane.b32.xlu0 %v5588_v28, %s6661_s8  ;;  %v5593_v54 = vsel %vm527_vm1, %v5590_v42, %v5592_v55 }
 0x5df   :  { %4239 = vrot.lane.b32.xlu1 %v4231_v34, %s6662_s12  ;;  %v5365_v34 = vstv %s6439_s19 }
 0x5e0   :  { %4241 = vrot.lane.b32.xlu0 %v4234_v2, %s6662_s12  ;;  %v5367_v20 = vmul.f32 %v5365_v34, %v11569_v47  ;;  %v5366_v49 = vmul.f32 %v5365_v34, %v11563_v51  ;;  %v5368_v51 = vmul.f32 %v5365_v34, %v11690_v50  ;;  %v5369_v52 = vmul.f32 %v5365_v34, %v11751_v37 }
 0x5e3   :  { %5594 = vrot.lane.b32.xlu1 %v5586_v41, %s6661_s8 }
 0x5e4   :  { %5634 = vrot.lane.b32.xlu0 %v11653_v36, %s6662_s12  ;;  %v5629_v36 = vrot.slane %v5615_v22, 4 }
 0x5e6   :  { %v5631_v43 = vsel %vm527_vm1, %v5629_v36, %v5630_v59 }
 0x5e7   :  { %4203 = vrot.lane.b32.xlu1 %v4196_v44, %s6661_s8 }
 0x5e8   :  { %4243 = vrot.lane.b32.xlu0 %v4236_v29, %s6662_s12 }
 0x5eb   :  { %5598 = vrot.lane.b32.xlu1 %v5591_v17, %s6661_s8 }
 0x5ec   :  { %5638 = vrot.lane.b32.xlu0 %v5631_v43, %s6662_s12 }
 0x5ef   :  { %5636 = vrot.lane.b32.xlu1 %v5628_v57, %s6662_s12 }
 0x5f2   :  { %v3988_v31 = vpop.permute.xlu0 %3987 }
 0x5f3   :  { %5600 = vrot.lane.b32.xlu1 %v5593_v54, %s6661_s8  ;;  %v3999_v5 = vadd.f32 %v3988_v31, %v3969_v27  ;;  %v13348_v27 = vld [vmem:[#allocation76_spill] sm:$0xff]  ;;  %s6402_s8 = sld [smem:[#allocation8 + $0x2]] }
 0x5f5   :  { %v3990_v9 = vpop.permute.xlu1 %3989 }
 0x5f6   :  { %v4000_v32 = vadd.f32 %v3990_v9, %v3970_v6 }
 0x5f7   :  { %5640 = vrot.lane.b32.xlu1 %v5633_v60, %s6662_s12  ;;  %s6403_s12 = sld [smem:[#allocation8 + $0x82]] }
 0x5f9   :  { %v4014_v3 = vpop.permute.xlu1 %4013 }
 0x5fa   :  { %v4025_v28 = vadd.f32 %v4014_v3, %v3999_v5 }
 0x5fc   :  { %v4057_v58 = vadd.f32 %v13347_v63, %v4025_v28 }
 0x606   :  { %v3992_v14 = vpop.permute.xlu0 %3991 }
 0x607   :  { %v4001_v18 = vadd.f32 %v3992_v14, %v3971_v61 }
 0x60a   :  { %v4016_v46 = vpop.permute.xlu0 %4015 }
 0x60b   :  { %v4026_v56 = vadd.f32 %v4016_v46, %v4000_v32 }
 0x60d   :  { %v4058_v30 = vadd.f32 %v11714_v53, %v4026_v56  ;;  %v5385_v62 = vpop.permute.xlu1 %5384 }
 0x60e   :  { %v5387_v2 = vpop.permute.xlu0 %5386  ;;  %v5396_v22 = vadd.f32 %v5385_v62, %v5366_v49 }
 0x60f   :  { %v5397_v41 = vadd.f32 %v5387_v2, %v5367_v20 }
 0x612   :  { %v4018_v7 = vpop.permute.xlu0 %4017 }
 0x613   :  { %v4027_v26 = vadd.f32 %v4018_v7, %v4001_v18 }
 0x615   :  { %v4059_v40 = vadd.f32 %v11846_v39, %v4027_v26 }
 0x616   :  { %v5411_v44 = vpop.permute.xlu0 %5410 }
 0x617   :  { %v5422_v42 = vadd.f32 %v5411_v44, %v5396_v22 }
 0x619   :  { %v3994_v47 = vpop.permute.xlu1 %3993  ;;  %v5454_v53 = vadd.f32 %v11861_v21, %v5422_v42 }
 0x61a   :  { %v4020_v29 = vpop.permute.xlu0 %4019  ;;  %v4002_v59 = vadd.f32 %v3994_v47, %v3972_v16 }
 0x61c   :  { %v4028_v0 = vadd.f32 %v4020_v29, %v4002_v59  ;;  %v12048_v29 = vstv %s6404_s20  ;;  %v12050_v59 = vstv %s6405_s21 }
 0x61d   :  { %v5389_v35 = vpop.permute.xlu1 %5388 }
 0x61e   :  { %v4088_v36 = vpop.permute.xlu0 %4087  ;;  %v4060_v17 = vadd.f32 %v11864_v33, %v4028_v0  ;;  %v5398_v13 = vadd.f32 %v5389_v35, %v5368_v51 }
 0x61f   :  { %v4098_v63 = vadd.f32 %v4088_v36, %v4058_v30 }
 0x621   :  { %v5413_v23 = vpop.permute.xlu1 %5412 }
 0x622   :  { %v5415_v43 = vpop.permute.xlu0 %5414  ;;  %v5423_v39 = vadd.f32 %v5413_v23, %v5397_v41  ;;  %v13349_v23 = vld [vmem:[#allocation41_spill] sm:$0xff] }
 0x623   :  { %v5424_v57 = vadd.f32 %v5415_v43, %v5398_v13 }
 0x624   :  { %v5455_v55 = vadd.f32 %v11843_v45, %v5423_v39  ;;  %v13350_v39 = vld [vmem:[#allocation42_spill] sm:$0xff] }
 0x625   :  { %v4086_v38 = vpop.permute.xlu1 %4085  ;;  %v5456_v10 = vadd.f32 %v11875_v8, %v5424_v57 }
 0x626   :  { %v4126_v21 = vpop.permute.xlu0 %4125  ;;  %v4097_v54 = vadd.f32 %v4086_v38, %v4057_v58 }
 0x628   :  { %v4137_v24 = vadd.f32 %v4126_v21, %v4097_v54 }
 0x629   :  { %v5391_v31 = vpop.permute.xlu1 %5390 }
 0x62a   :  { %v5417_v9 = vpop.permute.xlu0 %5416  ;;  %v5399_v33 = vadd.f32 %v5391_v31, %v5369_v52  ;;  %v4169_v50 = vadd.f32 %v13348_v27, %v4137_v24 }
 0x62c   :  { %v5425_v60 = vadd.f32 %v5417_v9, %v5399_v33 }
 0x62d   :  { %v4090_v5 = vpop.permute.xlu1 %4089 }
 0x62e   :  { %v5485_v3 = vpop.permute.xlu0 %5484  ;;  %v5457_v28 = vadd.f32 %v11885_v25, %v5425_v60  ;;  %v4099_v45 = vadd.f32 %v4090_v5, %v4059_v40 }
 0x631   :  { %v4128_v14 = vpop.permute.xlu1 %4127 }
 0x632   :  { %v4130_v6 = vpop.permute.xlu0 %4129  ;;  %v4138_v8 = vadd.f32 %v4128_v14, %v4098_v63 }
 0x633   :  { %v4139_v32 = vadd.f32 %v4130_v6, %v4099_v45 }
 0x634   :  { %v4170_v58 = vadd.f32 %v11869_v12, %v4138_v8 }
 0x635   :  { %v5483_v46 = vpop.permute.xlu1 %5482  ;;  %v4171_v37 = vadd.f32 %v11902_v48, %v4139_v32  ;;  %v5495_v48 = vadd.f32 %v5485_v3, %v5455_v55  ;;  %v13351_v55 = vld [vmem:[#allocation44_spill] sm:$0xff] }
 0x636   :  { %v5523_v34 = vpop.permute.xlu0 %5522  ;;  %v5494_v56 = vadd.f32 %v5483_v46, %v5454_v53  ;;  %v12044_v53 = vstv %s6402_s8 }
 0x638   :  { %v5534_v20 = vadd.f32 %v5523_v34, %v5494_v56  ;;  %v13355_v56 = vld [vmem:[#allocation18_spill] sm:$0xff] }
 0x639   :  { %v4092_v2 = vpop.permute.xlu1 %4091 }
 0x63a   :  { %v4132_v61 = vpop.permute.xlu0 %4131  ;;  %v4100_v41 = vadd.f32 %v4092_v2, %v4060_v17  ;;  %v12033_v18 = vadd.f32 %v11909_v1, %v5534_v20  ;;  %v13356_v2 = vld [vmem:[#allocation49_spill] sm:$0xff] }
 0x63c   :  { %v4140_v25 = vadd.f32 %v4132_v61, %v4100_v41 }
 0x63d   :  { %v5487_v30 = vpop.permute.xlu1 %5486 }
 0x63e   :  { %v4200_v62 = vpop.permute.xlu0 %4199  ;;  %v12036_v12 = vadd.f32 %v11912_v19, %v4140_v25  ;;  %v5496_v7 = vadd.f32 %v5487_v30, %v5456_v10  ;;  %v12046_v19 = vstv %s6403_s12  ;;  %v13352_v10 = vld [vmem:[#allocation46_spill] sm:$0xff]  ;;  %v13357_v25 = vld [vmem:[#allocation56_spill] sm:$0xff] }
 0x63f   :  { %v4210_v9 = vadd.f32 %v4200_v62, %v4170_v58  ;;  %v13353_v58 = vld [vmem:[#allocation52_spill] sm:$0xff]  ;;  %v13358_v62 = vld [vmem:[#allocation69_spill] sm:$0xff] }
 0x641   :  { %v5525_v49 = vpop.permute.xlu1 %5524 }
 0x642   :  { %v5527_v26 = vpop.permute.xlu0 %5526  ;;  %v5535_v22 = vadd.f32 %v5525_v49, %v5495_v48 }
 0x643   :  { %v5536_v40 = vadd.f32 %v5527_v26, %v5496_v7  ;;  %v13359_v7 = vld [vmem:[#allocation30_spill] sm:$0xff] }
 0x644   :  { %v12039_v44 = vadd.f32 %v11888_v15, %v5535_v22  ;;  %v13360_v26 = vld [vmem:[#allocation62_spill] sm:$0xff] }
 0x645   :  { %v4198_v1 = vpop.permute.xlu1 %4197  ;;  %v12042_v42 = vadd.f32 %v11917_v4, %v5536_v40 }
 0x646   :  { %v4238_v16 = vpop.permute.xlu0 %4237  ;;  %v4209_v47 = vadd.f32 %v4198_v1, %v4169_v50  ;;  %v12082_v1 = vstv %s6448_s22 }
 0x648   :  { %v4249_v0 = vadd.f32 %v4238_v16, %v4209_v47  ;;  %v12084_v16 = vstv %s6449_s23  ;;  %v12086_v47 = vstv %s6450_s5 }
 0x649   :  { %v5489_v35 = vpop.permute.xlu1 %5488 }
 0x64a   :  { %v4255_v36 = vmul.f32 %v12044_v53, %v4249_v0  ;;  %v4265_v15 = vmul.f32 %v12046_v19, %v4249_v0  ;;  %v4275_v17 = vmul.f32 %v12048_v29, %v4249_v0  ;;  %v4285_v4 = vmul.f32 %v12050_v59, %v4249_v0  ;;  %v5529_v51 = vpop.permute.xlu0 %5528 }
 0x64b   :  { %v5497_v13 = vadd.f32 %v5489_v35, %v5457_v28  ;;  %v12088_v0 = vstv %s6451_s24 }
 0x64c   :  { %v4259_v43 = vadd.f32 %v4255_v36, %v13349_v23  ;;  %v4269_v57 = vadd.f32 %v4265_v15, %v13350_v39  ;;  %v4279_v38 = vadd.f32 %v4275_v17, %v13351_v55  ;;  %v4289_v21 = vadd.f32 %v4285_v4, %v13352_v10 }
 0x64d   :  { %v5537_v54 = vadd.f32 %v5529_v51, %v5497_v13  ;;  %v4202_v24 = vpop.permute.xlu1 %4201 }
 0x64e   :  { %v5597_v52 = vpop.permute.xlu0 %5596  ;;  %v4211_v33 = vadd.f32 %v4202_v24, %v4171_v37  ;;  %v13354_v37 = vld [vmem:[#allocation64_spill] sm:$0xff] }
 0x64f   :  { %v12061_v31 = vadd.f32 %v11922_v11, %v5537_v54 }
 0x651   :  { %v4240_v27 = vpop.permute.xlu1 %4239 }
 0x652   :  { %v4242_v50 = vpop.permute.xlu0 %4241  ;;  %v4250_v60 = vadd.f32 %v4240_v27, %v4210_v9 }
 0x653   :  { %v4251_v5 = vadd.f32 %v4242_v50, %v4211_v33  ;;  %v5607_v50 = vadd.f32 %v5597_v52, %v12039_v44 }
 0x654   :  { %v4256_v3 = vmul.f32 %v12044_v53, %v4250_v60  ;;  %v4266_v28 = vmul.f32 %v12046_v19, %v4250_v60  ;;  %v4276_v63 = vmul.f32 %v12048_v29, %v4250_v60  ;;  %v4286_v45 = vmul.f32 %v12050_v59, %v4250_v60 }
 0x655   :  { %v4257_v14 = vmul.f32 %v12044_v53, %v4251_v5  ;;  %v4267_v11 = vmul.f32 %v12046_v19, %v4251_v5  ;;  %v4277_v6 = vmul.f32 %v12048_v29, %v4251_v5  ;;  %v4287_v8 = vmul.f32 %v12050_v59, %v4251_v5  ;;  %v5595_v32 = vpop.permute.xlu1 %5594  ;;  %v13361_v5 = vld [vmem:[#allocation63_spill] sm:$0xff] }
 0x656   :  { %v4260_v46 = vadd.f32 %v4256_v3, %v13353_v58  ;;  %v4270_v34 = vadd.f32 %v4266_v28, %v13354_v37  ;;  %v4280_v20 = vadd.f32 %v4276_v63, %v13355_v56  ;;  %v4290_v61 = vadd.f32 %v4286_v45, %v13356_v2  ;;  %v5635_v41 = vpop.permute.xlu0 %5634  ;;  %v13362_v3 = vld [vmem:[#allocation59_spill] sm:$0xff] }
 0x657   :  { %v4261_v30 = vadd.f32 %v4257_v14, %v13357_v25  ;;  %v4271_v48 = vadd.f32 %v4267_v11, %v13358_v62  ;;  %v4281_v49 = vadd.f32 %v4277_v6, %v13359_v7  ;;  %v12079_v22 = vadd.f32 %v4287_v8, %v13360_v26  ;;  %v13363_v28 = vld [vmem:[#allocation47_spill] sm:$0xff] }
 0x658   :  { %v5606_v40 = vadd.f32 %v5595_v32, %v12033_v18 }
 0x659   :  { %v4204_v35 = vpop.permute.xlu1 %4203 }
 0x65a   :  { %v5646_v36 = vadd.f32 %v5635_v41, %v5606_v40  ;;  %v4212_v15 = vadd.f32 %v4204_v35, %v12036_v12  ;;  %v4244_v17 = vpop.permute.xlu0 %4243 }
 0x65c   :  { %v5652_v4 = vmul.f32 %v12082_v1, %v5646_v36  ;;  %v5662_v51 = vmul.f32 %v12084_v16, %v5646_v36  ;;  %v5672_v13 = vmul.f32 %v12086_v47, %v5646_v36  ;;  %v5682_v18 = vmul.f32 %v12088_v0, %v5646_v36 }
 0x65d   :  { %v4252_v23 = vadd.f32 %v4244_v17, %v4212_v15  ;;  %v5599_v39 = vpop.permute.xlu1 %5598 }
 0x65e   :  { %v12095_v55 = vadd.f32 %v5652_v4, %v4259_v43  ;;  %v12097_v10 = vadd.f32 %v5662_v51, %v4269_v57  ;;  %v12099_v54 = vadd.f32 %v5672_v13, %v4279_v38  ;;  %v12101_v24 = vadd.f32 %v5682_v18, %v4289_v21  ;;  %v5639_v43 = vpop.permute.xlu0 %5638 }
 0x65f   :  { %v4258_v12 = vmul.f32 %v12044_v53, %v4252_v23  ;;  %v4268_v9 = vmul.f32 %v12046_v19, %v4252_v23  ;;  %v4278_v33 = vmul.f32 %v12048_v29, %v4252_v23  ;;  %v4288_v27 = vmul.f32 %v12050_v59, %v4252_v23  ;;  %v13364_v29 = vld [vmem:[#allocation48_spill] sm:$0xff] }
 0x660   :  { %v5608_v60 = vadd.f32 %v5599_v39, %v12042_v42  ;;  %v5692_v19 = vsel %vm5691_vm12, %v12095_v55, 0.0  ;;  %v5708_v14 = vmul.f32 %v12095_v55, %v12095_v55  ;;  %v5831_v2 = vsel %vm5691_vm12, %v12097_v10, 0.0 }
 0x661   :  { %v5637_v57 = vpop.permute.xlu1 %5636  ;;  %v4262_v38 = vadd.f32 %v4258_v12, %v13361_v5  ;;  %v4272_v21 = vadd.f32 %v4268_v9, %v13362_v3  ;;  %v4282_v63 = vadd.f32 %v4278_v33, %v13363_v28  ;;  %v4292_v59 = vadd.f32 %v4288_v27, %v13364_v29 }
 0x662   :  { %v5648_v53 = vadd.f32 %v5639_v43, %v5608_v60  ;;  %v5647_v45 = vadd.f32 %v5637_v57, %v5607_v50  ;;  %v5847_v35 = vmul.f32 %v12097_v10, %v12097_v10  ;;  %v5990_v15 = vmul.f32 %v12099_v54, %v12099_v54 }
 0x663   :  { %v12159_v17 = vmul.f32 %v12101_v24, %v12101_v24 }
 0x664   :  { %v5654_v44 = vmul.f32 %v12082_v1, %v5648_v53  ;;  %v5664_v42 = vmul.f32 %v12084_v16, %v5648_v53  ;;  %v5674_v52 = vmul.f32 %v12086_v47, %v5648_v53  ;;  %v5653_v11 = vmul.f32 %v12082_v1, %v5647_v45 }
 0x665   :  { %v5663_v6 = vmul.f32 %v12084_v16, %v5647_v45  ;;  %v5673_v8 = vmul.f32 %v12086_v47, %v5647_v45  ;;  %v5683_v32 = vmul.f32 %v12088_v0, %v5647_v45  ;;  %v5601_v58 = vpop.permute.xlu1 %5600  ;;  %v5851_v29 = vsel %vm5691_vm12, %v5847_v35, 0.0 }
 0x666   :  { %v12124_v37 = vadd.f32 %v5654_v44, %v4261_v30  ;;  %v12126_v56 = vadd.f32 %v5664_v42, %v4271_v48  ;;  %v12130_v41 = vadd.f32 %v5674_v52, %v4281_v49  ;;  %v12132_v25 = vadd.f32 %v5653_v11, %v4260_v46 }
 0x667   :  { %v12134_v62 = vadd.f32 %v5663_v6, %v4270_v34  ;;  %v12136_v7 = vadd.f32 %v5673_v8, %v4280_v20  ;;  %v12138_v26 = vadd.f32 %v5683_v32, %v4290_v61  ;;  %v5609_v40 = vadd.f32 %v5601_v58, %v12061_v31 }
 0x668   :  { %v5712_v30 = vsel %vm5691_vm12, %v5708_v14, 0.0  ;;  %v5974_v48 = vsel %vm5691_vm12, %v12099_v54, 0.0  ;;  %v5693_v46 = vsel %vm5691_vm12, %v12132_v25, 0.0  ;;  %v5709_v34 = vmul.f32 %v12132_v25, %v12132_v25 }
 0x669   :  { %v5641_v49 = vpop.permute.xlu1 %5640  ;;  %v5710_v20 = vmul.f32 %v12124_v37, %v12124_v37  ;;  %v6117_v31 = vsel %vm5691_vm12, %v12101_v24, 0.0  ;;  %v5684_v61 = vmul.f32 %v12088_v0, %v5648_v53  ;;  %v5694_v4 = vadd.f32 %v5693_v46, %v5692_v19 }
 0x66a   :  { %v5649_v36 = vadd.f32 %v5641_v49, %v5609_v40  ;;  %v5713_v51 = vsel %vm5691_vm12, %v5709_v34, 0.0  ;;  %v5832_v13 = vsel %vm5691_vm12, %v12134_v62, 0.0  ;;  %v5975_v18 = vsel %vm5691_vm12, %v12136_v7, 0.0 }
 0x66b   :  { %v5848_v9 = vmul.f32 %v12134_v62, %v12134_v62  ;;  %v5695_v33 = vsel %vm5691_vm12, %v12124_v37, 0.0  ;;  %v5714_v27 = vadd.f32 %v5713_v51, %v5712_v30  ;;  %v5715_v50 = vsel %vm5691_vm12, %v5710_v20, 0.0 }
 0x66c   :  { %v5655_v23 = vmul.f32 %v12082_v1, %v5649_v36  ;;  %v5665_v39 = vmul.f32 %v12084_v16, %v5649_v36  ;;  %v5675_v12 = vmul.f32 %v12086_v47, %v5649_v36  ;;  %v5834_v60 = vsel %vm5691_vm12, %v12126_v56, 0.0 }
 0x66d   :  { %v5685_v43 = vmul.f32 %v12088_v0, %v5649_v36  ;;  %v5696_v47 = vadd.f32 %v5695_v33, %v5694_v4  ;;  %v5833_v5 = vadd.f32 %v5832_v13, %v5831_v2  ;;  %v5976_v3 = vadd.f32 %v5975_v18, %v5974_v48 }
 0x66e   :  { %v12177_v57 = vadd.f32 %v5655_v23, %v4262_v38  ;;  %v12179_v1 = vadd.f32 %v5665_v39, %v4272_v21  ;;  %v12181_v16 = vadd.f32 %v5675_v12, %v4282_v63  ;;  %v12184_v28 = vadd.f32 %v5684_v61, %v12079_v22 }
 0x66f   :  { %v5849_v0 = vmul.f32 %v12126_v56, %v12126_v56  ;;  %v5852_v38 = vsel %vm5691_vm12, %v5848_v9, 0.0  ;;  %v5716_v63 = vadd.f32 %v5715_v50, %v5714_v27  ;;  %v12199_v42 = vadd.f32 %v5685_v43, %v4292_v59 }
 0x670   :  { %v5697_v53 = vsel %vm5691_vm12, %v12177_v57, 0.0  ;;  %v5711_v45 = vmul.f32 %v12177_v57, %v12177_v57  ;;  %v5836_v19 = vsel %vm5691_vm12, %v12179_v1, 0.0  ;;  %v5850_v44 = vmul.f32 %v12179_v1, %v12179_v1 }
 0x671   :  { %v5698_v21 = vadd.f32 %v5697_v53, %v5696_v47  ;;  %v6118_v52 = vsel %vm5691_vm12, %v12138_v26, 0.0  ;;  %v5835_v11 = vadd.f32 %v5834_v60, %v5833_v5  ;;  %v5977_v6 = vsel %vm5691_vm12, %v12130_v41, 0.0 }
 0x672   :  { %v5717_v22 = vsel %vm5691_vm12, %v5711_v45, 0.0  ;;  %v5853_v8 = vadd.f32 %v5852_v38, %v5851_v29  ;;  %v5978_v32 = vadd.f32 %v5977_v6, %v5976_v3  ;;  %v5979_v58 = vsel %vm5691_vm12, %v12181_v16, 0.0 }
 0x673   :  { %5699 = vadd.xlane.f32.xlu0 %v5698_v21  ;;  %v5718_v14 = vadd.f32 %v5717_v22, %v5716_v63  ;;  %v5854_v2 = vsel %vm5691_vm12, %v5849_v0, 0.0  ;;  %v5991_v59 = vmul.f32 %v12136_v7, %v12136_v7  ;;  %v5837_v40 = vadd.f32 %v5836_v19, %v5835_v11 }
 0x674   :  { %v6119_v30 = vadd.f32 %v6118_v52, %v6117_v31  ;;  %v5992_v48 = vmul.f32 %v12130_v41, %v12130_v41  ;;  %v6134_v35 = vmul.f32 %v12138_v26, %v12138_v26  ;;  %v5856_v49 = vsel %vm5691_vm12, %v5850_v44, 0.0 }
 0x675   :  { %5719 = vadd.xlane.f32.xlu1 %v5718_v14  ;;  %v5993_v46 = vmul.f32 %v12181_v16, %v12181_v16  ;;  %v5994_v34 = vsel %vm5691_vm12, %v5990_v15, 0.0  ;;  %v5995_v20 = vsel %vm5691_vm12, %v5991_v59, 0.0  ;;  %v5980_v61 = vadd.f32 %v5979_v58, %v5978_v32 }
 0x676   :  { %v5855_v36 = vadd.f32 %v5854_v2, %v5853_v8  ;;  %v5996_v4 = vadd.f32 %v5995_v20, %v5994_v34  ;;  %v6120_v31 = vsel %vm5691_vm12, %v12184_v28, 0.0  ;;  %v6122_v51 = vsel %vm5691_vm12, %v12199_v42, 0.0 }
 0x677   :  { %5838 = vadd.xlane.f32.xlu0 %v5837_v40  ;;  %v6138_v13 = vsel %vm5691_vm12, %v6134_v35, 0.0  ;;  %v6121_v23 = vadd.f32 %v6120_v31, %v6119_v30  ;;  %v5997_v39 = vsel %vm5691_vm12, %v5992_v48, 0.0  ;;  %v5999_v15 = vsel %vm5691_vm12, %v5993_v46, 0.0 }
 0x678   :  { %v5857_v18 = vadd.f32 %v5856_v49, %v5855_v36  ;;  %v6135_v12 = vmul.f32 %v12184_v28, %v12184_v28  ;;  %v6136_v9 = vmul.f32 %v12199_v42, %v12199_v42  ;;  %v6137_v33 = vsel %vm5691_vm12, %v12159_v17, 0.0 }
 0x679   :  { %5981 = vadd.xlane.f32.xlu1 %v5980_v61  ;;  %v6123_v27 = vadd.f32 %v6122_v51, %v6121_v23  ;;  %v5998_v50 = vadd.f32 %v5997_v39, %v5996_v4  ;;  %v6139_v60 = vadd.f32 %v6138_v13, %v6137_v33 }
 0x67a   :  { %v6140_v47 = vsel %vm5691_vm12, %v6135_v12, 0.0  ;;  %v6142_v5 = vsel %vm5691_vm12, %v6136_v9, 0.0 }
 0x67b   :  { %5858 = vadd.xlane.f32.xlu0 %v5857_v18  ;;  %v6000_v43 = vadd.f32 %v5999_v15, %v5998_v50  ;;  %v6141_v3 = vadd.f32 %v6140_v47, %v6139_v60 }
 0x67d   :  { %6124 = vadd.xlane.f32.xlu1 %v6123_v27  ;;  %v6143_v53 = vadd.f32 %v6142_v5, %v6141_v3  ;;  %v12251_v27 = vstv %s12463_s6  ;;  %s6666_s6 = smov 6  }
 0x67f   :  { %6001 = vadd.xlane.f32.xlu0 %v6000_v43 }
 0x683   :  { %6144 = vadd.xlane.f32.xlu0 %v6143_v53 }
 0x6fc   :  { %v5700_v45 = vpop.xlane.xlu0 %5699 }
 0x6fd   :  { %v5701_v0 = vrot.slane %v5700_v45, 4 }
 0x6fe   :  { %v5720_v38 = vpop.xlane.xlu1 %5719 }
 0x6ff   :  { %v5702_v21 = vadd.f32 %v5701_v0, %v5700_v45  ;;  %v5721_v63 = vrot.slane %v5720_v38, 4 }
 0x700   :  { %v5839_v8 = vpop.xlane.xlu0 %5838 }
 0x701   :  { %v5703_v17 = vrot.slane %v5702_v21, 2  ;;  %v5722_v19 = vadd.f32 %v5721_v63, %v5720_v38  ;;  %v5840_v58 = vrot.slane %v5839_v8, 4 }
 0x702   :  { %v5982_v31 = vpop.xlane.xlu1 %5981 }
 0x703   :  { %v5723_v29 = vrot.slane %v5722_v19, 2  ;;  %v5704_v22 = vadd.f32 %v5703_v17, %v5702_v21  ;;  %v5841_v59 = vadd.f32 %v5840_v58, %v5839_v8  ;;  %v5983_v18 = vrot.slane %v5982_v31, 4 }
 0x704   :  { %v5859_v32 = vpop.xlane.xlu0 %5858 }
 0x705   :  { %v5705_v44 = vrot.slane %v5704_v22, 1  ;;  %v5724_v52 = vadd.f32 %v5723_v29, %v5722_v19  ;;  %v5860_v2 = vrot.slane %v5859_v32, 4  ;;  %v5842_v48 = vrot.slane %v5841_v59, 2 }
 0x706   :  { %v5984_v5 = vadd.f32 %v5983_v18, %v5982_v31 }
 0x707   :  { %v5706_v14 = vadd.f32 %v5705_v44, %v5704_v22  ;;  %v5725_v11 = vrot.slane %v5724_v52, 1  ;;  %v5861_v40 = vadd.f32 %v5860_v2, %v5859_v32  ;;  %v5843_v49 = vadd.f32 %v5842_v48, %v5841_v59 }
 0x708   :  { %v6002_v51 = vpop.xlane.xlu0 %6001  ;;  %v5985_v17 = vrot.slane %v5984_v5, 2 }
 0x709   :  { %6476 = vpush %v5706_v14  ;;  %v5726_v6 = vadd.f32 %v5725_v11, %v5724_v52  ;;  %v5862_v35 = vrot.slane %v5861_v40, 2  ;;  %v5844_v34 = vrot.slane %v5843_v49, 1  ;;  %v6003_v23 = vrot.slane %v6002_v51, 4 }
 0x70a   :  { %v5986_v14 = vadd.f32 %v5985_v17, %v5984_v5  ;;  %v6563_v5 = vld [vmem:[%s12457_s0 + $0x8] sm:$0xff]  ;;  %v6566_v17 = vld [vmem:[%s12457_s0 + $0x80] sm:$0xff] }
 0x70b   :  { %6478 = vpush %v5726_v6  ;;  %v5863_v46 = vadd.f32 %v5862_v35, %v5861_v40  ;;  %v5845_v36 = vadd.f32 %v5844_v34, %v5843_v49  ;;  %v6004_v3 = vadd.f32 %v6003_v23, %v6002_v51  ;;  %v6125_v40 = vpop.xlane.xlu1 %6124 }
 0x70c   :  { %v5987_v8 = vrot.slane %v5986_v14, 1  ;;  %v6126_v48 = vrot.slane %v6125_v40, 4 }
 0x70d   :  { %v5864_v20 = vrot.slane %v5863_v46, 1  ;;  %v6005_v29 = vrot.slane %v6004_v3, 2 }
 0x70e   :  { %v5988_v2 = vadd.f32 %v5987_v8, %v5986_v14  ;;  %v6127_v49 = vadd.f32 %v6126_v48, %v6125_v40 }
 0x70f   :  { %v5865_v4 = vadd.f32 %v5864_v20, %v5863_v46  ;;  %v6006_v6 = vadd.f32 %v6005_v29, %v6004_v3 }
 0x710   :  { %v6128_v20 = vrot.slane %v6127_v49, 2 }
 0x711   :  { %v6007_v32 = vrot.slane %v6006_v6, 1 }
 0x713   :  { %v6008_v59 = vadd.f32 %v6007_v32, %v6006_v6 }
 0x73a   :  { %s6477_s25 = spop %6476 }
 0x73b   :  { %s12234_s26 = smul.f32 0.001953125, %s6477_s25 }
 0x73c   :  { %s6479_s28 = spop %6478 }
 0x73d   :  { %s5730_s27 = smul.f32 %s12234_s26, %s12234_s26 }
 0x73e   :  { %s5729_s29 = smul.f32 0.001953125, %s6479_s28 }
 0x740   :  { %s5731_s30 = ssub.f32 %s5729_s29, %s5730_s27 }
 0x742   :  { %s5732_s2 = smax.f32 %s6665_s9, %s5731_s30 }
 0x743   :  { %s5733_s4 = sadd.f32 1e-05, %s5732_s2 }
 0x745   :  { %v5734_v30 = vstv %s5733_s4  ;;  %s6452_s4 = sld [smem:[#allocation9 + $0x1]] }
 0x746   :  { %6514 = vrsqrt.f32 %v5734_v30  ;;  %v6145_v30 = vpop.xlane.xlu0 %6144 }
 0x747   :  { %v6146_v35 = vrot.slane %v6145_v30, 4 }
 0x749   :  { %v6147_v46 = vadd.f32 %v6146_v35, %v6145_v30 }
 0x753   :  { %v6515_v61 = vpop.eup %6514 }
 0x754   :  { %6480 = vpush %v6515_v61  ;;  %v6148_v61 = vrot.slane %v6147_v46, 2 }
 0x755   :  { %6482 = vpush %v5845_v36  ;;  %v6129_v36 = vadd.f32 %v6128_v20, %v6127_v49 }
 0x756   :  { %6484 = vpush %v5865_v4  ;;  %v6149_v4 = vadd.f32 %v6148_v61, %v6147_v46 }
 0x757   :  { %v6130_v31 = vrot.slane %v6129_v36, 1 }
 0x758   :  { %v6150_v51 = vrot.slane %v6149_v4, 1 }
 0x759   :  { %v6131_v18 = vadd.f32 %v6130_v31, %v6129_v36 }
 0x75a   :  { %v6151_v23 = vadd.f32 %v6150_v51, %v6149_v4 }
 0x785   :  { %s6481_s13 = spop %6480 }
 0x786   :  { %s5738_s15 = smul.f32 %s6481_s13, %s5737_s10  ;;  %s6483_s17 = spop %6482 }
 0x787   :  { %s12239_s16 = smul.f32 0.001953125, %s6483_s17  ;;  %s6485_s1 = spop %6484 }
 0x788   :  { %s5740_s3 = smul.f32 %s5738_s15, %s12234_s26  ;;  %v5742_v13 = vstv %s5738_s15  ;;  %s6468_s17 = sld [smem:[#allocation9 + $0x3]] }
 0x789   :  { %s5869_s18 = smul.f32 %s12239_s16, %s12239_s16  ;;  %v5743_v39 = vmul.f32 %v5742_v13, %v12095_v55  ;;  %v5744_v15 = vmul.f32 %v5742_v13, %v12132_v25  ;;  %v5745_v12 = vmul.f32 %v5742_v13, %v12124_v37  ;;  %v5746_v9 = vmul.f32 %v5742_v13, %v12177_v57 }
 0x78a   :  { %s5741_s19 = ssub.f32 %s5739_s11, %s5740_s3  ;;  %s5868_s8 = smul.f32 0.001953125, %s6485_s1 }
 0x78b   :  { %s6453_s11 = sld [smem:[#allocation11 + $0x1]] }
 0x78c   :  { %v5747_v33 = vstv %s5741_s19  ;;  %s5870_s12 = ssub.f32 %s5868_s8, %s5869_s18 }
 0x78d   :  { %v5748_v50 = vadd.f32 %v5747_v33, %v5743_v39  ;;  %v5749_v60 = vadd.f32 %v5747_v33, %v5744_v15  ;;  %v5750_v43 = vadd.f32 %v5747_v33, %v5745_v12  ;;  %v5751_v47 = vadd.f32 %v5747_v33, %v5746_v9 }
 0x78e   :  { %s5871_s22 = smax.f32 %s6665_s9, %s5870_s12 }
 0x78f   :  { %s5872_s23 = sadd.f32 1e-05, %s5871_s22  ;;  %vm5752_vm13 = vcmp.ge.f32.partialorder %v5748_v50, 0.0  ;;  %v5757_v55 = vmul.f32 %v12251_v27, %v5748_v50  ;;  %vm5753_vm14 = vcmp.ge.f32.partialorder %v5749_v60, 0.0  ;;  %v5758_v37 = vmul.f32 %v12251_v27, %v5749_v60 }
 0x790   :  { %vm5754_vm15 = vcmp.ge.f32.partialorder %v5750_v43, 0.0  ;;  %vm5755_vm1 = vcmp.ge.f32.partialorder %v5751_v47, 0.0  ;;  %v5759_v25 = vmul.f32 %v12251_v27, %v5750_v43  ;;  %v5760_v57 = vmul.f32 %v12251_v27, %v5751_v47 }
 0x791   :  { %v5873_v53 = vstv %s5872_s23  ;;  %v5761_v45 = vsel %vm5752_vm13, %v5748_v50, %v5757_v55  ;;  %v5762_v0 = vsel %vm5753_vm14, %v5749_v60, %v5758_v37  ;;  %v6562_v50 = vld [vmem:[%s12457_s0] sm:$0xff] }
 0x792   :  { %6516 = vrsqrt.f32 %v5873_v53  ;;  %v5769_v38 = vrot.slane %v5761_v45, 2  ;;  %v5770_v21 = vrot.slane %v5762_v0, 2  ;;  %v5763_v63 = vsel %vm5754_vm15, %v5750_v43, %v5759_v25  ;;  %v6564_v25 = vld [vmem:[%s12457_s0 + $0x10] sm:$0xff] }
 0x793   :  { %v5764_v19 = vsel %vm5755_vm1, %v5751_v47, %v5760_v57  ;;  %v5772_v44 = vrot.slane %v5763_v63, 2 }
 0x794   :  { %5775 = vrot.lane.b32.xlu1 %v5769_v38, %s6666_s6  ;;  %v5771_v22 = vsel %vm298_vm0, %v5769_v38, %v5770_v21  ;;  %v5773_v52 = vrot.slane %v5764_v19, 2 }
 0x795   :  { %5777 = vrot.lane.b32.xlu0 %v5771_v22, %s6666_s6 }
 0x796   :  { %v5774_v11 = vsel %vm298_vm0, %v5772_v44, %v5773_v52 }
 0x798   :  { %5779 = vrot.lane.b32.xlu1 %v5770_v21, %s6666_s6 }
 0x799   :  { %5783 = vrot.lane.b32.xlu0 %v5774_v11, %s6666_s6  ;;  %v6567_v11 = vld [vmem:[%s12457_s0 + $0x90] sm:$0xff] }
 0x79c   :  { %5781 = vrot.lane.b32.xlu1 %v5772_v44, %s6666_s6 }
 0x79f   :  { %v6517_v58 = vpop.eup %6516 }
 0x7a0   :  { %6486 = vpush %v6517_v58  ;;  %5785 = vrot.lane.b32.xlu1 %v5773_v52, %s6666_s6 }
 0x7a1   :  { %6488 = vpush %v5988_v2 }
 0x7a2   :  { %6490 = vpush %v6008_v59 }
 0x7d1   :  { %s12266_s5 = spop %6486 }
 0x7d2   :  { %s6489_s24 = spop %6488  ;;  %s5877_s10 = smul.f32 %s12266_s5, %s6452_s4 }
 0x7d3   :  { %s12268_s25 = smul.f32 0.001953125, %s6489_s24  ;;  %s6491_s26 = spop %6490 }
 0x7d4   :  { %s6011_s28 = smul.f32 0.001953125, %s6491_s26  ;;  %v5881_v39 = vstv %s5877_s10 }
 0x7d5   :  { %s6012_s27 = smul.f32 %s12268_s25, %s12268_s25  ;;  %v5882_v12 = vmul.f32 %v5881_v39, %v12097_v10  ;;  %v5883_v33 = vmul.f32 %v5881_v39, %v12134_v62  ;;  %v5884_v10 = vmul.f32 %v5881_v39, %v12126_v56  ;;  %v5885_v62 = vmul.f32 %v5881_v39, %v12179_v1  ;;  %v6565_v56 = vld [vmem:[%s12457_s0 + $0x88] sm:$0xff] }
 0x7d6   :  { %s5879_s13 = smul.f32 %s5877_s10, %s12239_s16  ;;  %s6460_s10 = sld [smem:[#allocation9 + $0x2]] }
 0x7d7   :  { %s6013_s29 = ssub.f32 %s6011_s28, %s6012_s27 }
 0x7d8   :  { %s5880_s15 = ssub.f32 %s6453_s11, %s5879_s13 }
 0x7d9   :  { %s6014_s30 = smax.f32 %s6665_s9, %s6013_s29  ;;  %s6461_s13 = sld [smem:[#allocation11 + $0x2]] }
 0x7da   :  { %s6015_s2 = sadd.f32 1e-05, %s6014_s30  ;;  %v5886_v15 = vstv %s5880_s15 }
 0x7db   :  { %v5887_v47 = vadd.f32 %v5886_v15, %v5882_v12  ;;  %v5888_v55 = vadd.f32 %v5886_v15, %v5883_v33  ;;  %v5889_v0 = vadd.f32 %v5886_v15, %v5884_v10  ;;  %v5890_v38 = vadd.f32 %v5886_v15, %v5885_v62  ;;  %v6457_v62 = vld [vmem:[%s12457_s0 + $0xa0] sm:$0xff] }
 0x7dc   :  { %v6016_v34 = vstv %s6015_s2 }
 0x7dd   :  { %6518 = vrsqrt.f32 %v6016_v34  ;;  %v5895_v45 = vmul.f32 %v5887_v47, %v12251_v27  ;;  %vm5891_vm2 = vcmp.ge.f32.partialorder %v5887_v47, 0.0  ;;  %v5896_v21 = vmul.f32 %v5888_v55, %v12251_v27 }
 0x7de   :  { %vm5892_vm3 = vcmp.ge.f32.partialorder %v5888_v55, 0.0  ;;  %v5897_v44 = vmul.f32 %v5889_v0, %v12251_v27  ;;  %v5898_v52 = vmul.f32 %v5890_v38, %v12251_v27  ;;  %vm5893_vm4 = vcmp.ge.f32.partialorder %v5889_v0, 0.0 }
 0x7df   :  { %v5899_v29 = vsel %vm5891_vm2, %v5887_v47, %v5895_v45  ;;  %v5900_v22 = vsel %vm5892_vm3, %v5888_v55, %v5896_v21  ;;  %vm5894_vm5 = vcmp.ge.f32.partialorder %v5890_v38, 0.0 }
 0x7e0   :  { %v5913_v8 = vrot.slane %v5899_v29, 2  ;;  %v5914_v32 = vrot.slane %v5900_v22, 2  ;;  %v5901_v58 = vsel %vm5893_vm4, %v5889_v0, %v5897_v44  ;;  %v5902_v2 = vsel %vm5894_vm5, %v5890_v38, %v5898_v52 }
 0x7e1   :  { %v5916_v40 = vrot.slane %v5901_v58, 2  ;;  %v5917_v30 = vrot.slane %v5902_v2, 2 }
 0x7e2   :  { %v5915_v59 = vsel %vm298_vm0, %v5913_v8, %v5914_v32 }
 0x7e3   :  { %v5918_v48 = vsel %vm298_vm0, %v5916_v40, %v5917_v30 }
 0x7ea   :  { %v6519_v13 = vpop.eup %6518 }
 0x7eb   :  { %6492 = vpush %v6519_v13 }
 0x7ec   :  { %6494 = vpush %v6131_v18  ;;  %v6454_v18 = vld [vmem:[%s12457_s0 + $0x20] sm:$0xff] }
 0x7ed   :  { %6496 = vpush %v6151_v23 }
 0x806   :  { %v5776_v9 = vpop.permute.xlu1 %5775 }
 0x807   :  { %v5793_v60 = vadd.f32 %v6562_v50, %v5776_v9  ;;  %v5778_v43 = vpop.permute.xlu0 %5777 }
 0x808   :  { %v5794_v3 = vadd.f32 %v6563_v5, %v5778_v43 }
 0x809   :  { %5805 = vrot.lane.b32.xlu0 %v5793_v60, %s6663_s14 }
 0x80a   :  { %v5780_v37 = vpop.permute.xlu1 %5779  ;;  %5807 = vrot.lane.b32.xlu1 %v5794_v3, %s6663_s14 }
 0x80b   :  { %v5795_v57 = vadd.f32 %v6564_v25, %v5780_v37  ;;  %v5784_v53 = vpop.permute.xlu0 %5783  ;;  %v6458_v25 = vld [vmem:[%s12457_s0 + $0xa8] sm:$0xff] }
 0x80c   :  { %v5797_v1 = vadd.f32 %v6565_v56, %v5784_v53 }
 0x80d   :  { %5809 = vrot.lane.b32.xlu0 %v5795_v57, %s6663_s14 }
 0x80e   :  { %v5782_v63 = vpop.permute.xlu1 %5781 }
 0x80f   :  { %v5796_v19 = vadd.f32 %v6566_v17, %v5782_v63 }
 0x811   :  { %5811 = vrot.lane.b32.xlu1 %v5796_v19, %s6663_s14  ;;  %5813 = vrot.lane.b32.xlu0 %v5797_v1, %s6663_s14 }
 0x812   :  { %v5786_v14 = vpop.permute.xlu1 %5785 }
 0x813   :  { %v5798_v6 = vadd.f32 %v6567_v11, %v5786_v14 }
 0x815   :  { %5815 = vrot.lane.b32.xlu1 %v5798_v6, %s6663_s14  ;;  %5919 = vrot.lane.b32.xlu0 %v5913_v8, %s6666_s6 }
 0x819   :  { %5921 = vrot.lane.b32.xlu1 %v5915_v59, %s6666_s6  ;;  %5923 = vrot.lane.b32.xlu0 %v5914_v32, %s6666_s6 }
 0x81c   :  { %s6493_s5 = spop %6492 }
 0x81d   :  { %5925 = vrot.lane.b32.xlu1 %v5916_v40, %s6666_s6  ;;  %5927 = vrot.lane.b32.xlu0 %v5918_v48, %s6666_s6  ;;  %s6495_s24 = spop %6494  ;;  %s6020_s11 = smul.f32 %s6493_s5, %s6460_s10 }
 0x81e   :  { %s12314_s26 = smul.f32 0.001953125, %s6495_s24  ;;  %s6497_s27 = spop %6496 }
 0x81f   :  { %s6154_s29 = smul.f32 0.001953125, %s6497_s27  ;;  %v6024_v61 = vstv %s6020_s11 }
 0x820   :  { %s6155_s28 = smul.f32 %s12314_s26, %s12314_s26  ;;  %v6025_v51 = vmul.f32 %v6024_v61, %v12099_v54  ;;  %v6026_v13 = vmul.f32 %v6024_v61, %v12136_v7  ;;  %v6455_v54 = vld [vmem:[%s12457_s0 + $0x28] sm:$0xff]  ;;  %v6456_v7 = vld [vmem:[%s12457_s0 + $0x30] sm:$0xff]  ;;  %v6027_v60 = vmul.f32 %v6024_v61, %v12130_v41  ;;  %v6028_v5 = vmul.f32 %v6024_v61, %v12181_v16 }
 0x821   :  { %5929 = vrot.lane.b32.xlu1 %v5917_v30, %s6666_s6  ;;  %s6022_s15 = smul.f32 %s6020_s11, %s12268_s25  ;;  %s6469_s25 = sld [smem:[#allocation11 + $0x3]] }
 0x822   :  { %s6156_s30 = ssub.f32 %s6154_s29, %s6155_s28 }
 0x823   :  { %s6023_s1 = ssub.f32 %s6461_s13, %s6022_s15 }
 0x824   :  { %s6157_s2 = smax.f32 %s6665_s9, %s6156_s30 }
 0x825   :  { %s6158_s4 = sadd.f32 1e-05, %s6157_s2  ;;  %v6029_v36 = vstv %s6023_s1 }
 0x826   :  { %v6030_v23 = vadd.f32 %v6029_v36, %v6025_v51  ;;  %v6031_v39 = vadd.f32 %v6029_v36, %v6026_v13  ;;  %v6032_v37 = vadd.f32 %v6029_v36, %v6027_v60  ;;  %v6033_v41 = vadd.f32 %v6029_v36, %v6028_v5  ;;  %v6464_v60 = vld [vmem:[%s12457_s0 + $0x50] sm:$0xff] }
 0x827   :  { %v6159_v35 = vstv %s6158_s4 }
 0x828   :  { %6520 = vrsqrt.f32 %v6159_v35  ;;  %v6038_v33 = vmul.f32 %v6030_v23, %v12251_v27  ;;  %v6039_v50 = vmul.f32 %v6031_v39, %v12251_v27  ;;  %vm6034_vm8 = vcmp.ge.f32.partialorder %v6030_v23, 0.0 }
 0x829   :  { %vm6035_vm9 = vcmp.ge.f32.partialorder %v6031_v39, 0.0  ;;  %v6040_v19 = vmul.f32 %v6032_v37, %v12251_v27  ;;  %vm6036_vm10 = vcmp.ge.f32.partialorder %v6032_v37, 0.0  ;;  %v6041_v44 = vmul.f32 %v6033_v41, %v12251_v27 }
 0x82a   :  { %v6042_v57 = vsel %vm6034_vm8, %v6030_v23, %v6038_v33  ;;  %v6043_v53 = vsel %vm6035_vm9, %v6031_v39, %v6039_v50  ;;  %vm6037_vm11 = vcmp.ge.f32.partialorder %v6033_v41, 0.0 }
 0x82b   :  { %v6056_v1 = vrot.slane %v6042_v57, 2  ;;  %v6057_v17 = vrot.slane %v6043_v53, 2  ;;  %v6044_v52 = vsel %vm6036_vm10, %v6032_v37, %v6040_v19  ;;  %v6466_v37 = vld [vmem:[%s12457_s0 + $0xc8] sm:$0xff]  ;;  %v6470_v53 = vld [vmem:[%s12457_s0 + $0x60] sm:$0xff] }
 0x82c   :  { %v6059_v32 = vrot.slane %v6044_v52, 2 }
 0x835   :  { %v6521_v49 = vpop.eup %6520 }
 0x836   :  { %6498 = vpush %v6521_v49 }
 0x867   :  { %s6499_s9 = spop %6498 }
 0x868   :  { %s12324_s3 = smul.f32 %s6499_s9, %s6468_s17 }
 0x86a   :  { %s6165_s19 = smul.f32 %s12324_s3, %s12314_s26  ;;  %v6167_v10 = vstv %s12324_s3 }
 0x86b   :  { %v6168_v38 = vmul.f32 %v6167_v10, %v12101_v24  ;;  %v6169_v21 = vmul.f32 %v6167_v10, %v12138_v26  ;;  %v6058_v24 = vsel %vm298_vm0, %v6056_v1, %v6057_v17  ;;  %v6045_v26 = vsel %vm6037_vm11, %v6033_v41, %v6041_v44  ;;  %v6475_v44 = vld [vmem:[%s12457_s0 + $0xf0] sm:$0xff] }
 0x86c   :  { %s6166_s22 = ssub.f32 %s6469_s25, %s6165_s19  ;;  %v6170_v6 = vmul.f32 %v6167_v10, %v12184_v28  ;;  %v6171_v8 = vmul.f32 %v6167_v10, %v12199_v42  ;;  %v6060_v2 = vrot.slane %v6045_v26, 2  ;;  %v6467_v10 = vld [vmem:[%s12457_s0 + $0xd0] sm:$0xff] }
 0x86e   :  { %v6172_v16 = vstv %s6166_s22  ;;  %v6061_v48 = vsel %vm298_vm0, %v6059_v32, %v6060_v2 }
 0x86f   :  { %v6173_v29 = vadd.f32 %v6172_v16, %v6168_v38  ;;  %v6174_v22 = vadd.f32 %v6172_v16, %v6169_v21  ;;  %v6175_v58 = vadd.f32 %v6172_v16, %v6170_v6  ;;  %v6176_v59 = vadd.f32 %v6172_v16, %v6171_v8  ;;  %v6471_v16 = vld [vmem:[%s12457_s0 + $0x68] sm:$0xff] }
 0x871   :  { %v6181_v14 = vmul.f32 %v6173_v29, %v12251_v27  ;;  %v6182_v11 = vmul.f32 %v6174_v22, %v12251_v27  ;;  %vm6177_vm13 = vcmp.ge.f32.partialorder %v6173_v29, 0.0  ;;  %vm6178_vm14 = vcmp.ge.f32.partialorder %v6174_v22, 0.0 }
 0x872   :  { %v6183_v28 = vmul.f32 %v6175_v58, %v12251_v27  ;;  %vm6179_vm15 = vcmp.ge.f32.partialorder %v6175_v58, 0.0  ;;  %v6184_v42 = vmul.f32 %v6176_v59, %v12251_v27  ;;  %vm6180_vm1 = vcmp.ge.f32.partialorder %v6176_v59, 0.0 }
 0x873   :  { %v6185_v40 = vsel %vm6177_vm13, %v6173_v29, %v6181_v14  ;;  %v6186_v30 = vsel %vm6178_vm14, %v6174_v22, %v6182_v11  ;;  %v6474_v22 = vld [vmem:[%s12457_s0 + $0xe8] sm:$0xff] }
 0x874   :  { %v6199_v35 = vrot.slane %v6185_v40, 2  ;;  %v6200_v49 = vrot.slane %v6186_v30, 2 }
 0x87b   :  { %v5806_v46 = vpop.permute.xlu0 %5805 }
 0x87c   :  { %5824 = vst.msk [vmem:[#allocation12 - $0x6] sm:$0xc0] %vm5823_vm6, %v5806_v46  ;;  %v5808_v34 = vpop.permute.xlu1 %5807  ;;  %v6201_v46 = vsel %vm298_vm0, %v6199_v35, %v6200_v49 }
 0x87d   :  { %5825 = vst.msk [vmem:[#allocation12 + $0x2] sm:$0xff] %vm5691_vm12, %v5808_v34  ;;  %v6187_v34 = vsel %vm6179_vm15, %v6175_v58, %v6183_v28 }
 0x87e   :  { %v6202_v61 = vrot.slane %v6187_v34, 2 }
 0x87f   :  { %v5810_v20 = vpop.permute.xlu0 %5809 }
 0x880   :  { %5827 = vst.msk [vmem:[#allocation12 + $0xa] sm:$0x3f] %vm5826_vm7, %v5810_v20  ;;  %v6188_v20 = vsel %vm6180_vm1, %v6176_v59, %v6184_v42 }
 0x881   :  { %v6203_v36 = vrot.slane %v6188_v20, 2 }
 0x883   :  { %v5812_v4 = vpop.permute.xlu1 %5811  ;;  %v5814_v31 = vpop.permute.xlu0 %5813 }
 0x884   :  { %5828 = vst.msk [vmem:[#allocation12 + $0x3a] sm:$0xc0] %vm5823_vm6, %v5812_v4  ;;  %v6459_v4 = vld [vmem:[%s12457_s0 + $0xb0] sm:$0xff] }
 0x885   :  { %5829 = vst.msk [vmem:[#allocation12 + $0x42] sm:$0xff] %vm5691_vm12, %v5814_v31  ;;  %v6204_v31 = vsel %vm298_vm0, %v6202_v61, %v6203_v36 }
 0x887   :  { %v5816_v15 = vpop.permute.xlu1 %5815  ;;  %v5920_v12 = vpop.permute.xlu0 %5919 }
 0x888   :  { %5830 = vst.msk [vmem:[#allocation12 + $0x4a] sm:$0x3f] %vm5826_vm7, %v5816_v15  ;;  %v5937_v9 = vadd.f32 %v6454_v18, %v5920_v12  ;;  %v6462_v12 = vld [vmem:[%s12457_s0 + $0x40] sm:$0xff] }
 0x88a   :  { %5949 = vrot.lane.b32.xlu0 %v5937_v9, %s6663_s14  ;;  %v6463_v9 = vld [vmem:[%s12457_s0 + $0x48] sm:$0xff] }
 0x88b   :  { %v5922_v43 = vpop.permute.xlu1 %5921  ;;  %v5924_v47 = vpop.permute.xlu0 %5923 }
 0x88c   :  { %v5938_v3 = vadd.f32 %v6455_v54, %v5922_v43  ;;  %v5939_v55 = vadd.f32 %v6456_v7, %v5924_v47  ;;  %v6465_v43 = vld [vmem:[%s12457_s0 + $0xc0] sm:$0xff] }
 0x88e   :  { %5951 = vrot.lane.b32.xlu1 %v5938_v3, %s6663_s14  ;;  %5953 = vrot.lane.b32.xlu0 %v5939_v55, %s6663_s14 }
 0x88f   :  { %v5926_v45 = vpop.permute.xlu1 %5925  ;;  %v5928_v0 = vpop.permute.xlu0 %5927 }
 0x890   :  { %v5940_v63 = vadd.f32 %v6457_v62, %v5926_v45  ;;  %v5941_v56 = vadd.f32 %v6458_v25, %v5928_v0 }
 0x892   :  { %5955 = vrot.lane.b32.xlu1 %v5940_v63, %s6663_s14  ;;  %5957 = vrot.lane.b32.xlu0 %v5941_v56, %s6663_s14  ;;  %v6472_v63 = vld [vmem:[%s12457_s0 + $0x70] sm:$0xff]  ;;  %v6473_v56 = vld [vmem:[%s12457_s0 + $0xe0] sm:$0xff]  ;;  %s6667_s0 = smov [#allocation12]  }
 0x893   :  { %v5930_v27 = vpop.permute.xlu1 %5929 }
 0x894   :  { %v5942_v51 = vadd.f32 %v6459_v4, %v5930_v27 }
 0x896   :  { %6062 = vrot.lane.b32.xlu1 %v6056_v1, %s6666_s6  ;;  %6064 = vrot.lane.b32.xlu0 %v6058_v24, %s6666_s6 }
 0x89a   :  { %6066 = vrot.lane.b32.xlu1 %v6057_v17, %s6666_s6  ;;  %6068 = vrot.lane.b32.xlu0 %v6059_v32, %s6666_s6 }
 0x89e   :  { %6070 = vrot.lane.b32.xlu1 %v6061_v48, %s6666_s6  ;;  %6072 = vrot.lane.b32.xlu0 %v6060_v2, %s6666_s6 }
 0x8a2   :  { %6205 = vrot.lane.b32.xlu1 %v6199_v35, %s6666_s6  ;;  %6207 = vrot.lane.b32.xlu0 %v6201_v46, %s6666_s6 }
 0x8a6   :  { %6209 = vrot.lane.b32.xlu1 %v6200_v49, %s6666_s6  ;;  %6211 = vrot.lane.b32.xlu0 %v6202_v61, %s6666_s6 }
 0x8aa   :  { %6213 = vrot.lane.b32.xlu1 %v6204_v31, %s6666_s6  ;;  %6215 = vrot.lane.b32.xlu0 %v6203_v36, %s6666_s6 }
 0x8ae   :  { %5959 = vrot.lane.b32.xlu1 %v5942_v51, %s6663_s14 }
 0x8fc   :  { %v5950_v13 = vpop.permute.xlu0 %5949 }
 0x8fd   :  { %5968 = vst.msk [vmem:[#allocation12 + $0xa] sm:$0xc0] %vm5823_vm6, %v5950_v13 }
 0x900   :  { %v5952_v18 = vpop.permute.xlu1 %5951  ;;  %v5954_v23 = vpop.permute.xlu0 %5953 }
 0x901   :  { %5969 = vst.msk [vmem:[#allocation12 + $0x12] sm:$0xff] %vm5691_vm12, %v5952_v18 }
 0x902   :  { %5970 = vst.msk [vmem:[#allocation12 + $0x1a] sm:$0x3f] %vm5826_vm7, %v5954_v23 }
 0x904   :  { %v5956_v39 = vpop.permute.xlu1 %5955  ;;  %v5958_v15 = vpop.permute.xlu0 %5957 }
 0x905   :  { %5971 = vst.msk [vmem:[#allocation12 + $0x4a] sm:$0xc0] %vm5823_vm6, %v5956_v39 }
 0x906   :  { %5972 = vst.msk [vmem:[#allocation12 + $0x52] sm:$0xff] %vm5691_vm12, %v5958_v15 }
 0x908   :  { %v6063_v54 = vpop.permute.xlu1 %6062  ;;  %v6065_v7 = vpop.permute.xlu0 %6064 }
 0x909   :  { %v6080_v33 = vadd.f32 %v6462_v12, %v6063_v54  ;;  %v6081_v50 = vadd.f32 %v6463_v9, %v6065_v7 }
 0x90b   :  { %6092 = vrot.lane.b32.xlu0 %v6080_v33, %s6663_s14  ;;  %6094 = vrot.lane.b32.xlu1 %v6081_v50, %s6663_s14 }
 0x90c   :  { %v6067_v47 = vpop.permute.xlu1 %6066  ;;  %v6069_v5 = vpop.permute.xlu0 %6068 }
 0x90d   :  { %v6082_v3 = vadd.f32 %v6464_v60, %v6067_v47  ;;  %v6083_v55 = vadd.f32 %v6465_v43, %v6069_v5 }
 0x90f   :  { %6096 = vrot.lane.b32.xlu0 %v6082_v3, %s6663_s14  ;;  %6098 = vrot.lane.b32.xlu1 %v6083_v55, %s6663_s14 }
 0x910   :  { %v6071_v62 = vpop.permute.xlu1 %6070  ;;  %v6073_v25 = vpop.permute.xlu0 %6072 }
 0x911   :  { %v6084_v41 = vadd.f32 %v6466_v37, %v6071_v62  ;;  %v6085_v57 = vadd.f32 %v6467_v10, %v6073_v25 }
 0x913   :  { %6100 = vrot.lane.b32.xlu0 %v6084_v41, %s6663_s14  ;;  %6102 = vrot.lane.b32.xlu1 %v6085_v57, %s6663_s14 }
 0x914   :  { %v6206_v45 = vpop.permute.xlu1 %6205  ;;  %v6208_v0 = vpop.permute.xlu0 %6207 }
 0x915   :  { %v6223_v38 = vadd.f32 %v6470_v53, %v6206_v45  ;;  %v6224_v21 = vadd.f32 %v6471_v16, %v6208_v0 }
 0x917   :  { %6235 = vrot.lane.b32.xlu0 %v6223_v38, %s6663_s14  ;;  %6237 = vrot.lane.b32.xlu1 %v6224_v21, %s6663_s14 }
 0x918   :  { %v6210_v1 = vpop.permute.xlu1 %6209  ;;  %v6212_v17 = vpop.permute.xlu0 %6211 }
 0x919   :  { %v6225_v19 = vadd.f32 %v6472_v63, %v6210_v1  ;;  %v6226_v29 = vadd.f32 %v6473_v56, %v6212_v17 }
 0x91b   :  { %6239 = vrot.lane.b32.xlu0 %v6225_v19, %s6663_s14  ;;  %6241 = vrot.lane.b32.xlu1 %v6226_v29, %s6663_s14 }
 0x91c   :  { %v6214_v24 = vpop.permute.xlu1 %6213  ;;  %v6216_v52 = vpop.permute.xlu0 %6215 }
 0x91d   :  { %v6227_v26 = vadd.f32 %v6474_v22, %v6214_v24  ;;  %v6228_v14 = vadd.f32 %v6475_v44, %v6216_v52 }
 0x91f   :  { %6243 = vrot.lane.b32.xlu0 %v6227_v26, %s6663_s14  ;;  %6245 = vrot.lane.b32.xlu1 %v6228_v14, %s6663_s14  ;;  %s6265_s14 = sshll.u32 %s6667_s0, 4  ;;  %s6266_s14 = int_to_ptr.vmem [resolvable:$true] %s6265_s14 }
 0x920   :  { %v5960_v11 = vpop.permute.xlu1 %5959  ;;  %s6628_s24 = scalar_lea.vmem %s6266_s14, 2048  ;;  %p6633_p12 = scmp.lt.s32.totalorder %s6266_s14, %s6266_s14 }
 0x921   :  { %5973 = vst.msk [vmem:[#allocation12 + $0x5a] sm:$0x3f] %vm5826_vm7, %v5960_v11  ;;  %p6629_p11 = scmp.ne.s32.totalorder %s6266_s14, %s6628_s24  ;;  %p6634_p13 = scmp.lt.s32.totalorder %s6628_s24, %s6628_s24 }
 0x923   :  { %p6635_p0 = por %p6634_p13, %p6633_p12 }
 0x925   :  { %p6636_p1 = pnand %p6635_p0, %p6629_p11 }
 0x97d   :  { %v6095_v6 = vpop.permute.xlu1 %6094  ;;  %v6093_v8 = vpop.permute.xlu0 %6092 }
 0x97e   :  { %6112 = vst.msk [vmem:[#allocation12 + $0x22] sm:$0xff] %vm5691_vm12, %v6095_v6 }
 0x97f   :  { %6111 = vst.msk [vmem:[#allocation12 + $0x1a] sm:$0xc0] %vm5823_vm6, %v6093_v8 }
 0x981   :  { %v6099_v32 = vpop.permute.xlu1 %6098  ;;  %v6097_v58 = vpop.permute.xlu0 %6096 }
 0x982   :  { %6114 = vst.msk [vmem:[#allocation12 + $0x5a] sm:$0xc0] %vm5823_vm6, %v6099_v32 }
 0x983   :  { %6113 = vst.msk [vmem:[#allocation12 + $0x2a] sm:$0x3f] %vm5826_vm7, %v6097_v58 }
 0x985   :  { %v6103_v2 = vpop.permute.xlu1 %6102  ;;  %v6101_v59 = vpop.permute.xlu0 %6100 }
 0x986   :  { %6116 = vst.msk [vmem:[#allocation12 + $0x6a] sm:$0x3f] %vm5826_vm7, %v6103_v2 }
 0x987   :  { %6115 = vst.msk [vmem:[#allocation12 + $0x62] sm:$0xff] %vm5691_vm12, %v6101_v59 }
 0x989   :  { %v6238_v40 = vpop.permute.xlu1 %6237  ;;  %v6236_v30 = vpop.permute.xlu0 %6235 }
 0x98a   :  { %6255 = vst.msk [vmem:[#allocation12 + $0x32] sm:$0xff] %vm5691_vm12, %v6238_v40 }
 0x98b   :  { %6254 = vst.msk [vmem:[#allocation12 + $0x2a] sm:$0xc0] %vm5823_vm6, %v6236_v30 }
 0x98d   :  { %v6242_v48 = vpop.permute.xlu1 %6241  ;;  %v6240_v35 = vpop.permute.xlu0 %6239 }
 0x98e   :  { %6257 = vst.msk [vmem:[#allocation12 + $0x6a] sm:$0xc0] %vm5823_vm6, %v6242_v48 }
 0x98f   :  { %6256 = vst.msk [vmem:[#allocation12 + $0x3a] sm:$0x3f] %vm5826_vm7, %v6240_v35 }
 0x991   :  { %v6246_v49 = vpop.permute.xlu1 %6245  ;;  %v6244_v28 = vpop.permute.xlu0 %6243 }
 0x992   :  { %6259 = vst.msk [vmem:[#allocation12 + $0x7a] sm:$0x3f] %vm5826_vm7, %v6246_v49 }
 0x993   :  { %6258 = vst.msk [vmem:[#allocation12 + $0x72] sm:$0xff] %vm5691_vm12, %v6244_v28 }
 0x994   :  { %6639 = shalt.err (!%p6636_p1)
}
 0x995   :  { %s6668_s26 = smov 128   ;;  %s6669_s27 = smov 8  }
 0x996   :  { %6271 = dma.vmem_to_hbm [thread:$0]  %s6266_s14, 2048, %s12464_s7, [#allocation4], %s6668_s26, %s6668_s26, %s6669_s27  }
 0x997   :  { %6654 = dma.done.wait [#allocation4], 2048  }
 0x998   :  { %6655 = vsyncadd [#allocation4], 4294965248 }
 0x999   :  { %6275 = vsyncpa [#allocation4], 1 }
 0x99a   :  { %6276 = vsyncpa [#allocation5], 1 }
 0x99b   :  { %6277 = vsyncpa [#allocation7], 1 }
 0x99c   :  { %6278 = vsyncpa [#allocation10], 1 }

</bundles_post_ra>
